<compile_context>
chip_gen: v5e
topology: v5e:2x2
jax: 0.10.0
libtpu: 0.0.40
codegen_flags: <defaults>
</compile_context>

<pallas_src>
import jax
import jax.numpy as jnp
from jax.experimental import pallas as pl
from jax.experimental.pallas import tpu as pltpu

EPS = 1e-5
LANE = 128
VMEM_LIMIT = 32 * 1024 * 1024     # explicit scoped-VMEM budget, safe on v5e/v6e/v7x


# ----------------------------- small helpers --------------------------------

def _round_up(x, m):
    return (x + m - 1) // m * m


def _pad_cols(a, width):
    if a.shape[1] >= width:
        return a
    return jnp.pad(a, ((0, 0), (0, width - a.shape[1])))


def _pad_rows(a, rows):
    if a.shape[0] >= rows:
        return a
    return jnp.pad(a, ((0, rows - a.shape[0]), (0, 0)))


def _pick_row_tile(n, target=512):
    """Largest multiple-of-8 divisor of n that is <= target (or n itself)."""
    if n <= target:
        return n
    t = target - target % 8
    while t >= 8:
        if n % t == 0:
            return t
        t -= 8
    return n


def _pick_k_tile(kp, target=512):
    """kp is a multiple of 128; largest multiple-of-128 divisor <= target."""
    if kp <= target:
        return kp
    t = target - target % 128
    while t >= 128:
        if kp % t == 0:
            return t
        t -= 128
    return kp


# ----------------------------- Pallas kernels -------------------------------

def upconv_kernel(x_ref, w_ref, b_ref, o_ref):
    # ConvTranspose3d(k=2, s=2) as a per-voxel matmul: (tm, Cin)bf16 @ (Cin, P)bf16.
    o_ref[...] = (
        jnp.dot(x_ref[...], w_ref[...], preferred_element_type=jnp.float32)
        + b_ref[...]
    )


def conv_matmul_kernel(p_ref, w_ref, b_ref, y_ref, s_ref, acc_ref):
    # Tiled im2col matmul with f32 accumulator.  On the last K step: add bias,
    # write the conv-output tile and the per-tile BN partials (row 0 = sum,
    # row 1 = sum of squares) so the global batch stats can be reduced outside.
    k = pl.program_id(1)

    @pl.when(k == 0)
    def _():
        acc_ref[...] = jnp.zeros_like(acc_ref)

    acc_ref[...] += jnp.dot(p_ref[...], w_ref[...],
                            preferred_element_type=jnp.float32)

    @pl.when(k == pl.num_programs(1) - 1)
    def _():
        yb = acc_ref[...] + b_ref[...]
        y_ref[...] = yb
        s_ref[...] = jnp.zeros_like(s_ref)
        s_ref[0:1, :] = jnp.sum(yb, axis=0, keepdims=True)
        s_ref[1:2, :] = jnp.sum(yb * yb, axis=0, keepdims=True)


def bn_relu_kernel(y_ref, sc_ref, sh_ref, o_ref):
    o_ref[...] = jnp.maximum(y_ref[...] * sc_ref[...] + sh_ref[...],
                             0.0).astype(o_ref.dtype)


def bn_relu_sub_kernel(y_ref, sc_ref, sh_ref, sub_ref, o_ref):
    z = jnp.maximum(y_ref[...] * sc_ref[...] + sh_ref[...], 0.0)
    o_ref[...] = (z - sub_ref[...]).astype(o_ref.dtype)


# ----------------------------- pallas_call wrappers --------------------------

def _upconv_matmul(x_bf16, w_bf16, b_row):
    mu, cin = x_bf16.shape
    p = w_bf16.shape[1]
    tm = _pick_row_tile(mu)
    return pl.pallas_call(
        upconv_kernel,
        out_shape=jax.ShapeDtypeStruct((mu, p), jnp.float32),
        grid_spec=pltpu.PrefetchScalarGridSpec(
            num_scalar_prefetch=0,
            grid=(mu // tm,),
            in_specs=[
                pl.BlockSpec((tm, cin), lambda m: (m, 0)),
                pl.BlockSpec((cin, p), lambda m: (0, 0)),
                pl.BlockSpec((1, p), lambda m: (0, 0)),
            ],
            out_specs=pl.BlockSpec((tm, p), lambda m: (m, 0)),
        ),
        compiler_params=pltpu.CompilerParams(
            dimension_semantics=("parallel",),
            vmem_limit_bytes=VMEM_LIMIT),
    )(x_bf16, w_bf16, b_row)


def _conv_partial(patches, w_mat, b_row, tm, tk, cp):
    m, kp = patches.shape
    gm, gk = m // tm, kp // tk
    return pl.pallas_call(
        conv_matmul_kernel,
        out_shape=(
            jax.ShapeDtypeStruct((m, cp), jnp.float32),        # conv output
            jax.ShapeDtypeStruct((gm * 8, cp), jnp.float32),   # per-tile BN partials
        ),
        grid_spec=pltpu.PrefetchScalarGridSpec(
            num_scalar_prefetch=0,
            grid=(gm, gk),
            in_specs=[
                pl.BlockSpec((tm, tk), lambda i, k: (i, k)),
                pl.BlockSpec((tk, cp), lambda i, k: (k, 0)),
                pl.BlockSpec((1, cp), lambda i, k: (0, 0)),
            ],
            out_specs=(
                pl.BlockSpec((tm, cp), lambda i, k: (i, 0)),
                pl.BlockSpec((8, cp), lambda i, k: (i, 0)),
            ),
            scratch_shapes=[pltpu.VMEM((tm, cp), jnp.float32)],
        ),
        compiler_params=pltpu.CompilerParams(
            dimension_semantics=("parallel", "arbitrary"),
            vmem_limit_bytes=VMEM_LIMIT),
    )(patches, w_mat, b_row)


def _bn_relu(y, scale, shift, out_dtype):
    m, cp = y.shape
    tm = _pick_row_tile(m)
    return pl.pallas_call(
        bn_relu_kernel,
        out_shape=jax.ShapeDtypeStruct((m, cp), out_dtype),
        grid_spec=pltpu.PrefetchScalarGridSpec(
            num_scalar_prefetch=0,
            grid=(m // tm,),
            in_specs=[
                pl.BlockSpec((tm, cp), lambda i: (i, 0)),
                pl.BlockSpec((1, cp), lambda i: (0, 0)),
                pl.BlockSpec((1, cp), lambda i: (0, 0)),
            ],
            out_specs=pl.BlockSpec((tm, cp), lambda i: (i, 0)),
        ),
        compiler_params=pltpu.CompilerParams(
            dimension_semantics=("parallel",),
            vmem_limit_bytes=VMEM_LIMIT),
    )(y, scale, shift)


def _bn_relu_sub(y, scale, shift, sub, out_dtype):
    m, cp = y.shape
    tm = _pick_row_tile(m)
    return pl.pallas_call(
        bn_relu_sub_kernel,
        out_shape=jax.ShapeDtypeStruct((m, cp), out_dtype),
        grid_spec=pltpu.PrefetchScalarGridSpec(
            num_scalar_prefetch=0,
            grid=(m // tm,),
            in_specs=[
                pl.BlockSpec((tm, cp), lambda i: (i, 0)),
                pl.BlockSpec((1, cp), lambda i: (0, 0)),
                pl.BlockSpec((1, cp), lambda i: (0, 0)),
                pl.BlockSpec((tm, cp), lambda i: (i, 0)),
            ],
            out_specs=pl.BlockSpec((tm, cp), lambda i: (i, 0)),
        ),
        compiler_params=pltpu.CompilerParams(
            dimension_semantics=("parallel",),
            vmem_limit_bytes=VMEM_LIMIT),
    )(y, scale, shift, sub)


# ------------------------------- JAX glue ------------------------------------

def _im2col_3d(x_ndhwc, k):
    """SAME-padded (pad=k//2) 3D im2col. Returns (N*D*H*W, k^3*C), dtype preserved."""
    n, d, h, w, c = x_ndhwc.shape
    pad = k // 2
    xp = jnp.pad(x_ndhwc, ((0, 0), (pad, pad), (pad, pad), (pad, pad), (0, 0)))
    cols = []
    for kd in range(k):
        for kh in range(k):
            for kw in range(k):
                cols.append(xp[:, kd:kd + d, kh:kh + h, kw:kw + w, :])
    p = jnp.concatenate(cols, axis=-1)
    return p.reshape(n * d * h * w, k * k * k * c)
# TODO(synk): stream the 125 conv taps straight from the un-expanded NDHWC
# activation (manual halo DMA / shifted windows) instead of materializing the
# im2col patch matrix in HBM.


def _conv_bn_stats(patches_bf16, w_mat_f32, bias, gamma, beta, cp):
    """Tiled conv matmul with split BatchNorm statistics.

    Returns (y, scale, shift): y is the raw conv output (M, cp) f32; scale/shift
    are folded BN affine rows (1, cp) built from the *global* batch statistics.
    """
    m, k = patches_bf16.shape
    kp = _round_up(k, LANE)
    tk = _pick_k_tile(kp)
    tm = _pick_row_tile(m)

    patches_p = _pad_cols(patches_bf16, kp)
    w_p = _pad_cols(_pad_rows(w_mat_f32, kp), cp).astype(jnp.bfloat16)
    b_row = _pad_cols(bias[None, :].astype(jnp.float32), cp)

    y, stats = _conv_partial(patches_p, w_p, b_row, tm, tk, cp)

    stats = stats.reshape(m // tm, 8, cp)
    s1 = jnp.sum(stats[:, 0, :], axis=0)                  # per-channel sum
    s2 = jnp.sum(stats[:, 1, :], axis=0)                  # per-channel sum of squares
    mean = s1 / m
    var = jnp.maximum(s2 / m - mean * mean, 0.0)          # biased (training) variance
    inv = jax.lax.rsqrt(var + EPS)

    g_p = _pad_cols(gamma[None, :].astype(jnp.float32), cp)[0]
    b_p = _pad_cols(beta[None, :].astype(jnp.float32), cp)[0]
    scale = (g_p * inv)[None, :]
    shift = (b_p - mean * g_p * inv)[None, :]
    return y, scale, shift


@jax.jit
def up_forward(x, x_conv, x_pool, params):
    """x: (N, Cin, D, H, W); x_conv: (N, Cin//2, 2D, 2H, 2W); x_pool: (N, Cout, 2D, 2H, 2W)."""
    w_up, b_up, w1, b1, g1, be1, w2, b2, g2, be2 = params
    n, cin, d, h, w = x.shape
    ch = w_up.shape[1]                     # cin // 2
    cout = w1.shape[0]
    cp_out = _round_up(cout, LANE)         # lane-dense padded output channels
    cp_up = _round_up(8 * ch, LANE)

    # ---- ConvTranspose3d(cin -> cin//2, k=2, s=2) as tiled per-voxel matmul ----
    mu = n * d * h * w
    x_cl = jnp.transpose(x, (0, 2, 3, 4, 1)).reshape(mu, cin).astype(jnp.bfloat16)
    w_up_mat = jnp.transpose(w_up, (0, 2, 3, 4, 1)).reshape(cin, 8 * ch)
    w_up_mat = _pad_cols(w_up_mat, cp_up).astype(jnp.bfloat16)
    b_up_row = _pad_cols(jnp.tile(b_up, 8)[None, :].astype(jnp.float32), cp_up)
    # TODO(synk): fold the 2x2x2 transpose-conv taps algebraically into conv1's
    # weights to skip this kernel and the interleave transpose entirely.
    y_up = _upconv_matmul(x_cl, w_up_mat, b_up_row)[:, :8 * ch]
    y_up = y_up.reshape(n, d, h, w, 2, 2, 2, ch)
    y_up = jnp.transpose(y_up, (0, 1, 4, 2, 5, 3, 6, 7)).reshape(
        n, 2 * d, 2 * h, 2 * w, ch)

    # ---- concat([up, x_conv], channel-last) ----
    xc = jnp.transpose(x_conv, (0, 2, 3, 4, 1))
    cat = jnp.concatenate([y_up, xc], axis=-1).astype(jnp.bfloat16)

    do, ho, wo = 2 * d, 2 * h, 2 * w
    m = n * do * ho * wo

    # ---- conv1 (5^3) + BN1 + ReLU ----
    p1 = _im2col_3d(cat, 5)                                       # (M, 125*cin) bf16
    w1_mat = jnp.transpose(w1, (2, 3, 4, 1, 0)).reshape(125 * cin, cout)
    y1, sc1, sh1 = _conv_bn_stats(p1, w1_mat, b1, g1, be1, cp_out)
    z1 = _bn_relu(y1, sc1, sh1, jnp.bfloat16)                     # (M, cp_out) bf16
    z1 = z1[:, :cout].reshape(n, do, ho, wo, cout)

    # ---- conv2 (5^3) + BN2 + ReLU, fused with the final "- x_pool" ----
    p2 = _im2col_3d(z1, 5)                                        # (M, 125*cout) bf16
    w2_mat = jnp.transpose(w2, (2, 3, 4, 1, 0)).reshape(125 * cout, cout)
    y2, sc2, sh2 = _conv_bn_stats(p2, w2_mat, b2, g2, be2, cp_out)
    sub = jnp.transpose(x_pool, (0, 2, 3, 4, 1)).reshape(m, cout)
    sub_p = _pad_cols(sub.astype(jnp.float32), cp_out)
    z2 = _bn_relu_sub(y2, sc2, sh2, sub_p, jnp.float32)           # (M, cp_out) f32

    out = z2[:, :cout].reshape(n, do, ho, wo, cout)
    return jnp.transpose(out, (0, 4, 1, 2, 3))                    # back to NCDHW


# ------------------------- pure-JAX reference (f32) --------------------------

def up_ref(x, x_conv, x_pool, params):
    w_up, b_up, w1, b1, g1, be1, w2, b2, g2, be2 = params
    n, cin, d, h, w = x.shape
    ch = w_up.shape[1]

    # ConvTranspose3d(k=2, s=2)
    y = jnp.einsum('ncdhw,copqr->ndphqwro', x, w_up)
    y = y.reshape(n, 2 * d, 2 * h, 2 * w, ch) + b_up

    xc = jnp.transpose(x_conv, (0, 2, 3, 4, 1))
    cat = jnp.concatenate([y, xc], axis=-1)

    def conv3d(a, wgt, b):
        wt = jnp.transpose(wgt, (2, 3, 4, 1, 0))                  # DHWIO
        out = jax.lax.conv_general_dilated(
            a, wt, window_strides=(1, 1, 1),
            padding=((2, 2), (2, 2), (2, 2)),
            dimension_numbers=('NDHWC', 'DHWIO', 'NDHWC'),
            precision=jax.lax.Precision.HIGHEST)
        return out + b

    def bn_relu(a, g, be):
        mean = jnp.mean(a, axis=(0, 1, 2, 3), keepdims=True)
        var = jnp.mean((a - mean) ** 2, axis=(0, 1, 2, 3), keepdims=True)
        return jnp.maximum((a - mean) * jax.lax.rsqrt(var + EPS) * g + be, 0.0)

    z = bn_relu(conv3d(cat, w1, b1), g1, be1)
    z = bn_relu(conv3d(z, w2, b2), g2, be2)
    z = z - jnp.transpose(x_pool, (0, 2, 3, 4, 1))
    return jnp.transpose(z, (0, 4, 1, 2, 3))


# --------------------------------- main --------------------------------------

if __name__ == "__main__":
    key = jax.random.PRNGKey(0)
    N, in_ch, out_ch = 2, 8, 4
    D = H = W = 4
    Ch = in_ch // 2
    ks = jax.random.split(key, 8)

    x = jax.random.normal(ks[0], (N, in_ch, D, H, W), jnp.float32)
    x_conv = jax.random.normal(ks[1], (N, Ch, 2 * D, 2 * H, 2 * W), jnp.float32)
    x_pool = jax.random.normal(ks[2], (N, out_ch, 2 * D, 2 * H, 2 * W), jnp.float32)

    # Deterministic kaiming-style init (synthetic, matches shapes of __init__)
    w_up = jax.random.normal(ks[3], (in_ch, Ch, 2, 2, 2), jnp.float32) * (2.0 / (Ch * 8)) ** 0.5
    b_up = jnp.zeros((Ch,), jnp.float32)
    w1 = jax.random.normal(ks[4], (out_ch, in_ch, 5, 5, 5), jnp.float32) * (2.0 / (in_ch * 125)) ** 0.5
    b1 = jnp.zeros((out_ch,), jnp.float32)
    w2 = jax.random.normal(ks[5], (out_ch, out_ch, 5, 5, 5), jnp.float32) * (2.0 / (out_ch * 125)) ** 0.5
    b2 = jnp.zeros((out_ch,), jnp.float32)
    g1 = jnp.ones((out_ch,), jnp.float32); be1 = jnp.zeros((out_ch,), jnp.float32)
    g2 = jnp.ones((out_ch,), jnp.float32); be2 = jnp.zeros((out_ch,), jnp.float32)
    params = (w_up, b_up, w1, b1, g1, be1, w2, b2, g2, be2)

    out = up_forward(x, x_conv, x_pool, params)
    out = jax.block_until_ready(out)

    assert out.shape == (N, out_ch, 2 * D, 2 * H, 2 * W)
    assert bool(jnp.all(jnp.isfinite(out)))

    # Reference is full-f32/HIGHEST precision; kernel matmuls use bf16 inputs with
    # f32 accumulation, so allow a bf16-appropriate tolerance on unit-variance outputs.
    ref = up_ref(x, x_conv, x_pool, params)
    max_err = float(jnp.max(jnp.abs(out - ref)))
    mean_err = float(jnp.mean(jnp.abs(out - ref)))
    assert max_err < 1.5e-1, f"mismatch vs reference, max |err| = {max_err}"
    assert mean_err < 2e-2, f"mismatch vs reference, mean |err| = {mean_err}"

    print("KERNEL_OK")
</pallas_src>

<mosaic_0001>
module attributes {stable_mosaic.version = 11 : i64} {
  func.func @upconv_kernel(%arg0: i32, %arg1: memref<128x8xbf16, #tpu.memory_space<vmem>>, %arg2: memref<8x128xbf16, #tpu.memory_space<vmem>>, %arg3: memref<1x128xf32, #tpu.memory_space<vmem>>, %arg4: memref<128x128xf32, #tpu.memory_space<vmem>>) attributes {dimension_semantics = [#tpu.dimension_semantics<parallel>], iteration_bounds = array<i64: 1>, scalar_prefetch = 0 : i64, scratch_operands = 0 : i64, tpu.core_type = #tpu.core_type<tc>, window_params = [{transform_indices = @transform_0, window_bounds = array<i64: 128, 8>}, {pipeline_mode = #tpu.pipeline_mode<synchronous>, transform_indices = @transform_1, window_bounds = array<i64: 8, 128>}, {pipeline_mode = #tpu.pipeline_mode<synchronous>, transform_indices = @transform_2, window_bounds = array<i64: 1, 128>}, {transform_indices = @transform_3, window_bounds = array<i64: 128, 128>}]} {
    %c0 = arith.constant 0 : index
    %c0_0 = arith.constant 0 : index
    %0 = vector.load %arg1[%c0, %c0_0] : memref<128x8xbf16, #tpu.memory_space<vmem>>, vector<128x8xbf16>
    %c0_1 = arith.constant 0 : index
    %c0_2 = arith.constant 0 : index
    %1 = vector.load %arg2[%c0_1, %c0_2] : memref<8x128xbf16, #tpu.memory_space<vmem>>, vector<8x128xbf16>
    %cst = arith.constant dense<0.000000e+00> : vector<128x128xf32>
    %2 = tpu.matmul %0, %1, %cst {dimension_numbers = #tpu.dot_dimension_numbers<[1], [0], [0], [1], [0, 0, 1, 1], [], []>} : vector<128x8xbf16>, vector<8x128xbf16>, vector<128x128xf32> -> vector<128x128xf32>
    %c0_3 = arith.constant 0 : index
    %c0_4 = arith.constant 0 : index
    %3 = vector.load %arg3[%c0_3, %c0_4] : memref<1x128xf32, #tpu.memory_space<vmem>>, vector<1x128xf32>
    %4 = vector.broadcast %3 : vector<1x128xf32> to vector<128x128xf32>
    %5 = arith.addf %2, %4 : vector<128x128xf32>
    %c0_5 = arith.constant 0 : index
    %c0_6 = arith.constant 0 : index
    %6 = vector.load %arg4[%c0_5, %c0_6] : memref<128x128xf32, #tpu.memory_space<vmem>>, vector<128x128xf32>
    tpu.vector_store %arg4[%c0_5, %c0_6], %5 {strides = array<i32>} : memref<128x128xf32, #tpu.memory_space<vmem>>, vector<128x128xf32>,
    return
  }
  func.func @transform_0(%arg0: i32) -> (i32, i32) {
    %c0_i32 = arith.constant 0 : i32
    %c0_i32_0 = arith.constant 0 : i32
    return %arg0, %c0_i32 : i32, i32
  }
  func.func @transform_1(%arg0: i32) -> (i32, i32) {
    %c0_i32 = arith.constant 0 : i32
    %c0_i32_0 = arith.constant 0 : i32
    %c0_i32_1 = arith.constant 0 : i32
    return %c0_i32, %c0_i32_0 : i32, i32
  }
  func.func @transform_2(%arg0: i32) -> (i32, i32) {
    %c0_i32 = arith.constant 0 : i32
    %c0_i32_0 = arith.constant 0 : i32
    %c0_i32_1 = arith.constant 0 : i32
    return %c0_i32, %c0_i32_0 : i32, i32
  }
  func.func @transform_3(%arg0: i32) -> (i32, i32) {
    %c0_i32 = arith.constant 0 : i32
    %c0_i32_0 = arith.constant 0 : i32
    return %arg0, %c0_i32 : i32, i32
  }
}

module attributes {stable_mosaic.version = 11 : i64} {
  func.func @conv_matmul_kernel(%arg0: i32, %arg1: i32, %arg2: memref<512x512xbf16, #tpu.memory_space<vmem>>, %arg3: memref<512x128xbf16, #tpu.memory_space<vmem>>, %arg4: memref<1x128xf32, #tpu.memory_space<vmem>>, %arg5: memref<512x128xf32, #tpu.memory_space<vmem>>, %arg6: memref<8x128xf32, #tpu.memory_space<vmem>>, %arg7: memref<512x128xf32, #tpu.memory_space<vmem>>) attributes {dimension_semantics = [#tpu.dimension_semantics<parallel>, #tpu.dimension_semantics<arbitrary>], iteration_bounds = array<i64: 2, 2>, scalar_prefetch = 0 : i64, scratch_operands = 1 : i64, tpu.core_type = #tpu.core_type<tc>, window_params = [{transform_indices = @transform_0, window_bounds = array<i64: 512, 512>}, {transform_indices = @transform_1, window_bounds = array<i64: 512, 128>}, {pipeline_mode = #tpu.pipeline_mode<synchronous>, transform_indices = @transform_2, window_bounds = array<i64: 1, 128>}, {transform_indices = @transform_3, window_bounds = array<i64: 512, 128>}, {transform_indices = @transform_4, window_bounds = array<i64: 8, 128>}]} {
    %c0_i32 = arith.constant 0 : i32
    %0 = arith.cmpi eq, %arg1, %c0_i32 : i32
    %1 = arith.extui %0 : i1 to i32
    %c0_i32_0 = arith.constant 0 : i32
    %2 = arith.cmpi ne, %1, %c0_i32_0 : i32
    scf.if %2 {
      %cst_9 = arith.constant 0.000000e+00 : f32
      %12 = vector.broadcast %cst_9 : f32 to vector<512x128xf32>
      %c0_10 = arith.constant 0 : index
      %c0_11 = arith.constant 0 : index
      %13 = vector.load %arg7[%c0_10, %c0_11] : memref<512x128xf32, #tpu.memory_space<vmem>>, vector<512x128xf32>
      tpu.vector_store %arg7[%c0_10, %c0_11], %12 {strides = array<i32>} : memref<512x128xf32, #tpu.memory_space<vmem>>, vector<512x128xf32>,
    } else {
    }
    %c0 = arith.constant 0 : index
    %c0_1 = arith.constant 0 : index
    %3 = vector.load %arg7[%c0, %c0_1] : memref<512x128xf32, #tpu.memory_space<vmem>>, vector<512x128xf32>
    %c0_2 = arith.constant 0 : index
    %c0_3 = arith.constant 0 : index
    %4 = vector.load %arg2[%c0_2, %c0_3] : memref<512x512xbf16, #tpu.memory_space<vmem>>, vector<512x512xbf16>
    %c0_4 = arith.constant 0 : index
    %c0_5 = arith.constant 0 : index
    %5 = vector.load %arg3[%c0_4, %c0_5] : memref<512x128xbf16, #tpu.memory_space<vmem>>, vector<512x128xbf16>
    %cst = arith.constant dense<0.000000e+00> : vector<512x128xf32>
    %6 = tpu.matmul %4, %5, %cst {dimension_numbers = #tpu.dot_dimension_numbers<[1], [0], [0], [1], [0, 0, 1, 1], [], []>} : vector<512x512xbf16>, vector<512x128xbf16>, vector<512x128xf32> -> vector<512x128xf32>
    %7 = arith.addf %3, %6 : vector<512x128xf32>
    %c0_6 = arith.constant 0 : index
    %c0_7 = arith.constant 0 : index
    %8 = vector.load %arg7[%c0_6, %c0_7] : memref<512x128xf32, #tpu.memory_space<vmem>>, vector<512x128xf32>
    tpu.vector_store %arg7[%c0_6, %c0_7], %7 {strides = array<i32>} : memref<512x128xf32, #tpu.memory_space<vmem>>, vector<512x128xf32>,
    %c1_i32 = arith.constant 1 : i32
    %9 = arith.cmpi eq, %arg1, %c1_i32 : i32
    %10 = arith.extui %9 : i1 to i32
    %c0_i32_8 = arith.constant 0 : i32
    %11 = arith.cmpi ne, %10, %c0_i32_8 : i32
    scf.if %11 {
      %c0_9 = arith.constant 0 : index
      %c0_10 = arith.constant 0 : index
      %12 = vector.load %arg7[%c0_9, %c0_10] : memref<512x128xf32, #tpu.memory_space<vmem>>, vector<512x128xf32>
      %c0_11 = arith.constant 0 : index
      %c0_12 = arith.constant 0 : index
      %13 = vector.load %arg4[%c0_11, %c0_12] : memref<1x128xf32, #tpu.memory_space<vmem>>, vector<1x128xf32>
      %14 = vector.broadcast %13 : vector<1x128xf32> to vector<512x128xf32>
      %15 = arith.addf %12, %14 : vector<512x128xf32>
      %c0_13 = arith.constant 0 : index
      %c0_14 = arith.constant 0 : index
      %16 = vector.load %arg5[%c0_13, %c0_14] : memref<512x128xf32, #tpu.memory_space<vmem>>, vector<512x128xf32>
      tpu.vector_store %arg5[%c0_13, %c0_14], %15 {strides = array<i32>} : memref<512x128xf32, #tpu.memory_space<vmem>>, vector<512x128xf32>,
      %cst_15 = arith.constant 0.000000e+00 : f32
      %17 = vector.broadcast %cst_15 : f32 to vector<8x128xf32>
      %c0_16 = arith.constant 0 : index
      %c0_17 = arith.constant 0 : index
      %18 = vector.load %arg6[%c0_16, %c0_17] : memref<8x128xf32, #tpu.memory_space<vmem>>, vector<8x128xf32>
      tpu.vector_store %arg6[%c0_16, %c0_17], %17 {strides = array<i32>} : memref<8x128xf32, #tpu.memory_space<vmem>>, vector<8x128xf32>,
      %cst_18 = arith.constant dense<0.000000e+00> : vector<128xf32>
      %19 = vector.multi_reduction <add>, %15, %cst_18 [0] : vector<512x128xf32> to vector<128xf32>
      %20 = vector.shape_cast %19 : vector<128xf32> to vector<1x128xf32>
      %c0_19 = arith.constant 0 : index
      %c0_20 = arith.constant 0 : index
      %21 = vector.load %arg6[%c0_19, %c0_20] : memref<8x128xf32, #tpu.memory_space<vmem>>, vector<1x128xf32>
      tpu.vector_store %arg6[%c0_19, %c0_20], %20 {strides = array<i32>} : memref<8x128xf32, #tpu.memory_space<vmem>>, vector<1x128xf32>,
      %22 = arith.mulf %15, %15 : vector<512x128xf32>
      %cst_21 = arith.constant dense<0.000000e+00> : vector<128xf32>
      %23 = vector.multi_reduction <add>, %22, %cst_21 [0] : vector<512x128xf32> to vector<128xf32>
      %24 = vector.shape_cast %23 : vector<128xf32> to vector<1x128xf32>
      %c1 = arith.constant 1 : index
      %c0_22 = arith.constant 0 : index
      %25 = vector.load %arg6[%c1, %c0_22] : memref<8x128xf32, #tpu.memory_space<vmem>>, vector<1x128xf32>
      tpu.vector_store %arg6[%c1, %c0_22], %24 {strides = array<i32>} : memref<8x128xf32, #tpu.memory_space<vmem>>, vector<1x128xf32>,
    } else {
    }
    return
  }
  func.func @transform_0(%arg0: i32, %arg1: i32) -> (i32, i32) {
    %c0_i32 = arith.constant 0 : i32
    return %arg0, %arg1 : i32, i32
  }
  func.func @transform_1(%arg0: i32, %arg1: i32) -> (i32, i32) {
    %c0_i32 = arith.constant 0 : i32
    %c0_i32_0 = arith.constant 0 : i32
    return %arg1, %c0_i32 : i32, i32
  }
  func.func @transform_2(%arg0: i32, %arg1: i32) -> (i32, i32) {
    %c0_i32 = arith.constant 0 : i32
    %c0_i32_0 = arith.constant 0 : i32
    %c0_i32_1 = arith.constant 0 : i32
    return %c0_i32, %c0_i32_0 : i32, i32
  }
  func.func @transform_3(%arg0: i32, %arg1: i32) -> (i32, i32) {
    %c0_i32 = arith.constant 0 : i32
    %c0_i32_0 = arith.constant 0 : i32
    return %arg0, %c0_i32 : i32, i32
  }
  func.func @transform_4(%arg0: i32, %arg1: i32) -> (i32, i32) {
    %c0_i32 = arith.constant 0 : i32
    %c0_i32_0 = arith.constant 0 : i32
    return %arg0, %c0_i32 : i32, i32
  }
}

module attributes {stable_mosaic.version = 11 : i64} {
  func.func @bn_relu_kernel(%arg0: i32, %arg1: memref<512x128xf32, #tpu.memory_space<vmem>>, %arg2: memref<1x128xf32, #tpu.memory_space<vmem>>, %arg3: memref<1x128xf32, #tpu.memory_space<vmem>>, %arg4: memref<512x128xbf16, #tpu.memory_space<vmem>>) attributes {dimension_semantics = [#tpu.dimension_semantics<parallel>], iteration_bounds = array<i64: 2>, scalar_prefetch = 0 : i64, scratch_operands = 0 : i64, tpu.core_type = #tpu.core_type<tc>, window_params = [{transform_indices = @transform_0, window_bounds = array<i64: 512, 128>}, {pipeline_mode = #tpu.pipeline_mode<synchronous>, transform_indices = @transform_1, window_bounds = array<i64: 1, 128>}, {pipeline_mode = #tpu.pipeline_mode<synchronous>, transform_indices = @transform_2, window_bounds = array<i64: 1, 128>}, {transform_indices = @transform_3, window_bounds = array<i64: 512, 128>}]} {
    %c0 = arith.constant 0 : index
    %c0_0 = arith.constant 0 : index
    %0 = vector.load %arg1[%c0, %c0_0] : memref<512x128xf32, #tpu.memory_space<vmem>>, vector<512x128xf32>
    %c0_1 = arith.constant 0 : index
    %c0_2 = arith.constant 0 : index
    %1 = vector.load %arg2[%c0_1, %c0_2] : memref<1x128xf32, #tpu.memory_space<vmem>>, vector<1x128xf32>
    %2 = vector.broadcast %1 : vector<1x128xf32> to vector<512x128xf32>
    %3 = arith.mulf %0, %2 : vector<512x128xf32>
    %c0_3 = arith.constant 0 : index
    %c0_4 = arith.constant 0 : index
    %4 = vector.load %arg3[%c0_3, %c0_4] : memref<1x128xf32, #tpu.memory_space<vmem>>, vector<1x128xf32>
    %5 = vector.broadcast %4 : vector<1x128xf32> to vector<512x128xf32>
    %6 = arith.addf %3, %5 : vector<512x128xf32>
    %cst = arith.constant 0.000000e+00 : f32
    %7 = vector.broadcast %cst : f32 to vector<512x128xf32>
    %8 = arith.maximumf %6, %7 : vector<512x128xf32>
    %9 = arith.truncf %8 : vector<512x128xf32> to vector<512x128xbf16>
    %c0_5 = arith.constant 0 : index
    %c0_6 = arith.constant 0 : index
    %10 = vector.load %arg4[%c0_5, %c0_6] : memref<512x128xbf16, #tpu.memory_space<vmem>>, vector<512x128xbf16>
    tpu.vector_store %arg4[%c0_5, %c0_6], %9 {strides = array<i32>} : memref<512x128xbf16, #tpu.memory_space<vmem>>, vector<512x128xbf16>,
    return
  }
  func.func @transform_0(%arg0: i32) -> (i32, i32) {
    %c0_i32 = arith.constant 0 : i32
    %c0_i32_0 = arith.constant 0 : i32
    return %arg0, %c0_i32 : i32, i32
  }
  func.func @transform_1(%arg0: i32) -> (i32, i32) {
    %c0_i32 = arith.constant 0 : i32
    %c0_i32_0 = arith.constant 0 : i32
    %c0_i32_1 = arith.constant 0 : i32
    return %c0_i32, %c0_i32_0 : i32, i32
  }
  func.func @transform_2(%arg0: i32) -> (i32, i32) {
    %c0_i32 = arith.constant 0 : i32
    %c0_i32_0 = arith.constant 0 : i32
    %c0_i32_1 = arith.constant 0 : i32
    return %c0_i32, %c0_i32_0 : i32, i32
  }
  func.func @transform_3(%arg0: i32) -> (i32, i32) {
    %c0_i32 = arith.constant 0 : i32
    %c0_i32_0 = arith.constant 0 : i32
    return %arg0, %c0_i32 : i32, i32
  }
}

module attributes {stable_mosaic.version = 11 : i64} {
  func.func @conv_matmul_kernel(%arg0: i32, %arg1: i32, %arg2: memref<512x512xbf16, #tpu.memory_space<vmem>>, %arg3: memref<512x128xbf16, #tpu.memory_space<vmem>>, %arg4: memref<1x128xf32, #tpu.memory_space<vmem>>, %arg5: memref<512x128xf32, #tpu.memory_space<vmem>>, %arg6: memref<8x128xf32, #tpu.memory_space<vmem>>, %arg7: memref<512x128xf32, #tpu.memory_space<vmem>>) attributes {dimension_semantics = [#tpu.dimension_semantics<parallel>, #tpu.dimension_semantics<arbitrary>], iteration_bounds = array<i64: 2, 1>, scalar_prefetch = 0 : i64, scratch_operands = 1 : i64, tpu.core_type = #tpu.core_type<tc>, window_params = [{transform_indices = @transform_0, window_bounds = array<i64: 512, 512>}, {transform_indices = @transform_1, window_bounds = array<i64: 512, 128>}, {pipeline_mode = #tpu.pipeline_mode<synchronous>, transform_indices = @transform_2, window_bounds = array<i64: 1, 128>}, {transform_indices = @transform_3, window_bounds = array<i64: 512, 128>}, {transform_indices = @transform_4, window_bounds = array<i64: 8, 128>}]} {
    %c0_i32 = arith.constant 0 : i32
    %0 = arith.cmpi eq, %arg1, %c0_i32 : i32
    %1 = arith.extui %0 : i1 to i32
    %c0_i32_0 = arith.constant 0 : i32
    %2 = arith.cmpi ne, %1, %c0_i32_0 : i32
    scf.if %2 {
      %cst_10 = arith.constant 0.000000e+00 : f32
      %12 = vector.broadcast %cst_10 : f32 to vector<512x128xf32>
      %c0_11 = arith.constant 0 : index
      %c0_12 = arith.constant 0 : index
      %13 = vector.load %arg7[%c0_11, %c0_12] : memref<512x128xf32, #tpu.memory_space<vmem>>, vector<512x128xf32>
      tpu.vector_store %arg7[%c0_11, %c0_12], %12 {strides = array<i32>} : memref<512x128xf32, #tpu.memory_space<vmem>>, vector<512x128xf32>,
    } else {
    }
    %c0 = arith.constant 0 : index
    %c0_1 = arith.constant 0 : index
    %3 = vector.load %arg7[%c0, %c0_1] : memref<512x128xf32, #tpu.memory_space<vmem>>, vector<512x128xf32>
    %c0_2 = arith.constant 0 : index
    %c0_3 = arith.constant 0 : index
    %4 = vector.load %arg2[%c0_2, %c0_3] : memref<512x512xbf16, #tpu.memory_space<vmem>>, vector<512x512xbf16>
    %c0_4 = arith.constant 0 : index
    %c0_5 = arith.constant 0 : index
    %5 = vector.load %arg3[%c0_4, %c0_5] : memref<512x128xbf16, #tpu.memory_space<vmem>>, vector<512x128xbf16>
    %cst = arith.constant dense<0.000000e+00> : vector<512x128xf32>
    %6 = tpu.matmul %4, %5, %cst {dimension_numbers = #tpu.dot_dimension_numbers<[1], [0], [0], [1], [0, 0, 1, 1], [], []>} : vector<512x512xbf16>, vector<512x128xbf16>, vector<512x128xf32> -> vector<512x128xf32>
    %7 = arith.addf %3, %6 : vector<512x128xf32>
    %c0_6 = arith.constant 0 : index
    %c0_7 = arith.constant 0 : index
    %8 = vector.load %arg7[%c0_6, %c0_7] : memref<512x128xf32, #tpu.memory_space<vmem>>, vector<512x128xf32>
    tpu.vector_store %arg7[%c0_6, %c0_7], %7 {strides = array<i32>} : memref<512x128xf32, #tpu.memory_space<vmem>>, vector<512x128xf32>,
    %c0_i32_8 = arith.constant 0 : i32
    %9 = arith.cmpi eq, %arg1, %c0_i32_8 : i32
    %10 = arith.extui %9 : i1 to i32
    %c0_i32_9 = arith.constant 0 : i32
    %11 = arith.cmpi ne, %10, %c0_i32_9 : i32
    scf.if %11 {
      %c0_10 = arith.constant 0 : index
      %c0_11 = arith.constant 0 : index
      %12 = vector.load %arg7[%c0_10, %c0_11] : memref<512x128xf32, #tpu.memory_space<vmem>>, vector<512x128xf32>
      %c0_12 = arith.constant 0 : index
      %c0_13 = arith.constant 0 : index
      %13 = vector.load %arg4[%c0_12, %c0_13] : memref<1x128xf32, #tpu.memory_space<vmem>>, vector<1x128xf32>
      %14 = vector.broadcast %13 : vector<1x128xf32> to vector<512x128xf32>
      %15 = arith.addf %12, %14 : vector<512x128xf32>
      %c0_14 = arith.constant 0 : index
      %c0_15 = arith.constant 0 : index
      %16 = vector.load %arg5[%c0_14, %c0_15] : memref<512x128xf32, #tpu.memory_space<vmem>>, vector<512x128xf32>
      tpu.vector_store %arg5[%c0_14, %c0_15], %15 {strides = array<i32>} : memref<512x128xf32, #tpu.memory_space<vmem>>, vector<512x128xf32>,
      %cst_16 = arith.constant 0.000000e+00 : f32
      %17 = vector.broadcast %cst_16 : f32 to vector<8x128xf32>
      %c0_17 = arith.constant 0 : index
      %c0_18 = arith.constant 0 : index
      %18 = vector.load %arg6[%c0_17, %c0_18] : memref<8x128xf32, #tpu.memory_space<vmem>>, vector<8x128xf32>
      tpu.vector_store %arg6[%c0_17, %c0_18], %17 {strides = array<i32>} : memref<8x128xf32, #tpu.memory_space<vmem>>, vector<8x128xf32>,
      %cst_19 = arith.constant dense<0.000000e+00> : vector<128xf32>
      %19 = vector.multi_reduction <add>, %15, %cst_19 [0] : vector<512x128xf32> to vector<128xf32>
      %20 = vector.shape_cast %19 : vector<128xf32> to vector<1x128xf32>
      %c0_20 = arith.constant 0 : index
      %c0_21 = arith.constant 0 : index
      %21 = vector.load %arg6[%c0_20, %c0_21] : memref<8x128xf32, #tpu.memory_space<vmem>>, vector<1x128xf32>
      tpu.vector_store %arg6[%c0_20, %c0_21], %20 {strides = array<i32>} : memref<8x128xf32, #tpu.memory_space<vmem>>, vector<1x128xf32>,
      %22 = arith.mulf %15, %15 : vector<512x128xf32>
      %cst_22 = arith.constant dense<0.000000e+00> : vector<128xf32>
      %23 = vector.multi_reduction <add>, %22, %cst_22 [0] : vector<512x128xf32> to vector<128xf32>
      %24 = vector.shape_cast %23 : vector<128xf32> to vector<1x128xf32>
      %c1 = arith.constant 1 : index
      %c0_23 = arith.constant 0 : index
      %25 = vector.load %arg6[%c1, %c0_23] : memref<8x128xf32, #tpu.memory_space<vmem>>, vector<1x128xf32>
      tpu.vector_store %arg6[%c1, %c0_23], %24 {strides = array<i32>} : memref<8x128xf32, #tpu.memory_space<vmem>>, vector<1x128xf32>,
    } else {
    }
    return
  }
  func.func @transform_0(%arg0: i32, %arg1: i32) -> (i32, i32) {
    %c0_i32 = arith.constant 0 : i32
    return %arg0, %arg1 : i32, i32
  }
  func.func @transform_1(%arg0: i32, %arg1: i32) -> (i32, i32) {
    %c0_i32 = arith.constant 0 : i32
    %c0_i32_0 = arith.constant 0 : i32
    return %arg1, %c0_i32 : i32, i32
  }
  func.func @transform_2(%arg0: i32, %arg1: i32) -> (i32, i32) {
    %c0_i32 = arith.constant 0 : i32
    %c0_i32_0 = arith.constant 0 : i32
    %c0_i32_1 = arith.constant 0 : i32
    return %c0_i32, %c0_i32_0 : i32, i32
  }
  func.func @transform_3(%arg0: i32, %arg1: i32) -> (i32, i32) {
    %c0_i32 = arith.constant 0 : i32
    %c0_i32_0 = arith.constant 0 : i32
    return %arg0, %c0_i32 : i32, i32
  }
  func.func @transform_4(%arg0: i32, %arg1: i32) -> (i32, i32) {
    %c0_i32 = arith.constant 0 : i32
    %c0_i32_0 = arith.constant 0 : i32
    return %arg0, %c0_i32 : i32, i32
  }
}

module attributes {stable_mosaic.version = 11 : i64} {
  func.func @bn_relu_sub_kernel(%arg0: i32, %arg1: memref<512x128xf32, #tpu.memory_space<vmem>>, %arg2: memref<1x128xf32, #tpu.memory_space<vmem>>, %arg3: memref<1x128xf32, #tpu.memory_space<vmem>>, %arg4: memref<512x128xf32, #tpu.memory_space<vmem>>, %arg5: memref<512x128xf32, #tpu.memory_space<vmem>>) attributes {dimension_semantics = [#tpu.dimension_semantics<parallel>], iteration_bounds = array<i64: 2>, scalar_prefetch = 0 : i64, scratch_operands = 0 : i64, tpu.core_type = #tpu.core_type<tc>, window_params = [{transform_indices = @transform_0, window_bounds = array<i64: 512, 128>}, {pipeline_mode = #tpu.pipeline_mode<synchronous>, transform_indices = @transform_1, window_bounds = array<i64: 1, 128>}, {pipeline_mode = #tpu.pipeline_mode<synchronous>, transform_indices = @transform_2, window_bounds = array<i64: 1, 128>}, {transform_indices = @transform_3, window_bounds = array<i64: 512, 128>}, {transform_indices = @transform_4, window_bounds = array<i64: 512, 128>}]} {
    %c0 = arith.constant 0 : index
    %c0_0 = arith.constant 0 : index
    %0 = vector.load %arg1[%c0, %c0_0] : memref<512x128xf32, #tpu.memory_space<vmem>>, vector<512x128xf32>
    %c0_1 = arith.constant 0 : index
    %c0_2 = arith.constant 0 : index
    %1 = vector.load %arg2[%c0_1, %c0_2] : memref<1x128xf32, #tpu.memory_space<vmem>>, vector<1x128xf32>
    %2 = vector.broadcast %1 : vector<1x128xf32> to vector<512x128xf32>
    %3 = arith.mulf %0, %2 : vector<512x128xf32>
    %c0_3 = arith.constant 0 : index
    %c0_4 = arith.constant 0 : index
    %4 = vector.load %arg3[%c0_3, %c0_4] : memref<1x128xf32, #tpu.memory_space<vmem>>, vector<1x128xf32>
    %5 = vector.broadcast %4 : vector<1x128xf32> to vector<512x128xf32>
    %6 = arith.addf %3, %5 : vector<512x128xf32>
    %cst = arith.constant 0.000000e+00 : f32
    %7 = vector.broadcast %cst : f32 to vector<512x128xf32>
    %8 = arith.maximumf %6, %7 : vector<512x128xf32>
    %c0_5 = arith.constant 0 : index
    %c0_6 = arith.constant 0 : index
    %9 = vector.load %arg4[%c0_5, %c0_6] : memref<512x128xf32, #tpu.memory_space<vmem>>, vector<512x128xf32>
    %10 = arith.subf %8, %9 : vector<512x128xf32>
    %c0_7 = arith.constant 0 : index
    %c0_8 = arith.constant 0 : index
    %11 = vector.load %arg5[%c0_7, %c0_8] : memref<512x128xf32, #tpu.memory_space<vmem>>, vector<512x128xf32>
    tpu.vector_store %arg5[%c0_7, %c0_8], %10 {strides = array<i32>} : memref<512x128xf32, #tpu.memory_space<vmem>>, vector<512x128xf32>,
    return
  }
  func.func @transform_0(%arg0: i32) -> (i32, i32) {
    %c0_i32 = arith.constant 0 : i32
    %c0_i32_0 = arith.constant 0 : i32
    return %arg0, %c0_i32 : i32, i32
  }
  func.func @transform_1(%arg0: i32) -> (i32, i32) {
    %c0_i32 = arith.constant 0 : i32
    %c0_i32_0 = arith.constant 0 : i32
    %c0_i32_1 = arith.constant 0 : i32
    return %c0_i32, %c0_i32_0 : i32, i32
  }
  func.func @transform_2(%arg0: i32) -> (i32, i32) {
    %c0_i32 = arith.constant 0 : i32
    %c0_i32_0 = arith.constant 0 : i32
    %c0_i32_1 = arith.constant 0 : i32
    return %c0_i32, %c0_i32_0 : i32, i32
  }
  func.func @transform_3(%arg0: i32) -> (i32, i32) {
    %c0_i32 = arith.constant 0 : i32
    %c0_i32_0 = arith.constant 0 : i32
    return %arg0, %c0_i32 : i32, i32
  }
  func.func @transform_4(%arg0: i32) -> (i32, i32) {
    %c0_i32 = arith.constant 0 : i32
    %c0_i32_0 = arith.constant 0 : i32
    return %arg0, %c0_i32 : i32, i32
  }
}

</mosaic_0001>

<bundles_post_ra>
// kernel: tile.8
= control target key start
LH: loop header
LB: loop body
LE: loop exit
PB: predicated region body
PF: predicated region fallthrough
CT: control target
= control target key end

     0   :  { %2 = vsyncpa [#allocation1], 0  ;;  %s48_s8 = smov [#allocation0]   ;;  %s65_s0 = inlined_call_operand.hbm [shape: f32[4], index: 0, kind: input, shape index: {}]   ;;  %s66_s1 = inlined_call_operand.vmem [shape: f32[8,4], index: 1, kind: output, shape index: {}]  }
   0x1   :  { %s8_s0 = sshll.u32 %s65_s0, 4  ;;  %s10_s9 = sshll.u32 %s48_s8, 4  ;;  %s9_s0 = int_to_ptr.hbm [resolvable:$true] %s8_s0  ;;  %s11_s9 = int_to_ptr.vmem [resolvable:$true] %s10_s9 }
   0x2   :  { %13 = dma.hbm_to_vmem [thread:$0]  %s9_s0, 16, %s11_s9, [#allocation1]  }
   0x3   :  { %46 = dma.done.wait [#allocation1], 16  }
   0x4   :  { %47 = vsyncadd [#allocation1], 4294967280  ;;  %v18_v0 = vld [vmem:[#allocation0] ss:$0 sm:$0xff] }
   0x5   :  { %19 = vst [vmem:[%s66_s1] sm:$0xff] %v18_v0 }
   0x6   :  { %20 = vsyncpa [#allocation1], 1 }

// kernel: tile.9
= control target key start
LH: loop header
LB: loop body
LE: loop exit
PB: predicated region body
PF: predicated region fallthrough
CT: control target
= control target key end

     0   :  { %s67_s10 = smov 28   ;;  %s68_s11 = smov 20   ;;  %vm3_vm0 = vcmask 31744   ;;  %vm9_vm1 = vcmask 261344   ;;  %vm15_vm2 = vcmask 228544   ;;  %vm21_vm3 = vcmask 195744   ;;  %s111_s0 = inlined_call_operand.vmem [shape: f32[8,4], index: 0, kind: input, shape index: {}]   ;;  %s112_s1 = inlined_call_operand.vmem [shape: f32[1,32], index: 1, kind: output, shape index: {}]  }
   0x1   :  { %v53_v0 = vld [vmem:[%s111_s0 + $0x7] sm:$0x1]   ;;  %v55_v1 = vld [vmem:[%s111_s0 + $0x5] sm:$0x1]   ;;  %v57_v2 = vld [vmem:[%s111_s0 + $0x3] sm:$0x1]  }
   0x2   :  { %7 = vrot.lane.b32.xlu0 %v53_v0, %s67_s10  ;;  %19 = vrot.lane.b32.xlu1 %v55_v1, %s68_s11  ;;  %s69_s14 = smov 12   ;;  %v54_v3 = vld [vmem:[%s111_s0 + $0x6] sm:$0x1]   ;;  %v56_v4 = vld [vmem:[%s111_s0 + $0x4] sm:$0x1]   ;;  %s70_s21 = smov 24  }
   0x3   :  { %31 = vrot.lane.b32.xlu2 %v57_v2, %s69_s14  ;;  %v58_v5 = vld [vmem:[%s111_s0 + $0x2] sm:$0x1]   ;;  %s71_s22 = smov 16   ;;  %s72_s23 = smov 8   ;;  %v59_v6 = vld [vmem:[%s111_s0 + $0x1] sm:$0x1]  }
   0x4   :  { %s73_s26 = smov 4   ;;  %v2_v7 = vld [vmem:[%s111_s0] sm:$0x1]   ;;  %vm27_vm4 = vcmask 162944   ;;  %vm33_vm5 = vcmask 130144   ;;  %vm39_vm6 = vcmask 97344  }
   0x5   :  { %4 = vst.msk [vmem:[#allocation0] sm:$0x1] %vm3_vm0, %v2_v7   ;;  %vm45_vm7 = vcmask 64544  }
   0xa   :  { %13 = vrot.lane.b32.xlu0 %v54_v3, %s70_s21  ;;  %25 = vrot.lane.b32.xlu1 %v56_v4, %s71_s22 }
   0xb   :  { %37 = vrot.lane.b32.xlu2 %v58_v5, %s72_s23 }
  0x12   :  { %43 = vrot.lane.b32.xlu0 %v59_v6, %s73_s26 }
  0x5d   :  { %v32_v8 = vpop.permute.xlu2 %31  }
  0x65   :  { %v38_v9 = vpop.permute.xlu2 %37  }
  0x74   :  { %v8_v10 = vpop.permute.xlu0 %7   ;;  %v20_v11 = vpop.permute.xlu1 %19  }
  0x75   :  { %10 = vst.msk [vmem:[#allocation0] sm:$0x1] %vm9_vm1, %v8_v10  }
  0x7c   :  { %v14_v12 = vpop.permute.xlu0 %13   ;;  %v26_v13 = vpop.permute.xlu1 %25  }
  0x7d   :  { %16 = vst.msk [vmem:[#allocation0] sm:$0x1] %vm15_vm2, %v14_v12  }
  0x7e   :  { %22 = vst.msk [vmem:[#allocation0] sm:$0x1] %vm21_vm3, %v20_v11  }
  0x7f   :  { %28 = vst.msk [vmem:[#allocation0] sm:$0x1] %vm27_vm4, %v26_v13  }
  0x80   :  { %34 = vst.msk [vmem:[#allocation0] sm:$0x1] %vm33_vm5, %v32_v8  }
  0x81   :  { %40 = vst.msk [vmem:[#allocation0] sm:$0x1] %vm39_vm6, %v38_v9  }
  0x84   :  { %v44_v14 = vpop.permute.xlu0 %43  }
  0x85   :  { %46 = vst.msk [vmem:[#allocation0] sm:$0x1] %vm45_vm7, %v44_v14  }
  0x8c   :  { %v49_v15 = vld [vmem:[#allocation0] sm:$0x1] }
  0x8d   :  { %52 = vst [vmem:[%s112_s1] sm:$0x1] %v49_v15 }

// kernel: up_forward.5
= control target key start
LH: loop header
LB: loop body
LE: loop exit
PB: predicated region body
PF: predicated region fallthrough
CT: control target
= control target key end

     0   :  { %vm101_vm0 = vcmask 1043456   ;;  %vm76_vm1 = vcmask 64512   ;;  %s332_s1 = inlined_call_operand.vmem [shape: bf16[8,128], index: 1, kind: input, shape index: {}]   ;;  %s333_s0 = inlined_call_operand.vmem [shape: bf16[128,8], index: 0, kind: input, shape index: {}]   ;;  %s334_s2 = inlined_call_operand.vmem [shape: f32[1,128], index: 2, kind: input, shape index: {}]   ;;  %s335_s3 = inlined_call_operand.vmem [shape: f32[128,128], index: 3, kind: output, shape index: {}]  }
   0x1   :  { %v31_v0 = vld [vmem:[%s332_s1] sm:$0xf]  ;;  %v216_v3 = vld [vmem:[%s333_s0 + $0x10] sm:$0xff]  ;;  %v215_v6 = vld [vmem:[%s333_s0 + $0x8] sm:$0xff] }
   0x2   :  { %v103_v1 = vsel %vm101_vm0, %v31_v0, 0  ;;  %v214_v2 = vld [vmem:[%s333_s0] sm:$0xff]  ;;  %v220_v5 = vld [vmem:[%s333_s0 + $0x30] sm:$0xff]  ;;  %v217_v7 = vld [vmem:[%s333_s0 + $0x18] sm:$0xff] }
   0x3   :  { %112 = vmatpush.bf16.msra.mxu0 %v103_v1  ;;  %222 = vmatpush.bf16.msra.mxu1 %v103_v1  ;;  %v218_v4 = vld [vmem:[%s333_s0 + $0x20] sm:$0xff]  ;;  %v219_v8 = vld [vmem:[%s333_s0 + $0x28] sm:$0xff]  ;;  %v221_v9 = vld [vmem:[%s333_s0 + $0x38] sm:$0xff] }
   0x4   :  { %223 = vmatpush.bf16.msra.mxu2 %v103_v1  ;;  %224 = vmatpush.bf16.msra.mxu3 %v103_v1  ;;  %v225_v10 = vld [vmem:[%s334_s2] ss:$0 sm:$0xff] }
   0x6   :  { %206 = vmatmul.msk.bf16.vlgmr.msra.gmra.mxu0 %vm76_vm1, %v214_v2  ;;  %208 = vmatmul.msk.bf16.vlgmr.msra.gmra.mxu1 %vm76_vm1, %v216_v3 }
   0x7   :  { %210 = vmatmul.msk.bf16.vlgmr.msra.gmra.mxu2 %vm76_vm1, %v218_v4  ;;  %212 = vmatmul.msk.bf16.vlgmr.msra.gmra.mxu3 %vm76_vm1, %v220_v5 }
  0x16   :  { %207 = vmatmul.msk.bf16.gmra.mxu0 %vm76_vm1, %v215_v6  ;;  %209 = vmatmul.msk.bf16.gmra.mxu1 %vm76_vm1, %v217_v7 }
  0x17   :  { %211 = vmatmul.msk.bf16.gmra.mxu2 %vm76_vm1, %v219_v8  ;;  %213 = vmatmul.msk.bf16.gmra.mxu3 %vm76_vm1, %v221_v9 }
  0x83   :  { %v114_v11 = vpop.f32.mrf.mxu0  ;;  %v124_v12 = vpop.f32.mrf.mxu1 }
  0x84   :  { %v115_v13 = vadd.f32 %v225_v10, %v114_v11  ;;  %v125_v14 = vadd.f32 %v225_v10, %v124_v12 }
  0x86   :  { %154 = vst [vmem:[%s335_s3] sm:$0xff] %v115_v13 }
  0x87   :  { %158 = vst [vmem:[%s335_s3 + $0x20] sm:$0xff] %v125_v14 }
  0x8a   :  { %v134_v15 = vpop.f32.mrf.mxu2  ;;  %v144_v16 = vpop.f32.mrf.mxu3 }
  0x8b   :  { %v135_v17 = vadd.f32 %v225_v10, %v134_v15  ;;  %v145_v18 = vadd.f32 %v225_v10, %v144_v16  ;;  %v116_v19 = vpop.f32.mrf.mxu0  ;;  %v126_v20 = vpop.f32.mrf.mxu1 }
  0x8c   :  { %v117_v21 = vadd.f32 %v225_v10, %v116_v19  ;;  %v127_v22 = vadd.f32 %v225_v10, %v126_v20 }
  0x8d   :  { %162 = vst [vmem:[%s335_s3 + $0x40] sm:$0xff] %v135_v17 }
  0x8e   :  { %166 = vst [vmem:[%s335_s3 + $0x60] sm:$0xff] %v145_v18 }
  0x8f   :  { %155 = vst [vmem:[%s335_s3 + $0x8] sm:$0xff] %v117_v21 }
  0x90   :  { %159 = vst [vmem:[%s335_s3 + $0x28] sm:$0xff] %v127_v22 }
  0x92   :  { %v136_v23 = vpop.f32.mrf.mxu2  ;;  %v146_v24 = vpop.f32.mrf.mxu3 }
  0x93   :  { %v137_v25 = vadd.f32 %v225_v10, %v136_v23  ;;  %v147_v26 = vadd.f32 %v225_v10, %v146_v24  ;;  %v119_v27 = vpop.f32.mrf.mxu0  ;;  %v129_v28 = vpop.f32.mrf.mxu1 }
  0x94   :  { %v120_v29 = vadd.f32 %v225_v10, %v119_v27  ;;  %v130_v30 = vadd.f32 %v225_v10, %v129_v28 }
  0x95   :  { %163 = vst [vmem:[%s335_s3 + $0x48] sm:$0xff] %v137_v25 }
  0x96   :  { %167 = vst [vmem:[%s335_s3 + $0x68] sm:$0xff] %v147_v26 }
  0x97   :  { %156 = vst [vmem:[%s335_s3 + $0x10] sm:$0xff] %v120_v29 }
  0x98   :  { %160 = vst [vmem:[%s335_s3 + $0x30] sm:$0xff] %v130_v30 }
  0x9a   :  { %v139_v31 = vpop.f32.mrf.mxu2  ;;  %v149_v32 = vpop.f32.mrf.mxu3 }
  0x9b   :  { %v140_v33 = vadd.f32 %v225_v10, %v139_v31  ;;  %v150_v34 = vadd.f32 %v225_v10, %v149_v32  ;;  %v121_v35 = vpop.f32.mrf.mxu0  ;;  %v131_v36 = vpop.f32.mrf.mxu1 }
  0x9c   :  { %v122_v37 = vadd.f32 %v225_v10, %v121_v35  ;;  %v132_v38 = vadd.f32 %v225_v10, %v131_v36 }
  0x9d   :  { %164 = vst [vmem:[%s335_s3 + $0x50] sm:$0xff] %v140_v33 }
  0x9e   :  { %168 = vst [vmem:[%s335_s3 + $0x70] sm:$0xff] %v150_v34 }
  0x9f   :  { %157 = vst [vmem:[%s335_s3 + $0x18] sm:$0xff] %v122_v37 }
  0xa0   :  { %161 = vst [vmem:[%s335_s3 + $0x38] sm:$0xff] %v132_v38 }
  0xa2   :  { %v141_v39 = vpop.f32.mrf.mxu2  ;;  %v151_v40 = vpop.f32.mrf.mxu3 }
  0xa3   :  { %v142_v41 = vadd.f32 %v225_v10, %v141_v39  ;;  %v152_v42 = vadd.f32 %v225_v10, %v151_v40 }
  0xa5   :  { %165 = vst [vmem:[%s335_s3 + $0x58] sm:$0xff] %v142_v41 }
  0xa6   :  { %169 = vst [vmem:[%s335_s3 + $0x78] sm:$0xff] %v152_v42 }

// kernel: up_forward.7
= control target key start
LH: loop header
LB: loop body
LE: loop exit
PB: predicated region body
PF: predicated region fallthrough
CT: control target
= control target key end

     0   :  { %s862_s12 = smov 0   ;;  %s1121_s0 = inlined_call_operand.vmem [shape: f32[1024,128], index: 0, kind: input, shape index: {}]   ;;  %s1122_s1 = inlined_call_operand.vmem [shape: f32[1,128], index: 1, kind: input, shape index: {}]   ;;  %s1123_s2 = inlined_call_operand.vmem [shape: f32[1,128], index: 2, kind: input, shape index: {}]   ;;  %s1124_s3 = inlined_call_operand.vmem [shape: bf16[1024,128], index: 3, kind: output, shape index: {}]  }
   0x1 LB: > { %s622_s13 = sadd.s32 4294967295, %s840_s12   ;;  %p626_p0 = scmp.ge.s32.totalorder %s840_s12, 1  ;;  %s840_s12 = sphi %s862_s12, %s13_s12  }
   0x2   : > { %p138_p1 = scmp.lt.s32.totalorder %s840_s12, 3 }
   0x4   : > { %p139_p2 = pnand %p626_p0, %p138_p1 }
   0x5   : > { %s627_s14 = sshll.u32 (!%p139_p2), %s622_s13, 6 }
   0x6   : > { %142 = sbr.rel (%p139_p2) target bundleno = 77 (0x4d), region = 32  ;;  %p163_p3 = scmp.lt.s32.totalorder (!%p139_p2), %s627_s14, 127 }
   0xb   : > { %s1126_s14 = smov (!%p163_p3, %s627_s14), 127  ;;  %v875_v0 = vld [vmem:[%s1122_s1] ss:$0 sm:$0xff] }
   0xc   : > { %s628_s17 = sshll.u32 %s1126_s14, 3  ;;  %v886_v1 = vld [vmem:[%s1123_s2] ss:$0 sm:$0xff]  ;;  %s630_s23 = sshll.u32 %s1126_s14, 2 }
   0xd   : > { %s881_s20 = scalar_lea.vmem %s1121_s0, %s628_s17  ;;  %s918_s26 = scalar_lea.vmem %s1124_s3, %s630_s23 }
   0xe   : > { %v174_v2 = vld [vmem:[%s881_s20] sm:$0xff]  ;;  %v175_v3 = vld [vmem:[%s881_s20 + $0x8] sm:$0xff]  ;;  %v176_v4 = vld [vmem:[%s881_s20 + $0x10] sm:$0xff] }
   0xf   : > { %v242_v5 = vmul.f32 %v875_v0, %v174_v2  ;;  %v243_v6 = vmul.f32 %v875_v0, %v175_v3  ;;  %v177_v7 = vld [vmem:[%s881_s20 + $0x18] sm:$0xff]  ;;  %v244_v8 = vmul.f32 %v875_v0, %v176_v4  ;;  %v178_v9 = vld [vmem:[%s881_s20 + $0x20] sm:$0xff]  ;;  %v179_v10 = vld [vmem:[%s881_s20 + $0x28] sm:$0xff] }
  0x10   : > { %v245_v11 = vmul.f32 %v875_v0, %v177_v7  ;;  %v246_v12 = vmul.f32 %v875_v0, %v178_v9  ;;  %v247_v13 = vmul.f32 %v875_v0, %v179_v10  ;;  %v180_v14 = vld [vmem:[%s881_s20 + $0x30] sm:$0xff]  ;;  %v181_v15 = vld [vmem:[%s881_s20 + $0x38] sm:$0xff]  ;;  %v182_v24 = vld [vmem:[%s881_s20 + $0x40] sm:$0xff] }
  0x11   : > { %v310_v16 = vadd.f32 %v886_v1, %v242_v5  ;;  %v311_v17 = vadd.f32 %v886_v1, %v243_v6  ;;  %v312_v18 = vadd.f32 %v886_v1, %v244_v8  ;;  %v248_v19 = vmul.f32 %v875_v0, %v180_v14  ;;  %v183_v25 = vld [vmem:[%s881_s20 + $0x48] sm:$0xff]  ;;  %v184_v30 = vld [vmem:[%s881_s20 + $0x50] sm:$0xff]  ;;  %v185_v35 = vld [vmem:[%s881_s20 + $0x58] sm:$0xff] }
  0x12   : > { %v313_v20 = vadd.f32 %v886_v1, %v245_v11  ;;  %v314_v21 = vadd.f32 %v886_v1, %v246_v12  ;;  %v315_v22 = vadd.f32 %v886_v1, %v247_v13  ;;  %v249_v23 = vmul.f32 %v875_v0, %v181_v15  ;;  %v186_v36 = vld [vmem:[%s881_s20 + $0x60] sm:$0xff]  ;;  %v187_v41 = vld [vmem:[%s881_s20 + $0x68] sm:$0xff]  ;;  %v188_v42 = vld [vmem:[%s881_s20 + $0x70] sm:$0xff] }
  0x13   : > { %v374_v26 = vmax.f32 %v310_v16, 0.0  ;;  %v375_v27 = vmax.f32 %v311_v17, 0.0  ;;  %v376_v28 = vmax.f32 %v312_v18, 0.0  ;;  %v316_v29 = vadd.f32 %v886_v1, %v248_v19  ;;  %v189_v51 = vld [vmem:[%s881_s20 + $0x78] sm:$0xff]  ;;  %v190_v56 = vld [vmem:[%s881_s20 + $0x80] sm:$0xff]  ;;  %v191_v61 = vld [vmem:[%s881_s20 + $0x88] sm:$0xff] }
  0x14   : > { %v377_v31 = vmax.f32 %v313_v20, 0.0  ;;  %v378_v32 = vmax.f32 %v314_v21, 0.0  ;;  %v379_v33 = vmax.f32 %v315_v22, 0.0  ;;  %v317_v34 = vadd.f32 %v886_v1, %v249_v23  ;;  %v192_v4 = vld [vmem:[%s881_s20 + $0x90] sm:$0xff]  ;;  %v193_v5 = vld [vmem:[%s881_s20 + $0x98] sm:$0xff]  ;;  %v194_v10 = vld [vmem:[%s881_s20 + $0xa0] sm:$0xff] }
  0x15   : > { %v636_v37 = vpack.c.bf16 %v375_v27, %v374_v26  ;;  %v380_v38 = vmax.f32 %v316_v29, 0.0  ;;  %v250_v39 = vmul.f32 %v875_v0, %v182_v24  ;;  %v251_v40 = vmul.f32 %v875_v0, %v183_v25  ;;  %v195_v15 = vld [vmem:[%s881_s20 + $0xa8] sm:$0xff]  ;;  %v196_v20 = vld [vmem:[%s881_s20 + $0xb0] sm:$0xff]  ;;  %v197_v25 = vld [vmem:[%s881_s20 + $0xb8] sm:$0xff] }
  0x16   : > { %v641_v43 = vpack.c.bf16 %v377_v31, %v376_v28  ;;  %v646_v44 = vpack.c.bf16 %v379_v33, %v378_v32  ;;  %v381_v45 = vmax.f32 %v317_v34, 0.0  ;;  %v252_v46 = vmul.f32 %v875_v0, %v184_v30  ;;  %v198_v30 = vld [vmem:[%s881_s20 + $0xc0] sm:$0xff] }
  0x17   : > { %637 = vst [vmem:[%s918_s26] sm:$0xff] %v636_v37   ;;  %v318_v47 = vadd.f32 %v886_v1, %v250_v39  ;;  %v319_v48 = vadd.f32 %v886_v1, %v251_v40  ;;  %v253_v49 = vmul.f32 %v875_v0, %v185_v35  ;;  %v254_v50 = vmul.f32 %v875_v0, %v186_v36  ;;  %v199_v35 = vld [vmem:[%s881_s20 + $0xc8] sm:$0xff]  ;;  %v200_v40 = vld [vmem:[%s881_s20 + $0xd0] sm:$0xff] }
  0x18   : > { %793 = vst [vmem:[%s918_s26 + $0x8] sm:$0xff] %v641_v43   ;;  %v651_v52 = vpack.c.bf16 %v381_v45, %v380_v38  ;;  %v320_v53 = vadd.f32 %v886_v1, %v252_v46  ;;  %v255_v54 = vmul.f32 %v875_v0, %v187_v41  ;;  %v256_v55 = vmul.f32 %v875_v0, %v188_v42  ;;  %v201_v41 = vld [vmem:[%s881_s20 + $0xd8] sm:$0xff]  ;;  %v202_v46 = vld [vmem:[%s881_s20 + $0xe0] sm:$0xff] }
  0x19   : > { %794 = vst [vmem:[%s918_s26 + $0x10] sm:$0xff] %v646_v44   ;;  %v382_v57 = vmax.f32 %v318_v47, 0.0  ;;  %v383_v58 = vmax.f32 %v319_v48, 0.0  ;;  %v321_v59 = vadd.f32 %v886_v1, %v253_v49  ;;  %v322_v60 = vadd.f32 %v886_v1, %v254_v50 }
  0x1a   : > { %795 = vst [vmem:[%s918_s26 + $0x18] sm:$0xff] %v651_v52   ;;  %v384_v62 = vmax.f32 %v320_v53, 0.0  ;;  %v323_v63 = vadd.f32 %v886_v1, %v255_v54  ;;  %v257_v2 = vmul.f32 %v875_v0, %v189_v51  ;;  %v324_v3 = vadd.f32 %v886_v1, %v256_v55  ;;  %v203_v51 = vld [vmem:[%s881_s20 + $0xe8] sm:$0xff] }
  0x1b   : > { %v656_v6 = vpack.c.bf16 %v383_v58, %v382_v57  ;;  %v385_v7 = vmax.f32 %v321_v59, 0.0  ;;  %v386_v8 = vmax.f32 %v322_v60, 0.0  ;;  %v258_v9 = vmul.f32 %v875_v0, %v190_v56  ;;  %v204_v56 = vld [vmem:[%s881_s20 + $0xf0] sm:$0xff] }
  0x1c   : > { %v387_v11 = vmax.f32 %v323_v63, 0.0  ;;  %v325_v12 = vadd.f32 %v886_v1, %v257_v2  ;;  %v388_v13 = vmax.f32 %v324_v3, 0.0  ;;  %v259_v14 = vmul.f32 %v875_v0, %v191_v61  ;;  %v205_v61 = vld [vmem:[%s881_s20 + $0xf8] sm:$0xff] }
  0x1d   : > { %796 = vst [vmem:[%s918_s26 + $0x20] sm:$0xff] %v656_v6   ;;  %v661_v16 = vpack.c.bf16 %v385_v7, %v384_v62  ;;  %v326_v17 = vadd.f32 %v886_v1, %v258_v9  ;;  %v260_v18 = vmul.f32 %v875_v0, %v192_v4  ;;  %v261_v19 = vmul.f32 %v875_v0, %v193_v5  ;;  %v206_v4 = vld [vmem:[%s881_s20 + $0x100] sm:$0xff]  ;;  %v207_v9 = vld [vmem:[%s881_s20 + $0x108] sm:$0xff] }
  0x1e   : > { %v666_v21 = vpack.c.bf16 %v387_v11, %v386_v8  ;;  %v389_v22 = vmax.f32 %v325_v12, 0.0  ;;  %v327_v23 = vadd.f32 %v886_v1, %v259_v14  ;;  %v262_v24 = vmul.f32 %v875_v0, %v194_v10  ;;  %v208_v14 = vld [vmem:[%s881_s20 + $0x110] sm:$0xff] }
  0x1f   : > { %797 = vst [vmem:[%s918_s26 + $0x28] sm:$0xff] %v661_v16   ;;  %v390_v26 = vmax.f32 %v326_v17, 0.0  ;;  %v328_v27 = vadd.f32 %v886_v1, %v260_v18  ;;  %v329_v28 = vadd.f32 %v886_v1, %v261_v19  ;;  %v263_v29 = vmul.f32 %v875_v0, %v195_v15  ;;  %v209_v15 = vld [vmem:[%s881_s20 + $0x118] sm:$0xff] }
  0x20   : > { %798 = vst [vmem:[%s918_s26 + $0x30] sm:$0xff] %v666_v21   ;;  %v671_v31 = vpack.c.bf16 %v389_v22, %v388_v13  ;;  %v391_v32 = vmax.f32 %v327_v23, 0.0  ;;  %v330_v33 = vadd.f32 %v886_v1, %v262_v24  ;;  %v264_v34 = vmul.f32 %v875_v0, %v196_v20  ;;  %v210_v20 = vld [vmem:[%s881_s20 + $0x120] sm:$0xff] }
  0x21   : > { %v392_v36 = vmax.f32 %v328_v27, 0.0  ;;  %v393_v37 = vmax.f32 %v329_v28, 0.0  ;;  %v331_v38 = vadd.f32 %v886_v1, %v263_v29  ;;  %v265_v39 = vmul.f32 %v875_v0, %v197_v25  ;;  %v211_v25 = vld [vmem:[%s881_s20 + $0x128] sm:$0xff] }
  0x22   : > { %799 = vst [vmem:[%s918_s26 + $0x38] sm:$0xff] %v671_v31   ;;  %v676_v42 = vpack.c.bf16 %v391_v32, %v390_v26  ;;  %v394_v43 = vmax.f32 %v330_v33, 0.0  ;;  %v332_v44 = vadd.f32 %v886_v1, %v264_v34  ;;  %v266_v45 = vmul.f32 %v875_v0, %v198_v30  ;;  %v212_v30 = vld [vmem:[%s881_s20 + $0x130] sm:$0xff] }
  0x23   : > { %v681_v47 = vpack.c.bf16 %v393_v37, %v392_v36  ;;  %v395_v48 = vmax.f32 %v331_v38, 0.0  ;;  %v333_v49 = vadd.f32 %v886_v1, %v265_v39  ;;  %v267_v50 = vmul.f32 %v875_v0, %v199_v35  ;;  %v213_v35 = vld [vmem:[%s881_s20 + $0x138] sm:$0xff] }
  0x24   : > { %800 = vst [vmem:[%s918_s26 + $0x40] sm:$0xff] %v676_v42   ;;  %v396_v52 = vmax.f32 %v332_v44, 0.0  ;;  %v334_v53 = vadd.f32 %v886_v1, %v266_v45  ;;  %v268_v54 = vmul.f32 %v875_v0, %v200_v40  ;;  %v269_v55 = vmul.f32 %v875_v0, %v201_v41  ;;  %v214_v40 = vld [vmem:[%s881_s20 + $0x140] sm:$0xff]  ;;  %v215_v45 = vld [vmem:[%s881_s20 + $0x148] sm:$0xff] }
  0x25   : > { %801 = vst [vmem:[%s918_s26 + $0x48] sm:$0xff] %v681_v47   ;;  %v686_v57 = vpack.c.bf16 %v395_v48, %v394_v43  ;;  %v397_v58 = vmax.f32 %v333_v49, 0.0  ;;  %v335_v59 = vadd.f32 %v886_v1, %v267_v50  ;;  %v270_v60 = vmul.f32 %v875_v0, %v202_v46  ;;  %v216_v50 = vld [vmem:[%s881_s20 + $0x150] sm:$0xff] }
  0x26   : > { %v398_v62 = vmax.f32 %v334_v53, 0.0  ;;  %v336_v63 = vadd.f32 %v886_v1, %v268_v54  ;;  %v337_v2 = vadd.f32 %v886_v1, %v269_v55  ;;  %v271_v3 = vmul.f32 %v875_v0, %v203_v51  ;;  %v217_v51 = vld [vmem:[%s881_s20 + $0x158] sm:$0xff] }
  0x27   : > { %802 = vst [vmem:[%s918_s26 + $0x50] sm:$0xff] %v686_v57   ;;  %v691_v5 = vpack.c.bf16 %v397_v58, %v396_v52  ;;  %v399_v6 = vmax.f32 %v335_v59, 0.0  ;;  %v338_v7 = vadd.f32 %v886_v1, %v270_v60  ;;  %v272_v8 = vmul.f32 %v875_v0, %v204_v56  ;;  %v218_v56 = vld [vmem:[%s881_s20 + $0x160] sm:$0xff] }
  0x28   : > { %v400_v10 = vmax.f32 %v336_v63, 0.0  ;;  %v401_v11 = vmax.f32 %v337_v2, 0.0  ;;  %v339_v12 = vadd.f32 %v886_v1, %v271_v3  ;;  %v273_v13 = vmul.f32 %v875_v0, %v205_v61  ;;  %v219_v61 = vld [vmem:[%s881_s20 + $0x168] sm:$0xff] }
  0x29   : > { %803 = vst [vmem:[%s918_s26 + $0x58] sm:$0xff] %v691_v5   ;;  %v696_v16 = vpack.c.bf16 %v399_v6, %v398_v62  ;;  %v402_v17 = vmax.f32 %v338_v7, 0.0  ;;  %v340_v18 = vadd.f32 %v886_v1, %v272_v8  ;;  %v274_v19 = vmul.f32 %v875_v0, %v206_v4  ;;  %v220_v4 = vld [vmem:[%s881_s20 + $0x170] sm:$0xff] }
  0x2a   : > { %v701_v21 = vpack.c.bf16 %v401_v11, %v400_v10  ;;  %v403_v22 = vmax.f32 %v339_v12, 0.0  ;;  %v341_v23 = vadd.f32 %v886_v1, %v273_v13  ;;  %v275_v24 = vmul.f32 %v875_v0, %v207_v9  ;;  %v221_v9 = vld [vmem:[%s881_s20 + $0x178] sm:$0xff] }
  0x2b   : > { %804 = vst [vmem:[%s918_s26 + $0x60] sm:$0xff] %v696_v16   ;;  %v404_v26 = vmax.f32 %v340_v18, 0.0  ;;  %v342_v27 = vadd.f32 %v886_v1, %v274_v19  ;;  %v276_v28 = vmul.f32 %v875_v0, %v208_v14  ;;  %v277_v29 = vmul.f32 %v875_v0, %v209_v15  ;;  %v222_v14 = vld [vmem:[%s881_s20 + $0x180] sm:$0xff]  ;;  %v223_v19 = vld [vmem:[%s881_s20 + $0x188] sm:$0xff] }
  0x2c   : > { %805 = vst [vmem:[%s918_s26 + $0x68] sm:$0xff] %v701_v21   ;;  %v706_v31 = vpack.c.bf16 %v403_v22, %v402_v17  ;;  %v405_v32 = vmax.f32 %v341_v23, 0.0  ;;  %v343_v33 = vadd.f32 %v886_v1, %v275_v24  ;;  %v278_v34 = vmul.f32 %v875_v0, %v210_v20  ;;  %v224_v24 = vld [vmem:[%s881_s20 + $0x190] sm:$0xff] }
  0x2d   : > { %v406_v36 = vmax.f32 %v342_v27, 0.0  ;;  %v344_v37 = vadd.f32 %v886_v1, %v276_v28  ;;  %v345_v38 = vadd.f32 %v886_v1, %v277_v29  ;;  %v279_v39 = vmul.f32 %v875_v0, %v211_v25  ;;  %v225_v25 = vld [vmem:[%s881_s20 + $0x198] sm:$0xff] }
  0x2e   : > { %806 = vst [vmem:[%s918_s26 + $0x70] sm:$0xff] %v706_v31   ;;  %v711_v41 = vpack.c.bf16 %v405_v32, %v404_v26  ;;  %v407_v42 = vmax.f32 %v343_v33, 0.0  ;;  %v346_v43 = vadd.f32 %v886_v1, %v278_v34  ;;  %v280_v44 = vmul.f32 %v875_v0, %v212_v30  ;;  %v226_v30 = vld [vmem:[%s881_s20 + $0x1a0] sm:$0xff] }
  0x2f   : > { %v408_v46 = vmax.f32 %v344_v37, 0.0  ;;  %v409_v47 = vmax.f32 %v345_v38, 0.0  ;;  %v347_v48 = vadd.f32 %v886_v1, %v279_v39  ;;  %v281_v49 = vmul.f32 %v875_v0, %v213_v35  ;;  %v227_v35 = vld [vmem:[%s881_s20 + $0x1a8] sm:$0xff] }
  0x30   : > { %807 = vst [vmem:[%s918_s26 + $0x78] sm:$0xff] %v711_v41   ;;  %v716_v52 = vpack.c.bf16 %v407_v42, %v406_v36  ;;  %v410_v53 = vmax.f32 %v346_v43, 0.0  ;;  %v348_v54 = vadd.f32 %v886_v1, %v280_v44  ;;  %v282_v55 = vmul.f32 %v875_v0, %v214_v40  ;;  %v228_v40 = vld [vmem:[%s881_s20 + $0x1b0] sm:$0xff] }
  0x31   : > { %v721_v57 = vpack.c.bf16 %v409_v47, %v408_v46  ;;  %v411_v58 = vmax.f32 %v347_v48, 0.0  ;;  %v349_v59 = vadd.f32 %v886_v1, %v281_v49  ;;  %v283_v60 = vmul.f32 %v875_v0, %v215_v45  ;;  %v229_v45 = vld [vmem:[%s881_s20 + $0x1b8] sm:$0xff] }
  0x32   : > { %808 = vst [vmem:[%s918_s26 + $0x80] sm:$0xff] %v716_v52   ;;  %v412_v62 = vmax.f32 %v348_v54, 0.0  ;;  %v350_v63 = vadd.f32 %v886_v1, %v282_v55  ;;  %v284_v2 = vmul.f32 %v875_v0, %v216_v50  ;;  %v285_v3 = vmul.f32 %v875_v0, %v217_v51  ;;  %v230_v50 = vld [vmem:[%s881_s20 + $0x1c0] sm:$0xff]  ;;  %v231_v55 = vld [vmem:[%s881_s20 + $0x1c8] sm:$0xff] }
  0x33   : > { %809 = vst [vmem:[%s918_s26 + $0x88] sm:$0xff] %v721_v57   ;;  %v726_v5 = vpack.c.bf16 %v411_v58, %v410_v53  ;;  %v413_v6 = vmax.f32 %v349_v59, 0.0  ;;  %v351_v7 = vadd.f32 %v886_v1, %v283_v60  ;;  %v286_v8 = vmul.f32 %v875_v0, %v218_v56  ;;  %v232_v60 = vld [vmem:[%s881_s20 + $0x1d0] sm:$0xff] }
  0x34   : > { %v414_v10 = vmax.f32 %v350_v63, 0.0  ;;  %v352_v11 = vadd.f32 %v886_v1, %v284_v2  ;;  %v353_v12 = vadd.f32 %v886_v1, %v285_v3  ;;  %v287_v13 = vmul.f32 %v875_v0, %v219_v61  ;;  %v233_v61 = vld [vmem:[%s881_s20 + $0x1d8] sm:$0xff] }
  0x35   : > { %810 = vst [vmem:[%s918_s26 + $0x90] sm:$0xff] %v726_v5   ;;  %v731_v15 = vpack.c.bf16 %v413_v6, %v412_v62  ;;  %v415_v16 = vmax.f32 %v351_v7, 0.0  ;;  %v354_v17 = vadd.f32 %v886_v1, %v286_v8  ;;  %v288_v18 = vmul.f32 %v875_v0, %v220_v4  ;;  %v234_v4 = vld [vmem:[%s881_s20 + $0x1e0] sm:$0xff] }
  0x36   : > { %v416_v20 = vmax.f32 %v352_v11, 0.0  ;;  %v417_v21 = vmax.f32 %v353_v12, 0.0  ;;  %v355_v22 = vadd.f32 %v886_v1, %v287_v13  ;;  %v289_v23 = vmul.f32 %v875_v0, %v221_v9  ;;  %v235_v9 = vld [vmem:[%s881_s20 + $0x1e8] sm:$0xff] }
  0x37   : > { %811 = vst [vmem:[%s918_s26 + $0x98] sm:$0xff] %v731_v15   ;;  %v736_v26 = vpack.c.bf16 %v415_v16, %v414_v10  ;;  %v418_v27 = vmax.f32 %v354_v17, 0.0  ;;  %v356_v28 = vadd.f32 %v886_v1, %v288_v18  ;;  %v290_v29 = vmul.f32 %v875_v0, %v222_v14  ;;  %v236_v14 = vld [vmem:[%s881_s20 + $0x1f0] sm:$0xff] }
  0x38   : > { %v741_v31 = vpack.c.bf16 %v417_v21, %v416_v20  ;;  %v419_v32 = vmax.f32 %v355_v22, 0.0  ;;  %v357_v33 = vadd.f32 %v886_v1, %v289_v23  ;;  %v291_v34 = vmul.f32 %v875_v0, %v223_v19  ;;  %v237_v19 = vld [vmem:[%s881_s20 + $0x1f8] sm:$0xff] }
  0x39   : > { %812 = vst [vmem:[%s918_s26 + $0xa0] sm:$0xff] %v736_v26   ;;  %v420_v36 = vmax.f32 %v356_v28, 0.0  ;;  %v358_v37 = vadd.f32 %v886_v1, %v290_v29  ;;  %v292_v38 = vmul.f32 %v875_v0, %v224_v24  ;;  %v293_v39 = vmul.f32 %v875_v0, %v225_v25 }
  0x3a   : > { %813 = vst [vmem:[%s918_s26 + $0xa8] sm:$0xff] %v741_v31   ;;  %v746_v41 = vpack.c.bf16 %v419_v32, %v418_v27  ;;  %v421_v42 = vmax.f32 %v357_v33, 0.0  ;;  %v359_v43 = vadd.f32 %v886_v1, %v291_v34  ;;  %v294_v44 = vmul.f32 %v875_v0, %v226_v30 }
  0x3b   : > { %v422_v46 = vmax.f32 %v358_v37, 0.0  ;;  %v360_v47 = vadd.f32 %v886_v1, %v292_v38  ;;  %v361_v48 = vadd.f32 %v886_v1, %v293_v39  ;;  %v295_v49 = vmul.f32 %v875_v0, %v227_v35 }
  0x3c   : > { %814 = vst [vmem:[%s918_s26 + $0xb0] sm:$0xff] %v746_v41   ;;  %v751_v51 = vpack.c.bf16 %v421_v42, %v420_v36  ;;  %v423_v52 = vmax.f32 %v359_v43, 0.0  ;;  %v362_v53 = vadd.f32 %v886_v1, %v294_v44  ;;  %v296_v54 = vmul.f32 %v875_v0, %v228_v40 }
  0x3d   : > { %v424_v56 = vmax.f32 %v360_v47, 0.0  ;;  %v425_v57 = vmax.f32 %v361_v48, 0.0  ;;  %v363_v58 = vadd.f32 %v886_v1, %v295_v49  ;;  %v297_v59 = vmul.f32 %v875_v0, %v229_v45 }
  0x3e   : > { %815 = vst [vmem:[%s918_s26 + $0xb8] sm:$0xff] %v751_v51   ;;  %v756_v62 = vpack.c.bf16 %v423_v52, %v422_v46  ;;  %v426_v63 = vmax.f32 %v362_v53, 0.0  ;;  %v364_v2 = vadd.f32 %v886_v1, %v296_v54  ;;  %v298_v3 = vmul.f32 %v875_v0, %v230_v50 }
  0x3f   : > { %v761_v5 = vpack.c.bf16 %v425_v57, %v424_v56  ;;  %v427_v6 = vmax.f32 %v363_v58, 0.0  ;;  %v365_v7 = vadd.f32 %v886_v1, %v297_v59  ;;  %v299_v8 = vmul.f32 %v875_v0, %v231_v55 }
  0x40   : > { %816 = vst [vmem:[%s918_s26 + $0xc0] sm:$0xff] %v756_v62   ;;  %v428_v10 = vmax.f32 %v364_v2, 0.0  ;;  %v366_v11 = vadd.f32 %v886_v1, %v298_v3  ;;  %v300_v12 = vmul.f32 %v875_v0, %v232_v60  ;;  %v301_v13 = vmul.f32 %v875_v0, %v233_v61 }
  0x41   : > { %817 = vst [vmem:[%s918_s26 + $0xc8] sm:$0xff] %v761_v5   ;;  %v766_v15 = vpack.c.bf16 %v427_v6, %v426_v63  ;;  %v429_v16 = vmax.f32 %v365_v7, 0.0  ;;  %v367_v17 = vadd.f32 %v886_v1, %v299_v8  ;;  %v302_v18 = vmul.f32 %v875_v0, %v234_v4 }
  0x42   : > { %v430_v20 = vmax.f32 %v366_v11, 0.0  ;;  %v368_v21 = vadd.f32 %v886_v1, %v300_v12  ;;  %v369_v22 = vadd.f32 %v886_v1, %v301_v13  ;;  %v303_v23 = vmul.f32 %v875_v0, %v235_v9 }
  0x43   : > { %818 = vst [vmem:[%s918_s26 + $0xd0] sm:$0xff] %v766_v15   ;;  %v771_v24 = vpack.c.bf16 %v429_v16, %v428_v10  ;;  %v431_v25 = vmax.f32 %v367_v17, 0.0  ;;  %v370_v26 = vadd.f32 %v886_v1, %v302_v18  ;;  %v304_v27 = vmul.f32 %v875_v0, %v236_v14 }
  0x44   : > { %v432_v28 = vmax.f32 %v368_v21, 0.0  ;;  %v433_v29 = vmax.f32 %v369_v22, 0.0  ;;  %v371_v30 = vadd.f32 %v886_v1, %v303_v23  ;;  %v305_v31 = vmul.f32 %v875_v0, %v237_v19 }
  0x45   : > { %819 = vst [vmem:[%s918_s26 + $0xd8] sm:$0xff] %v771_v24   ;;  %v776_v32 = vpack.c.bf16 %v431_v25, %v430_v20  ;;  %v434_v33 = vmax.f32 %v370_v26, 0.0  ;;  %v372_v34 = vadd.f32 %v886_v1, %v304_v27 }
  0x46   : > { %v781_v35 = vpack.c.bf16 %v433_v29, %v432_v28  ;;  %v435_v36 = vmax.f32 %v371_v30, 0.0  ;;  %v373_v37 = vadd.f32 %v886_v1, %v305_v31 }
  0x47   : > { %820 = vst [vmem:[%s918_s26 + $0xe0] sm:$0xff] %v776_v32   ;;  %v436_v38 = vmax.f32 %v372_v34, 0.0 }
  0x48   : > { %821 = vst [vmem:[%s918_s26 + $0xe8] sm:$0xff] %v781_v35   ;;  %v786_v39 = vpack.c.bf16 %v435_v36, %v434_v33  ;;  %v437_v40 = vmax.f32 %v373_v37, 0.0 }
  0x4a   : > { %822 = vst [vmem:[%s918_s26 + $0xf0] sm:$0xff] %v786_v39   ;;  %v791_v41 = vpack.c.bf16 %v437_v40, %v436_v38 }
  0x4c   : > { %823 = vst [vmem:[%s918_s26 + $0xf8] sm:$0xff] %v791_v41  }
  0x4d PF: > { %s13_s12 = sadd.s32 1, %s840_s12  }
  0x4e   : > { %p10_p4 = scmp.ge.s32.totalorder %s13_s12, 4  }
  0x50   :  { %12 = sbr.rel (!%p10_p4) target bundleno = 1 (0x1), region = 62 }

// kernel: up_forward.6
= control target key start
LH: loop header
LB: loop body
LE: loop exit
PB: predicated region body
PF: predicated region fallthrough
CT: control target
= control target key end

     0   :  { %s3973_s15 = smov 0   ;;  %s3975_s16 = smov 0   ;;  %s5098_s0 = inlined_call_operand.vmem [shape: bf16[1024,1024], index: 0, kind: input, shape index: {}]   ;;  %s5099_s1 = inlined_call_operand.vmem [shape: bf16[1024,128], index: 1, kind: input, shape index: {}]   ;;  %s5100_s2 = inlined_call_operand.vmem [shape: f32[1,128], index: 2, kind: input, shape index: {}]   ;;  %s5101_s3 = inlined_call_operand.vmem [shape: f32[1024,128], index: 3, kind: output, shape index: {0}]   ;;  %s5102_s4 = inlined_call_operand.vmem [shape: f32[16,128], index: 4, kind: output, shape index: {1}]  }
   0x1   :  { %s3977_s17 = smov 0   ;;  %s3979_s18 = smov 0  }
   0x2   :  { %s3981_s19 = smov 0   ;;  %s3983_s20 = smov 0  }
   0x3   :  { %s3985_s21 = smov 0  }
   0x4 LB: > { %s24_s22 = sadd.s32 1, %s3936_s19  ;;  %s27_s23 = sadd.s32 1, %s3940_s20  ;;  %s3944_s21 = sphi %s3985_s21, %s15_s21   ;;  %s3940_s20 = sphi %s3983_s20, %s5108_s20   ;;  %s3936_s19 = sphi %s3981_s19, %s5107_s19   ;;  %s3932_s18 = sphi %s3979_s18, %s5106_s18   ;;  %s3928_s17 = sphi %s3977_s17, %s5105_s17   ;;  %s3924_s16 = sphi %s3975_s16, %s5104_s16   ;;  %s3920_s15 = sphi %s3973_s15, %s5103_s15  }
   0x5   : > { %p25_p0 = scmp.ge.s32.totalorder %s24_s22, 2  ;;  %p43_p1 = scmp.ne.s32.totalorder %s3924_s16, %s3920_s15 }
   0x6   : > { %p44_p2 = scmp.eq.s32.totalorder %s3944_s21, 0  ;;  %s36_s27 = sadd.s32 1, %s3924_s16 }
   0x7   : > { %s5110_s22 = smov (%p25_p0, %s24_s22), 0  ;;  %s5112_s23 = smov (!%p25_p0, %s27_s23), %s3940_s20 }
   0x8   : > { %p45_p3 = por %p44_p2, %p43_p1  ;;  %p29_p4 = scmp.ge.s32.totalorder %s5112_s23, 2 }
   0x9   : > { %s32_s24 = ssub.s32 %s3936_s19, %s5110_s22  ;;  %p3013_p6 = scmp.ge.s32.totalorder %s3944_s21, 4 }
   0xa   : > { %s5114_s23 = smov (%p29_p4, %s5112_s23), 0 }
   0xb   : > { %s31_s25 = ssub.s32 %s3940_s20, %s5114_s23  ;;  %171 = sbr.rel (%p3013_p6) target bundleno = 151 (0x97), region = 20 }
   0xc   : > { %s33_s26 = sor.u32 %s32_s24, %s31_s25 }
   0xd   : > { %p34_p5 = scmp.eq.s32.totalorder %s33_s26, 0 }
   0xf   : > { %s4024_s28 = scalar_select %p34_p5, %s3924_s16, %s36_s27  }
  0x10   : > { %174 = sbr.rel (!%p45_p3) target bundleno = 151 (0x97), region = 24  ;;  %s176_s29 = sand.u32 (%p45_p3), 1, %s3924_s16  }
  0x11   : > { %s3016_s30 = sshll.u32 (%p45_p3), %s3936_s19, 2  ;;  %s3014_s5 = sshll.u32 (%p45_p3), %s176_s29, 10 }
  0x12   : > { %s3670_s6 = sshll.u32 (%p45_p3), %s3940_s20, 9  ;;  %s4038_s12 = scalar_lea.vmem (%p45_p3), [#allocation3], %s3014_s5 }
  0x13   : > { %s182_s7 = sadd.s32 (%p45_p3), %s3670_s6, %s3016_s30 }
  0x14   : > { %s3018_s8 = sshll.u32 (%p45_p3), %s182_s7, 2 }
  0x15   : > { %s4033_s11 = scalar_lea.vmem %s5098_s0, %s3018_s8 }
  0x16   : > { %v197_v0 = vld [vmem:[%s4033_s11] sm:$0xff]  ;;  %v199_v1 = vld [vmem:[%s4033_s11 + $0x8] sm:$0xff] }
  0x17   : > { %v201_v2 = vld [vmem:[%s4033_s11 + $0x20] sm:$0xff]  ;;  %198 = vst [vmem:[%s4038_s12] sm:$0xff] %v197_v0  ;;  %v203_v3 = vld [vmem:[%s4033_s11 + $0x28] sm:$0xff] }
  0x18   : > { %200 = vst [vmem:[%s4038_s12 + $0x8] sm:$0xff] %v199_v1  ;;  %v205_v4 = vld [vmem:[%s4033_s11 + $0x40] sm:$0xff]  ;;  %v207_v5 = vld [vmem:[%s4033_s11 + $0x48] sm:$0xff] }
  0x19   : > { %202 = vst [vmem:[%s4038_s12 + $0x10] sm:$0xff] %v201_v2  ;;  %v209_v6 = vld [vmem:[%s4033_s11 + $0x60] sm:$0xff]  ;;  %v211_v7 = vld [vmem:[%s4033_s11 + $0x68] sm:$0xff] }
  0x1a   : > { %204 = vst [vmem:[%s4038_s12 + $0x18] sm:$0xff] %v203_v3  ;;  %v213_v8 = vld [vmem:[%s4033_s11 + $0x80] sm:$0xff]  ;;  %v215_v9 = vld [vmem:[%s4033_s11 + $0x88] sm:$0xff] }
  0x1b   : > { %206 = vst [vmem:[%s4038_s12 + $0x20] sm:$0xff] %v205_v4  ;;  %v217_v10 = vld [vmem:[%s4033_s11 + $0xa0] sm:$0xff]  ;;  %v219_v11 = vld [vmem:[%s4033_s11 + $0xa8] sm:$0xff] }
  0x1c   : > { %208 = vst [vmem:[%s4038_s12 + $0x28] sm:$0xff] %v207_v5  ;;  %v221_v12 = vld [vmem:[%s4033_s11 + $0xc0] sm:$0xff]  ;;  %v223_v13 = vld [vmem:[%s4033_s11 + $0xc8] sm:$0xff] }
  0x1d   : > { %210 = vst [vmem:[%s4038_s12 + $0x30] sm:$0xff] %v209_v6  ;;  %v225_v14 = vld [vmem:[%s4033_s11 + $0xe0] sm:$0xff]  ;;  %v227_v15 = vld [vmem:[%s4033_s11 + $0xe8] sm:$0xff] }
  0x1e   : > { %212 = vst [vmem:[%s4038_s12 + $0x38] sm:$0xff] %v211_v7  ;;  %v229_v16 = vld [vmem:[%s4033_s11 + $0x100] sm:$0xff]  ;;  %v231_v17 = vld [vmem:[%s4033_s11 + $0x108] sm:$0xff] }
  0x1f   : > { %214 = vst [vmem:[%s4038_s12 + $0x40] sm:$0xff] %v213_v8  ;;  %v233_v18 = vld [vmem:[%s4033_s11 + $0x120] sm:$0xff]  ;;  %v235_v19 = vld [vmem:[%s4033_s11 + $0x128] sm:$0xff] }
  0x20   : > { %216 = vst [vmem:[%s4038_s12 + $0x48] sm:$0xff] %v215_v9  ;;  %v237_v20 = vld [vmem:[%s4033_s11 + $0x140] sm:$0xff]  ;;  %v239_v21 = vld [vmem:[%s4033_s11 + $0x148] sm:$0xff] }
  0x21   : > { %218 = vst [vmem:[%s4038_s12 + $0x50] sm:$0xff] %v217_v10  ;;  %v241_v22 = vld [vmem:[%s4033_s11 + $0x160] sm:$0xff]  ;;  %v243_v23 = vld [vmem:[%s4033_s11 + $0x168] sm:$0xff] }
  0x22   : > { %220 = vst [vmem:[%s4038_s12 + $0x58] sm:$0xff] %v219_v11  ;;  %v245_v24 = vld [vmem:[%s4033_s11 + $0x180] sm:$0xff]  ;;  %v247_v25 = vld [vmem:[%s4033_s11 + $0x188] sm:$0xff] }
  0x23   : > { %222 = vst [vmem:[%s4038_s12 + $0x60] sm:$0xff] %v221_v12  ;;  %v249_v26 = vld [vmem:[%s4033_s11 + $0x1a0] sm:$0xff]  ;;  %v251_v27 = vld [vmem:[%s4033_s11 + $0x1a8] sm:$0xff] }
  0x24   : > { %224 = vst [vmem:[%s4038_s12 + $0x68] sm:$0xff] %v223_v13  ;;  %v253_v28 = vld [vmem:[%s4033_s11 + $0x1c0] sm:$0xff]  ;;  %v255_v29 = vld [vmem:[%s4033_s11 + $0x1c8] sm:$0xff] }
  0x25   : > { %226 = vst [vmem:[%s4038_s12 + $0x70] sm:$0xff] %v225_v14  ;;  %v257_v30 = vld [vmem:[%s4033_s11 + $0x1e0] sm:$0xff]  ;;  %v259_v31 = vld [vmem:[%s4033_s11 + $0x1e8] sm:$0xff] }
  0x26   : > { %228 = vst [vmem:[%s4038_s12 + $0x78] sm:$0xff] %v227_v15  ;;  %v261_v32 = vld [vmem:[%s4033_s11 + $0x200] sm:$0xff]  ;;  %v263_v33 = vld [vmem:[%s4033_s11 + $0x208] sm:$0xff] }
  0x27   : > { %230 = vst [vmem:[%s4038_s12 + $0x80] sm:$0xff] %v229_v16  ;;  %v265_v34 = vld [vmem:[%s4033_s11 + $0x220] sm:$0xff]  ;;  %v267_v35 = vld [vmem:[%s4033_s11 + $0x228] sm:$0xff] }
  0x28   : > { %232 = vst [vmem:[%s4038_s12 + $0x88] sm:$0xff] %v231_v17  ;;  %v269_v36 = vld [vmem:[%s4033_s11 + $0x240] sm:$0xff]  ;;  %v271_v37 = vld [vmem:[%s4033_s11 + $0x248] sm:$0xff] }
  0x29   : > { %234 = vst [vmem:[%s4038_s12 + $0x90] sm:$0xff] %v233_v18  ;;  %v273_v38 = vld [vmem:[%s4033_s11 + $0x260] sm:$0xff]  ;;  %v275_v39 = vld [vmem:[%s4033_s11 + $0x268] sm:$0xff] }
  0x2a   : > { %236 = vst [vmem:[%s4038_s12 + $0x98] sm:$0xff] %v235_v19  ;;  %v277_v40 = vld [vmem:[%s4033_s11 + $0x280] sm:$0xff]  ;;  %v279_v41 = vld [vmem:[%s4033_s11 + $0x288] sm:$0xff] }
  0x2b   : > { %238 = vst [vmem:[%s4038_s12 + $0xa0] sm:$0xff] %v237_v20  ;;  %v281_v42 = vld [vmem:[%s4033_s11 + $0x2a0] sm:$0xff]  ;;  %v283_v43 = vld [vmem:[%s4033_s11 + $0x2a8] sm:$0xff] }
  0x2c   : > { %240 = vst [vmem:[%s4038_s12 + $0xa8] sm:$0xff] %v239_v21  ;;  %v285_v44 = vld [vmem:[%s4033_s11 + $0x2c0] sm:$0xff]  ;;  %v287_v45 = vld [vmem:[%s4033_s11 + $0x2c8] sm:$0xff] }
  0x2d   : > { %242 = vst [vmem:[%s4038_s12 + $0xb0] sm:$0xff] %v241_v22  ;;  %v289_v46 = vld [vmem:[%s4033_s11 + $0x2e0] sm:$0xff]  ;;  %v291_v47 = vld [vmem:[%s4033_s11 + $0x2e8] sm:$0xff] }
  0x2e   : > { %244 = vst [vmem:[%s4038_s12 + $0xb8] sm:$0xff] %v243_v23  ;;  %v293_v48 = vld [vmem:[%s4033_s11 + $0x300] sm:$0xff]  ;;  %v295_v49 = vld [vmem:[%s4033_s11 + $0x308] sm:$0xff] }
  0x2f   : > { %246 = vst [vmem:[%s4038_s12 + $0xc0] sm:$0xff] %v245_v24  ;;  %v297_v50 = vld [vmem:[%s4033_s11 + $0x320] sm:$0xff]  ;;  %v299_v51 = vld [vmem:[%s4033_s11 + $0x328] sm:$0xff] }
  0x30   : > { %248 = vst [vmem:[%s4038_s12 + $0xc8] sm:$0xff] %v247_v25  ;;  %v301_v52 = vld [vmem:[%s4033_s11 + $0x340] sm:$0xff]  ;;  %v303_v53 = vld [vmem:[%s4033_s11 + $0x348] sm:$0xff] }
  0x31   : > { %250 = vst [vmem:[%s4038_s12 + $0xd0] sm:$0xff] %v249_v26  ;;  %v305_v54 = vld [vmem:[%s4033_s11 + $0x360] sm:$0xff]  ;;  %v307_v55 = vld [vmem:[%s4033_s11 + $0x368] sm:$0xff] }
  0x32   : > { %252 = vst [vmem:[%s4038_s12 + $0xd8] sm:$0xff] %v251_v27  ;;  %v309_v56 = vld [vmem:[%s4033_s11 + $0x380] sm:$0xff]  ;;  %v311_v57 = vld [vmem:[%s4033_s11 + $0x388] sm:$0xff] }
  0x33   : > { %254 = vst [vmem:[%s4038_s12 + $0xe0] sm:$0xff] %v253_v28  ;;  %v313_v58 = vld [vmem:[%s4033_s11 + $0x3a0] sm:$0xff]  ;;  %v315_v59 = vld [vmem:[%s4033_s11 + $0x3a8] sm:$0xff] }
  0x34   : > { %256 = vst [vmem:[%s4038_s12 + $0xe8] sm:$0xff] %v255_v29  ;;  %v317_v60 = vld [vmem:[%s4033_s11 + $0x3c0] sm:$0xff]  ;;  %v319_v61 = vld [vmem:[%s4033_s11 + $0x3c8] sm:$0xff] }
  0x35   : > { %258 = vst [vmem:[%s4038_s12 + $0xf0] sm:$0xff] %v257_v30  ;;  %v321_v62 = vld [vmem:[%s4033_s11 + $0x3e0] sm:$0xff]  ;;  %v323_v63 = vld [vmem:[%s4033_s11 + $0x3e8] sm:$0xff] }
  0x36   : > { %260 = vst [vmem:[%s4038_s12 + $0xf8] sm:$0xff] %v259_v31  ;;  %v325_v0 = vld [vmem:[%s4033_s11 + $0x400] sm:$0xff]  ;;  %v327_v1 = vld [vmem:[%s4033_s11 + $0x408] sm:$0xff] }
  0x37   : > { %262 = vst [vmem:[%s4038_s12 + $0x100] sm:$0xff] %v261_v32  ;;  %v329_v2 = vld [vmem:[%s4033_s11 + $0x420] sm:$0xff]  ;;  %v331_v3 = vld [vmem:[%s4033_s11 + $0x428] sm:$0xff] }
  0x38   : > { %264 = vst [vmem:[%s4038_s12 + $0x108] sm:$0xff] %v263_v33  ;;  %v333_v4 = vld [vmem:[%s4033_s11 + $0x440] sm:$0xff]  ;;  %v335_v5 = vld [vmem:[%s4033_s11 + $0x448] sm:$0xff] }
  0x39   : > { %266 = vst [vmem:[%s4038_s12 + $0x110] sm:$0xff] %v265_v34  ;;  %v337_v6 = vld [vmem:[%s4033_s11 + $0x460] sm:$0xff]  ;;  %v339_v7 = vld [vmem:[%s4033_s11 + $0x468] sm:$0xff] }
  0x3a   : > { %268 = vst [vmem:[%s4038_s12 + $0x118] sm:$0xff] %v267_v35  ;;  %v341_v8 = vld [vmem:[%s4033_s11 + $0x480] sm:$0xff]  ;;  %v343_v9 = vld [vmem:[%s4033_s11 + $0x488] sm:$0xff] }
  0x3b   : > { %270 = vst [vmem:[%s4038_s12 + $0x120] sm:$0xff] %v269_v36  ;;  %v345_v10 = vld [vmem:[%s4033_s11 + $0x4a0] sm:$0xff]  ;;  %v347_v11 = vld [vmem:[%s4033_s11 + $0x4a8] sm:$0xff] }
  0x3c   : > { %272 = vst [vmem:[%s4038_s12 + $0x128] sm:$0xff] %v271_v37  ;;  %v349_v12 = vld [vmem:[%s4033_s11 + $0x4c0] sm:$0xff]  ;;  %v351_v13 = vld [vmem:[%s4033_s11 + $0x4c8] sm:$0xff] }
  0x3d   : > { %274 = vst [vmem:[%s4038_s12 + $0x130] sm:$0xff] %v273_v38  ;;  %v353_v14 = vld [vmem:[%s4033_s11 + $0x4e0] sm:$0xff]  ;;  %v355_v15 = vld [vmem:[%s4033_s11 + $0x4e8] sm:$0xff] }
  0x3e   : > { %276 = vst [vmem:[%s4038_s12 + $0x138] sm:$0xff] %v275_v39  ;;  %v357_v16 = vld [vmem:[%s4033_s11 + $0x500] sm:$0xff]  ;;  %v359_v17 = vld [vmem:[%s4033_s11 + $0x508] sm:$0xff] }
  0x3f   : > { %278 = vst [vmem:[%s4038_s12 + $0x140] sm:$0xff] %v277_v40  ;;  %v361_v18 = vld [vmem:[%s4033_s11 + $0x520] sm:$0xff]  ;;  %v363_v19 = vld [vmem:[%s4033_s11 + $0x528] sm:$0xff] }
  0x40   : > { %280 = vst [vmem:[%s4038_s12 + $0x148] sm:$0xff] %v279_v41  ;;  %v365_v20 = vld [vmem:[%s4033_s11 + $0x540] sm:$0xff]  ;;  %v367_v21 = vld [vmem:[%s4033_s11 + $0x548] sm:$0xff] }
  0x41   : > { %282 = vst [vmem:[%s4038_s12 + $0x150] sm:$0xff] %v281_v42  ;;  %v369_v22 = vld [vmem:[%s4033_s11 + $0x560] sm:$0xff]  ;;  %v371_v23 = vld [vmem:[%s4033_s11 + $0x568] sm:$0xff] }
  0x42   : > { %284 = vst [vmem:[%s4038_s12 + $0x158] sm:$0xff] %v283_v43  ;;  %v373_v24 = vld [vmem:[%s4033_s11 + $0x580] sm:$0xff]  ;;  %v375_v25 = vld [vmem:[%s4033_s11 + $0x588] sm:$0xff] }
  0x43   : > { %286 = vst [vmem:[%s4038_s12 + $0x160] sm:$0xff] %v285_v44  ;;  %v377_v26 = vld [vmem:[%s4033_s11 + $0x5a0] sm:$0xff]  ;;  %v379_v27 = vld [vmem:[%s4033_s11 + $0x5a8] sm:$0xff] }
  0x44   : > { %288 = vst [vmem:[%s4038_s12 + $0x168] sm:$0xff] %v287_v45  ;;  %v381_v28 = vld [vmem:[%s4033_s11 + $0x5c0] sm:$0xff]  ;;  %v383_v29 = vld [vmem:[%s4033_s11 + $0x5c8] sm:$0xff] }
  0x45   : > { %290 = vst [vmem:[%s4038_s12 + $0x170] sm:$0xff] %v289_v46  ;;  %v385_v30 = vld [vmem:[%s4033_s11 + $0x5e0] sm:$0xff]  ;;  %v387_v31 = vld [vmem:[%s4033_s11 + $0x5e8] sm:$0xff] }
  0x46   : > { %292 = vst [vmem:[%s4038_s12 + $0x178] sm:$0xff] %v291_v47  ;;  %v389_v32 = vld [vmem:[%s4033_s11 + $0x600] sm:$0xff]  ;;  %v391_v33 = vld [vmem:[%s4033_s11 + $0x608] sm:$0xff] }
  0x47   : > { %294 = vst [vmem:[%s4038_s12 + $0x180] sm:$0xff] %v293_v48  ;;  %v393_v34 = vld [vmem:[%s4033_s11 + $0x620] sm:$0xff]  ;;  %v395_v35 = vld [vmem:[%s4033_s11 + $0x628] sm:$0xff] }
  0x48   : > { %296 = vst [vmem:[%s4038_s12 + $0x188] sm:$0xff] %v295_v49  ;;  %v397_v36 = vld [vmem:[%s4033_s11 + $0x640] sm:$0xff]  ;;  %v399_v37 = vld [vmem:[%s4033_s11 + $0x648] sm:$0xff] }
  0x49   : > { %298 = vst [vmem:[%s4038_s12 + $0x190] sm:$0xff] %v297_v50  ;;  %v401_v38 = vld [vmem:[%s4033_s11 + $0x660] sm:$0xff]  ;;  %v403_v39 = vld [vmem:[%s4033_s11 + $0x668] sm:$0xff] }
  0x4a   : > { %300 = vst [vmem:[%s4038_s12 + $0x198] sm:$0xff] %v299_v51  ;;  %v405_v40 = vld [vmem:[%s4033_s11 + $0x680] sm:$0xff]  ;;  %v407_v41 = vld [vmem:[%s4033_s11 + $0x688] sm:$0xff] }
  0x4b   : > { %302 = vst [vmem:[%s4038_s12 + $0x1a0] sm:$0xff] %v301_v52  ;;  %v409_v42 = vld [vmem:[%s4033_s11 + $0x6a0] sm:$0xff]  ;;  %v411_v43 = vld [vmem:[%s4033_s11 + $0x6a8] sm:$0xff] }
  0x4c   : > { %304 = vst [vmem:[%s4038_s12 + $0x1a8] sm:$0xff] %v303_v53  ;;  %v413_v44 = vld [vmem:[%s4033_s11 + $0x6c0] sm:$0xff]  ;;  %v415_v45 = vld [vmem:[%s4033_s11 + $0x6c8] sm:$0xff] }
  0x4d   : > { %306 = vst [vmem:[%s4038_s12 + $0x1b0] sm:$0xff] %v305_v54  ;;  %v417_v46 = vld [vmem:[%s4033_s11 + $0x6e0] sm:$0xff]  ;;  %v419_v47 = vld [vmem:[%s4033_s11 + $0x6e8] sm:$0xff] }
  0x4e   : > { %308 = vst [vmem:[%s4038_s12 + $0x1b8] sm:$0xff] %v307_v55  ;;  %v421_v48 = vld [vmem:[%s4033_s11 + $0x700] sm:$0xff]  ;;  %v423_v49 = vld [vmem:[%s4033_s11 + $0x708] sm:$0xff] }
  0x4f   : > { %310 = vst [vmem:[%s4038_s12 + $0x1c0] sm:$0xff] %v309_v56  ;;  %v425_v50 = vld [vmem:[%s4033_s11 + $0x720] sm:$0xff]  ;;  %v427_v51 = vld [vmem:[%s4033_s11 + $0x728] sm:$0xff] }
  0x50   : > { %312 = vst [vmem:[%s4038_s12 + $0x1c8] sm:$0xff] %v311_v57  ;;  %v429_v52 = vld [vmem:[%s4033_s11 + $0x740] sm:$0xff]  ;;  %v431_v53 = vld [vmem:[%s4033_s11 + $0x748] sm:$0xff] }
  0x51   : > { %314 = vst [vmem:[%s4038_s12 + $0x1d0] sm:$0xff] %v313_v58  ;;  %v433_v54 = vld [vmem:[%s4033_s11 + $0x760] sm:$0xff]  ;;  %v435_v55 = vld [vmem:[%s4033_s11 + $0x768] sm:$0xff] }
  0x52   : > { %316 = vst [vmem:[%s4038_s12 + $0x1d8] sm:$0xff] %v315_v59  ;;  %v437_v56 = vld [vmem:[%s4033_s11 + $0x780] sm:$0xff]  ;;  %v439_v57 = vld [vmem:[%s4033_s11 + $0x788] sm:$0xff] }
  0x53   : > { %318 = vst [vmem:[%s4038_s12 + $0x1e0] sm:$0xff] %v317_v60  ;;  %v441_v58 = vld [vmem:[%s4033_s11 + $0x7a0] sm:$0xff]  ;;  %v443_v59 = vld [vmem:[%s4033_s11 + $0x7a8] sm:$0xff] }
  0x54   : > { %320 = vst [vmem:[%s4038_s12 + $0x1e8] sm:$0xff] %v319_v61  ;;  %v445_v60 = vld [vmem:[%s4033_s11 + $0x7c0] sm:$0xff]  ;;  %v447_v61 = vld [vmem:[%s4033_s11 + $0x7c8] sm:$0xff] }
  0x55   : > { %322 = vst [vmem:[%s4038_s12 + $0x1f0] sm:$0xff] %v321_v62  ;;  %v449_v62 = vld [vmem:[%s4033_s11 + $0x7e0] sm:$0xff] }
  0x56   : > { %324 = vst [vmem:[%s4038_s12 + $0x1f8] sm:$0xff] %v323_v63  ;;  %v451_v63 = vld [vmem:[%s4033_s11 + $0x7e8] sm:$0xff] }
  0x57   : > { %326 = vst [vmem:[%s4038_s12 + $0x200] sm:$0xff] %v325_v0 }
  0x58   : > { %328 = vst [vmem:[%s4038_s12 + $0x208] sm:$0xff] %v327_v1 }
  0x59   : > { %330 = vst [vmem:[%s4038_s12 + $0x210] sm:$0xff] %v329_v2 }
  0x5a   : > { %332 = vst [vmem:[%s4038_s12 + $0x218] sm:$0xff] %v331_v3 }
  0x5b   : > { %334 = vst [vmem:[%s4038_s12 + $0x220] sm:$0xff] %v333_v4 }
  0x5c   : > { %336 = vst [vmem:[%s4038_s12 + $0x228] sm:$0xff] %v335_v5 }
  0x5d   : > { %338 = vst [vmem:[%s4038_s12 + $0x230] sm:$0xff] %v337_v6 }
  0x5e   : > { %340 = vst [vmem:[%s4038_s12 + $0x238] sm:$0xff] %v339_v7 }
  0x5f   : > { %342 = vst [vmem:[%s4038_s12 + $0x240] sm:$0xff] %v341_v8 }
  0x60   : > { %344 = vst [vmem:[%s4038_s12 + $0x248] sm:$0xff] %v343_v9 }
  0x61   : > { %346 = vst [vmem:[%s4038_s12 + $0x250] sm:$0xff] %v345_v10 }
  0x62   : > { %348 = vst [vmem:[%s4038_s12 + $0x258] sm:$0xff] %v347_v11 }
  0x63   : > { %350 = vst [vmem:[%s4038_s12 + $0x260] sm:$0xff] %v349_v12 }
  0x64   : > { %352 = vst [vmem:[%s4038_s12 + $0x268] sm:$0xff] %v351_v13 }
  0x65   : > { %354 = vst [vmem:[%s4038_s12 + $0x270] sm:$0xff] %v353_v14 }
  0x66   : > { %356 = vst [vmem:[%s4038_s12 + $0x278] sm:$0xff] %v355_v15 }
  0x67   : > { %358 = vst [vmem:[%s4038_s12 + $0x280] sm:$0xff] %v357_v16 }
  0x68   : > { %360 = vst [vmem:[%s4038_s12 + $0x288] sm:$0xff] %v359_v17 }
  0x69   : > { %362 = vst [vmem:[%s4038_s12 + $0x290] sm:$0xff] %v361_v18 }
  0x6a   : > { %364 = vst [vmem:[%s4038_s12 + $0x298] sm:$0xff] %v363_v19 }
  0x6b   : > { %366 = vst [vmem:[%s4038_s12 + $0x2a0] sm:$0xff] %v365_v20 }
  0x6c   : > { %368 = vst [vmem:[%s4038_s12 + $0x2a8] sm:$0xff] %v367_v21 }
  0x6d   : > { %370 = vst [vmem:[%s4038_s12 + $0x2b0] sm:$0xff] %v369_v22 }
  0x6e   : > { %372 = vst [vmem:[%s4038_s12 + $0x2b8] sm:$0xff] %v371_v23 }
  0x6f   : > { %374 = vst [vmem:[%s4038_s12 + $0x2c0] sm:$0xff] %v373_v24 }
  0x70   : > { %376 = vst [vmem:[%s4038_s12 + $0x2c8] sm:$0xff] %v375_v25 }
  0x71   : > { %378 = vst [vmem:[%s4038_s12 + $0x2d0] sm:$0xff] %v377_v26 }
  0x72   : > { %380 = vst [vmem:[%s4038_s12 + $0x2d8] sm:$0xff] %v379_v27 }
  0x73   : > { %382 = vst [vmem:[%s4038_s12 + $0x2e0] sm:$0xff] %v381_v28 }
  0x74   : > { %384 = vst [vmem:[%s4038_s12 + $0x2e8] sm:$0xff] %v383_v29 }
  0x75   : > { %386 = vst [vmem:[%s4038_s12 + $0x2f0] sm:$0xff] %v385_v30 }
  0x76   : > { %388 = vst [vmem:[%s4038_s12 + $0x2f8] sm:$0xff] %v387_v31 }
  0x77   : > { %390 = vst [vmem:[%s4038_s12 + $0x300] sm:$0xff] %v389_v32 }
  0x78   : > { %392 = vst [vmem:[%s4038_s12 + $0x308] sm:$0xff] %v391_v33 }
  0x79   : > { %394 = vst [vmem:[%s4038_s12 + $0x310] sm:$0xff] %v393_v34 }
  0x7a   : > { %396 = vst [vmem:[%s4038_s12 + $0x318] sm:$0xff] %v395_v35 }
  0x7b   : > { %398 = vst [vmem:[%s4038_s12 + $0x320] sm:$0xff] %v397_v36 }
  0x7c   : > { %400 = vst [vmem:[%s4038_s12 + $0x328] sm:$0xff] %v399_v37 }
  0x7d   : > { %402 = vst [vmem:[%s4038_s12 + $0x330] sm:$0xff] %v401_v38 }
  0x7e   : > { %404 = vst [vmem:[%s4038_s12 + $0x338] sm:$0xff] %v403_v39 }
  0x7f   : > { %406 = vst [vmem:[%s4038_s12 + $0x340] sm:$0xff] %v405_v40 }
  0x80   : > { %408 = vst [vmem:[%s4038_s12 + $0x348] sm:$0xff] %v407_v41 }
  0x81   : > { %410 = vst [vmem:[%s4038_s12 + $0x350] sm:$0xff] %v409_v42 }
  0x82   : > { %412 = vst [vmem:[%s4038_s12 + $0x358] sm:$0xff] %v411_v43 }
  0x83   : > { %414 = vst [vmem:[%s4038_s12 + $0x360] sm:$0xff] %v413_v44 }
  0x84   : > { %416 = vst [vmem:[%s4038_s12 + $0x368] sm:$0xff] %v415_v45 }
  0x85   : > { %418 = vst [vmem:[%s4038_s12 + $0x370] sm:$0xff] %v417_v46 }
  0x86   : > { %420 = vst [vmem:[%s4038_s12 + $0x378] sm:$0xff] %v419_v47 }
  0x87   : > { %422 = vst [vmem:[%s4038_s12 + $0x380] sm:$0xff] %v421_v48 }
  0x88   : > { %424 = vst [vmem:[%s4038_s12 + $0x388] sm:$0xff] %v423_v49 }
  0x89   : > { %426 = vst [vmem:[%s4038_s12 + $0x390] sm:$0xff] %v425_v50 }
  0x8a   : > { %428 = vst [vmem:[%s4038_s12 + $0x398] sm:$0xff] %v427_v51 }
  0x8b   : > { %430 = vst [vmem:[%s4038_s12 + $0x3a0] sm:$0xff] %v429_v52 }
  0x8c   : > { %432 = vst [vmem:[%s4038_s12 + $0x3a8] sm:$0xff] %v431_v53 }
  0x8d   : > { %434 = vst [vmem:[%s4038_s12 + $0x3b0] sm:$0xff] %v433_v54 }
  0x8e   : > { %436 = vst [vmem:[%s4038_s12 + $0x3b8] sm:$0xff] %v435_v55 }
  0x8f   : > { %438 = vst [vmem:[%s4038_s12 + $0x3c0] sm:$0xff] %v437_v56 }
  0x90   : > { %440 = vst [vmem:[%s4038_s12 + $0x3c8] sm:$0xff] %v439_v57 }
  0x91   : > { %442 = vst [vmem:[%s4038_s12 + $0x3d0] sm:$0xff] %v441_v58 }
  0x92   : > { %444 = vst [vmem:[%s4038_s12 + $0x3d8] sm:$0xff] %v443_v59 }
  0x93   : > { %446 = vst [vmem:[%s4038_s12 + $0x3e0] sm:$0xff] %v445_v60 }
  0x94   : > { %448 = vst [vmem:[%s4038_s12 + $0x3e8] sm:$0xff] %v447_v61 }
  0x95   : > { %450 = vst [vmem:[%s4038_s12 + $0x3f0] sm:$0xff] %v449_v62 }
  0x96   : > { %452 = vst [vmem:[%s4038_s12 + $0x3f8] sm:$0xff] %v451_v63 }
  0x97 PF: > { %p3019_p7 = scmp.ge.s32.totalorder %s3944_s21, 1  ;;  %p466_p8 = scmp.lt.s32.totalorder %s3944_s21, 5 }
  0x99   : > { %p467_p9 = pnand %p3019_p7, %p466_p8 }
  0x9a   : > { %s473_s13 = sand.u32 (!%p467_p9), 1, %s3920_s15   ;;  %s3021_s14 = sshll.u32 (!%p467_p9), %s3928_s17, 6 }
  0x9b   : > { %470 = sbr.rel (%p467_p9) target bundleno = 1056 (0x420), region = 51  ;;  %s3020_s24 = sshll.u32 (!%p467_p9), %s473_s13, 10 }
  0x9c   : > { %p510_p10 = scmp.lt.s32.totalorder (!%p467_p9), %s3021_s14, 127  ;;  %s3023_s25 = sshll.u32 (!%p467_p9), %s3932_s18, 6 }
  0x9d   : > { %p516_p11 = scmp.lt.s32.totalorder (!%p467_p9), %s3023_s25, 127  ;;  %p521_p12 = scmp.lt.s32.totalorder (!%p467_p9), %s3932_s18, 1 }
  0x9e   : > { %s4315_s12 = scalar_lea.vmem (!%p467_p9), [#allocation3], %s3020_s24  ;;  %p3026_p13 = scmp.ne.s32.totalorder (!%p467_p9), %s3928_s17, 0 }
  0xa0   : > { %s5116_s14 = smov (!%p510_p10, %s3021_s14), 127  ;;  %s5118_s25 = smov (!%p516_p11, %s3023_s25), 127 }
  0xa1   : > { %s3022_s26 = sshll.u32 %s5116_s14, 2  ;;  %s5120_s18 = smov (!%p521_p12, %s3932_s18), 1 }
  0xa2   : > { %s4302_s30 = scalar_lea.vmem %s5099_s1, %s3022_s26  ;;  %s3024_s5 = sshll.u32 %s5118_s25, 3 }
  0xa3   : > { %s4308_s15 = scalar_lea.vmem %s5101_s3, %s3024_s5  ;;  %s3025_s8 = sshll.u32 %s5120_s18, 3 }
  0xa4   : > { %s4313_s11 = scalar_lea.vmem %s5102_s4, %s3025_s8  ;;  %528 = sbr.rel (%p3026_p13) target bundleno = 234 (0xea), region = 59 }
  0xa9   : > { %v3946_v0 = vmov 0.0  }
  0xaa   : > { %529 = vst [vmem:[#allocation2 + $0xb0] sm:$0xff] %v3946_v0 }
  0xab   : > { %530 = vst [vmem:[#allocation2 + $0x1b0] sm:$0xff] %v3946_v0 }
  0xac   : > { %531 = vst [vmem:[#allocation2 + $0xd8] sm:$0xff] %v3946_v0 }
  0xad   : > { %532 = vst [vmem:[#allocation2 + $0x18] sm:$0xff] %v3946_v0 }
  0xae   : > { %533 = vst [vmem:[#allocation2 + $0x50] sm:$0xff] %v3946_v0 }
  0xaf   : > { %534 = vst [vmem:[#allocation2 + $0x168] sm:$0xff] %v3946_v0 }
  0xb0   : > { %535 = vst [vmem:[#allocation2 + $0x130] sm:$0xff] %v3946_v0 }
  0xb1   : > { %536 = vst [vmem:[#allocation2 + $0x48] sm:$0xff] %v3946_v0 }
  0xb2   : > { %537 = vst [vmem:[#allocation2 + $0x180] sm:$0xff] %v3946_v0 }
  0xb3   : > { %538 = vst [vmem:[#allocation2 + $0x110] sm:$0xff] %v3946_v0 }
  0xb4   : > { %539 = vst [vmem:[#allocation2 + $0x118] sm:$0xff] %v3946_v0 }
  0xb5   : > { %540 = vst [vmem:[#allocation2 + $0x98] sm:$0xff] %v3946_v0 }
  0xb6   : > { %541 = vst [vmem:[#allocation2 + $0x120] sm:$0xff] %v3946_v0 }
  0xb7   : > { %542 = vst [vmem:[#allocation2 + $0x150] sm:$0xff] %v3946_v0 }
  0xb8   : > { %543 = vst [vmem:[#allocation2 + $0x108] sm:$0xff] %v3946_v0 }
  0xb9   : > { %544 = vst [vmem:[#allocation2 + $0x60] sm:$0xff] %v3946_v0 }
  0xba   : > { %545 = vst [vmem:[#allocation2 + $0xe0] sm:$0xff] %v3946_v0 }
  0xbb   : > { %546 = vst [vmem:[#allocation2 + $0x188] sm:$0xff] %v3946_v0 }
  0xbc   : > { %547 = vst [vmem:[#allocation2 + $0x138] sm:$0xff] %v3946_v0 }
  0xbd   : > { %548 = vst [vmem:[#allocation2 + $0x140] sm:$0xff] %v3946_v0 }
  0xbe   : > { %549 = vst [vmem:[#allocation2 + $0x80] sm:$0xff] %v3946_v0 }
  0xbf   : > { %550 = vst [vmem:[#allocation2 + $0x1a8] sm:$0xff] %v3946_v0 }
  0xc0   : > { %551 = vst [vmem:[#allocation2 + $0x1b8] sm:$0xff] %v3946_v0 }
  0xc1   : > { %552 = vst [vmem:[#allocation2 + $0x28] sm:$0xff] %v3946_v0 }
  0xc2   : > { %553 = vst [vmem:[#allocation2 + $0x1e8] sm:$0xff] %v3946_v0 }
  0xc3   : > { %554 = vst [vmem:[#allocation2 + $0xf8] sm:$0xff] %v3946_v0 }
  0xc4   : > { %555 = vst [vmem:[#allocation2 + $0x160] sm:$0xff] %v3946_v0 }
  0xc5   : > { %556 = vst [vmem:[#allocation2 + $0x30] sm:$0xff] %v3946_v0 }
  0xc6   : > { %557 = vst [vmem:[#allocation2 + $0x1e0] sm:$0xff] %v3946_v0 }
  0xc7   : > { %558 = vst [vmem:[#allocation2] sm:$0xff] %v3946_v0 }
  0xc8   : > { %559 = vst [vmem:[#allocation2 + $0xf0] sm:$0xff] %v3946_v0 }
  0xc9   : > { %560 = vst [vmem:[#allocation2 + $0x8] sm:$0xff] %v3946_v0 }
  0xca   : > { %561 = vst [vmem:[#allocation2 + $0x148] sm:$0xff] %v3946_v0 }
  0xcb   : > { %562 = vst [vmem:[#allocation2 + $0x1d0] sm:$0xff] %v3946_v0 }
  0xcc   : > { %563 = vst [vmem:[#allocation2 + $0x100] sm:$0xff] %v3946_v0 }
  0xcd   : > { %564 = vst [vmem:[#allocation2 + $0xc8] sm:$0xff] %v3946_v0 }
  0xce   : > { %565 = vst [vmem:[#allocation2 + $0x40] sm:$0xff] %v3946_v0 }
  0xcf   : > { %566 = vst [vmem:[#allocation2 + $0x1f8] sm:$0xff] %v3946_v0 }
  0xd0   : > { %567 = vst [vmem:[#allocation2 + $0x20] sm:$0xff] %v3946_v0 }
  0xd1   : > { %568 = vst [vmem:[#allocation2 + $0x128] sm:$0xff] %v3946_v0 }
  0xd2   : > { %569 = vst [vmem:[#allocation2 + $0x1a0] sm:$0xff] %v3946_v0 }
  0xd3   : > { %570 = vst [vmem:[#allocation2 + $0x1f0] sm:$0xff] %v3946_v0 }
  0xd4   : > { %571 = vst [vmem:[#allocation2 + $0xe8] sm:$0xff] %v3946_v0 }
  0xd5   : > { %572 = vst [vmem:[#allocation2 + $0x78] sm:$0xff] %v3946_v0 }
  0xd6   : > { %573 = vst [vmem:[#allocation2 + $0x70] sm:$0xff] %v3946_v0 }
  0xd7   : > { %574 = vst [vmem:[#allocation2 + $0x90] sm:$0xff] %v3946_v0 }
  0xd8   : > { %575 = vst [vmem:[#allocation2 + $0x1d8] sm:$0xff] %v3946_v0 }
  0xd9   : > { %576 = vst [vmem:[#allocation2 + $0xd0] sm:$0xff] %v3946_v0 }
  0xda   : > { %577 = vst [vmem:[#allocation2 + $0xb8] sm:$0xff] %v3946_v0 }
  0xdb   : > { %578 = vst [vmem:[#allocation2 + $0x88] sm:$0xff] %v3946_v0 }
  0xdc   : > { %579 = vst [vmem:[#allocation2 + $0xa8] sm:$0xff] %v3946_v0 }
  0xdd   : > { %580 = vst [vmem:[#allocation2 + $0x1c8] sm:$0xff] %v3946_v0 }
  0xde   : > { %581 = vst [vmem:[#allocation2 + $0x170] sm:$0xff] %v3946_v0 }
  0xdf   : > { %582 = vst [vmem:[#allocation2 + $0x178] sm:$0xff] %v3946_v0 }
  0xe0   : > { %583 = vst [vmem:[#allocation2 + $0x68] sm:$0xff] %v3946_v0 }
  0xe1   : > { %584 = vst [vmem:[#allocation2 + $0x190] sm:$0xff] %v3946_v0 }
  0xe2   : > { %585 = vst [vmem:[#allocation2 + $0x198] sm:$0xff] %v3946_v0 }
  0xe3   : > { %586 = vst [vmem:[#allocation2 + $0x38] sm:$0xff] %v3946_v0 }
  0xe4   : > { %587 = vst [vmem:[#allocation2 + $0xc0] sm:$0xff] %v3946_v0 }
  0xe5   : > { %588 = vst [vmem:[#allocation2 + $0x1c0] sm:$0xff] %v3946_v0 }
  0xe6   : > { %589 = vst [vmem:[#allocation2 + $0x158] sm:$0xff] %v3946_v0 }
  0xe7   : > { %590 = vst [vmem:[#allocation2 + $0x10] sm:$0xff] %v3946_v0 }
  0xe8   : > { %591 = vst [vmem:[#allocation2 + $0x58] sm:$0xff] %v3946_v0 }
  0xe9   : > { %592 = vst [vmem:[#allocation2 + $0xa0] sm:$0xff] %v3946_v0 }
  0xea PF: > { %v3806_v1 = vld [vmem:[%s4302_s30 + $0x38] sm:$0xff]  ;;  %v3805_v5 = vld [vmem:[%s4302_s30 + $0x30] sm:$0xff]  ;;  %v3804_v9 = vld [vmem:[%s4302_s30 + $0x28] sm:$0xff]  ;;  %p3667_p0 = scmp.ne.s32.totalorder %s3928_s17, 1 }
  0xeb   : > { %v3814_v2 = vld [vmem:[%s4302_s30 + $0x78] sm:$0xff]  ;;  %1681 = vmatpush.bf16.msra.mxu0 %v3806_v1  ;;  %v3813_v6 = vld [vmem:[%s4302_s30 + $0x70] sm:$0xff]  ;;  %v3812_v10 = vld [vmem:[%s4302_s30 + $0x68] sm:$0xff] }
  0xec   : > { %v3822_v3 = vld [vmem:[%s4302_s30 + $0xb8] sm:$0xff]  ;;  %1850 = vmatpush.bf16.msra.mxu1 %v3814_v2  ;;  %v3821_v7 = vld [vmem:[%s4302_s30 + $0xb0] sm:$0xff]  ;;  %v3820_v11 = vld [vmem:[%s4302_s30 + $0xa8] sm:$0xff] }
  0xed   : > { %v3830_v4 = vld [vmem:[%s4302_s30 + $0xf8] sm:$0xff]  ;;  %2019 = vmatpush.bf16.msra.mxu2 %v3822_v3  ;;  %v3829_v8 = vld [vmem:[%s4302_s30 + $0xf0] sm:$0xff]  ;;  %v3828_v12 = vld [vmem:[%s4302_s30 + $0xe8] sm:$0xff] }
  0xee   : > { %2188 = vmatpush.bf16.msra.mxu3 %v3830_v4  ;;  %v3803_v13 = vld [vmem:[%s4302_s30 + $0x20] sm:$0xff]  ;;  %v3802_v17 = vld [vmem:[%s4302_s30 + $0x18] sm:$0xff]  ;;  %v3801_v21 = vld [vmem:[%s4302_s30 + $0x10] sm:$0xff] }
  0xef   : > { %1682 = vmatpush.bf16.msra.mxu0 %v3805_v5  ;;  %v3811_v14 = vld [vmem:[%s4302_s30 + $0x60] sm:$0xff]  ;;  %v3810_v18 = vld [vmem:[%s4302_s30 + $0x58] sm:$0xff]  ;;  %v3809_v22 = vld [vmem:[%s4302_s30 + $0x50] sm:$0xff] }
  0xf0   : > { %1851 = vmatpush.bf16.msra.mxu1 %v3813_v6  ;;  %v3819_v15 = vld [vmem:[%s4302_s30 + $0xa0] sm:$0xff]  ;;  %v3818_v19 = vld [vmem:[%s4302_s30 + $0x98] sm:$0xff]  ;;  %v3817_v23 = vld [vmem:[%s4302_s30 + $0x90] sm:$0xff] }
  0xf1   : > { %2020 = vmatpush.bf16.msra.mxu2 %v3821_v7  ;;  %v3827_v16 = vld [vmem:[%s4302_s30 + $0xe0] sm:$0xff]  ;;  %v3826_v20 = vld [vmem:[%s4302_s30 + $0xd8] sm:$0xff]  ;;  %v3825_v24 = vld [vmem:[%s4302_s30 + $0xd0] sm:$0xff] }
  0xf2   : > { %2189 = vmatpush.bf16.msra.mxu3 %v3829_v8  ;;  %v3800_v25 = vld [vmem:[%s4302_s30 + $0x8] sm:$0xff]  ;;  %v3799_v29 = vld [vmem:[%s4302_s30] sm:$0xff]  ;;  %v3673_v34 = vld [vmem:[%s4315_s12 + $0xc] sm:$0xf0] }
  0xf3   : > { %1683 = vmatpush.bf16.msra.mxu0 %v3804_v9  ;;  %v3808_v26 = vld [vmem:[%s4302_s30 + $0x48] sm:$0xff]  ;;  %v3807_v30 = vld [vmem:[%s4302_s30 + $0x40] sm:$0xff]  ;;  %v3031_v36 = vld [vmem:[%s4315_s12 + $0x10] sm:$0xf0] }
  0xf4   : > { %1852 = vmatpush.bf16.msra.mxu1 %v3812_v10  ;;  %v3816_v27 = vld [vmem:[%s4302_s30 + $0x88] sm:$0xff]  ;;  %v3815_v31 = vld [vmem:[%s4302_s30 + $0x80] sm:$0xff]  ;;  %v3674_v38 = vld [vmem:[%s4315_s12 + $0x14] sm:$0xf0] }
  0xf5   : > { %2021 = vmatpush.bf16.msra.mxu2 %v3820_v11  ;;  %v3824_v28 = vld [vmem:[%s4302_s30 + $0xc8] sm:$0xff]  ;;  %v3823_v32 = vld [vmem:[%s4302_s30 + $0xc0] sm:$0xff]  ;;  %v3039_v40 = vld [vmem:[%s4315_s12 + $0x18] sm:$0xf0] }
  0xf6   : > { %2190 = vmatpush.bf16.msra.mxu3 %v3828_v12  ;;  %v3029_v33 = vld [vmem:[%s4315_s12] sm:$0xf]  ;;  %v3671_v35 = vld [vmem:[%s4315_s12 + $0x4] sm:$0xf]  ;;  %v3037_v37 = vld [vmem:[%s4315_s12 + $0x8] sm:$0xf] }
  0xf7   : > { %1684 = vmatpush.bf16.msra.mxu0 %v3803_v13  ;;  %v3672_v39 = vld [vmem:[%s4315_s12 + $0xc] sm:$0xf]  ;;  %v3030_v41 = vor.u32 %v3673_v34, %v3029_v33  ;;  %v3034_v42 = vor.u32 %v3671_v35, %v3031_v36  ;;  %v3038_v43 = vor.u32 %v3674_v38, %v3037_v37  ;;  %v3045_v45 = vld [vmem:[%s4315_s12 + $0x20] sm:$0xf]  ;;  %v3677_v46 = vld [vmem:[%s4315_s12 + $0x2c] sm:$0xf0] }
  0xf8   : > { %1853 = vmatpush.bf16.msra.mxu1 %v3811_v14  ;;  %v3042_v44 = vor.u32 %v3672_v39, %v3039_v40  ;;  %v3675_v47 = vld [vmem:[%s4315_s12 + $0x24] sm:$0xf]  ;;  %v3047_v48 = vld [vmem:[%s4315_s12 + $0x30] sm:$0xf0]  ;;  %v3053_v49 = vld [vmem:[%s4315_s12 + $0x28] sm:$0xf]  ;;  %v3046_v53 = vor.u32 %v3677_v46, %v3045_v45 }
  0xf9   : > { %2022 = vmatpush.bf16.msra.mxu2 %v3819_v15  ;;  %v3678_v50 = vld [vmem:[%s4315_s12 + $0x34] sm:$0xf0]  ;;  %v3676_v51 = vld [vmem:[%s4315_s12 + $0x2c] sm:$0xf]  ;;  %v3055_v52 = vld [vmem:[%s4315_s12 + $0x38] sm:$0xf0]  ;;  %v3050_v54 = vor.u32 %v3675_v47, %v3047_v48 }
  0xfa   : > { %2191 = vmatpush.bf16.msra.mxu3 %v3827_v16  ;;  %v3054_v55 = vor.u32 %v3678_v50, %v3053_v49  ;;  %v3058_v56 = vor.u32 %v3676_v51, %v3055_v52  ;;  %v3061_v57 = vld [vmem:[%s4315_s12 + $0x40] sm:$0xf]  ;;  %v3681_v58 = vld [vmem:[%s4315_s12 + $0x4c] sm:$0xf0]  ;;  %v3679_v59 = vld [vmem:[%s4315_s12 + $0x44] sm:$0xf] }
  0xfb   : > { %1685 = vmatpush.bf16.msra.mxu0 %v3802_v17  ;;  %v3063_v60 = vld [vmem:[%s4315_s12 + $0x50] sm:$0xf0]  ;;  %v3069_v61 = vld [vmem:[%s4315_s12 + $0x48] sm:$0xf]  ;;  %v3682_v62 = vld [vmem:[%s4315_s12 + $0x54] sm:$0xf0]  ;;  %v3062_v1 = vor.u32 %v3681_v58, %v3061_v57 }
  0xfc   : > { %1854 = vmatpush.bf16.msra.mxu1 %v3810_v18  ;;  %v3680_v63 = vld [vmem:[%s4315_s12 + $0x4c] sm:$0xf]  ;;  %v3071_v0 = vld [vmem:[%s4315_s12 + $0x58] sm:$0xf0]  ;;  %v3066_v2 = vor.u32 %v3679_v59, %v3063_v60  ;;  %v3070_v3 = vor.u32 %v3682_v62, %v3069_v61  ;;  %v3077_v5 = vld [vmem:[%s4315_s12 + $0x60] sm:$0xf] }
  0xfd   : > { %2023 = vmatpush.bf16.msra.mxu2 %v3818_v19  ;;  %v3074_v4 = vor.u32 %v3680_v63, %v3071_v0  ;;  %v3685_v6 = vld [vmem:[%s4315_s12 + $0x6c] sm:$0xf0]  ;;  %v3683_v7 = vld [vmem:[%s4315_s12 + $0x64] sm:$0xf]  ;;  %v3079_v8 = vld [vmem:[%s4315_s12 + $0x70] sm:$0xf0] }
  0xfe   : > { %2192 = vmatpush.bf16.msra.mxu3 %v3826_v20  ;;  %v3085_v9 = vld [vmem:[%s4315_s12 + $0x68] sm:$0xf]  ;;  %v3686_v10 = vld [vmem:[%s4315_s12 + $0x74] sm:$0xf0]  ;;  %v3684_v11 = vld [vmem:[%s4315_s12 + $0x6c] sm:$0xf]  ;;  %v3078_v13 = vor.u32 %v3685_v6, %v3077_v5  ;;  %v3082_v14 = vor.u32 %v3683_v7, %v3079_v8 }
  0xff   : > { %1686 = vmatpush.bf16.msra.mxu0 %v3801_v21  ;;  %v3087_v12 = vld [vmem:[%s4315_s12 + $0x78] sm:$0xf0]  ;;  %v3086_v15 = vor.u32 %v3686_v10, %v3085_v9  ;;  %v3093_v17 = vld [vmem:[%s4315_s12 + $0x80] sm:$0xf]  ;;  %v3689_v18 = vld [vmem:[%s4315_s12 + $0x8c] sm:$0xf0] }
 0x100   : > { %1855 = vmatpush.bf16.msra.mxu1 %v3809_v22  ;;  %v3090_v16 = vor.u32 %v3684_v11, %v3087_v12  ;;  %v3687_v19 = vld [vmem:[%s4315_s12 + $0x84] sm:$0xf]  ;;  %v3095_v20 = vld [vmem:[%s4315_s12 + $0x90] sm:$0xf0]  ;;  %v3101_v21 = vld [vmem:[%s4315_s12 + $0x88] sm:$0xf] }
 0x101   : > { %2024 = vmatpush.bf16.msra.mxu2 %v3817_v23  ;;  %v3690_v22 = vld [vmem:[%s4315_s12 + $0x94] sm:$0xf0]  ;;  %v3688_v23 = vld [vmem:[%s4315_s12 + $0x8c] sm:$0xf]  ;;  %v3117_v33 = vld [vmem:[%s4315_s12 + $0xa8] sm:$0xf] }
 0x102   : > { %2193 = vmatpush.bf16.msra.mxu3 %v3825_v24  ;;  %v3103_v24 = vld [vmem:[%s4315_s12 + $0x98] sm:$0xf0]  ;;  %v3694_v34 = vld [vmem:[%s4315_s12 + $0xb4] sm:$0xf0]  ;;  %v3692_v35 = vld [vmem:[%s4315_s12 + $0xac] sm:$0xf] }
 0x103   : > { %1687 = vmatpush.bf16.msra.mxu0 %v3800_v25  ;;  %v3094_v25 = vor.u32 %v3689_v18, %v3093_v17  ;;  %v3119_v36 = vld [vmem:[%s4315_s12 + $0xb8] sm:$0xf0]  ;;  %v3118_v39 = vor.u32 %v3694_v34, %v3117_v33  ;;  %v3133_v45 = vld [vmem:[%s4315_s12 + $0xc8] sm:$0xf]  ;;  %v3698_v46 = vld [vmem:[%s4315_s12 + $0xd4] sm:$0xf0] }
 0x104   : > { %1856 = vmatpush.bf16.msra.mxu1 %v3808_v26  ;;  %v3098_v26 = vor.u32 %v3687_v19, %v3095_v20  ;;  %v3122_v40 = vor.u32 %v3692_v35, %v3119_v36  ;;  %v3696_v47 = vld [vmem:[%s4315_s12 + $0xcc] sm:$0xf]  ;;  %v3135_v48 = vld [vmem:[%s4315_s12 + $0xd8] sm:$0xf0]  ;;  %v3134_v51 = vor.u32 %v3698_v46, %v3133_v45  ;;  %v3149_v57 = vld [vmem:[%s4315_s12 + $0xe8] sm:$0xf] }
 0x105   : > { %2025 = vmatpush.bf16.msra.mxu2 %v3816_v27  ;;  %v3102_v27 = vor.u32 %v3690_v22, %v3101_v21  ;;  %v3138_v52 = vor.u32 %v3696_v47, %v3135_v48  ;;  %v3702_v58 = vld [vmem:[%s4315_s12 + $0xf4] sm:$0xf0]  ;;  %v3700_v59 = vld [vmem:[%s4315_s12 + $0xec] sm:$0xf]  ;;  %v3151_v60 = vld [vmem:[%s4315_s12 + $0xf8] sm:$0xf0] }
 0x106   : > { %2194 = vmatpush.bf16.msra.mxu3 %v3824_v28  ;;  %v3106_v28 = vor.u32 %v3688_v23, %v3103_v24  ;;  %v3150_v63 = vor.u32 %v3702_v58, %v3149_v57  ;;  %v3154_v0 = vor.u32 %v3700_v59, %v3151_v60  ;;  %v3165_v5 = vld [vmem:[%s4315_s12 + $0x108] sm:$0xf]  ;;  %v3706_v6 = vld [vmem:[%s4315_s12 + $0x114] sm:$0xf0]  ;;  %v3704_v7 = vld [vmem:[%s4315_s12 + $0x10c] sm:$0xf] }
 0x107   : > { %1688 = vmatpush.bf16.msra.mxu0 %v3799_v29  ;;  %v3109_v29 = vld [vmem:[%s4315_s12 + $0xa0] sm:$0xf]  ;;  %v3167_v8 = vld [vmem:[%s4315_s12 + $0x118] sm:$0xf0]  ;;  %v593_v21 = vld [vmem:[#allocation2 + $0xb0] sm:$0xff] }
 0x108   : > { %1857 = vmatpush.bf16.msra.mxu1 %v3807_v30  ;;  %v3693_v30 = vld [vmem:[%s4315_s12 + $0xac] sm:$0xf0]  ;;  %v3173_v23 = vld [vmem:[%s4315_s12 + $0x120] sm:$0xf]  ;;  %v3191_v57 = vld [vmem:[%s4315_s12 + $0x150] sm:$0xf0] }
 0x109   : > { %2026 = vmatpush.bf16.msra.mxu2 %v3815_v31  ;;  %v3691_v31 = vld [vmem:[%s4315_s12 + $0xa4] sm:$0xf]  ;;  %v3110_v37 = vor.u32 %v3693_v30, %v3109_v29  ;;  %v3709_v24 = vld [vmem:[%s4315_s12 + $0x12c] sm:$0xf0]  ;;  %v3710_v29 = vld [vmem:[%s4315_s12 + $0x134] sm:$0xf0] }
 0x10a   : > { %2195 = vmatpush.bf16.msra.mxu3 %v3823_v32  ;;  %1689 = vmatmul.bf16.vlgmr.msra.gmra.mxu0 %v3030_v41  ;;  %v3111_v32 = vld [vmem:[%s4315_s12 + $0xb0] sm:$0xf0]  ;;  %v3125_v41 = vld [vmem:[%s4315_s12 + $0xc0] sm:$0xf]  ;;  %v3708_v30 = vld [vmem:[%s4315_s12 + $0x12c] sm:$0xf]  ;;  %v3174_v35 = vor.u32 %v3709_v24, %v3173_v23 }
 0x10b   : > { %1858 = vmatmul.bf16.vlgmr.msra.gmra.mxu1 %v3034_v42  ;;  %v3114_v38 = vor.u32 %v3691_v31, %v3111_v32  ;;  %v3697_v42 = vld [vmem:[%s4315_s12 + $0xcc] sm:$0xf0]  ;;  %v3183_v31 = vld [vmem:[%s4315_s12 + $0x138] sm:$0xf0]  ;;  %v3197_v58 = vld [vmem:[%s4315_s12 + $0x148] sm:$0xf] }
 0x10c   : > { %2027 = vmatmul.bf16.vlgmr.msra.gmra.mxu2 %v3038_v43  ;;  %v3695_v43 = vld [vmem:[%s4315_s12 + $0xc4] sm:$0xf]  ;;  %v3126_v49 = vor.u32 %v3697_v42, %v3125_v41  ;;  %v3186_v41 = vor.u32 %v3708_v30, %v3183_v31  ;;  %v594_v42 = vld [vmem:[#allocation2 + $0x1b0] sm:$0xff]  ;;  %v3714_v59 = vld [vmem:[%s4315_s12 + $0x154] sm:$0xf0] }
 0x10d   : > { %2196 = vmatmul.bf16.vlgmr.msra.gmra.mxu3 %v3042_v44  ;;  %v3127_v44 = vld [vmem:[%s4315_s12 + $0xd0] sm:$0xf0]  ;;  %v3712_v60 = vld [vmem:[%s4315_s12 + $0x14c] sm:$0xf]  ;;  %v3213_v24 = vld [vmem:[%s4315_s12 + $0x168] sm:$0xf] }
 0x10e   : > { %v3130_v50 = vor.u32 %v3695_v43, %v3127_v44  ;;  %v3207_v23 = vld [vmem:[%s4315_s12 + $0x170] sm:$0xf0] }
 0x11a   : > { %1694 = vmatmul.bf16.gmra.mxu0 %v3046_v53  ;;  %v3141_v53 = vld [vmem:[%s4315_s12 + $0xe0] sm:$0xf] }
 0x11b   : > { %1863 = vmatmul.bf16.gmra.mxu1 %v3050_v54  ;;  %v3701_v54 = vld [vmem:[%s4315_s12 + $0xec] sm:$0xf0] }
 0x11c   : > { %2032 = vmatmul.bf16.gmra.mxu2 %v3054_v55  ;;  %v3699_v55 = vld [vmem:[%s4315_s12 + $0xe4] sm:$0xf]  ;;  %v3142_v61 = vor.u32 %v3701_v54, %v3141_v53  ;;  %v3189_v53 = vld [vmem:[%s4315_s12 + $0x140] sm:$0xf]  ;;  %v3713_v54 = vld [vmem:[%s4315_s12 + $0x14c] sm:$0xf0] }
 0x11d   : > { %2201 = vmatmul.bf16.gmra.mxu3 %v3058_v56  ;;  %v3143_v56 = vld [vmem:[%s4315_s12 + $0xf0] sm:$0xf0] }
 0x11e   : > { %v3146_v62 = vor.u32 %v3699_v55, %v3143_v56  ;;  %v3711_v56 = vld [vmem:[%s4315_s12 + $0x144] sm:$0xf] }
 0x12a   : > { %1699 = vmatmul.bf16.gmra.mxu0 %v3062_v1  ;;  %v3157_v1 = vld [vmem:[%s4315_s12 + $0x100] sm:$0xf] }
 0x12b   : > { %1868 = vmatmul.bf16.gmra.mxu1 %v3066_v2  ;;  %v3705_v2 = vld [vmem:[%s4315_s12 + $0x10c] sm:$0xf0] }
 0x12c   : > { %2037 = vmatmul.bf16.gmra.mxu2 %v3070_v3  ;;  %v3703_v3 = vld [vmem:[%s4315_s12 + $0x104] sm:$0xf]  ;;  %v3158_v9 = vor.u32 %v3705_v2, %v3157_v1  ;;  %v3190_v1 = vor.u32 %v3713_v54, %v3189_v53  ;;  %v3194_v2 = vor.u32 %v3711_v56, %v3191_v57  ;;  %v3223_v53 = vld [vmem:[%s4315_s12 + $0x190] sm:$0xf0]  ;;  %v3229_v54 = vld [vmem:[%s4315_s12 + $0x188] sm:$0xf] }
 0x12d   : > { %2206 = vmatmul.bf16.gmra.mxu3 %v3074_v4  ;;  %v3159_v4 = vld [vmem:[%s4315_s12 + $0x110] sm:$0xf0]  ;;  %v3720_v56 = vld [vmem:[%s4315_s12 + $0x18c] sm:$0xf]  ;;  %v3231_v57 = vld [vmem:[%s4315_s12 + $0x198] sm:$0xf0] }
 0x12e   : > { %v3162_v10 = vor.u32 %v3703_v3, %v3159_v4 }
 0x13a   : > { %1704 = vmatmul.bf16.gmra.mxu0 %v3078_v13  ;;  %v3166_v13 = vor.u32 %v3706_v6, %v3165_v5  ;;  %v3198_v6 = vor.u32 %v3714_v59, %v3197_v58 }
 0x13b   : > { %1873 = vmatmul.bf16.gmra.mxu1 %v3082_v14  ;;  %v3170_v14 = vor.u32 %v3704_v7, %v3167_v8  ;;  %v596_v8 = vld [vmem:[#allocation2 + $0x18] sm:$0xff] }
 0x13c   : > { %2042 = vmatmul.bf16.gmra.mxu2 %v3086_v15 }
 0x13d   : > { %2211 = vmatmul.bf16.gmra.mxu3 %v3090_v16 }
 0x14a   : > { %1709 = vmatmul.bf16.gmra.mxu0 %v3094_v25 }
 0x14b   : > { %1878 = vmatmul.bf16.gmra.mxu1 %v3098_v26  ;;  %v3707_v26 = vld [vmem:[%s4315_s12 + $0x124] sm:$0xf] }
 0x14c   : > { %2047 = vmatmul.bf16.gmra.mxu2 %v3102_v27  ;;  %v3175_v27 = vld [vmem:[%s4315_s12 + $0x130] sm:$0xf0] }
 0x14d   : > { %2216 = vmatmul.bf16.gmra.mxu3 %v3106_v28  ;;  %v3181_v28 = vld [vmem:[%s4315_s12 + $0x128] sm:$0xf]  ;;  %v3178_v36 = vor.u32 %v3707_v26, %v3175_v27  ;;  %v3716_v26 = vld [vmem:[%s4315_s12 + $0x16c] sm:$0xf]  ;;  %v3215_v27 = vld [vmem:[%s4315_s12 + $0x178] sm:$0xf0] }
 0x15a   : > { %1714 = vmatmul.bf16.gmra.mxu0 %v3110_v37 }
 0x15b   : > { %1883 = vmatmul.bf16.gmra.mxu1 %v3114_v38 }
 0x15c   : > { %2052 = vmatmul.bf16.gmra.mxu2 %v3118_v39 }
 0x15d   : > { %2221 = vmatmul.bf16.gmra.mxu3 %v3122_v40  ;;  %v3182_v40 = vor.u32 %v3710_v29, %v3181_v28 }
 0x16a   : > { %1719 = vmatmul.bf16.gmra.mxu0 %v3126_v49 }
 0x16b   : > { %1888 = vmatmul.bf16.gmra.mxu1 %v3130_v50 }
 0x16c   : > { %2057 = vmatmul.bf16.gmra.mxu2 %v3134_v51  ;;  %v595_v51 = vld [vmem:[#allocation2 + $0xd8] sm:$0xff] }
 0x16d   : > { %2226 = vmatmul.bf16.gmra.mxu3 %v3138_v52 }
 0x17a   : > { %1724 = vmatmul.bf16.gmra.mxu0 %v3142_v61  ;;  %v3199_v61 = vld [vmem:[%s4315_s12 + $0x158] sm:$0xf0] }
 0x17b   : > { %1893 = vmatmul.bf16.gmra.mxu1 %v3146_v62  ;;  %v3202_v7 = vor.u32 %v3712_v60, %v3199_v61 }
 0x17c   : > { %2062 = vmatmul.bf16.gmra.mxu2 %v3150_v63 }
 0x17d   : > { %2231 = vmatmul.bf16.gmra.mxu3 %v3154_v0 }
 0x187   : > { %v1690_v11 = vpop.f32.mrf.mxu0 }
 0x188   : > { %v1859_v12 = vpop.f32.mrf.mxu1 }
 0x189   : > { %v1860_v15 = vadd.f32 %v1859_v12, %v1690_v11 }
 0x18a   : > { %1729 = vmatmul.bf16.gmra.mxu0 %v3158_v9 }
 0x18b   : > { %1898 = vmatmul.bf16.gmra.mxu1 %v3162_v10 }
 0x18c   : > { %2067 = vmatmul.bf16.gmra.mxu2 %v3166_v13 }
 0x18d   : > { %2236 = vmatmul.bf16.gmra.mxu3 %v3170_v14 }
 0x18f   : > { %v2028_v16 = vpop.f32.mrf.mxu2  ;;  %v1692_v19 = vpop.f32.mrf.mxu0 }
 0x190   : > { %v2197_v17 = vpop.f32.mrf.mxu3  ;;  %v2029_v18 = vadd.f32 %v2028_v16, %v1860_v15  ;;  %v1861_v20 = vpop.f32.mrf.mxu1 }
 0x191   : > { %v1862_v32 = vadd.f32 %v1861_v20, %v1692_v19  ;;  %v3205_v19 = vld [vmem:[%s4315_s12 + $0x160] sm:$0xf]  ;;  %v3717_v20 = vld [vmem:[%s4315_s12 + $0x16c] sm:$0xf0] }
 0x192   : > { %v2198_v22 = vadd.f32 %v2197_v17, %v2029_v18  ;;  %v597_v17 = vld [vmem:[#allocation2 + $0x50] sm:$0xff]  ;;  %v3206_v31 = vor.u32 %v3717_v20, %v3205_v19  ;;  %v3245_v20 = vld [vmem:[%s4315_s12 + $0x1a8] sm:$0xf] }
 0x193   : > { %v3239_v19 = vld [vmem:[%s4315_s12 + $0x1b0] sm:$0xf0] }
 0x194   : > { %v2357_v25 = vadd.f32 %v2198_v22, %v593_v21  ;;  %v3715_v22 = vld [vmem:[%s4315_s12 + $0x164] sm:$0xf] }
 0x196   : > { %2421 = vst [vmem:[#allocation2 + $0xb0] sm:$0xff] %v2357_v25  ;;  %v3718_v25 = vld [vmem:[%s4315_s12 + $0x174] sm:$0xf0] }
 0x197   : > { %v2030_v33 = vpop.f32.mrf.mxu2  ;;  %v1695_v38 = vpop.f32.mrf.mxu0 }
 0x198   : > { %v2199_v34 = vpop.f32.mrf.mxu3  ;;  %v2031_v37 = vadd.f32 %v2030_v33, %v1862_v32  ;;  %v1864_v39 = vpop.f32.mrf.mxu1  ;;  %v3210_v32 = vor.u32 %v3715_v22, %v3207_v23  ;;  %v3724_v22 = vld [vmem:[%s4315_s12 + $0x1ac] sm:$0xf]  ;;  %v3247_v23 = vld [vmem:[%s4315_s12 + $0x1b8] sm:$0xf0] }
 0x199   : > { %v1865_v45 = vadd.f32 %v1864_v39, %v1695_v38  ;;  %v598_v38 = vld [vmem:[#allocation2 + $0x168] sm:$0xff] }
 0x19a   : > { %v2200_v43 = vadd.f32 %v2199_v34, %v2031_v37  ;;  %1734 = vmatmul.bf16.gmra.mxu0 %v3174_v35  ;;  %v3218_v37 = vor.u32 %v3716_v26, %v3215_v27 }
 0x19b   : > { %1903 = vmatmul.bf16.gmra.mxu1 %v3178_v36  ;;  %v3214_v36 = vor.u32 %v3718_v25, %v3213_v24 }
 0x19c   : > { %v2358_v44 = vadd.f32 %v2200_v43, %v594_v42  ;;  %2072 = vmatmul.bf16.gmra.mxu2 %v3182_v40 }
 0x19d   : > { %2241 = vmatmul.bf16.gmra.mxu3 %v3186_v41 }
 0x19e   : > { %2422 = vst [vmem:[#allocation2 + $0x1b0] sm:$0xff] %v2358_v44 }
 0x19f   : > { %v2033_v46 = vpop.f32.mrf.mxu2  ;;  %v1697_v49 = vpop.f32.mrf.mxu0 }
 0x1a0   : > { %v2202_v47 = vpop.f32.mrf.mxu3  ;;  %v2034_v48 = vadd.f32 %v2033_v46, %v1865_v45  ;;  %v1866_v50 = vpop.f32.mrf.mxu1 }
 0x1a1   : > { %v1867_v62 = vadd.f32 %v1866_v50, %v1697_v49  ;;  %v3221_v49 = vld [vmem:[%s4315_s12 + $0x180] sm:$0xf]  ;;  %v3721_v50 = vld [vmem:[%s4315_s12 + $0x18c] sm:$0xf0] }
 0x1a2   : > { %v2203_v52 = vadd.f32 %v2202_v47, %v2034_v48  ;;  %v599_v47 = vld [vmem:[#allocation2 + $0x130] sm:$0xff]  ;;  %v3222_v61 = vor.u32 %v3721_v50, %v3221_v49  ;;  %v3261_v50 = vld [vmem:[%s4315_s12 + $0x1c8] sm:$0xf] }
 0x1a3   : > { %v3255_v49 = vld [vmem:[%s4315_s12 + $0x1d0] sm:$0xf0] }
 0x1a4   : > { %v2359_v55 = vadd.f32 %v2203_v52, %v595_v51  ;;  %v3719_v52 = vld [vmem:[%s4315_s12 + $0x184] sm:$0xf] }
 0x1a6   : > { %2423 = vst [vmem:[#allocation2 + $0xd8] sm:$0xff] %v2359_v55  ;;  %v3722_v55 = vld [vmem:[%s4315_s12 + $0x194] sm:$0xf0] }
 0x1a7   : > { %v2035_v63 = vpop.f32.mrf.mxu2  ;;  %v1700_v4 = vpop.f32.mrf.mxu0 }
 0x1a8   : > { %v2204_v0 = vpop.f32.mrf.mxu3  ;;  %v2036_v3 = vadd.f32 %v2035_v63, %v1867_v62  ;;  %v1869_v5 = vpop.f32.mrf.mxu1  ;;  %v3226_v62 = vor.u32 %v3719_v52, %v3223_v53  ;;  %v3728_v52 = vld [vmem:[%s4315_s12 + $0x1cc] sm:$0xf]  ;;  %v3263_v53 = vld [vmem:[%s4315_s12 + $0x1d8] sm:$0xf0] }
 0x1a9   : > { %v1870_v11 = vadd.f32 %v1869_v5, %v1700_v4  ;;  %v600_v4 = vld [vmem:[#allocation2 + $0x48] sm:$0xff] }
 0x1aa   : > { %v2205_v9 = vadd.f32 %v2204_v0, %v2036_v3  ;;  %1739 = vmatmul.bf16.gmra.mxu0 %v3190_v1  ;;  %v3234_v3 = vor.u32 %v3720_v56, %v3231_v57 }
 0x1ab   : > { %1908 = vmatmul.bf16.gmra.mxu1 %v3194_v2  ;;  %v3230_v2 = vor.u32 %v3722_v55, %v3229_v54 }
 0x1ac   : > { %v2360_v10 = vadd.f32 %v2205_v9, %v596_v8  ;;  %2077 = vmatmul.bf16.gmra.mxu2 %v3198_v6 }
 0x1ad   : > { %2246 = vmatmul.bf16.gmra.mxu3 %v3202_v7 }
 0x1ae   : > { %2424 = vst [vmem:[#allocation2 + $0x18] sm:$0xff] %v2360_v10 }
 0x1af   : > { %v2038_v12 = vpop.f32.mrf.mxu2  ;;  %v1702_v15 = vpop.f32.mrf.mxu0 }
 0x1b0   : > { %v2207_v13 = vpop.f32.mrf.mxu3  ;;  %v2039_v14 = vadd.f32 %v2038_v12, %v1870_v11  ;;  %v1871_v16 = vpop.f32.mrf.mxu1 }
 0x1b1   : > { %v1872_v28 = vadd.f32 %v1871_v16, %v1702_v15  ;;  %v3237_v15 = vld [vmem:[%s4315_s12 + $0x1a0] sm:$0xf]  ;;  %v3725_v16 = vld [vmem:[%s4315_s12 + $0x1ac] sm:$0xf0] }
 0x1b2   : > { %v2208_v18 = vadd.f32 %v2207_v13, %v2039_v14  ;;  %v601_v13 = vld [vmem:[#allocation2 + $0x180] sm:$0xff]  ;;  %v3238_v27 = vor.u32 %v3725_v16, %v3237_v15  ;;  %v3271_v15 = vld [vmem:[%s4315_s12 + $0x1f0] sm:$0xf0]  ;;  %v3277_v16 = vld [vmem:[%s4315_s12 + $0x1e8] sm:$0xf] }
 0x1b4   : > { %v2361_v21 = vadd.f32 %v2208_v18, %v597_v17  ;;  %v3723_v18 = vld [vmem:[%s4315_s12 + $0x1a4] sm:$0xf] }
 0x1b6   : > { %2425 = vst [vmem:[#allocation2 + $0x50] sm:$0xff] %v2361_v21  ;;  %v3726_v21 = vld [vmem:[%s4315_s12 + $0x1b4] sm:$0xf0] }
 0x1b7   : > { %v2040_v29 = vpop.f32.mrf.mxu2  ;;  %v1705_v34 = vpop.f32.mrf.mxu0 }
 0x1b8   : > { %v2209_v30 = vpop.f32.mrf.mxu3  ;;  %v2041_v33 = vadd.f32 %v2040_v29, %v1872_v28  ;;  %v1874_v35 = vpop.f32.mrf.mxu1  ;;  %v3242_v28 = vor.u32 %v3723_v18, %v3239_v19  ;;  %v3732_v18 = vld [vmem:[%s4315_s12 + $0x1ec] sm:$0xf]  ;;  %v3279_v19 = vld [vmem:[%s4315_s12 + $0x1f8] sm:$0xf0] }
 0x1b9   : > { %v1875_v41 = vadd.f32 %v1874_v35, %v1705_v34  ;;  %v602_v34 = vld [vmem:[#allocation2 + $0x110] sm:$0xff] }
 0x1ba   : > { %v2210_v39 = vadd.f32 %v2209_v30, %v2041_v33  ;;  %1744 = vmatmul.bf16.gmra.mxu0 %v3206_v31  ;;  %v3250_v33 = vor.u32 %v3724_v22, %v3247_v23 }
 0x1bb   : > { %1913 = vmatmul.bf16.gmra.mxu1 %v3210_v32  ;;  %v3246_v32 = vor.u32 %v3726_v21, %v3245_v20 }
 0x1bc   : > { %v2362_v40 = vadd.f32 %v2210_v39, %v598_v38  ;;  %2082 = vmatmul.bf16.gmra.mxu2 %v3214_v36 }
 0x1bd   : > { %2251 = vmatmul.bf16.gmra.mxu3 %v3218_v37 }
 0x1be   : > { %2426 = vst [vmem:[#allocation2 + $0x168] sm:$0xff] %v2362_v40 }
 0x1bf   : > { %v2043_v42 = vpop.f32.mrf.mxu2  ;;  %v1707_v45 = vpop.f32.mrf.mxu0 }
 0x1c0   : > { %v2212_v43 = vpop.f32.mrf.mxu3  ;;  %v2044_v44 = vadd.f32 %v2043_v42, %v1875_v41  ;;  %v1876_v46 = vpop.f32.mrf.mxu1 }
 0x1c1   : > { %v1877_v58 = vadd.f32 %v1876_v46, %v1707_v45  ;;  %v3253_v45 = vld [vmem:[%s4315_s12 + $0x1c0] sm:$0xf]  ;;  %v3729_v46 = vld [vmem:[%s4315_s12 + $0x1cc] sm:$0xf0] }
 0x1c2   : > { %v2213_v48 = vadd.f32 %v2212_v43, %v2044_v44  ;;  %v603_v43 = vld [vmem:[#allocation2 + $0x118] sm:$0xff]  ;;  %v3254_v57 = vor.u32 %v3729_v46, %v3253_v45  ;;  %v3287_v45 = vld [vmem:[%s4315_s12 + $0x210] sm:$0xf0]  ;;  %v3293_v46 = vld [vmem:[%s4315_s12 + $0x208] sm:$0xf] }
 0x1c4   : > { %v2363_v51 = vadd.f32 %v2213_v48, %v599_v47  ;;  %v3727_v48 = vld [vmem:[%s4315_s12 + $0x1c4] sm:$0xf] }
 0x1c6   : > { %2427 = vst [vmem:[#allocation2 + $0x130] sm:$0xff] %v2363_v51  ;;  %v3730_v51 = vld [vmem:[%s4315_s12 + $0x1d4] sm:$0xf0] }
 0x1c7   : > { %v2045_v59 = vpop.f32.mrf.mxu2  ;;  %v1710_v0 = vpop.f32.mrf.mxu0 }
 0x1c8   : > { %v2214_v60 = vpop.f32.mrf.mxu3  ;;  %v2046_v63 = vadd.f32 %v2045_v59, %v1877_v58  ;;  %v1879_v1 = vpop.f32.mrf.mxu1  ;;  %v3258_v58 = vor.u32 %v3727_v48, %v3255_v49  ;;  %v3736_v48 = vld [vmem:[%s4315_s12 + $0x20c] sm:$0xf]  ;;  %v3295_v49 = vld [vmem:[%s4315_s12 + $0x218] sm:$0xf0] }
 0x1c9   : > { %v1880_v7 = vadd.f32 %v1879_v1, %v1710_v0  ;;  %v604_v0 = vld [vmem:[#allocation2 + $0x98] sm:$0xff] }
 0x1ca   : > { %v2215_v5 = vadd.f32 %v2214_v60, %v2046_v63  ;;  %1749 = vmatmul.bf16.gmra.mxu0 %v3222_v61  ;;  %v3266_v63 = vor.u32 %v3728_v52, %v3263_v53 }
 0x1cb   : > { %1918 = vmatmul.bf16.gmra.mxu1 %v3226_v62  ;;  %v3262_v62 = vor.u32 %v3730_v51, %v3261_v50 }
 0x1cc   : > { %v2364_v6 = vadd.f32 %v2215_v5, %v600_v4  ;;  %2087 = vmatmul.bf16.gmra.mxu2 %v3230_v2 }
 0x1cd   : > { %2256 = vmatmul.bf16.gmra.mxu3 %v3234_v3 }
 0x1ce   : > { %2428 = vst [vmem:[#allocation2 + $0x48] sm:$0xff] %v2364_v6 }
 0x1cf   : > { %v2048_v8 = vpop.f32.mrf.mxu2  ;;  %v1712_v11 = vpop.f32.mrf.mxu0 }
 0x1d0   : > { %v2217_v9 = vpop.f32.mrf.mxu3  ;;  %v2049_v10 = vadd.f32 %v2048_v8, %v1880_v7  ;;  %v1881_v12 = vpop.f32.mrf.mxu1 }
 0x1d1   : > { %v1882_v24 = vadd.f32 %v1881_v12, %v1712_v11  ;;  %v3269_v11 = vld [vmem:[%s4315_s12 + $0x1e0] sm:$0xf]  ;;  %v3733_v12 = vld [vmem:[%s4315_s12 + $0x1ec] sm:$0xf0] }
 0x1d2   : > { %v2218_v14 = vadd.f32 %v2217_v9, %v2049_v10  ;;  %v605_v9 = vld [vmem:[#allocation2 + $0x120] sm:$0xff]  ;;  %v3270_v23 = vor.u32 %v3733_v12, %v3269_v11  ;;  %v3303_v11 = vld [vmem:[%s4315_s12 + $0x230] sm:$0xf0]  ;;  %v3309_v12 = vld [vmem:[%s4315_s12 + $0x228] sm:$0xf] }
 0x1d4   : > { %v2365_v17 = vadd.f32 %v2218_v14, %v601_v13  ;;  %v3731_v14 = vld [vmem:[%s4315_s12 + $0x1e4] sm:$0xf] }
 0x1d6   : > { %2429 = vst [vmem:[#allocation2 + $0x180] sm:$0xff] %v2365_v17  ;;  %v3734_v17 = vld [vmem:[%s4315_s12 + $0x1f4] sm:$0xf0] }
 0x1d7   : > { %v2050_v25 = vpop.f32.mrf.mxu2  ;;  %v1715_v30 = vpop.f32.mrf.mxu0 }
 0x1d8   : > { %v2219_v26 = vpop.f32.mrf.mxu3  ;;  %v2051_v29 = vadd.f32 %v2050_v25, %v1882_v24  ;;  %v1884_v31 = vpop.f32.mrf.mxu1  ;;  %v3274_v24 = vor.u32 %v3731_v14, %v3271_v15  ;;  %v3740_v14 = vld [vmem:[%s4315_s12 + $0x22c] sm:$0xf]  ;;  %v3311_v15 = vld [vmem:[%s4315_s12 + $0x238] sm:$0xf0] }
 0x1d9   : > { %v1885_v37 = vadd.f32 %v1884_v31, %v1715_v30  ;;  %v606_v30 = vld [vmem:[#allocation2 + $0x150] sm:$0xff] }
 0x1da   : > { %v2220_v35 = vadd.f32 %v2219_v26, %v2051_v29  ;;  %1754 = vmatmul.bf16.gmra.mxu0 %v3238_v27  ;;  %v3282_v29 = vor.u32 %v3732_v18, %v3279_v19 }
 0x1db   : > { %1923 = vmatmul.bf16.gmra.mxu1 %v3242_v28  ;;  %v3278_v28 = vor.u32 %v3734_v17, %v3277_v16 }
 0x1dc   : > { %v2366_v36 = vadd.f32 %v2220_v35, %v602_v34  ;;  %2092 = vmatmul.bf16.gmra.mxu2 %v3246_v32 }
 0x1dd   : > { %2261 = vmatmul.bf16.gmra.mxu3 %v3250_v33 }
 0x1de   : > { %2430 = vst [vmem:[#allocation2 + $0x110] sm:$0xff] %v2366_v36 }
 0x1df   : > { %v2053_v38 = vpop.f32.mrf.mxu2  ;;  %v1717_v41 = vpop.f32.mrf.mxu0 }
 0x1e0   : > { %v2222_v39 = vpop.f32.mrf.mxu3  ;;  %v2054_v40 = vadd.f32 %v2053_v38, %v1885_v37  ;;  %v1886_v42 = vpop.f32.mrf.mxu1 }
 0x1e1   : > { %v1887_v54 = vadd.f32 %v1886_v42, %v1717_v41  ;;  %v3285_v41 = vld [vmem:[%s4315_s12 + $0x200] sm:$0xf]  ;;  %v3737_v42 = vld [vmem:[%s4315_s12 + $0x20c] sm:$0xf0] }
 0x1e2   : > { %v2223_v44 = vadd.f32 %v2222_v39, %v2054_v40  ;;  %v607_v39 = vld [vmem:[#allocation2 + $0x108] sm:$0xff]  ;;  %v3286_v53 = vor.u32 %v3737_v42, %v3285_v41  ;;  %v3319_v41 = vld [vmem:[%s4315_s12 + $0x250] sm:$0xf0] }
 0x1e3   : > { %v3325_v42 = vld [vmem:[%s4315_s12 + $0x248] sm:$0xf] }
 0x1e4   : > { %v2367_v47 = vadd.f32 %v2223_v44, %v603_v43  ;;  %v3735_v44 = vld [vmem:[%s4315_s12 + $0x204] sm:$0xf] }
 0x1e6   : > { %2431 = vst [vmem:[#allocation2 + $0x118] sm:$0xff] %v2367_v47  ;;  %v3738_v47 = vld [vmem:[%s4315_s12 + $0x214] sm:$0xf0] }
 0x1e7   : > { %v2055_v55 = vpop.f32.mrf.mxu2  ;;  %v1720_v60 = vpop.f32.mrf.mxu0 }
 0x1e8   : > { %v2224_v56 = vpop.f32.mrf.mxu3  ;;  %v2056_v59 = vadd.f32 %v2055_v55, %v1887_v54  ;;  %v1889_v61 = vpop.f32.mrf.mxu1  ;;  %v3290_v54 = vor.u32 %v3735_v44, %v3287_v45  ;;  %v3744_v44 = vld [vmem:[%s4315_s12 + $0x24c] sm:$0xf]  ;;  %v3327_v45 = vld [vmem:[%s4315_s12 + $0x258] sm:$0xf0] }
 0x1e9   : > { %v1890_v3 = vadd.f32 %v1889_v61, %v1720_v60  ;;  %v608_v60 = vld [vmem:[#allocation2 + $0x60] sm:$0xff] }
 0x1ea   : > { %v2225_v1 = vadd.f32 %v2224_v56, %v2056_v59  ;;  %1759 = vmatmul.bf16.gmra.mxu0 %v3254_v57  ;;  %v3298_v59 = vor.u32 %v3736_v48, %v3295_v49 }
 0x1eb   : > { %1928 = vmatmul.bf16.gmra.mxu1 %v3258_v58  ;;  %v3294_v58 = vor.u32 %v3738_v47, %v3293_v46 }
 0x1ec   : > { %v2368_v2 = vadd.f32 %v2225_v1, %v604_v0  ;;  %2097 = vmatmul.bf16.gmra.mxu2 %v3262_v62 }
 0x1ed   : > { %2266 = vmatmul.bf16.gmra.mxu3 %v3266_v63 }
 0x1ee   : > { %2432 = vst [vmem:[#allocation2 + $0x98] sm:$0xff] %v2368_v2 }
 0x1ef   : > { %v2058_v4 = vpop.f32.mrf.mxu2  ;;  %v1722_v7 = vpop.f32.mrf.mxu0 }
 0x1f0   : > { %v2227_v5 = vpop.f32.mrf.mxu3  ;;  %v2059_v6 = vadd.f32 %v2058_v4, %v1890_v3  ;;  %v1891_v8 = vpop.f32.mrf.mxu1 }
 0x1f1   : > { %v1892_v20 = vadd.f32 %v1891_v8, %v1722_v7  ;;  %v3301_v7 = vld [vmem:[%s4315_s12 + $0x220] sm:$0xf]  ;;  %v3741_v8 = vld [vmem:[%s4315_s12 + $0x22c] sm:$0xf0] }
 0x1f2   : > { %v2228_v10 = vadd.f32 %v2227_v5, %v2059_v6  ;;  %v609_v5 = vld [vmem:[#allocation2 + $0xe0] sm:$0xff]  ;;  %v3302_v19 = vor.u32 %v3741_v8, %v3301_v7  ;;  %v3335_v7 = vld [vmem:[%s4315_s12 + $0x270] sm:$0xf0]  ;;  %v3341_v8 = vld [vmem:[%s4315_s12 + $0x268] sm:$0xf] }
 0x1f4   : > { %v2369_v13 = vadd.f32 %v2228_v10, %v605_v9  ;;  %v3739_v10 = vld [vmem:[%s4315_s12 + $0x224] sm:$0xf] }
 0x1f6   : > { %2433 = vst [vmem:[#allocation2 + $0x120] sm:$0xff] %v2369_v13  ;;  %v3742_v13 = vld [vmem:[%s4315_s12 + $0x234] sm:$0xf0] }
 0x1f7   : > { %v2060_v21 = vpop.f32.mrf.mxu2  ;;  %v1725_v26 = vpop.f32.mrf.mxu0 }
 0x1f8   : > { %v2229_v22 = vpop.f32.mrf.mxu3  ;;  %v2061_v25 = vadd.f32 %v2060_v21, %v1892_v20  ;;  %v1894_v27 = vpop.f32.mrf.mxu1  ;;  %v3306_v20 = vor.u32 %v3739_v10, %v3303_v11  ;;  %v3748_v10 = vld [vmem:[%s4315_s12 + $0x26c] sm:$0xf]  ;;  %v3343_v11 = vld [vmem:[%s4315_s12 + $0x278] sm:$0xf0] }
 0x1f9   : > { %v1895_v33 = vadd.f32 %v1894_v27, %v1725_v26  ;;  %v610_v26 = vld [vmem:[#allocation2 + $0x188] sm:$0xff] }
 0x1fa   : > { %v2230_v31 = vadd.f32 %v2229_v22, %v2061_v25  ;;  %1764 = vmatmul.bf16.gmra.mxu0 %v3270_v23  ;;  %v3314_v25 = vor.u32 %v3740_v14, %v3311_v15 }
 0x1fb   : > { %1933 = vmatmul.bf16.gmra.mxu1 %v3274_v24  ;;  %v3310_v24 = vor.u32 %v3742_v13, %v3309_v12 }
 0x1fc   : > { %v2370_v32 = vadd.f32 %v2230_v31, %v606_v30  ;;  %2102 = vmatmul.bf16.gmra.mxu2 %v3278_v28 }
 0x1fd   : > { %2271 = vmatmul.bf16.gmra.mxu3 %v3282_v29 }
 0x1fe   : > { %2434 = vst [vmem:[#allocation2 + $0x150] sm:$0xff] %v2370_v32 }
 0x1ff   : > { %v2063_v34 = vpop.f32.mrf.mxu2  ;;  %v1727_v37 = vpop.f32.mrf.mxu0 }
 0x200   : > { %v2232_v35 = vpop.f32.mrf.mxu3  ;;  %v2064_v36 = vadd.f32 %v2063_v34, %v1895_v33  ;;  %v1896_v38 = vpop.f32.mrf.mxu1 }
 0x201   : > { %v1897_v50 = vadd.f32 %v1896_v38, %v1727_v37  ;;  %v3317_v37 = vld [vmem:[%s4315_s12 + $0x240] sm:$0xf]  ;;  %v3745_v38 = vld [vmem:[%s4315_s12 + $0x24c] sm:$0xf0] }
 0x202   : > { %v2233_v40 = vadd.f32 %v2232_v35, %v2064_v36  ;;  %v611_v35 = vld [vmem:[#allocation2 + $0x138] sm:$0xff]  ;;  %v3318_v49 = vor.u32 %v3745_v38, %v3317_v37  ;;  %v3351_v37 = vld [vmem:[%s4315_s12 + $0x290] sm:$0xf0]  ;;  %v3357_v38 = vld [vmem:[%s4315_s12 + $0x288] sm:$0xf] }
 0x204   : > { %v2371_v43 = vadd.f32 %v2233_v40, %v607_v39  ;;  %v3743_v40 = vld [vmem:[%s4315_s12 + $0x244] sm:$0xf] }
 0x206   : > { %2435 = vst [vmem:[#allocation2 + $0x108] sm:$0xff] %v2371_v43  ;;  %v3746_v43 = vld [vmem:[%s4315_s12 + $0x254] sm:$0xf0] }
 0x207   : > { %v2065_v51 = vpop.f32.mrf.mxu2  ;;  %v1730_v56 = vpop.f32.mrf.mxu0 }
 0x208   : > { %v2234_v52 = vpop.f32.mrf.mxu3  ;;  %v2066_v55 = vadd.f32 %v2065_v51, %v1897_v50  ;;  %v1899_v57 = vpop.f32.mrf.mxu1  ;;  %v3322_v50 = vor.u32 %v3743_v40, %v3319_v41  ;;  %v3752_v40 = vld [vmem:[%s4315_s12 + $0x28c] sm:$0xf]  ;;  %v3359_v41 = vld [vmem:[%s4315_s12 + $0x298] sm:$0xf0] }
 0x209   : > { %v1900_v63 = vadd.f32 %v1899_v57, %v1730_v56  ;;  %v612_v56 = vld [vmem:[#allocation2 + $0x140] sm:$0xff] }
 0x20a   : > { %v2235_v61 = vadd.f32 %v2234_v52, %v2066_v55  ;;  %1769 = vmatmul.bf16.gmra.mxu0 %v3286_v53  ;;  %v3330_v55 = vor.u32 %v3744_v44, %v3327_v45 }
 0x20b   : > { %1938 = vmatmul.bf16.gmra.mxu1 %v3290_v54  ;;  %v3326_v54 = vor.u32 %v3746_v43, %v3325_v42 }
 0x20c   : > { %v2372_v62 = vadd.f32 %v2235_v61, %v608_v60  ;;  %2107 = vmatmul.bf16.gmra.mxu2 %v3294_v58 }
 0x20d   : > { %2276 = vmatmul.bf16.gmra.mxu3 %v3298_v59 }
 0x20e   : > { %2436 = vst [vmem:[#allocation2 + $0x60] sm:$0xff] %v2372_v62 }
 0x20f   : > { %v2068_v0 = vpop.f32.mrf.mxu2  ;;  %v1732_v3 = vpop.f32.mrf.mxu0 }
 0x210   : > { %v2237_v1 = vpop.f32.mrf.mxu3  ;;  %v2069_v2 = vadd.f32 %v2068_v0, %v1900_v63  ;;  %v1901_v4 = vpop.f32.mrf.mxu1 }
 0x211   : > { %v1902_v16 = vadd.f32 %v1901_v4, %v1732_v3  ;;  %v3333_v3 = vld [vmem:[%s4315_s12 + $0x260] sm:$0xf]  ;;  %v3749_v4 = vld [vmem:[%s4315_s12 + $0x26c] sm:$0xf0] }
 0x212   : > { %v2238_v6 = vadd.f32 %v2237_v1, %v2069_v2  ;;  %v613_v1 = vld [vmem:[#allocation2 + $0x80] sm:$0xff]  ;;  %v3334_v15 = vor.u32 %v3749_v4, %v3333_v3  ;;  %v3367_v3 = vld [vmem:[%s4315_s12 + $0x2b0] sm:$0xf0]  ;;  %v3373_v4 = vld [vmem:[%s4315_s12 + $0x2a8] sm:$0xf] }
 0x214   : > { %v2373_v9 = vadd.f32 %v2238_v6, %v609_v5  ;;  %v3747_v6 = vld [vmem:[%s4315_s12 + $0x264] sm:$0xf] }
 0x216   : > { %2437 = vst [vmem:[#allocation2 + $0xe0] sm:$0xff] %v2373_v9  ;;  %v3750_v9 = vld [vmem:[%s4315_s12 + $0x274] sm:$0xf0] }
 0x217   : > { %v2070_v17 = vpop.f32.mrf.mxu2  ;;  %v1735_v22 = vpop.f32.mrf.mxu0 }
 0x218   : > { %v2239_v18 = vpop.f32.mrf.mxu3  ;;  %v2071_v21 = vadd.f32 %v2070_v17, %v1902_v16  ;;  %v1904_v23 = vpop.f32.mrf.mxu1  ;;  %v3338_v16 = vor.u32 %v3747_v6, %v3335_v7  ;;  %v3756_v6 = vld [vmem:[%s4315_s12 + $0x2ac] sm:$0xf]  ;;  %v3375_v7 = vld [vmem:[%s4315_s12 + $0x2b8] sm:$0xf0] }
 0x219   : > { %v1905_v29 = vadd.f32 %v1904_v23, %v1735_v22  ;;  %v614_v22 = vld [vmem:[#allocation2 + $0x1a8] sm:$0xff] }
 0x21a   : > { %v2240_v27 = vadd.f32 %v2239_v18, %v2071_v21  ;;  %1774 = vmatmul.bf16.gmra.mxu0 %v3302_v19  ;;  %v3346_v21 = vor.u32 %v3748_v10, %v3343_v11 }
 0x21b   : > { %1943 = vmatmul.bf16.gmra.mxu1 %v3306_v20  ;;  %v3342_v20 = vor.u32 %v3750_v9, %v3341_v8 }
 0x21c   : > { %v2374_v28 = vadd.f32 %v2240_v27, %v610_v26  ;;  %2112 = vmatmul.bf16.gmra.mxu2 %v3310_v24 }
 0x21d   : > { %2281 = vmatmul.bf16.gmra.mxu3 %v3314_v25 }
 0x21e   : > { %2438 = vst [vmem:[#allocation2 + $0x188] sm:$0xff] %v2374_v28 }
 0x21f   : > { %v2073_v30 = vpop.f32.mrf.mxu2  ;;  %v1737_v33 = vpop.f32.mrf.mxu0 }
 0x220   : > { %v2242_v31 = vpop.f32.mrf.mxu3  ;;  %v2074_v32 = vadd.f32 %v2073_v30, %v1905_v29  ;;  %v1906_v34 = vpop.f32.mrf.mxu1 }
 0x221   : > { %v1907_v46 = vadd.f32 %v1906_v34, %v1737_v33  ;;  %v3349_v33 = vld [vmem:[%s4315_s12 + $0x280] sm:$0xf]  ;;  %v3753_v34 = vld [vmem:[%s4315_s12 + $0x28c] sm:$0xf0] }
 0x222   : > { %v2243_v36 = vadd.f32 %v2242_v31, %v2074_v32  ;;  %v615_v31 = vld [vmem:[#allocation2 + $0x1b8] sm:$0xff]  ;;  %v3350_v45 = vor.u32 %v3753_v34, %v3349_v33  ;;  %v3383_v33 = vld [vmem:[%s4315_s12 + $0x2d0] sm:$0xf0]  ;;  %v3389_v34 = vld [vmem:[%s4315_s12 + $0x2c8] sm:$0xf] }
 0x224   : > { %v2375_v39 = vadd.f32 %v2243_v36, %v611_v35  ;;  %v3751_v36 = vld [vmem:[%s4315_s12 + $0x284] sm:$0xf] }
 0x226   : > { %2439 = vst [vmem:[#allocation2 + $0x138] sm:$0xff] %v2375_v39  ;;  %v3754_v39 = vld [vmem:[%s4315_s12 + $0x294] sm:$0xf0] }
 0x227   : > { %v2075_v47 = vpop.f32.mrf.mxu2  ;;  %v1740_v52 = vpop.f32.mrf.mxu0 }
 0x228   : > { %v2244_v48 = vpop.f32.mrf.mxu3  ;;  %v2076_v51 = vadd.f32 %v2075_v47, %v1907_v46  ;;  %v1909_v53 = vpop.f32.mrf.mxu1  ;;  %v3354_v46 = vor.u32 %v3751_v36, %v3351_v37  ;;  %v3760_v36 = vld [vmem:[%s4315_s12 + $0x2cc] sm:$0xf]  ;;  %v3391_v37 = vld [vmem:[%s4315_s12 + $0x2d8] sm:$0xf0] }
 0x229   : > { %v1910_v59 = vadd.f32 %v1909_v53, %v1740_v52  ;;  %v616_v52 = vld [vmem:[#allocation2 + $0x28] sm:$0xff] }
 0x22a   : > { %v2245_v57 = vadd.f32 %v2244_v48, %v2076_v51  ;;  %1779 = vmatmul.bf16.gmra.mxu0 %v3318_v49  ;;  %v3362_v51 = vor.u32 %v3752_v40, %v3359_v41 }
 0x22b   : > { %1948 = vmatmul.bf16.gmra.mxu1 %v3322_v50  ;;  %v3358_v50 = vor.u32 %v3754_v39, %v3357_v38 }
 0x22c   : > { %v2376_v58 = vadd.f32 %v2245_v57, %v612_v56  ;;  %2117 = vmatmul.bf16.gmra.mxu2 %v3326_v54 }
 0x22d   : > { %2286 = vmatmul.bf16.gmra.mxu3 %v3330_v55 }
 0x22e   : > { %2440 = vst [vmem:[#allocation2 + $0x140] sm:$0xff] %v2376_v58 }
 0x22f   : > { %v2078_v60 = vpop.f32.mrf.mxu2  ;;  %v1742_v63 = vpop.f32.mrf.mxu0 }
 0x230   : > { %v2247_v61 = vpop.f32.mrf.mxu3  ;;  %v2079_v62 = vadd.f32 %v2078_v60, %v1910_v59  ;;  %v1911_v0 = vpop.f32.mrf.mxu1 }
 0x231   : > { %v1912_v12 = vadd.f32 %v1911_v0, %v1742_v63  ;;  %v3365_v63 = vld [vmem:[%s4315_s12 + $0x2a0] sm:$0xf]  ;;  %v3757_v0 = vld [vmem:[%s4315_s12 + $0x2ac] sm:$0xf0] }
 0x232   : > { %v2248_v2 = vadd.f32 %v2247_v61, %v2079_v62  ;;  %v617_v61 = vld [vmem:[#allocation2 + $0x1e8] sm:$0xff]  ;;  %v3366_v11 = vor.u32 %v3757_v0, %v3365_v63  ;;  %v3399_v63 = vld [vmem:[%s4315_s12 + $0x2f0] sm:$0xf0] }
 0x233   : > { %v3405_v0 = vld [vmem:[%s4315_s12 + $0x2e8] sm:$0xf] }
 0x234   : > { %v2377_v5 = vadd.f32 %v2248_v2, %v613_v1  ;;  %v3755_v2 = vld [vmem:[%s4315_s12 + $0x2a4] sm:$0xf] }
 0x236   : > { %2441 = vst [vmem:[#allocation2 + $0x80] sm:$0xff] %v2377_v5  ;;  %v3758_v5 = vld [vmem:[%s4315_s12 + $0x2b4] sm:$0xf0] }
 0x237   : > { %v2080_v13 = vpop.f32.mrf.mxu2  ;;  %v1745_v18 = vpop.f32.mrf.mxu0 }
 0x238   : > { %v2249_v14 = vpop.f32.mrf.mxu3  ;;  %v2081_v17 = vadd.f32 %v2080_v13, %v1912_v12  ;;  %v1914_v19 = vpop.f32.mrf.mxu1  ;;  %v3370_v12 = vor.u32 %v3755_v2, %v3367_v3  ;;  %v3764_v2 = vld [vmem:[%s4315_s12 + $0x2ec] sm:$0xf]  ;;  %v3407_v3 = vld [vmem:[%s4315_s12 + $0x2f8] sm:$0xf0] }
 0x239   : > { %v1915_v25 = vadd.f32 %v1914_v19, %v1745_v18  ;;  %v618_v18 = vld [vmem:[#allocation2 + $0xf8] sm:$0xff] }
 0x23a   : > { %v2250_v23 = vadd.f32 %v2249_v14, %v2081_v17  ;;  %1784 = vmatmul.bf16.gmra.mxu0 %v3334_v15  ;;  %v3378_v17 = vor.u32 %v3756_v6, %v3375_v7 }
 0x23b   : > { %1953 = vmatmul.bf16.gmra.mxu1 %v3338_v16  ;;  %v3374_v16 = vor.u32 %v3758_v5, %v3373_v4 }
 0x23c   : > { %v2378_v24 = vadd.f32 %v2250_v23, %v614_v22  ;;  %2122 = vmatmul.bf16.gmra.mxu2 %v3342_v20 }
 0x23d   : > { %2291 = vmatmul.bf16.gmra.mxu3 %v3346_v21 }
 0x23e   : > { %2442 = vst [vmem:[#allocation2 + $0x1a8] sm:$0xff] %v2378_v24 }
 0x23f   : > { %v2083_v26 = vpop.f32.mrf.mxu2  ;;  %v1747_v29 = vpop.f32.mrf.mxu0 }
 0x240   : > { %v2252_v27 = vpop.f32.mrf.mxu3  ;;  %v2084_v28 = vadd.f32 %v2083_v26, %v1915_v25  ;;  %v1916_v30 = vpop.f32.mrf.mxu1 }
 0x241   : > { %v1917_v42 = vadd.f32 %v1916_v30, %v1747_v29  ;;  %v3381_v29 = vld [vmem:[%s4315_s12 + $0x2c0] sm:$0xf]  ;;  %v3761_v30 = vld [vmem:[%s4315_s12 + $0x2cc] sm:$0xf0] }
 0x242   : > { %v2253_v32 = vadd.f32 %v2252_v27, %v2084_v28  ;;  %v619_v27 = vld [vmem:[#allocation2 + $0x160] sm:$0xff]  ;;  %v3382_v41 = vor.u32 %v3761_v30, %v3381_v29  ;;  %v3415_v29 = vld [vmem:[%s4315_s12 + $0x310] sm:$0xf0]  ;;  %v3421_v30 = vld [vmem:[%s4315_s12 + $0x308] sm:$0xf] }
 0x244   : > { %v2379_v35 = vadd.f32 %v2253_v32, %v615_v31  ;;  %v3759_v32 = vld [vmem:[%s4315_s12 + $0x2c4] sm:$0xf] }
 0x246   : > { %2443 = vst [vmem:[#allocation2 + $0x1b8] sm:$0xff] %v2379_v35  ;;  %v3762_v35 = vld [vmem:[%s4315_s12 + $0x2d4] sm:$0xf0] }
 0x247   : > { %v2085_v43 = vpop.f32.mrf.mxu2  ;;  %v1750_v48 = vpop.f32.mrf.mxu0 }
 0x248   : > { %v2254_v44 = vpop.f32.mrf.mxu3  ;;  %v2086_v47 = vadd.f32 %v2085_v43, %v1917_v42  ;;  %v1919_v49 = vpop.f32.mrf.mxu1  ;;  %v3386_v42 = vor.u32 %v3759_v32, %v3383_v33  ;;  %v3768_v32 = vld [vmem:[%s4315_s12 + $0x30c] sm:$0xf]  ;;  %v3423_v33 = vld [vmem:[%s4315_s12 + $0x318] sm:$0xf0] }
 0x249   : > { %v1920_v55 = vadd.f32 %v1919_v49, %v1750_v48  ;;  %v620_v48 = vld [vmem:[#allocation2 + $0x30] sm:$0xff] }
 0x24a   : > { %v2255_v53 = vadd.f32 %v2254_v44, %v2086_v47  ;;  %1789 = vmatmul.bf16.gmra.mxu0 %v3350_v45  ;;  %v3394_v47 = vor.u32 %v3760_v36, %v3391_v37 }
 0x24b   : > { %1958 = vmatmul.bf16.gmra.mxu1 %v3354_v46  ;;  %v3390_v46 = vor.u32 %v3762_v35, %v3389_v34 }
 0x24c   : > { %v2380_v54 = vadd.f32 %v2255_v53, %v616_v52  ;;  %2127 = vmatmul.bf16.gmra.mxu2 %v3358_v50 }
 0x24d   : > { %2296 = vmatmul.bf16.gmra.mxu3 %v3362_v51 }
 0x24e   : > { %2444 = vst [vmem:[#allocation2 + $0x28] sm:$0xff] %v2380_v54 }
 0x24f   : > { %v2088_v56 = vpop.f32.mrf.mxu2  ;;  %v1752_v59 = vpop.f32.mrf.mxu0 }
 0x250   : > { %v2257_v57 = vpop.f32.mrf.mxu3  ;;  %v2089_v58 = vadd.f32 %v2088_v56, %v1920_v55  ;;  %v1921_v60 = vpop.f32.mrf.mxu1 }
 0x251   : > { %v1922_v8 = vadd.f32 %v1921_v60, %v1752_v59  ;;  %v3397_v59 = vld [vmem:[%s4315_s12 + $0x2e0] sm:$0xf]  ;;  %v3765_v60 = vld [vmem:[%s4315_s12 + $0x2ec] sm:$0xf0] }
 0x252   : > { %v2258_v62 = vadd.f32 %v2257_v57, %v2089_v58  ;;  %v621_v57 = vld [vmem:[#allocation2 + $0x1e0] sm:$0xff]  ;;  %v3398_v7 = vor.u32 %v3765_v60, %v3397_v59  ;;  %v3431_v59 = vld [vmem:[%s4315_s12 + $0x330] sm:$0xf0]  ;;  %v3437_v60 = vld [vmem:[%s4315_s12 + $0x328] sm:$0xf] }
 0x254   : > { %v2381_v1 = vadd.f32 %v2258_v62, %v617_v61  ;;  %v3763_v62 = vld [vmem:[%s4315_s12 + $0x2e4] sm:$0xf] }
 0x256   : > { %2445 = vst [vmem:[#allocation2 + $0x1e8] sm:$0xff] %v2381_v1  ;;  %v3766_v1 = vld [vmem:[%s4315_s12 + $0x2f4] sm:$0xf0] }
 0x257   : > { %v2090_v9 = vpop.f32.mrf.mxu2  ;;  %v1755_v14 = vpop.f32.mrf.mxu0 }
 0x258   : > { %v2259_v10 = vpop.f32.mrf.mxu3  ;;  %v2091_v13 = vadd.f32 %v2090_v9, %v1922_v8  ;;  %v1924_v15 = vpop.f32.mrf.mxu1  ;;  %v3402_v8 = vor.u32 %v3763_v62, %v3399_v63  ;;  %v3772_v62 = vld [vmem:[%s4315_s12 + $0x32c] sm:$0xf]  ;;  %v3439_v63 = vld [vmem:[%s4315_s12 + $0x338] sm:$0xf0] }
 0x259   : > { %v1925_v21 = vadd.f32 %v1924_v15, %v1755_v14  ;;  %v622_v14 = vld [vmem:[#allocation2] sm:$0xff] }
 0x25a   : > { %v2260_v19 = vadd.f32 %v2259_v10, %v2091_v13  ;;  %1794 = vmatmul.bf16.gmra.mxu0 %v3366_v11  ;;  %v3410_v13 = vor.u32 %v3764_v2, %v3407_v3 }
 0x25b   : > { %1963 = vmatmul.bf16.gmra.mxu1 %v3370_v12  ;;  %v3406_v12 = vor.u32 %v3766_v1, %v3405_v0 }
 0x25c   : > { %v2382_v20 = vadd.f32 %v2260_v19, %v618_v18  ;;  %2132 = vmatmul.bf16.gmra.mxu2 %v3374_v16 }
 0x25d   : > { %2301 = vmatmul.bf16.gmra.mxu3 %v3378_v17 }
 0x25e   : > { %2446 = vst [vmem:[#allocation2 + $0xf8] sm:$0xff] %v2382_v20 }
 0x25f   : > { %v2093_v22 = vpop.f32.mrf.mxu2  ;;  %v1757_v25 = vpop.f32.mrf.mxu0 }
 0x260   : > { %v2262_v23 = vpop.f32.mrf.mxu3  ;;  %v2094_v24 = vadd.f32 %v2093_v22, %v1925_v21  ;;  %v1926_v26 = vpop.f32.mrf.mxu1 }
 0x261   : > { %v1927_v38 = vadd.f32 %v1926_v26, %v1757_v25  ;;  %v3413_v25 = vld [vmem:[%s4315_s12 + $0x300] sm:$0xf]  ;;  %v3769_v26 = vld [vmem:[%s4315_s12 + $0x30c] sm:$0xf0] }
 0x262   : > { %v2263_v28 = vadd.f32 %v2262_v23, %v2094_v24  ;;  %v623_v23 = vld [vmem:[#allocation2 + $0xf0] sm:$0xff]  ;;  %v3414_v37 = vor.u32 %v3769_v26, %v3413_v25  ;;  %v3453_v26 = vld [vmem:[%s4315_s12 + $0x348] sm:$0xf] }
 0x263   : > { %v3447_v25 = vld [vmem:[%s4315_s12 + $0x350] sm:$0xf0] }
 0x264   : > { %v2383_v31 = vadd.f32 %v2263_v28, %v619_v27  ;;  %v3767_v28 = vld [vmem:[%s4315_s12 + $0x304] sm:$0xf] }
 0x266   : > { %2447 = vst [vmem:[#allocation2 + $0x160] sm:$0xff] %v2383_v31  ;;  %v3770_v31 = vld [vmem:[%s4315_s12 + $0x314] sm:$0xf0] }
 0x267   : > { %v2095_v39 = vpop.f32.mrf.mxu2  ;;  %v1760_v44 = vpop.f32.mrf.mxu0 }
 0x268   : > { %v2264_v40 = vpop.f32.mrf.mxu3  ;;  %v2096_v43 = vadd.f32 %v2095_v39, %v1927_v38  ;;  %v1929_v45 = vpop.f32.mrf.mxu1  ;;  %v3418_v38 = vor.u32 %v3767_v28, %v3415_v29  ;;  %v3776_v28 = vld [vmem:[%s4315_s12 + $0x34c] sm:$0xf]  ;;  %v3455_v29 = vld [vmem:[%s4315_s12 + $0x358] sm:$0xf0] }
 0x269   : > { %v1930_v51 = vadd.f32 %v1929_v45, %v1760_v44  ;;  %v624_v44 = vld [vmem:[#allocation2 + $0x8] sm:$0xff] }
 0x26a   : > { %v2265_v49 = vadd.f32 %v2264_v40, %v2096_v43  ;;  %1799 = vmatmul.bf16.gmra.mxu0 %v3382_v41  ;;  %v3426_v43 = vor.u32 %v3768_v32, %v3423_v33 }
 0x26b   : > { %1968 = vmatmul.bf16.gmra.mxu1 %v3386_v42  ;;  %v3422_v42 = vor.u32 %v3770_v31, %v3421_v30 }
 0x26c   : > { %v2384_v50 = vadd.f32 %v2265_v49, %v620_v48  ;;  %2137 = vmatmul.bf16.gmra.mxu2 %v3390_v46 }
 0x26d   : > { %2306 = vmatmul.bf16.gmra.mxu3 %v3394_v47 }
 0x26e   : > { %2448 = vst [vmem:[#allocation2 + $0x30] sm:$0xff] %v2384_v50 }
 0x26f   : > { %v2098_v52 = vpop.f32.mrf.mxu2  ;;  %v1762_v55 = vpop.f32.mrf.mxu0 }
 0x270   : > { %v2267_v53 = vpop.f32.mrf.mxu3  ;;  %v2099_v54 = vadd.f32 %v2098_v52, %v1930_v51  ;;  %v1931_v56 = vpop.f32.mrf.mxu1 }
 0x271   : > { %v1932_v4 = vadd.f32 %v1931_v56, %v1762_v55  ;;  %v3429_v55 = vld [vmem:[%s4315_s12 + $0x320] sm:$0xf]  ;;  %v3773_v56 = vld [vmem:[%s4315_s12 + $0x32c] sm:$0xf0] }
 0x272   : > { %v2268_v58 = vadd.f32 %v2267_v53, %v2099_v54  ;;  %v625_v53 = vld [vmem:[#allocation2 + $0x148] sm:$0xff]  ;;  %v3430_v3 = vor.u32 %v3773_v56, %v3429_v55  ;;  %v3463_v55 = vld [vmem:[%s4315_s12 + $0x370] sm:$0xf0] }
 0x273   : > { %v3469_v56 = vld [vmem:[%s4315_s12 + $0x368] sm:$0xf] }
 0x274   : > { %v2385_v61 = vadd.f32 %v2268_v58, %v621_v57  ;;  %v3771_v58 = vld [vmem:[%s4315_s12 + $0x324] sm:$0xf] }
 0x276   : > { %2449 = vst [vmem:[#allocation2 + $0x1e0] sm:$0xff] %v2385_v61  ;;  %v3774_v61 = vld [vmem:[%s4315_s12 + $0x334] sm:$0xf0] }
 0x277   : > { %v2100_v5 = vpop.f32.mrf.mxu2  ;;  %v1765_v10 = vpop.f32.mrf.mxu0 }
 0x278   : > { %v2269_v6 = vpop.f32.mrf.mxu3  ;;  %v2101_v9 = vadd.f32 %v2100_v5, %v1932_v4  ;;  %v1934_v11 = vpop.f32.mrf.mxu1  ;;  %v3434_v4 = vor.u32 %v3771_v58, %v3431_v59  ;;  %v3780_v58 = vld [vmem:[%s4315_s12 + $0x36c] sm:$0xf]  ;;  %v3471_v59 = vld [vmem:[%s4315_s12 + $0x378] sm:$0xf0] }
 0x279   : > { %v1935_v17 = vadd.f32 %v1934_v11, %v1765_v10  ;;  %v626_v10 = vld [vmem:[#allocation2 + $0x1d0] sm:$0xff] }
 0x27a   : > { %v2270_v15 = vadd.f32 %v2269_v6, %v2101_v9  ;;  %1804 = vmatmul.bf16.gmra.mxu0 %v3398_v7  ;;  %v3442_v9 = vor.u32 %v3772_v62, %v3439_v63 }
 0x27b   : > { %1973 = vmatmul.bf16.gmra.mxu1 %v3402_v8  ;;  %v3438_v8 = vor.u32 %v3774_v61, %v3437_v60 }
 0x27c   : > { %v2386_v16 = vadd.f32 %v2270_v15, %v622_v14  ;;  %2142 = vmatmul.bf16.gmra.mxu2 %v3406_v12 }
 0x27d   : > { %2311 = vmatmul.bf16.gmra.mxu3 %v3410_v13 }
 0x27e   : > { %2450 = vst [vmem:[#allocation2] sm:$0xff] %v2386_v16 }
 0x27f   : > { %v2103_v18 = vpop.f32.mrf.mxu2  ;;  %v1767_v21 = vpop.f32.mrf.mxu0 }
 0x280   : > { %v2272_v19 = vpop.f32.mrf.mxu3  ;;  %v2104_v20 = vadd.f32 %v2103_v18, %v1935_v17  ;;  %v1936_v22 = vpop.f32.mrf.mxu1 }
 0x281   : > { %v1937_v34 = vadd.f32 %v1936_v22, %v1767_v21  ;;  %v3445_v21 = vld [vmem:[%s4315_s12 + $0x340] sm:$0xf]  ;;  %v3777_v22 = vld [vmem:[%s4315_s12 + $0x34c] sm:$0xf0] }
 0x282   : > { %v2273_v24 = vadd.f32 %v2272_v19, %v2104_v20  ;;  %v627_v19 = vld [vmem:[#allocation2 + $0x100] sm:$0xff]  ;;  %v3446_v33 = vor.u32 %v3777_v22, %v3445_v21  ;;  %v3479_v21 = vld [vmem:[%s4315_s12 + $0x390] sm:$0xf0]  ;;  %v3485_v22 = vld [vmem:[%s4315_s12 + $0x388] sm:$0xf] }
 0x284   : > { %v2387_v27 = vadd.f32 %v2273_v24, %v623_v23  ;;  %v3775_v24 = vld [vmem:[%s4315_s12 + $0x344] sm:$0xf] }
 0x286   : > { %2451 = vst [vmem:[#allocation2 + $0xf0] sm:$0xff] %v2387_v27  ;;  %v3778_v27 = vld [vmem:[%s4315_s12 + $0x354] sm:$0xf0] }
 0x287   : > { %v2105_v35 = vpop.f32.mrf.mxu2  ;;  %v1770_v40 = vpop.f32.mrf.mxu0 }
 0x288   : > { %v2274_v36 = vpop.f32.mrf.mxu3  ;;  %v2106_v39 = vadd.f32 %v2105_v35, %v1937_v34  ;;  %v1939_v41 = vpop.f32.mrf.mxu1  ;;  %v3450_v34 = vor.u32 %v3775_v24, %v3447_v25  ;;  %v3784_v24 = vld [vmem:[%s4315_s12 + $0x38c] sm:$0xf]  ;;  %v3487_v25 = vld [vmem:[%s4315_s12 + $0x398] sm:$0xf0] }
 0x289   : > { %v1940_v47 = vadd.f32 %v1939_v41, %v1770_v40  ;;  %v628_v40 = vld [vmem:[#allocation2 + $0xc8] sm:$0xff] }
 0x28a   : > { %v2275_v45 = vadd.f32 %v2274_v36, %v2106_v39  ;;  %1809 = vmatmul.bf16.gmra.mxu0 %v3414_v37  ;;  %v3458_v39 = vor.u32 %v3776_v28, %v3455_v29 }
 0x28b   : > { %1978 = vmatmul.bf16.gmra.mxu1 %v3418_v38  ;;  %v3454_v38 = vor.u32 %v3778_v27, %v3453_v26 }
 0x28c   : > { %v2388_v46 = vadd.f32 %v2275_v45, %v624_v44  ;;  %2147 = vmatmul.bf16.gmra.mxu2 %v3422_v42 }
 0x28d   : > { %2316 = vmatmul.bf16.gmra.mxu3 %v3426_v43 }
 0x28e   : > { %2452 = vst [vmem:[#allocation2 + $0x8] sm:$0xff] %v2388_v46 }
 0x28f   : > { %v2108_v48 = vpop.f32.mrf.mxu2  ;;  %v1772_v51 = vpop.f32.mrf.mxu0 }
 0x290   : > { %v2277_v49 = vpop.f32.mrf.mxu3  ;;  %v2109_v50 = vadd.f32 %v2108_v48, %v1940_v47  ;;  %v1941_v52 = vpop.f32.mrf.mxu1 }
 0x291   : > { %v1942_v0 = vadd.f32 %v1941_v52, %v1772_v51  ;;  %v3461_v51 = vld [vmem:[%s4315_s12 + $0x360] sm:$0xf]  ;;  %v3781_v52 = vld [vmem:[%s4315_s12 + $0x36c] sm:$0xf0] }
 0x292   : > { %v2278_v54 = vadd.f32 %v2277_v49, %v2109_v50  ;;  %v629_v49 = vld [vmem:[#allocation2 + $0x40] sm:$0xff]  ;;  %v3462_v63 = vor.u32 %v3781_v52, %v3461_v51  ;;  %v3495_v51 = vld [vmem:[%s4315_s12 + $0x3b0] sm:$0xf0]  ;;  %v3501_v52 = vld [vmem:[%s4315_s12 + $0x3a8] sm:$0xf] }
 0x294   : > { %v2389_v57 = vadd.f32 %v2278_v54, %v625_v53  ;;  %v3779_v54 = vld [vmem:[%s4315_s12 + $0x364] sm:$0xf] }
 0x296   : > { %2453 = vst [vmem:[#allocation2 + $0x148] sm:$0xff] %v2389_v57  ;;  %v3782_v57 = vld [vmem:[%s4315_s12 + $0x374] sm:$0xf0] }
 0x297   : > { %v2110_v1 = vpop.f32.mrf.mxu2  ;;  %v1775_v6 = vpop.f32.mrf.mxu0 }
 0x298   : > { %v2279_v2 = vpop.f32.mrf.mxu3  ;;  %v2111_v5 = vadd.f32 %v2110_v1, %v1942_v0  ;;  %v1944_v7 = vpop.f32.mrf.mxu1  ;;  %v3466_v0 = vor.u32 %v3779_v54, %v3463_v55  ;;  %v3788_v54 = vld [vmem:[%s4315_s12 + $0x3ac] sm:$0xf]  ;;  %v3503_v55 = vld [vmem:[%s4315_s12 + $0x3b8] sm:$0xf0] }
 0x299   : > { %v1945_v13 = vadd.f32 %v1944_v7, %v1775_v6  ;;  %v630_v6 = vld [vmem:[#allocation2 + $0x1f8] sm:$0xff] }
 0x29a   : > { %v2280_v11 = vadd.f32 %v2279_v2, %v2111_v5  ;;  %1814 = vmatmul.bf16.gmra.mxu0 %v3430_v3  ;;  %v3474_v5 = vor.u32 %v3780_v58, %v3471_v59 }
 0x29b   : > { %1983 = vmatmul.bf16.gmra.mxu1 %v3434_v4  ;;  %v3470_v4 = vor.u32 %v3782_v57, %v3469_v56 }
 0x29c   : > { %v2390_v12 = vadd.f32 %v2280_v11, %v626_v10  ;;  %2152 = vmatmul.bf16.gmra.mxu2 %v3438_v8 }
 0x29d   : > { %2321 = vmatmul.bf16.gmra.mxu3 %v3442_v9 }
 0x29e   : > { %2454 = vst [vmem:[#allocation2 + $0x1d0] sm:$0xff] %v2390_v12 }
 0x29f   : > { %v2113_v14 = vpop.f32.mrf.mxu2  ;;  %v1777_v17 = vpop.f32.mrf.mxu0 }
 0x2a0   : > { %v2282_v15 = vpop.f32.mrf.mxu3  ;;  %v2114_v16 = vadd.f32 %v2113_v14, %v1945_v13  ;;  %v1946_v18 = vpop.f32.mrf.mxu1 }
 0x2a1   : > { %v1947_v30 = vadd.f32 %v1946_v18, %v1777_v17  ;;  %v3477_v17 = vld [vmem:[%s4315_s12 + $0x380] sm:$0xf]  ;;  %v3785_v18 = vld [vmem:[%s4315_s12 + $0x38c] sm:$0xf0] }
 0x2a2   : > { %v2283_v20 = vadd.f32 %v2282_v15, %v2114_v16  ;;  %v631_v15 = vld [vmem:[#allocation2 + $0x20] sm:$0xff]  ;;  %v3478_v29 = vor.u32 %v3785_v18, %v3477_v17  ;;  %v3511_v17 = vld [vmem:[%s4315_s12 + $0x3d0] sm:$0xf0]  ;;  %v3517_v18 = vld [vmem:[%s4315_s12 + $0x3c8] sm:$0xf] }
 0x2a4   : > { %v2391_v23 = vadd.f32 %v2283_v20, %v627_v19  ;;  %v3783_v20 = vld [vmem:[%s4315_s12 + $0x384] sm:$0xf] }
 0x2a6   : > { %2455 = vst [vmem:[#allocation2 + $0x100] sm:$0xff] %v2391_v23  ;;  %v3786_v23 = vld [vmem:[%s4315_s12 + $0x394] sm:$0xf0] }
 0x2a7   : > { %v2115_v31 = vpop.f32.mrf.mxu2  ;;  %v1780_v36 = vpop.f32.mrf.mxu0 }
 0x2a8   : > { %v2284_v32 = vpop.f32.mrf.mxu3  ;;  %v2116_v35 = vadd.f32 %v2115_v31, %v1947_v30  ;;  %v1949_v37 = vpop.f32.mrf.mxu1  ;;  %v3482_v30 = vor.u32 %v3783_v20, %v3479_v21  ;;  %v3792_v20 = vld [vmem:[%s4315_s12 + $0x3cc] sm:$0xf]  ;;  %v3519_v21 = vld [vmem:[%s4315_s12 + $0x3d8] sm:$0xf0] }
 0x2a9   : > { %v1950_v43 = vadd.f32 %v1949_v37, %v1780_v36  ;;  %v632_v36 = vld [vmem:[#allocation2 + $0x128] sm:$0xff] }
 0x2aa   : > { %v2285_v41 = vadd.f32 %v2284_v32, %v2116_v35  ;;  %1819 = vmatmul.bf16.gmra.mxu0 %v3446_v33  ;;  %v3490_v35 = vor.u32 %v3784_v24, %v3487_v25 }
 0x2ab   : > { %1988 = vmatmul.bf16.gmra.mxu1 %v3450_v34  ;;  %v3486_v34 = vor.u32 %v3786_v23, %v3485_v22 }
 0x2ac   : > { %v2392_v42 = vadd.f32 %v2285_v41, %v628_v40  ;;  %2157 = vmatmul.bf16.gmra.mxu2 %v3454_v38 }
 0x2ad   : > { %2326 = vmatmul.bf16.gmra.mxu3 %v3458_v39 }
 0x2ae   : > { %2456 = vst [vmem:[#allocation2 + $0xc8] sm:$0xff] %v2392_v42 }
 0x2af   : > { %v2118_v44 = vpop.f32.mrf.mxu2  ;;  %v1782_v47 = vpop.f32.mrf.mxu0 }
 0x2b0   : > { %v2287_v45 = vpop.f32.mrf.mxu3  ;;  %v2119_v46 = vadd.f32 %v2118_v44, %v1950_v43  ;;  %v1951_v48 = vpop.f32.mrf.mxu1 }
 0x2b1   : > { %v1952_v60 = vadd.f32 %v1951_v48, %v1782_v47  ;;  %v3493_v47 = vld [vmem:[%s4315_s12 + $0x3a0] sm:$0xf]  ;;  %v3789_v48 = vld [vmem:[%s4315_s12 + $0x3ac] sm:$0xf0] }
 0x2b2   : > { %v2288_v50 = vadd.f32 %v2287_v45, %v2119_v46  ;;  %v633_v45 = vld [vmem:[#allocation2 + $0x1a0] sm:$0xff]  ;;  %v3494_v59 = vor.u32 %v3789_v48, %v3493_v47  ;;  %v3527_v47 = vld [vmem:[%s4315_s12 + $0x3f0] sm:$0xf0]  ;;  %v3533_v48 = vld [vmem:[%s4315_s12 + $0x3e8] sm:$0xf] }
 0x2b4   : > { %v2393_v53 = vadd.f32 %v2288_v50, %v629_v49  ;;  %v3787_v50 = vld [vmem:[%s4315_s12 + $0x3a4] sm:$0xf] }
 0x2b6   : > { %2457 = vst [vmem:[#allocation2 + $0x40] sm:$0xff] %v2393_v53  ;;  %v3790_v53 = vld [vmem:[%s4315_s12 + $0x3b4] sm:$0xf0] }
 0x2b7   : > { %v2120_v61 = vpop.f32.mrf.mxu2  ;;  %v1785_v2 = vpop.f32.mrf.mxu0 }
 0x2b8   : > { %v2289_v62 = vpop.f32.mrf.mxu3  ;;  %v2121_v1 = vadd.f32 %v2120_v61, %v1952_v60  ;;  %v1954_v3 = vpop.f32.mrf.mxu1  ;;  %v3498_v60 = vor.u32 %v3787_v50, %v3495_v51  ;;  %v3796_v50 = vld [vmem:[%s4315_s12 + $0x3ec] sm:$0xf]  ;;  %v3535_v51 = vld [vmem:[%s4315_s12 + $0x3f8] sm:$0xf0] }
 0x2b9   : > { %v1955_v9 = vadd.f32 %v1954_v3, %v1785_v2  ;;  %v634_v2 = vld [vmem:[#allocation2 + $0x1f0] sm:$0xff] }
 0x2ba   : > { %v2290_v7 = vadd.f32 %v2289_v62, %v2121_v1  ;;  %1824 = vmatmul.bf16.gmra.mxu0 %v3462_v63  ;;  %v3506_v1 = vor.u32 %v3788_v54, %v3503_v55 }
 0x2bb   : > { %1993 = vmatmul.bf16.gmra.mxu1 %v3466_v0  ;;  %v3502_v0 = vor.u32 %v3790_v53, %v3501_v52 }
 0x2bc   : > { %v2394_v8 = vadd.f32 %v2290_v7, %v630_v6  ;;  %2162 = vmatmul.bf16.gmra.mxu2 %v3470_v4 }
 0x2bd   : > { %2331 = vmatmul.bf16.gmra.mxu3 %v3474_v5 }
 0x2be   : > { %2458 = vst [vmem:[#allocation2 + $0x1f8] sm:$0xff] %v2394_v8 }
 0x2bf   : > { %v2123_v10 = vpop.f32.mrf.mxu2  ;;  %v1787_v13 = vpop.f32.mrf.mxu0 }
 0x2c0   : > { %v2292_v11 = vpop.f32.mrf.mxu3  ;;  %v2124_v12 = vadd.f32 %v2123_v10, %v1955_v9  ;;  %v1956_v14 = vpop.f32.mrf.mxu1 }
 0x2c1   : > { %v1957_v26 = vadd.f32 %v1956_v14, %v1787_v13  ;;  %v3509_v13 = vld [vmem:[%s4315_s12 + $0x3c0] sm:$0xf]  ;;  %v3793_v14 = vld [vmem:[%s4315_s12 + $0x3cc] sm:$0xf0] }
 0x2c2   : > { %v2293_v16 = vadd.f32 %v2292_v11, %v2124_v12  ;;  %v635_v11 = vld [vmem:[#allocation2 + $0xe8] sm:$0xff]  ;;  %v3510_v25 = vor.u32 %v3793_v14, %v3509_v13 }
 0x2c4   : > { %v2395_v19 = vadd.f32 %v2293_v16, %v631_v15  ;;  %v3791_v16 = vld [vmem:[%s4315_s12 + $0x3c4] sm:$0xf] }
 0x2c6   : > { %2459 = vst [vmem:[#allocation2 + $0x20] sm:$0xff] %v2395_v19  ;;  %v3794_v19 = vld [vmem:[%s4315_s12 + $0x3d4] sm:$0xf0] }
 0x2c7   : > { %v2125_v27 = vpop.f32.mrf.mxu2  ;;  %v1790_v32 = vpop.f32.mrf.mxu0 }
 0x2c8   : > { %v2294_v28 = vpop.f32.mrf.mxu3  ;;  %v2126_v31 = vadd.f32 %v2125_v27, %v1957_v26  ;;  %v1959_v33 = vpop.f32.mrf.mxu1  ;;  %v3514_v26 = vor.u32 %v3791_v16, %v3511_v17  ;;  %v640_v16 = vld [vmem:[#allocation2 + $0xd0] sm:$0xff] }
 0x2c9   : > { %v1960_v39 = vadd.f32 %v1959_v33, %v1790_v32  ;;  %v636_v32 = vld [vmem:[#allocation2 + $0x78] sm:$0xff] }
 0x2ca   : > { %v2295_v37 = vadd.f32 %v2294_v28, %v2126_v31  ;;  %1829 = vmatmul.bf16.gmra.mxu0 %v3478_v29  ;;  %v3522_v31 = vor.u32 %v3792_v20, %v3519_v21 }
 0x2cb   : > { %1998 = vmatmul.bf16.gmra.mxu1 %v3482_v30  ;;  %v3518_v30 = vor.u32 %v3794_v19, %v3517_v18 }
 0x2cc   : > { %v2396_v38 = vadd.f32 %v2295_v37, %v632_v36  ;;  %2167 = vmatmul.bf16.gmra.mxu2 %v3486_v34 }
 0x2cd   : > { %2336 = vmatmul.bf16.gmra.mxu3 %v3490_v35 }
 0x2ce   : > { %2460 = vst [vmem:[#allocation2 + $0x128] sm:$0xff] %v2396_v38 }
 0x2cf   : > { %v2128_v40 = vpop.f32.mrf.mxu2  ;;  %v1792_v43 = vpop.f32.mrf.mxu0 }
 0x2d0   : > { %v2297_v41 = vpop.f32.mrf.mxu3  ;;  %v2129_v42 = vadd.f32 %v2128_v40, %v1960_v39  ;;  %v1961_v44 = vpop.f32.mrf.mxu1 }
 0x2d1   : > { %v1962_v56 = vadd.f32 %v1961_v44, %v1792_v43  ;;  %v3525_v43 = vld [vmem:[%s4315_s12 + $0x3e0] sm:$0xf]  ;;  %v3797_v44 = vld [vmem:[%s4315_s12 + $0x3ec] sm:$0xf0] }
 0x2d2   : > { %v2298_v46 = vadd.f32 %v2297_v41, %v2129_v42  ;;  %v637_v41 = vld [vmem:[#allocation2 + $0x70] sm:$0xff]  ;;  %v3526_v55 = vor.u32 %v3797_v44, %v3525_v43  ;;  %v643_v43 = vld [vmem:[#allocation2 + $0xa8] sm:$0xff] }
 0x2d4   : > { %v2397_v49 = vadd.f32 %v2298_v46, %v633_v45  ;;  %v3795_v46 = vld [vmem:[%s4315_s12 + $0x3e4] sm:$0xf] }
 0x2d6   : > { %2461 = vst [vmem:[#allocation2 + $0x1a0] sm:$0xff] %v2397_v49  ;;  %v3798_v49 = vld [vmem:[%s4315_s12 + $0x3f4] sm:$0xf0] }
 0x2d7   : > { %v2130_v57 = vpop.f32.mrf.mxu2  ;;  %v1795_v62 = vpop.f32.mrf.mxu0 }
 0x2d8   : > { %v2299_v58 = vpop.f32.mrf.mxu3  ;;  %v2131_v61 = vadd.f32 %v2130_v57, %v1962_v56  ;;  %v1964_v63 = vpop.f32.mrf.mxu1  ;;  %v3530_v56 = vor.u32 %v3795_v46, %v3527_v47 }
 0x2d9   : > { %v1965_v5 = vadd.f32 %v1964_v63, %v1795_v62  ;;  %v638_v62 = vld [vmem:[#allocation2 + $0x90] sm:$0xff] }
 0x2da   : > { %v2300_v3 = vadd.f32 %v2299_v58, %v2131_v61  ;;  %1834 = vmatmul.bf16.gmra.mxu0 %v3494_v59  ;;  %v3538_v61 = vor.u32 %v3796_v50, %v3535_v51 }
 0x2db   : > { %2003 = vmatmul.bf16.gmra.mxu1 %v3498_v60  ;;  %v3534_v60 = vor.u32 %v3798_v49, %v3533_v48 }
 0x2dc   : > { %v2398_v4 = vadd.f32 %v2300_v3, %v634_v2  ;;  %2172 = vmatmul.bf16.gmra.mxu2 %v3502_v0 }
 0x2dd   : > { %2341 = vmatmul.bf16.gmra.mxu3 %v3506_v1 }
 0x2de   : > { %2462 = vst [vmem:[#allocation2 + $0x1f0] sm:$0xff] %v2398_v4 }
 0x2df   : > { %v2133_v6 = vpop.f32.mrf.mxu2  ;;  %v1797_v9 = vpop.f32.mrf.mxu0 }
 0x2e0   : > { %v2302_v7 = vpop.f32.mrf.mxu3  ;;  %v2134_v8 = vadd.f32 %v2133_v6, %v1965_v5  ;;  %v1966_v10 = vpop.f32.mrf.mxu1 }
 0x2e1   : > { %v1967_v22 = vadd.f32 %v1966_v10, %v1797_v9 }
 0x2e2   : > { %v2303_v12 = vadd.f32 %v2302_v7, %v2134_v8  ;;  %v639_v7 = vld [vmem:[#allocation2 + $0x1d8] sm:$0xff] }
 0x2e4   : > { %v2399_v15 = vadd.f32 %v2303_v12, %v635_v11 }
 0x2e6   : > { %2463 = vst [vmem:[#allocation2 + $0xe8] sm:$0xff] %v2399_v15 }
 0x2e7   : > { %v2135_v23 = vpop.f32.mrf.mxu2  ;;  %v1800_v28 = vpop.f32.mrf.mxu0 }
 0x2e8   : > { %v2304_v24 = vpop.f32.mrf.mxu3  ;;  %v2136_v27 = vadd.f32 %v2135_v23, %v1967_v22  ;;  %v1969_v29 = vpop.f32.mrf.mxu1 }
 0x2e9   : > { %v1970_v35 = vadd.f32 %v1969_v29, %v1800_v28 }
 0x2ea   : > { %v2305_v33 = vadd.f32 %v2304_v24, %v2136_v27  ;;  %1839 = vmatmul.bf16.gmra.mxu0 %v3510_v25  ;;  %v641_v25 = vld [vmem:[#allocation2 + $0xb8] sm:$0xff] }
 0x2eb   : > { %2008 = vmatmul.bf16.gmra.mxu1 %v3514_v26 }
 0x2ec   : > { %v2400_v34 = vadd.f32 %v2305_v33, %v636_v32  ;;  %2177 = vmatmul.bf16.gmra.mxu2 %v3518_v30 }
 0x2ed   : > { %2346 = vmatmul.bf16.gmra.mxu3 %v3522_v31 }
 0x2ee   : > { %2464 = vst [vmem:[#allocation2 + $0x78] sm:$0xff] %v2400_v34  ;;  %v642_v34 = vld [vmem:[#allocation2 + $0x88] sm:$0xff] }
 0x2ef   : > { %v2138_v36 = vpop.f32.mrf.mxu2  ;;  %v1802_v39 = vpop.f32.mrf.mxu0 }
 0x2f0   : > { %v2307_v37 = vpop.f32.mrf.mxu3  ;;  %v2139_v38 = vadd.f32 %v2138_v36, %v1970_v35  ;;  %v1971_v40 = vpop.f32.mrf.mxu1 }
 0x2f1   : > { %v1972_v52 = vadd.f32 %v1971_v40, %v1802_v39 }
 0x2f2   : > { %v2308_v42 = vadd.f32 %v2307_v37, %v2139_v38 }
 0x2f4   : > { %v2401_v45 = vadd.f32 %v2308_v42, %v637_v41 }
 0x2f6   : > { %2465 = vst [vmem:[#allocation2 + $0x70] sm:$0xff] %v2401_v45 }
 0x2f7   : > { %v2140_v53 = vpop.f32.mrf.mxu2  ;;  %v1805_v58 = vpop.f32.mrf.mxu0 }
 0x2f8   : > { %v2309_v54 = vpop.f32.mrf.mxu3  ;;  %v2141_v57 = vadd.f32 %v2140_v53, %v1972_v52  ;;  %v1974_v59 = vpop.f32.mrf.mxu1  ;;  %v644_v52 = vld [vmem:[#allocation2 + $0x1c8] sm:$0xff] }
 0x2f9   : > { %v1975_v1 = vadd.f32 %v1974_v59, %v1805_v58 }
 0x2fa   : > { %v2310_v63 = vadd.f32 %v2309_v54, %v2141_v57  ;;  %1844 = vmatmul.bf16.gmra.mxu0 %v3526_v55 }
 0x2fb   : > { %2013 = vmatmul.bf16.gmra.mxu1 %v3530_v56 }
 0x2fc   : > { %v2402_v0 = vadd.f32 %v2310_v63, %v638_v62  ;;  %2182 = vmatmul.bf16.gmra.mxu2 %v3534_v60 }
 0x2fd   : > { %2351 = vmatmul.bf16.gmra.mxu3 %v3538_v61  ;;  %v645_v61 = vld [vmem:[#allocation2 + $0x170] sm:$0xff] }
 0x2fe   : > { %2466 = vst [vmem:[#allocation2 + $0x90] sm:$0xff] %v2402_v0 }
 0x2ff   : > { %v2143_v2 = vpop.f32.mrf.mxu2  ;;  %v1807_v5 = vpop.f32.mrf.mxu0 }
 0x300   : > { %v2312_v3 = vpop.f32.mrf.mxu3  ;;  %v2144_v4 = vadd.f32 %v2143_v2, %v1975_v1  ;;  %v1976_v6 = vpop.f32.mrf.mxu1 }
 0x301   : > { %v1977_v10 = vadd.f32 %v1976_v6, %v1807_v5  ;;  %v646_v6 = vld [vmem:[#allocation2 + $0x178] sm:$0xff] }
 0x302   : > { %v2313_v8 = vadd.f32 %v2312_v3, %v2144_v4 }
 0x304   : > { %v2403_v9 = vadd.f32 %v2313_v8, %v639_v7 }
 0x306   : > { %2467 = vst [vmem:[#allocation2 + $0x1d8] sm:$0xff] %v2403_v9 }
 0x307   : > { %v2145_v11 = vpop.f32.mrf.mxu2  ;;  %v1810_v14 = vpop.f32.mrf.mxu0 }
 0x308   : > { %v2314_v12 = vpop.f32.mrf.mxu3  ;;  %v2146_v13 = vadd.f32 %v2145_v11, %v1977_v10  ;;  %v1979_v15 = vpop.f32.mrf.mxu1 }
 0x309   : > { %v1980_v19 = vadd.f32 %v1979_v15, %v1810_v14  ;;  %v647_v15 = vld [vmem:[#allocation2 + $0x68] sm:$0xff] }
 0x30a   : > { %v2315_v17 = vadd.f32 %v2314_v12, %v2146_v13 }
 0x30c   : > { %v2404_v18 = vadd.f32 %v2315_v17, %v640_v16 }
 0x30e   : > { %2468 = vst [vmem:[#allocation2 + $0xd0] sm:$0xff] %v2404_v18 }
 0x30f   : > { %v2148_v20 = vpop.f32.mrf.mxu2  ;;  %v1812_v23 = vpop.f32.mrf.mxu0 }
 0x310   : > { %v2317_v21 = vpop.f32.mrf.mxu3  ;;  %v2149_v22 = vadd.f32 %v2148_v20, %v1980_v19  ;;  %v1981_v24 = vpop.f32.mrf.mxu1 }
 0x311   : > { %v1982_v28 = vadd.f32 %v1981_v24, %v1812_v23  ;;  %v648_v24 = vld [vmem:[#allocation2 + $0x190] sm:$0xff] }
 0x312   : > { %v2318_v26 = vadd.f32 %v2317_v21, %v2149_v22 }
 0x314   : > { %v2405_v27 = vadd.f32 %v2318_v26, %v641_v25 }
 0x316   : > { %2469 = vst [vmem:[#allocation2 + $0xb8] sm:$0xff] %v2405_v27 }
 0x317   : > { %v2150_v29 = vpop.f32.mrf.mxu2  ;;  %v1815_v32 = vpop.f32.mrf.mxu0 }
 0x318   : > { %v2319_v30 = vpop.f32.mrf.mxu3  ;;  %v2151_v31 = vadd.f32 %v2150_v29, %v1982_v28  ;;  %v1984_v33 = vpop.f32.mrf.mxu1 }
 0x319   : > { %v1985_v37 = vadd.f32 %v1984_v33, %v1815_v32  ;;  %v649_v33 = vld [vmem:[#allocation2 + $0x198] sm:$0xff] }
 0x31a   : > { %v2320_v35 = vadd.f32 %v2319_v30, %v2151_v31 }
 0x31c   : > { %v2406_v36 = vadd.f32 %v2320_v35, %v642_v34 }
 0x31e   : > { %2470 = vst [vmem:[#allocation2 + $0x88] sm:$0xff] %v2406_v36 }
 0x31f   : > { %v2153_v38 = vpop.f32.mrf.mxu2  ;;  %v1817_v41 = vpop.f32.mrf.mxu0 }
 0x320   : > { %v2322_v39 = vpop.f32.mrf.mxu3  ;;  %v2154_v40 = vadd.f32 %v2153_v38, %v1985_v37  ;;  %v1986_v42 = vpop.f32.mrf.mxu1 }
 0x321   : > { %v1987_v46 = vadd.f32 %v1986_v42, %v1817_v41  ;;  %v650_v42 = vld [vmem:[#allocation2 + $0x38] sm:$0xff] }
 0x322   : > { %v2323_v44 = vadd.f32 %v2322_v39, %v2154_v40 }
 0x324   : > { %v2407_v45 = vadd.f32 %v2323_v44, %v643_v43 }
 0x326   : > { %2471 = vst [vmem:[#allocation2 + $0xa8] sm:$0xff] %v2407_v45 }
 0x327   : > { %v2155_v47 = vpop.f32.mrf.mxu2  ;;  %v1820_v50 = vpop.f32.mrf.mxu0 }
 0x328   : > { %v2324_v48 = vpop.f32.mrf.mxu3  ;;  %v2156_v49 = vadd.f32 %v2155_v47, %v1987_v46  ;;  %v1989_v51 = vpop.f32.mrf.mxu1 }
 0x329   : > { %v1990_v55 = vadd.f32 %v1989_v51, %v1820_v50  ;;  %v651_v51 = vld [vmem:[#allocation2 + $0xc0] sm:$0xff] }
 0x32a   : > { %v2325_v53 = vadd.f32 %v2324_v48, %v2156_v49 }
 0x32c   : > { %v2408_v54 = vadd.f32 %v2325_v53, %v644_v52 }
 0x32e   : > { %2472 = vst [vmem:[#allocation2 + $0x1c8] sm:$0xff] %v2408_v54 }
 0x32f   : > { %v2158_v56 = vpop.f32.mrf.mxu2  ;;  %v1822_v59 = vpop.f32.mrf.mxu0 }
 0x330   : > { %v2327_v57 = vpop.f32.mrf.mxu3  ;;  %v2159_v58 = vadd.f32 %v2158_v56, %v1990_v55  ;;  %v1991_v60 = vpop.f32.mrf.mxu1 }
 0x331   : > { %v1992_v0 = vadd.f32 %v1991_v60, %v1822_v59  ;;  %v652_v60 = vld [vmem:[#allocation2 + $0x1c0] sm:$0xff] }
 0x332   : > { %v2328_v62 = vadd.f32 %v2327_v57, %v2159_v58 }
 0x334   : > { %v2409_v63 = vadd.f32 %v2328_v62, %v645_v61 }
 0x336   : > { %2473 = vst [vmem:[#allocation2 + $0x170] sm:$0xff] %v2409_v63 }
 0x337   : > { %v2160_v1 = vpop.f32.mrf.mxu2  ;;  %v1825_v4 = vpop.f32.mrf.mxu0 }
 0x338   : > { %v2329_v2 = vpop.f32.mrf.mxu3  ;;  %v2161_v3 = vadd.f32 %v2160_v1, %v1992_v0  ;;  %v1994_v5 = vpop.f32.mrf.mxu1 }
 0x339   : > { %v1995_v9 = vadd.f32 %v1994_v5, %v1825_v4  ;;  %v653_v5 = vld [vmem:[#allocation2 + $0x158] sm:$0xff] }
 0x33a   : > { %v2330_v7 = vadd.f32 %v2329_v2, %v2161_v3 }
 0x33c   : > { %v2410_v8 = vadd.f32 %v2330_v7, %v646_v6 }
 0x33e   : > { %2474 = vst [vmem:[#allocation2 + $0x178] sm:$0xff] %v2410_v8 }
 0x33f   : > { %v2163_v10 = vpop.f32.mrf.mxu2  ;;  %v1827_v13 = vpop.f32.mrf.mxu0 }
 0x340   : > { %v2332_v11 = vpop.f32.mrf.mxu3  ;;  %v2164_v12 = vadd.f32 %v2163_v10, %v1995_v9  ;;  %v1996_v14 = vpop.f32.mrf.mxu1 }
 0x341   : > { %v1997_v18 = vadd.f32 %v1996_v14, %v1827_v13 }
 0x342   : > { %v2333_v16 = vadd.f32 %v2332_v11, %v2164_v12  ;;  %v654_v12 = vld [vmem:[#allocation2 + $0x10] sm:$0xff] }
 0x344   : > { %v2411_v17 = vadd.f32 %v2333_v16, %v647_v15 }
 0x346   : > { %2475 = vst [vmem:[#allocation2 + $0x68] sm:$0xff] %v2411_v17 }
 0x347   : > { %v2165_v19 = vpop.f32.mrf.mxu2  ;;  %v1830_v22 = vpop.f32.mrf.mxu0 }
 0x348   : > { %v2334_v20 = vpop.f32.mrf.mxu3  ;;  %v2166_v21 = vadd.f32 %v2165_v19, %v1997_v18  ;;  %v1999_v23 = vpop.f32.mrf.mxu1 }
 0x349   : > { %v2000_v27 = vadd.f32 %v1999_v23, %v1830_v22 }
 0x34a   : > { %v2335_v25 = vadd.f32 %v2334_v20, %v2166_v21  ;;  %v655_v21 = vld [vmem:[#allocation2 + $0x58] sm:$0xff] }
 0x34c   : > { %v2412_v26 = vadd.f32 %v2335_v25, %v648_v24 }
 0x34e   : > { %2476 = vst [vmem:[#allocation2 + $0x190] sm:$0xff] %v2412_v26 }
 0x34f   : > { %v2168_v28 = vpop.f32.mrf.mxu2  ;;  %v1832_v31 = vpop.f32.mrf.mxu0 }
 0x350   : > { %v2337_v29 = vpop.f32.mrf.mxu3  ;;  %v2169_v30 = vadd.f32 %v2168_v28, %v2000_v27  ;;  %v2001_v32 = vpop.f32.mrf.mxu1 }
 0x351   : > { %v2002_v36 = vadd.f32 %v2001_v32, %v1832_v31 }
 0x352   : > { %v2338_v34 = vadd.f32 %v2337_v29, %v2169_v30  ;;  %v656_v29 = vld [vmem:[#allocation2 + $0xa0] sm:$0xff] }
 0x354   : > { %v2413_v35 = vadd.f32 %v2338_v34, %v649_v33 }
 0x356   : > { %2477 = vst [vmem:[#allocation2 + $0x198] sm:$0xff] %v2413_v35 }
 0x357   : > { %v2170_v37 = vpop.f32.mrf.mxu2  ;;  %v1835_v40 = vpop.f32.mrf.mxu0 }
 0x358   : > { %v2339_v38 = vpop.f32.mrf.mxu3  ;;  %v2171_v39 = vadd.f32 %v2170_v37, %v2002_v36  ;;  %v2004_v41 = vpop.f32.mrf.mxu1 }
 0x359   : > { %v2005_v45 = vadd.f32 %v2004_v41, %v1835_v40 }
 0x35a   : > { %v2340_v43 = vadd.f32 %v2339_v38, %v2171_v39 }
 0x35c   : > { %v2414_v44 = vadd.f32 %v2340_v43, %v650_v42 }
 0x35e   : > { %2478 = vst [vmem:[#allocation2 + $0x38] sm:$0xff] %v2414_v44 }
 0x35f   : > { %v2173_v46 = vpop.f32.mrf.mxu2  ;;  %v1837_v49 = vpop.f32.mrf.mxu0 }
 0x360   : > { %v2342_v47 = vpop.f32.mrf.mxu3  ;;  %v2174_v48 = vadd.f32 %v2173_v46, %v2005_v45  ;;  %v2006_v50 = vpop.f32.mrf.mxu1 }
 0x361   : > { %v2007_v54 = vadd.f32 %v2006_v50, %v1837_v49 }
 0x362   : > { %v2343_v52 = vadd.f32 %v2342_v47, %v2174_v48 }
 0x364   : > { %v2415_v53 = vadd.f32 %v2343_v52, %v651_v51 }
 0x366   : > { %2479 = vst [vmem:[#allocation2 + $0xc0] sm:$0xff] %v2415_v53 }
 0x367   : > { %v2175_v55 = vpop.f32.mrf.mxu2  ;;  %v1840_v58 = vpop.f32.mrf.mxu0 }
 0x368   : > { %v2344_v56 = vpop.f32.mrf.mxu3  ;;  %v2176_v57 = vadd.f32 %v2175_v55, %v2007_v54  ;;  %v2009_v59 = vpop.f32.mrf.mxu1 }
 0x369   : > { %v2010_v63 = vadd.f32 %v2009_v59, %v1840_v58 }
 0x36a   : > { %v2345_v61 = vadd.f32 %v2344_v56, %v2176_v57 }
 0x36c   : > { %v2416_v62 = vadd.f32 %v2345_v61, %v652_v60 }
 0x36e   : > { %2480 = vst [vmem:[#allocation2 + $0x1c0] sm:$0xff] %v2416_v62 }
 0x36f   : > { %v2178_v0 = vpop.f32.mrf.mxu2  ;;  %v1842_v3 = vpop.f32.mrf.mxu0 }
 0x370   : > { %v2347_v1 = vpop.f32.mrf.mxu3  ;;  %v2179_v2 = vadd.f32 %v2178_v0, %v2010_v63  ;;  %v2011_v4 = vpop.f32.mrf.mxu1 }
 0x371   : > { %v2012_v8 = vadd.f32 %v2011_v4, %v1842_v3 }
 0x372   : > { %v2348_v6 = vadd.f32 %v2347_v1, %v2179_v2 }
 0x374   : > { %v2417_v7 = vadd.f32 %v2348_v6, %v653_v5 }
 0x376   : > { %2481 = vst [vmem:[#allocation2 + $0x158] sm:$0xff] %v2417_v7 }
 0x377   : > { %v2180_v9 = vpop.f32.mrf.mxu2  ;;  %v1845_v13 = vpop.f32.mrf.mxu0 }
 0x378   : > { %v2349_v10 = vpop.f32.mrf.mxu3  ;;  %v2181_v11 = vadd.f32 %v2180_v9, %v2012_v8  ;;  %v2014_v14 = vpop.f32.mrf.mxu1 }
 0x379   : > { %v2015_v17 = vadd.f32 %v2014_v14, %v1845_v13 }
 0x37a   : > { %v2350_v15 = vadd.f32 %v2349_v10, %v2181_v11 }
 0x37c   : > { %v2418_v16 = vadd.f32 %v2350_v15, %v654_v12 }
 0x37e   : > { %2482 = vst [vmem:[#allocation2 + $0x10] sm:$0xff] %v2418_v16 }
 0x37f   : > { %v2183_v18 = vpop.f32.mrf.mxu2  ;;  %v1847_v23 = vpop.f32.mrf.mxu0 }
 0x380   : > { %v2352_v19 = vpop.f32.mrf.mxu3  ;;  %v2184_v20 = vadd.f32 %v2183_v18, %v2015_v17  ;;  %v2016_v24 = vpop.f32.mrf.mxu1 }
 0x381   : > { %v2017_v26 = vadd.f32 %v2016_v24, %v1847_v23 }
 0x382   : > { %v2353_v22 = vadd.f32 %v2352_v19, %v2184_v20 }
 0x384   : > { %v2419_v25 = vadd.f32 %v2353_v22, %v655_v21 }
 0x386   : > { %2483 = vst [vmem:[#allocation2 + $0x58] sm:$0xff] %v2419_v25 }
 0x387   : > { %v2185_v27 = vpop.f32.mrf.mxu2 }
 0x388   : > { %v2186_v28 = vadd.f32 %v2185_v27, %v2017_v26  ;;  %v2354_v30 = vpop.f32.mrf.mxu3 }
 0x38a   : > { %v2355_v31 = vadd.f32 %v2354_v30, %v2186_v28  ;;  %2488 = sbr.rel (%p3667_p0) target bundleno = 1056 (0x420), region = 63 }
 0x38c   : > { %v2420_v32 = vadd.f32 %v2355_v31, %v656_v29 }
 0x38e   : > { %2484 = vst [vmem:[#allocation2 + $0xa0] sm:$0xff] %v2420_v32 }
 0x38f   : > { %v2489_v33 = vld [vmem:[#allocation2 + $0xb0] sm:$0xff]  ;;  %v4674_v34 = vld [vmem:[%s5100_s2] ss:$0 sm:$0xff]  ;;  %v3947_v35 = vmov 0.0   ;;  %v2491_v37 = vld [vmem:[#allocation2 + $0xd8] sm:$0xff] }
 0x390   : > { %2685 = vst [vmem:[%s4313_s11] sm:$0xff] %v3947_v35  ;;  %v2490_v36 = vld [vmem:[#allocation2 + $0x1b0] sm:$0xff]  ;;  %v2492_v38 = vld [vmem:[#allocation2 + $0x18] sm:$0xff]  ;;  %v2557_v39 = vadd.f32 %v4674_v34, %v2489_v33  ;;  %v2559_v41 = vadd.f32 %v4674_v34, %v2491_v37  ;;  %v2494_v45 = vld [vmem:[#allocation2 + $0x168] sm:$0xff] }
 0x391   : > { %v2558_v40 = vadd.f32 %v4674_v34, %v2490_v36  ;;  %v2560_v42 = vadd.f32 %v4674_v34, %v2492_v38  ;;  %v2493_v43 = vld [vmem:[#allocation2 + $0x50] sm:$0xff]  ;;  %v2562_v54 = vadd.f32 %v4674_v34, %v2494_v45  ;;  %v2496_v55 = vld [vmem:[#allocation2 + $0x48] sm:$0xff]  ;;  %v2497_v56 = vld [vmem:[#allocation2 + $0x180] sm:$0xff] }
 0x392   : > { %v2561_v44 = vadd.f32 %v4674_v34, %v2493_v43  ;;  %2621 = vst [vmem:[%s4308_s15] sm:$0xff] %v2557_v39  ;;  %v2756_v46 = vmul.f32 %v2557_v39, %v2557_v39  ;;  %v2758_v49 = vmul.f32 %v2559_v41, %v2559_v41  ;;  %v2495_v50 = vld [vmem:[#allocation2 + $0x130] sm:$0xff]  ;;  %v2564_v62 = vadd.f32 %v4674_v34, %v2496_v55  ;;  %v2499_v63 = vld [vmem:[#allocation2 + $0x118] sm:$0xff]  ;;  %v2501_v6 = vld [vmem:[#allocation2 + $0x120] sm:$0xff] }
 0x393   : > { %v2686_v47 = vadd.f32 %v2558_v40, %v2557_v39  ;;  %v2757_v48 = vmul.f32 %v2558_v40, %v2558_v40  ;;  %2622 = vst [vmem:[%s4308_s15 + $0x8] sm:$0xff] %v2558_v40  ;;  %v2759_v53 = vmul.f32 %v2560_v42, %v2560_v42  ;;  %v2563_v60 = vadd.f32 %v4674_v34, %v2495_v50  ;;  %v2498_v61 = vld [vmem:[#allocation2 + $0x110] sm:$0xff]  ;;  %v2500_v4 = vld [vmem:[#allocation2 + $0x98] sm:$0xff]  ;;  %v2503_v13 = vld [vmem:[#allocation2 + $0x108] sm:$0xff] }
 0x394   : > { %2623 = vst [vmem:[%s4308_s15 + $0x10] sm:$0xff] %v2559_v41  ;;  %v2760_v59 = vmul.f32 %v2561_v44, %v2561_v44  ;;  %v2761_v2 = vmul.f32 %v2562_v54, %v2562_v54  ;;  %v2565_v3 = vadd.f32 %v4674_v34, %v2497_v56  ;;  %v2566_v5 = vadd.f32 %v4674_v34, %v2498_v61  ;;  %v2502_v11 = vld [vmem:[#allocation2 + $0x150] sm:$0xff]  ;;  %v2504_v18 = vld [vmem:[#allocation2 + $0x60] sm:$0xff]  ;;  %v2506_v25 = vld [vmem:[#allocation2 + $0x188] sm:$0xff] }
 0x395   : > { %v2820_v51 = vadd.f32 %v2757_v48, %v2756_v46  ;;  %v2687_v52 = vadd.f32 %v2686_v47, %v2559_v41  ;;  %2624 = vst [vmem:[%s4308_s15 + $0x18] sm:$0xff] %v2560_v42  ;;  %v2762_v9 = vmul.f32 %v2563_v60, %v2563_v60  ;;  %v2567_v10 = vadd.f32 %v4674_v34, %v2499_v63  ;;  %v2505_v20 = vld [vmem:[#allocation2 + $0xe0] sm:$0xff]  ;;  %v2507_v27 = vld [vmem:[#allocation2 + $0x138] sm:$0xff]  ;;  %v2510_v40 = vld [vmem:[#allocation2 + $0x1a8] sm:$0xff] }
 0x396   : > { %2625 = vst [vmem:[%s4308_s15 + $0x20] sm:$0xff] %v2561_v44  ;;  %v2568_v12 = vadd.f32 %v4674_v34, %v2500_v4  ;;  %v2763_v16 = vmul.f32 %v2564_v62, %v2564_v62  ;;  %v2569_v17 = vadd.f32 %v4674_v34, %v2501_v6  ;;  %v2570_v19 = vadd.f32 %v4674_v34, %v2502_v11  ;;  %v2508_v32 = vld [vmem:[#allocation2 + $0x140] sm:$0xff]  ;;  %v2512_v47 = vld [vmem:[#allocation2 + $0x28] sm:$0xff]  ;;  %v2516_v61 = vld [vmem:[#allocation2 + $0x30] sm:$0xff] }
 0x397   : > { %v2821_v57 = vadd.f32 %v2820_v51, %v2758_v49  ;;  %v2688_v58 = vadd.f32 %v2687_v52, %v2560_v42  ;;  %2626 = vst [vmem:[%s4308_s15 + $0x28] sm:$0xff] %v2562_v54  ;;  %v2764_v23 = vmul.f32 %v2565_v3, %v2565_v3  ;;  %v2571_v24 = vadd.f32 %v4674_v34, %v2503_v13  ;;  %v2509_v35 = vld [vmem:[#allocation2 + $0x80] sm:$0xff]  ;;  %v2511_v42 = vld [vmem:[#allocation2 + $0x1b8] sm:$0xff]  ;;  %v2513_v49 = vld [vmem:[#allocation2 + $0x1e8] sm:$0xff] }
 0x398   : > { %2627 = vst [vmem:[%s4308_s15 + $0x30] sm:$0xff] %v2563_v60  ;;  %v4707_v26 = vadd.f32 %v4674_v34, %v2504_v18  ;;  %v2765_v30 = vmul.f32 %v2566_v5, %v2566_v5  ;;  %v4711_v31 = vadd.f32 %v4674_v34, %v2505_v20  ;;  %v4716_v33 = vadd.f32 %v4674_v34, %v2506_v25  ;;  %v2515_v56 = vld [vmem:[#allocation2 + $0x160] sm:$0xff]  ;;  %v2519_v6 = vld [vmem:[#allocation2 + $0xf0] sm:$0xff]  ;;  %v2520_v11 = vld [vmem:[#allocation2 + $0x8] sm:$0xff] }
 0x399   : > { %v2822_v0 = vadd.f32 %v2821_v57, %v2759_v53  ;;  %v2689_v1 = vadd.f32 %v2688_v58, %v2561_v44  ;;  %2628 = vst [vmem:[%s4308_s15 + $0x38] sm:$0xff] %v2564_v62  ;;  %v2766_v38 = vmul.f32 %v2567_v10, %v2567_v10  ;;  %v4721_v39 = vadd.f32 %v4674_v34, %v2507_v27  ;;  %v2517_v63 = vld [vmem:[#allocation2 + $0x1e0] sm:$0xff]  ;;  %v2521_v13 = vld [vmem:[#allocation2 + $0x148] sm:$0xff] }
 0x39a   : > { %2629 = vst [vmem:[%s4308_s15 + $0x40] sm:$0xff] %v2565_v3  ;;  %v4726_v41 = vadd.f32 %v4674_v34, %v2508_v32  ;;  %v2767_v45 = vmul.f32 %v2568_v12, %v2568_v12  ;;  %v4731_v46 = vadd.f32 %v4674_v34, %v2509_v35  ;;  %v4736_v48 = vadd.f32 %v4674_v34, %v2510_v40  ;;  %v2518_v4 = vld [vmem:[#allocation2] sm:$0xff] }
 0x39b   : > { %v2823_v7 = vadd.f32 %v2822_v0, %v2760_v59  ;;  %v2690_v8 = vadd.f32 %v2689_v1, %v2562_v54  ;;  %2630 = vst [vmem:[%s4308_s15 + $0x48] sm:$0xff] %v2566_v5  ;;  %v2768_v52 = vmul.f32 %v2569_v17, %v2569_v17  ;;  %v4741_v53 = vadd.f32 %v4674_v34, %v2511_v42  ;;  %v2514_v54 = vld [vmem:[#allocation2 + $0xf8] sm:$0xff]  ;;  %v2523_v25 = vld [vmem:[#allocation2 + $0x100] sm:$0xff] }
 0x39c   : > { %2631 = vst [vmem:[%s4308_s15 + $0x50] sm:$0xff] %v2567_v10  ;;  %v4746_v55 = vadd.f32 %v4674_v34, %v2512_v47  ;;  %v2769_v59 = vmul.f32 %v2570_v19, %v2570_v19  ;;  %v4791_v18 = vadd.f32 %v4674_v34, %v2520_v11  ;;  %v2775_v35 = vmul.f32 %v4726_v41, %v4726_v41  ;;  %v2526_v42 = vld [vmem:[#allocation2 + $0x1f8] sm:$0xff]  ;;  %v2527_v47 = vld [vmem:[#allocation2 + $0x20] sm:$0xff] }
 0x39d   : > { %v2824_v14 = vadd.f32 %v2823_v7, %v2761_v2  ;;  %v2691_v15 = vadd.f32 %v2690_v8, %v2563_v60  ;;  %2632 = vst [vmem:[%s4308_s15 + $0x58] sm:$0xff] %v2568_v12  ;;  %v4751_v60 = vadd.f32 %v4674_v34, %v2513_v49  ;;  %v2770_v2 = vmul.f32 %v2571_v24, %v2571_v24  ;;  %v2532_v11 = vld [vmem:[#allocation2 + $0x78] sm:$0xff] }
 0x39e   : > { %2633 = vst [vmem:[%s4308_s15 + $0x60] sm:$0xff] %v2569_v17  ;;  %v2776_v40 = vmul.f32 %v4731_v46, %v4731_v46 }
 0x39f   : > { %v2825_v21 = vadd.f32 %v2824_v14, %v2762_v9  ;;  %v2692_v22 = vadd.f32 %v2691_v15, %v2564_v62  ;;  %2634 = vst [vmem:[%s4308_s15 + $0x68] sm:$0xff] %v2570_v19  ;;  %v4756_v62 = vadd.f32 %v4674_v34, %v2514_v54  ;;  %v2771_v9 = vmul.f32 %v4707_v26, %v4707_v26 }
 0x3a0   : > { %2635 = vst [vmem:[%s4308_s15 + $0x70] sm:$0xff] %v2571_v24 }
 0x3a1   : > { %v2826_v28 = vadd.f32 %v2825_v21, %v2763_v16  ;;  %v2693_v29 = vadd.f32 %v2692_v22, %v2565_v3  ;;  %2636 = vst [vmem:[%s4308_s15 + $0x78] sm:$0xff] %v4707_v26  ;;  %v4761_v3 = vadd.f32 %v4674_v34, %v2515_v56  ;;  %v2772_v16 = vmul.f32 %v4711_v31, %v4711_v31 }
 0x3a2   : > { %2637 = vst [vmem:[%s4308_s15 + $0x80] sm:$0xff] %v4711_v31  ;;  %v2773_v22 = vmul.f32 %v4716_v33, %v4716_v33 }
 0x3a3   : > { %v2827_v36 = vadd.f32 %v2826_v28, %v2764_v23  ;;  %v2694_v37 = vadd.f32 %v2693_v29, %v2566_v5  ;;  %2638 = vst [vmem:[%s4308_s15 + $0x88] sm:$0xff] %v4716_v33  ;;  %v4766_v5 = vadd.f32 %v4674_v34, %v2516_v61  ;;  %v4799_v23 = vadd.f32 %v4674_v34, %v2521_v13 }
 0x3a4   : > { %2639 = vst [vmem:[%s4308_s15 + $0x90] sm:$0xff] %v4721_v39  ;;  %v2774_v28 = vmul.f32 %v4721_v39, %v4721_v39  ;;  %v4812_v29 = vadd.f32 %v4674_v34, %v2523_v25 }
 0x3a5   : > { %v2828_v43 = vadd.f32 %v2827_v36, %v2765_v30  ;;  %v2695_v44 = vadd.f32 %v2694_v37, %v2567_v10  ;;  %2640 = vst [vmem:[%s4308_s15 + $0x98] sm:$0xff] %v4726_v41  ;;  %v4773_v10 = vadd.f32 %v4674_v34, %v2517_v63  ;;  %v2524_v30 = vld [vmem:[#allocation2 + $0xc8] sm:$0xff]  ;;  %v2525_v36 = vld [vmem:[#allocation2 + $0x40] sm:$0xff]  ;;  %v2780_v63 = vmul.f32 %v4751_v60, %v4751_v60 }
 0x3a6   : > { %2641 = vst [vmem:[%s4308_s15 + $0xa0] sm:$0xff] %v4731_v46 }
 0x3a7   : > { %v2829_v50 = vadd.f32 %v2828_v43, %v2766_v38  ;;  %v2696_v51 = vadd.f32 %v2695_v44, %v2568_v12  ;;  %2642 = vst [vmem:[%s4308_s15 + $0xa8] sm:$0xff] %v4736_v48  ;;  %v4778_v12 = vadd.f32 %v4674_v34, %v2518_v4  ;;  %v2781_v4 = vmul.f32 %v4756_v62, %v4756_v62 }
 0x3a8   : > { %2643 = vst [vmem:[%s4308_s15 + $0xb0] sm:$0xff] %v4741_v53 }
 0x3a9   : > { %v2830_v57 = vadd.f32 %v2829_v50, %v2767_v45  ;;  %v2697_v58 = vadd.f32 %v2696_v51, %v2569_v17  ;;  %2644 = vst [vmem:[%s4308_s15 + $0xb8] sm:$0xff] %v4746_v55  ;;  %v4786_v17 = vadd.f32 %v4674_v34, %v2519_v6  ;;  %v2777_v45 = vmul.f32 %v4736_v48, %v4736_v48  ;;  %v2531_v6 = vld [vmem:[#allocation2 + $0xe8] sm:$0xff] }
 0x3aa   : > { %2645 = vst [vmem:[%s4308_s15 + $0xc0] sm:$0xff] %v4751_v60  ;;  %v2778_v51 = vmul.f32 %v4741_v53, %v4741_v53 }
 0x3ab   : > { %v2831_v0 = vadd.f32 %v2830_v57, %v2768_v52  ;;  %v2698_v1 = vadd.f32 %v2697_v58, %v2570_v19  ;;  %2646 = vst [vmem:[%s4308_s15 + $0xc8] sm:$0xff] %v4756_v62  ;;  %v2522_v19 = vld [vmem:[#allocation2 + $0x1d0] sm:$0xff]  ;;  %v2528_v52 = vld [vmem:[#allocation2 + $0x128] sm:$0xff]  ;;  %v2779_v57 = vmul.f32 %v4746_v55, %v4746_v55  ;;  %v2529_v58 = vld [vmem:[#allocation2 + $0x1a0] sm:$0xff] }
 0x3ac   : > { %2647 = vst [vmem:[%s4308_s15 + $0xd0] sm:$0xff] %v4761_v3 }
 0x3ad   : > { %v2832_v7 = vadd.f32 %v2831_v0, %v2769_v59  ;;  %v2699_v8 = vadd.f32 %v2698_v1, %v2571_v24  ;;  %2648 = vst [vmem:[%s4308_s15 + $0xd8] sm:$0xff] %v4766_v5  ;;  %v4804_v24 = vadd.f32 %v4674_v34, %v2522_v19  ;;  %v2530_v0 = vld [vmem:[#allocation2 + $0x1f0] sm:$0xff] }
 0x3ae   : > { %2649 = vst [vmem:[%s4308_s15 + $0xe0] sm:$0xff] %v4773_v10 }
 0x3af   : > { %v2833_v14 = vadd.f32 %v2832_v7, %v2770_v2  ;;  %v2700_v15 = vadd.f32 %v2699_v8, %v4707_v26  ;;  %2650 = vst [vmem:[%s4308_s15 + $0xe8] sm:$0xff] %v4778_v12 }
 0x3b0   : > { %2651 = vst [vmem:[%s4308_s15 + $0xf0] sm:$0xff] %v4786_v17 }
 0x3b1   : > { %v2834_v20 = vadd.f32 %v2833_v14, %v2771_v9  ;;  %v2701_v21 = vadd.f32 %v2700_v15, %v4711_v31  ;;  %2652 = vst [vmem:[%s4308_s15 + $0xf8] sm:$0xff] %v4791_v18  ;;  %v2782_v9 = vmul.f32 %v4761_v3, %v4761_v3  ;;  %v2783_v15 = vmul.f32 %v4766_v5, %v4766_v5 }
 0x3b2   : > { %2653 = vst [vmem:[%s4308_s15 + $0x100] sm:$0xff] %v4799_v23 }
 0x3b3   : > { %v2835_v26 = vadd.f32 %v2834_v20, %v2772_v16  ;;  %v2702_v27 = vadd.f32 %v2701_v21, %v4716_v33  ;;  %2654 = vst [vmem:[%s4308_s15 + $0x108] sm:$0xff] %v4804_v24  ;;  %v4822_v33 = vadd.f32 %v4674_v34, %v2524_v30  ;;  %v2533_v16 = vld [vmem:[#allocation2 + $0x70] sm:$0xff]  ;;  %v2784_v21 = vmul.f32 %v4773_v10, %v4773_v10 }
 0x3b4   : > { %2655 = vst [vmem:[%s4308_s15 + $0x110] sm:$0xff] %v4812_v29 }
 0x3b5   : > { %v2836_v31 = vadd.f32 %v2835_v26, %v2773_v22  ;;  %v2703_v32 = vadd.f32 %v2702_v27, %v4721_v39  ;;  %2656 = vst [vmem:[%s4308_s15 + $0x118] sm:$0xff] %v4822_v33  ;;  %v4830_v39 = vadd.f32 %v4674_v34, %v2525_v36  ;;  %v2534_v22 = vld [vmem:[#allocation2 + $0x90] sm:$0xff]  ;;  %v2785_v27 = vmul.f32 %v4778_v12, %v4778_v12 }
 0x3b7   : > { %v2837_v37 = vadd.f32 %v2836_v31, %v2774_v28  ;;  %v2704_v38 = vadd.f32 %v2703_v32, %v4726_v41  ;;  %2657 = vst [vmem:[%s4308_s15 + $0x120] sm:$0xff] %v4830_v39  ;;  %v4838_v41 = vadd.f32 %v4674_v34, %v2526_v42  ;;  %v2535_v28 = vld [vmem:[#allocation2 + $0x1d8] sm:$0xff]  ;;  %v2786_v32 = vmul.f32 %v4786_v17, %v4786_v17 }
 0x3b9   : > { %v2838_v43 = vadd.f32 %v2837_v37, %v2775_v35  ;;  %v2705_v44 = vadd.f32 %v2704_v38, %v4731_v46  ;;  %2658 = vst [vmem:[%s4308_s15 + $0x128] sm:$0xff] %v4838_v41  ;;  %v4846_v46 = vadd.f32 %v4674_v34, %v2527_v47  ;;  %v2536_v35 = vld [vmem:[#allocation2 + $0xd0] sm:$0xff]  ;;  %v2787_v38 = vmul.f32 %v4791_v18, %v4791_v18 }
 0x3bb   : > { %v2839_v49 = vadd.f32 %v2838_v43, %v2776_v40  ;;  %v2706_v50 = vadd.f32 %v2705_v44, %v4736_v48  ;;  %2659 = vst [vmem:[%s4308_s15 + $0x130] sm:$0xff] %v4846_v46  ;;  %v4854_v48 = vadd.f32 %v4674_v34, %v2528_v52  ;;  %v2537_v40 = vld [vmem:[#allocation2 + $0xb8] sm:$0xff]  ;;  %v2788_v44 = vmul.f32 %v4799_v23, %v4799_v23 }
 0x3bd   : > { %v2840_v54 = vadd.f32 %v2839_v49, %v2777_v45  ;;  %v2707_v56 = vadd.f32 %v2706_v50, %v4741_v53  ;;  %2660 = vst [vmem:[%s4308_s15 + $0x138] sm:$0xff] %v4854_v48  ;;  %v4862_v53 = vadd.f32 %v4674_v34, %v2529_v58  ;;  %v2538_v45 = vld [vmem:[#allocation2 + $0x88] sm:$0xff]  ;;  %v2789_v50 = vmul.f32 %v4804_v24, %v4804_v24 }
 0x3bf   : > { %v2841_v59 = vadd.f32 %v2840_v54, %v2778_v51  ;;  %v2708_v61 = vadd.f32 %v2707_v56, %v4746_v55  ;;  %2661 = vst [vmem:[%s4308_s15 + $0x140] sm:$0xff] %v4862_v53  ;;  %v4870_v55 = vadd.f32 %v4674_v34, %v2530_v0  ;;  %v2539_v51 = vld [vmem:[#allocation2 + $0xa8] sm:$0xff]  ;;  %v2790_v56 = vmul.f32 %v4812_v29, %v4812_v29 }
 0x3c1   : > { %v2842_v1 = vadd.f32 %v2841_v59, %v2779_v57  ;;  %v2709_v2 = vadd.f32 %v2708_v61, %v4751_v60  ;;  %2662 = vst [vmem:[%s4308_s15 + $0x148] sm:$0xff] %v4870_v55  ;;  %v4878_v60 = vadd.f32 %v4674_v34, %v2531_v6  ;;  %v2540_v57 = vld [vmem:[#allocation2 + $0x1c8] sm:$0xff]  ;;  %v2791_v61 = vmul.f32 %v4822_v33, %v4822_v33 }
 0x3c3   : > { %v2843_v7 = vadd.f32 %v2842_v1, %v2780_v63  ;;  %v2710_v8 = vadd.f32 %v2709_v2, %v4756_v62  ;;  %2663 = vst [vmem:[%s4308_s15 + $0x150] sm:$0xff] %v4878_v60  ;;  %v4886_v62 = vadd.f32 %v4674_v34, %v2532_v11  ;;  %v2541_v63 = vld [vmem:[#allocation2 + $0x170] sm:$0xff]  ;;  %v2792_v2 = vmul.f32 %v4830_v39, %v4830_v39 }
 0x3c5   : > { %v2844_v13 = vadd.f32 %v2843_v7, %v2781_v4  ;;  %v2711_v14 = vadd.f32 %v2710_v8, %v4761_v3  ;;  %2664 = vst [vmem:[%s4308_s15 + $0x158] sm:$0xff] %v4886_v62  ;;  %v4894_v3 = vadd.f32 %v4674_v34, %v2533_v16  ;;  %v2542_v4 = vld [vmem:[#allocation2 + $0x178] sm:$0xff]  ;;  %v2793_v8 = vmul.f32 %v4838_v41, %v4838_v41 }
 0x3c7   : > { %v2845_v19 = vadd.f32 %v2844_v13, %v2782_v9  ;;  %v2712_v20 = vadd.f32 %v2711_v14, %v4766_v5  ;;  %2665 = vst [vmem:[%s4308_s15 + $0x160] sm:$0xff] %v4894_v3  ;;  %v4902_v5 = vadd.f32 %v4674_v34, %v2534_v22  ;;  %v2543_v9 = vld [vmem:[#allocation2 + $0x68] sm:$0xff]  ;;  %v2794_v14 = vmul.f32 %v4846_v46, %v4846_v46 }
 0x3c9   : > { %v2846_v25 = vadd.f32 %v2845_v19, %v2783_v15  ;;  %v2713_v26 = vadd.f32 %v2712_v20, %v4773_v10  ;;  %2666 = vst [vmem:[%s4308_s15 + $0x168] sm:$0xff] %v4902_v5  ;;  %v4910_v10 = vadd.f32 %v4674_v34, %v2535_v28  ;;  %v2544_v15 = vld [vmem:[#allocation2 + $0x190] sm:$0xff]  ;;  %v2795_v20 = vmul.f32 %v4854_v48, %v4854_v48 }
 0x3cb   : > { %v2847_v30 = vadd.f32 %v2846_v25, %v2784_v21  ;;  %v2714_v31 = vadd.f32 %v2713_v26, %v4778_v12  ;;  %2667 = vst [vmem:[%s4308_s15 + $0x170] sm:$0xff] %v4910_v10  ;;  %v4918_v12 = vadd.f32 %v4674_v34, %v2536_v35  ;;  %v2545_v21 = vld [vmem:[#allocation2 + $0x198] sm:$0xff]  ;;  %v2796_v26 = vmul.f32 %v4862_v53, %v4862_v53 }
 0x3cd   : > { %v2848_v36 = vadd.f32 %v2847_v30, %v2785_v27  ;;  %v2715_v37 = vadd.f32 %v2714_v31, %v4786_v17  ;;  %2668 = vst [vmem:[%s4308_s15 + $0x178] sm:$0xff] %v4918_v12  ;;  %v4926_v17 = vadd.f32 %v4674_v34, %v2537_v40  ;;  %v2546_v27 = vld [vmem:[#allocation2 + $0x38] sm:$0xff]  ;;  %v2797_v31 = vmul.f32 %v4870_v55, %v4870_v55 }
 0x3cf   : > { %v2849_v42 = vadd.f32 %v2848_v36, %v2786_v32  ;;  %v2716_v43 = vadd.f32 %v2715_v37, %v4791_v18  ;;  %2669 = vst [vmem:[%s4308_s15 + $0x180] sm:$0xff] %v4926_v17  ;;  %v4934_v18 = vadd.f32 %v4674_v34, %v2538_v45  ;;  %v2547_v32 = vld [vmem:[#allocation2 + $0xc0] sm:$0xff]  ;;  %v2798_v37 = vmul.f32 %v4878_v60, %v4878_v60 }
 0x3d1   : > { %v2850_v47 = vadd.f32 %v2849_v42, %v2787_v38  ;;  %v2717_v49 = vadd.f32 %v2716_v43, %v4799_v23  ;;  %2670 = vst [vmem:[%s4308_s15 + $0x188] sm:$0xff] %v4934_v18  ;;  %v4942_v23 = vadd.f32 %v4674_v34, %v2539_v51  ;;  %v2548_v38 = vld [vmem:[#allocation2 + $0x1c0] sm:$0xff]  ;;  %v2799_v43 = vmul.f32 %v4886_v62, %v4886_v62 }
 0x3d3   : > { %v2851_v52 = vadd.f32 %v2850_v47, %v2788_v44  ;;  %v2718_v54 = vadd.f32 %v2717_v49, %v4804_v24  ;;  %2671 = vst [vmem:[%s4308_s15 + $0x190] sm:$0xff] %v4942_v23  ;;  %v4950_v24 = vadd.f32 %v4674_v34, %v2540_v57  ;;  %v2549_v44 = vld [vmem:[#allocation2 + $0x158] sm:$0xff]  ;;  %v2800_v49 = vmul.f32 %v4894_v3, %v4894_v3 }
 0x3d5   : > { %v2852_v58 = vadd.f32 %v2851_v52, %v2789_v50  ;;  %v2719_v59 = vadd.f32 %v2718_v54, %v4812_v29  ;;  %2672 = vst [vmem:[%s4308_s15 + $0x198] sm:$0xff] %v4950_v24  ;;  %v4958_v29 = vadd.f32 %v4674_v34, %v2541_v63  ;;  %v2550_v50 = vld [vmem:[#allocation2 + $0x10] sm:$0xff]  ;;  %v2801_v54 = vmul.f32 %v4902_v5, %v4902_v5  ;;  %v2552_v63 = vld [vmem:[#allocation2 + $0xa0] sm:$0xff] }
 0x3d7   : > { %v2853_v0 = vadd.f32 %v2852_v58, %v2790_v56  ;;  %v2720_v1 = vadd.f32 %v2719_v59, %v4822_v33  ;;  %2673 = vst [vmem:[%s4308_s15 + $0x1a0] sm:$0xff] %v4958_v29  ;;  %v4966_v33 = vadd.f32 %v4674_v34, %v2542_v4  ;;  %v2618_v56 = vadd.f32 %v4674_v34, %v2550_v50 }
 0x3d8   : > { %v2802_v59 = vmul.f32 %v4910_v10, %v4910_v10 }
 0x3d9   : > { %v2854_v6 = vadd.f32 %v2853_v0, %v2791_v61  ;;  %v2721_v7 = vadd.f32 %v2720_v1, %v4830_v39  ;;  %2674 = vst [vmem:[%s4308_s15 + $0x1a8] sm:$0xff] %v4966_v33  ;;  %v4974_v39 = vadd.f32 %v4674_v34, %v2543_v9  ;;  %v2803_v1 = vmul.f32 %v4918_v12, %v4918_v12 }
 0x3da   : > { %2682 = vst [vmem:[%s4308_s15 + $0x1e8] sm:$0xff] %v2618_v56  ;;  %v2805_v9 = vmul.f32 %v4934_v18, %v4934_v18 }
 0x3db   : > { %v2855_v11 = vadd.f32 %v2854_v6, %v2792_v2  ;;  %v2722_v13 = vadd.f32 %v2721_v7, %v4838_v41  ;;  %2675 = vst [vmem:[%s4308_s15 + $0x1b0] sm:$0xff] %v4974_v39  ;;  %v4982_v41 = vadd.f32 %v4674_v34, %v2544_v15  ;;  %v2620_v2 = vadd.f32 %v4674_v34, %v2552_v63 }
 0x3dd   : > { %v2856_v16 = vadd.f32 %v2855_v11, %v2793_v8  ;;  %v2723_v19 = vadd.f32 %v2722_v13, %v4846_v46  ;;  %2676 = vst [vmem:[%s4308_s15 + $0x1b8] sm:$0xff] %v4982_v41  ;;  %v4990_v46 = vadd.f32 %v4674_v34, %v2545_v21  ;;  %v2806_v13 = vmul.f32 %v4942_v23, %v4942_v23 }
 0x3de   : > { %2684 = vst [vmem:[%s4308_s15 + $0x1f8] sm:$0xff] %v2620_v2 }
 0x3df   : > { %v2857_v22 = vadd.f32 %v2856_v16, %v2794_v14  ;;  %v2724_v25 = vadd.f32 %v2723_v19, %v4854_v48  ;;  %2677 = vst [vmem:[%s4308_s15 + $0x1c0] sm:$0xff] %v4990_v46  ;;  %v4998_v48 = vadd.f32 %v4674_v34, %v2546_v27 }
 0x3e1   : > { %v2858_v28 = vadd.f32 %v2857_v22, %v2795_v20  ;;  %v2725_v30 = vadd.f32 %v2724_v25, %v4862_v53  ;;  %2678 = vst [vmem:[%s4308_s15 + $0x1c8] sm:$0xff] %v4998_v48  ;;  %v5006_v53 = vadd.f32 %v4674_v34, %v2547_v32 }
 0x3e3   : > { %v2859_v35 = vadd.f32 %v2858_v28, %v2796_v26  ;;  %v2726_v36 = vadd.f32 %v2725_v30, %v4870_v55  ;;  %2679 = vst [vmem:[%s4308_s15 + $0x1d0] sm:$0xff] %v5006_v53  ;;  %v5014_v55 = vadd.f32 %v4674_v34, %v2548_v38 }
 0x3e5   : > { %v2860_v40 = vadd.f32 %v2859_v35, %v2797_v31  ;;  %v2727_v42 = vadd.f32 %v2726_v36, %v4878_v60  ;;  %2680 = vst [vmem:[%s4308_s15 + $0x1d8] sm:$0xff] %v5014_v55  ;;  %v2617_v60 = vadd.f32 %v4674_v34, %v2549_v44  ;;  %v2817_v44 = vmul.f32 %v2618_v56, %v2618_v56 }
 0x3e7   : > { %v2861_v45 = vadd.f32 %v2860_v40, %v2798_v37  ;;  %v2728_v47 = vadd.f32 %v2727_v42, %v4886_v62  ;;  %2681 = vst [vmem:[%s4308_s15 + $0x1e0] sm:$0xff] %v2617_v60  ;;  %v2551_v62 = vld [vmem:[#allocation2 + $0x58] sm:$0xff]  ;;  %v2816_v42 = vmul.f32 %v2617_v60, %v2617_v60 }
 0x3e8   : > { %v2619_v61 = vadd.f32 %v4674_v34, %v2551_v62 }
 0x3e9   : > { %v2862_v51 = vadd.f32 %v2861_v45, %v2799_v43  ;;  %v2729_v52 = vadd.f32 %v2728_v47, %v4894_v3 }
 0x3ea   : > { %2683 = vst [vmem:[%s4308_s15 + $0x1f0] sm:$0xff] %v2619_v61 }
 0x3eb   : > { %v2863_v57 = vadd.f32 %v2862_v51, %v2800_v49  ;;  %v2730_v58 = vadd.f32 %v2729_v52, %v4902_v5  ;;  %v2804_v5 = vmul.f32 %v4926_v17, %v4926_v17  ;;  %v2818_v49 = vmul.f32 %v2619_v61, %v2619_v61 }
 0x3ec   : > { %v2819_v51 = vmul.f32 %v2620_v2, %v2620_v2 }
 0x3ed   : > { %v2864_v0 = vadd.f32 %v2863_v57, %v2801_v54  ;;  %v2731_v3 = vadd.f32 %v2730_v58, %v4910_v10 }
 0x3ef   : > { %v2865_v4 = vadd.f32 %v2864_v0, %v2802_v59  ;;  %v2732_v6 = vadd.f32 %v2731_v3, %v4918_v12  ;;  %v2807_v12 = vmul.f32 %v4950_v24, %v4950_v24 }
 0x3f1   : > { %v2866_v7 = vadd.f32 %v2865_v4, %v2803_v1  ;;  %v2733_v8 = vadd.f32 %v2732_v6, %v4926_v17  ;;  %v2808_v17 = vmul.f32 %v4958_v29, %v4958_v29 }
 0x3f3   : > { %v2867_v10 = vadd.f32 %v2866_v7, %v2804_v5  ;;  %v2734_v11 = vadd.f32 %v2733_v8, %v4934_v18  ;;  %v2809_v18 = vmul.f32 %v4966_v33, %v4966_v33 }
 0x3f5   : > { %v2868_v34 = vadd.f32 %v2867_v10, %v2805_v9  ;;  %v2735_v14 = vadd.f32 %v2734_v11, %v4942_v23  ;;  %v2810_v23 = vmul.f32 %v4974_v39, %v4974_v39 }
 0x3f7   : > { %v2869_v15 = vadd.f32 %v2868_v34, %v2806_v13  ;;  %v2736_v16 = vadd.f32 %v2735_v14, %v4950_v24  ;;  %v2811_v24 = vmul.f32 %v4982_v41, %v4982_v41 }
 0x3f9   : > { %v2870_v19 = vadd.f32 %v2869_v15, %v2807_v12  ;;  %v2737_v20 = vadd.f32 %v2736_v16, %v4958_v29  ;;  %v2812_v29 = vmul.f32 %v4990_v46, %v4990_v46 }
 0x3fb   : > { %v2871_v21 = vadd.f32 %v2870_v19, %v2808_v17  ;;  %v2738_v22 = vadd.f32 %v2737_v20, %v4966_v33  ;;  %v2813_v33 = vmul.f32 %v4998_v48, %v4998_v48 }
 0x3fd   : > { %v2872_v25 = vadd.f32 %v2871_v21, %v2809_v18  ;;  %v2739_v26 = vadd.f32 %v2738_v22, %v4974_v39  ;;  %v2814_v39 = vmul.f32 %v5006_v53, %v5006_v53 }
 0x3ff   : > { %v2873_v27 = vadd.f32 %v2872_v25, %v2810_v23  ;;  %v2740_v28 = vadd.f32 %v2739_v26, %v4982_v41  ;;  %v2815_v41 = vmul.f32 %v5014_v55, %v5014_v55 }
 0x401   : > { %v2874_v30 = vadd.f32 %v2873_v27, %v2811_v24  ;;  %v2741_v31 = vadd.f32 %v2740_v28, %v4990_v46 }
 0x403   : > { %v2875_v32 = vadd.f32 %v2874_v30, %v2812_v29  ;;  %v2742_v35 = vadd.f32 %v2741_v31, %v4998_v48 }
 0x405   : > { %v2876_v36 = vadd.f32 %v2875_v32, %v2813_v33  ;;  %v2743_v37 = vadd.f32 %v2742_v35, %v5006_v53 }
 0x407   : > { %v2877_v38 = vadd.f32 %v2876_v36, %v2814_v39  ;;  %v2744_v40 = vadd.f32 %v2743_v37, %v5014_v55 }
 0x409   : > { %v2878_v46 = vadd.f32 %v2877_v38, %v2815_v41  ;;  %v2745_v43 = vadd.f32 %v2744_v40, %v2617_v60 }
 0x40b   : > { %v2879_v45 = vadd.f32 %v2878_v46, %v2816_v42  ;;  %v2746_v47 = vadd.f32 %v2745_v43, %v2618_v56 }
 0x40d   : > { %v2880_v48 = vadd.f32 %v2879_v45, %v2817_v44  ;;  %v2747_v50 = vadd.f32 %v2746_v47, %v2619_v61 }
 0x40f   : > { %v2748_v52 = vadd.f32 %v2747_v50, %v2620_v2  ;;  %v2881_v53 = vadd.f32 %v2880_v48, %v2818_v49 }
 0x411   : > { %v2749_v54 = vrot.slane %v2748_v52, 4  ;;  %v2882_v62 = vadd.f32 %v2881_v53, %v2819_v51 }
 0x413   : > { %v2750_v57 = vadd.f32 %v2749_v54, %v2748_v52  ;;  %v2883_v58 = vrot.slane %v2882_v62, 4 }
 0x415   : > { %v2751_v59 = vrot.slane %v2750_v57, 2  ;;  %v2884_v55 = vadd.f32 %v2883_v58, %v2882_v62 }
 0x417   : > { %v2752_v63 = vadd.f32 %v2751_v59, %v2750_v57  ;;  %v2885_v0 = vrot.slane %v2884_v55, 2 }
 0x419   : > { %v2753_v60 = vrot.slane %v2752_v63, 1  ;;  %v2886_v3 = vadd.f32 %v2885_v0, %v2884_v55 }
 0x41b   : > { %v2754_v1 = vadd.f32 %v2753_v60, %v2752_v63  ;;  %v2887_v56 = vrot.slane %v2886_v3, 1 }
 0x41d   : > { %2755 = vst [vmem:[%s4313_s11] sm:$0x1] %v2754_v1  ;;  %v2888_v4 = vadd.f32 %v2887_v56, %v2886_v3 }
 0x41f   : > { %2889 = vst [vmem:[%s4313_s11 + $0x1] sm:$0x1] %v2888_v4 }
 0x420 PF: > { %s15_s21 = sadd.s32 1, %s3944_s21   ;;  %s5103_s15 = smov %s3924_s16 }
 0x421   : > { %p12_p1 = scmp.ge.s32.totalorder %s15_s21, 6   ;;  %s5104_s16 = smov %s4024_s28 }
 0x422   : > { %s5105_s17 = smov %s3936_s19  ;;  %s5106_s18 = smov %s3940_s20 }
 0x423   : > { %s5107_s19 = smov %s5110_s22  ;;  %s5108_s20 = smov %s5114_s23 }
 0x424   :  { %14 = sbr.rel (!%p12_p1) target bundleno = 4 (0x4), region = 113 }

// kernel: up_forward.8
= control target key start
LH: loop header
LB: loop body
LE: loop exit
PB: predicated region body
PF: predicated region fallthrough
CT: control target
= control target key end

     0   :  { %s3639_s15 = smov 0   ;;  %s3641_s16 = smov 0   ;;  %s4218_s0 = inlined_call_operand.vmem [shape: bf16[1024,512], index: 0, kind: input, shape index: {}]   ;;  %s4219_s1 = inlined_call_operand.vmem [shape: bf16[512,128], index: 1, kind: input, shape index: {}]   ;;  %s4220_s2 = inlined_call_operand.vmem [shape: f32[1,128], index: 2, kind: input, shape index: {}]   ;;  %s4221_s3 = inlined_call_operand.vmem [shape: f32[1024,128], index: 3, kind: output, shape index: {0}]   ;;  %s4222_s4 = inlined_call_operand.vmem [shape: f32[16,128], index: 4, kind: output, shape index: {1}]  }
   0x1   :  { %s3643_s17 = smov 0  }
   0x2 LB: > { %s27_s18 = sadd.s32 1, %s3607_s16  ;;  %p2751_p0 = scmp.ge.s32.totalorder %s3611_s17, 1  ;;  %s3611_s17 = sphi %s3643_s17, %s15_s17   ;;  %s3607_s16 = sphi %s3641_s16, %s4224_s16   ;;  %s3603_s15 = sphi %s3639_s15, %s4223_s15  }
   0x3   : > { %p29_p1 = scmp.ge.s32.totalorder %s27_s18, 2  ;;  %p197_p2 = scmp.lt.s32.totalorder %s3611_s17, 3 }
   0x5   : > { %s4226_s18 = smov (%p29_p1, %s27_s18), 0  ;;  %p198_p3 = pnand %p2751_p0, %p197_p2 }
   0x6   : > { %s2752_s21 = sshll.u32 (!%p198_p3), %s3603_s15, 6  ;;  %p261_p5 = scmp.lt.s32.totalorder (!%p198_p3), %s3603_s15, 1 }
   0x7   : > { %201 = sbr.rel (%p198_p3) target bundleno = 705 (0x2c1), region = 32  ;;  %p239_p4 = scmp.lt.s32.totalorder (!%p198_p3), %s2752_s21, 127 }
   0xc   : > { %v3536_v0 = vld [vmem:[%s4219_s1 + $0x38] sm:$0xff]  ;;  %v3535_v4 = vld [vmem:[%s4219_s1 + $0x30] sm:$0xff]  ;;  %v3534_v8 = vld [vmem:[%s4219_s1 + $0x28] sm:$0xff]  ;;  %s4228_s21 = smov (!%p239_p4, %s2752_s21), 127  ;;  %s4230_s15 = smov (!%p261_p5, %s3603_s15), 1 }
   0xd   : > { %v3544_v1 = vld [vmem:[%s4219_s1 + $0x78] sm:$0xff]  ;;  %1421 = vmatpush.bf16.msra.mxu0 %v3536_v0  ;;  %v3543_v5 = vld [vmem:[%s4219_s1 + $0x70] sm:$0xff]  ;;  %v3542_v9 = vld [vmem:[%s4219_s1 + $0x68] sm:$0xff]  ;;  %s3400_s25 = sshll.u32 %s4228_s21, 4  ;;  %s2756_s24 = sshll.u32 %s4228_s21, 3 }
   0xe   : > { %v3552_v2 = vld [vmem:[%s4219_s1 + $0xb8] sm:$0xff]  ;;  %1590 = vmatpush.bf16.msra.mxu1 %v3544_v1  ;;  %v3551_v6 = vld [vmem:[%s4219_s1 + $0xb0] sm:$0xff]  ;;  %v3550_v10 = vld [vmem:[%s4219_s1 + $0xa8] sm:$0xff]  ;;  %s3744_s6 = scalar_lea.vmem %s4218_s0, %s3400_s25  ;;  %s3845_s29 = scalar_lea.vmem %s4221_s3, %s2756_s24 }
   0xf   : > { %v3560_v3 = vld [vmem:[%s4219_s1 + $0xf8] sm:$0xff]  ;;  %1759 = vmatpush.bf16.msra.mxu2 %v3552_v2  ;;  %v3559_v7 = vld [vmem:[%s4219_s1 + $0xf0] sm:$0xff]  ;;  %v3558_v11 = vld [vmem:[%s4219_s1 + $0xe8] sm:$0xff]  ;;  %s2757_s7 = sshll.u32 %s4230_s15, 3 }
  0x10   : > { %1928 = vmatpush.bf16.msra.mxu3 %v3560_v3  ;;  %v3533_v12 = vld [vmem:[%s4219_s1 + $0x20] sm:$0xff]  ;;  %v3532_v16 = vld [vmem:[%s4219_s1 + $0x18] sm:$0xff]  ;;  %v3531_v20 = vld [vmem:[%s4219_s1 + $0x10] sm:$0xff]  ;;  %s4181_s10 = scalar_lea.vmem %s4222_s4, %s2757_s7 }
  0x11   : > { %1422 = vmatpush.bf16.msra.mxu0 %v3535_v4  ;;  %v3541_v13 = vld [vmem:[%s4219_s1 + $0x60] sm:$0xff]  ;;  %v3540_v17 = vld [vmem:[%s4219_s1 + $0x58] sm:$0xff]  ;;  %v3539_v21 = vld [vmem:[%s4219_s1 + $0x50] sm:$0xff] }
  0x12   : > { %1591 = vmatpush.bf16.msra.mxu1 %v3543_v5  ;;  %v3549_v14 = vld [vmem:[%s4219_s1 + $0xa0] sm:$0xff]  ;;  %v3548_v18 = vld [vmem:[%s4219_s1 + $0x98] sm:$0xff]  ;;  %v3547_v22 = vld [vmem:[%s4219_s1 + $0x90] sm:$0xff] }
  0x13   : > { %1760 = vmatpush.bf16.msra.mxu2 %v3551_v6  ;;  %v3557_v15 = vld [vmem:[%s4219_s1 + $0xe0] sm:$0xff]  ;;  %v3556_v19 = vld [vmem:[%s4219_s1 + $0xd8] sm:$0xff]  ;;  %v3555_v23 = vld [vmem:[%s4219_s1 + $0xd0] sm:$0xff] }
  0x14   : > { %1929 = vmatpush.bf16.msra.mxu3 %v3559_v7  ;;  %v3530_v24 = vld [vmem:[%s4219_s1 + $0x8] sm:$0xff]  ;;  %v3529_v28 = vld [vmem:[%s4219_s1] sm:$0xff]  ;;  %v3403_v33 = vld [vmem:[%s3744_s6 + $0xc] sm:$0xf0] }
  0x15   : > { %1423 = vmatpush.bf16.msra.mxu0 %v3534_v8  ;;  %v3538_v25 = vld [vmem:[%s4219_s1 + $0x48] sm:$0xff]  ;;  %v3537_v29 = vld [vmem:[%s4219_s1 + $0x40] sm:$0xff]  ;;  %v2762_v35 = vld [vmem:[%s3744_s6 + $0x10] sm:$0xf0] }
  0x16   : > { %1592 = vmatpush.bf16.msra.mxu1 %v3542_v9  ;;  %v3546_v26 = vld [vmem:[%s4219_s1 + $0x88] sm:$0xff]  ;;  %v3545_v30 = vld [vmem:[%s4219_s1 + $0x80] sm:$0xff]  ;;  %v3404_v37 = vld [vmem:[%s3744_s6 + $0x14] sm:$0xf0] }
  0x17   : > { %1761 = vmatpush.bf16.msra.mxu2 %v3550_v10  ;;  %v3554_v27 = vld [vmem:[%s4219_s1 + $0xc8] sm:$0xff]  ;;  %v3553_v31 = vld [vmem:[%s4219_s1 + $0xc0] sm:$0xff]  ;;  %v2770_v39 = vld [vmem:[%s3744_s6 + $0x18] sm:$0xf0] }
  0x18   : > { %1930 = vmatpush.bf16.msra.mxu3 %v3558_v11  ;;  %v2760_v32 = vld [vmem:[%s3744_s6] sm:$0xf]  ;;  %v3401_v34 = vld [vmem:[%s3744_s6 + $0x4] sm:$0xf]  ;;  %v2768_v36 = vld [vmem:[%s3744_s6 + $0x8] sm:$0xf] }
  0x19   : > { %1424 = vmatpush.bf16.msra.mxu0 %v3533_v12  ;;  %v3402_v38 = vld [vmem:[%s3744_s6 + $0xc] sm:$0xf]  ;;  %v2761_v40 = vor.u32 %v3403_v33, %v2760_v32  ;;  %v2765_v41 = vor.u32 %v3401_v34, %v2762_v35  ;;  %v2769_v42 = vor.u32 %v3404_v37, %v2768_v36  ;;  %v2776_v44 = vld [vmem:[%s3744_s6 + $0x20] sm:$0xf]  ;;  %v3407_v45 = vld [vmem:[%s3744_s6 + $0x2c] sm:$0xf0] }
  0x1a   : > { %1593 = vmatpush.bf16.msra.mxu1 %v3541_v13  ;;  %v2773_v43 = vor.u32 %v3402_v38, %v2770_v39  ;;  %v3405_v46 = vld [vmem:[%s3744_s6 + $0x24] sm:$0xf]  ;;  %v2778_v47 = vld [vmem:[%s3744_s6 + $0x30] sm:$0xf0]  ;;  %v2784_v48 = vld [vmem:[%s3744_s6 + $0x28] sm:$0xf]  ;;  %v2777_v52 = vor.u32 %v3407_v45, %v2776_v44 }
  0x1b   : > { %1762 = vmatpush.bf16.msra.mxu2 %v3549_v14  ;;  %v3408_v49 = vld [vmem:[%s3744_s6 + $0x34] sm:$0xf0]  ;;  %v3406_v50 = vld [vmem:[%s3744_s6 + $0x2c] sm:$0xf]  ;;  %v2786_v51 = vld [vmem:[%s3744_s6 + $0x38] sm:$0xf0]  ;;  %v2781_v53 = vor.u32 %v3405_v46, %v2778_v47 }
  0x1c   : > { %1931 = vmatpush.bf16.msra.mxu3 %v3557_v15  ;;  %v2785_v54 = vor.u32 %v3408_v49, %v2784_v48  ;;  %v2789_v55 = vor.u32 %v3406_v50, %v2786_v51  ;;  %v2792_v56 = vld [vmem:[%s3744_s6 + $0x40] sm:$0xf]  ;;  %v3411_v57 = vld [vmem:[%s3744_s6 + $0x4c] sm:$0xf0]  ;;  %v3409_v58 = vld [vmem:[%s3744_s6 + $0x44] sm:$0xf] }
  0x1d   : > { %1425 = vmatpush.bf16.msra.mxu0 %v3532_v16  ;;  %v2794_v59 = vld [vmem:[%s3744_s6 + $0x50] sm:$0xf0]  ;;  %v2800_v60 = vld [vmem:[%s3744_s6 + $0x48] sm:$0xf]  ;;  %v3412_v61 = vld [vmem:[%s3744_s6 + $0x54] sm:$0xf0]  ;;  %v2793_v0 = vor.u32 %v3411_v57, %v2792_v56 }
  0x1e   : > { %1594 = vmatpush.bf16.msra.mxu1 %v3540_v17  ;;  %v3410_v62 = vld [vmem:[%s3744_s6 + $0x4c] sm:$0xf]  ;;  %v2802_v63 = vld [vmem:[%s3744_s6 + $0x58] sm:$0xf0]  ;;  %v2797_v1 = vor.u32 %v3409_v58, %v2794_v59  ;;  %v2801_v2 = vor.u32 %v3412_v61, %v2800_v60  ;;  %v2808_v4 = vld [vmem:[%s3744_s6 + $0x60] sm:$0xf] }
  0x1f   : > { %1763 = vmatpush.bf16.msra.mxu2 %v3548_v18  ;;  %v2805_v3 = vor.u32 %v3410_v62, %v2802_v63  ;;  %v3415_v5 = vld [vmem:[%s3744_s6 + $0x6c] sm:$0xf0]  ;;  %v3413_v6 = vld [vmem:[%s3744_s6 + $0x64] sm:$0xf]  ;;  %v2810_v7 = vld [vmem:[%s3744_s6 + $0x70] sm:$0xf0] }
  0x20   : > { %1932 = vmatpush.bf16.msra.mxu3 %v3556_v19  ;;  %v2816_v8 = vld [vmem:[%s3744_s6 + $0x68] sm:$0xf]  ;;  %v3416_v9 = vld [vmem:[%s3744_s6 + $0x74] sm:$0xf0]  ;;  %v3414_v10 = vld [vmem:[%s3744_s6 + $0x6c] sm:$0xf]  ;;  %v2809_v12 = vor.u32 %v3415_v5, %v2808_v4  ;;  %v2813_v13 = vor.u32 %v3413_v6, %v2810_v7 }
  0x21   : > { %1426 = vmatpush.bf16.msra.mxu0 %v3531_v20  ;;  %v2818_v11 = vld [vmem:[%s3744_s6 + $0x78] sm:$0xf0]  ;;  %v2817_v14 = vor.u32 %v3416_v9, %v2816_v8  ;;  %v2824_v16 = vld [vmem:[%s3744_s6 + $0x80] sm:$0xf]  ;;  %v3419_v17 = vld [vmem:[%s3744_s6 + $0x8c] sm:$0xf0] }
  0x22   : > { %1595 = vmatpush.bf16.msra.mxu1 %v3539_v21  ;;  %v2821_v15 = vor.u32 %v3414_v10, %v2818_v11  ;;  %v3417_v18 = vld [vmem:[%s3744_s6 + $0x84] sm:$0xf]  ;;  %v2826_v19 = vld [vmem:[%s3744_s6 + $0x90] sm:$0xf0]  ;;  %v2832_v20 = vld [vmem:[%s3744_s6 + $0x88] sm:$0xf] }
  0x23   : > { %1764 = vmatpush.bf16.msra.mxu2 %v3547_v22  ;;  %v3420_v21 = vld [vmem:[%s3744_s6 + $0x94] sm:$0xf0]  ;;  %v3418_v22 = vld [vmem:[%s3744_s6 + $0x8c] sm:$0xf]  ;;  %v2848_v32 = vld [vmem:[%s3744_s6 + $0xa8] sm:$0xf] }
  0x24   : > { %1933 = vmatpush.bf16.msra.mxu3 %v3555_v23  ;;  %v2834_v23 = vld [vmem:[%s3744_s6 + $0x98] sm:$0xf0]  ;;  %v3424_v33 = vld [vmem:[%s3744_s6 + $0xb4] sm:$0xf0]  ;;  %v3422_v34 = vld [vmem:[%s3744_s6 + $0xac] sm:$0xf] }
  0x25   : > { %1427 = vmatpush.bf16.msra.mxu0 %v3530_v24  ;;  %v2825_v24 = vor.u32 %v3419_v17, %v2824_v16  ;;  %v2850_v35 = vld [vmem:[%s3744_s6 + $0xb8] sm:$0xf0]  ;;  %v2849_v38 = vor.u32 %v3424_v33, %v2848_v32  ;;  %v2864_v44 = vld [vmem:[%s3744_s6 + $0xc8] sm:$0xf]  ;;  %v3428_v45 = vld [vmem:[%s3744_s6 + $0xd4] sm:$0xf0] }
  0x26   : > { %1596 = vmatpush.bf16.msra.mxu1 %v3538_v25  ;;  %v2829_v25 = vor.u32 %v3417_v18, %v2826_v19  ;;  %v2853_v39 = vor.u32 %v3422_v34, %v2850_v35  ;;  %v3426_v46 = vld [vmem:[%s3744_s6 + $0xcc] sm:$0xf]  ;;  %v2866_v47 = vld [vmem:[%s3744_s6 + $0xd8] sm:$0xf0]  ;;  %v2865_v50 = vor.u32 %v3428_v45, %v2864_v44  ;;  %v2880_v56 = vld [vmem:[%s3744_s6 + $0xe8] sm:$0xf] }
  0x27   : > { %1765 = vmatpush.bf16.msra.mxu2 %v3546_v26  ;;  %v2833_v26 = vor.u32 %v3420_v21, %v2832_v20  ;;  %v2869_v51 = vor.u32 %v3426_v46, %v2866_v47  ;;  %v3432_v57 = vld [vmem:[%s3744_s6 + $0xf4] sm:$0xf0]  ;;  %v3430_v58 = vld [vmem:[%s3744_s6 + $0xec] sm:$0xf]  ;;  %v2882_v59 = vld [vmem:[%s3744_s6 + $0xf8] sm:$0xf0] }
  0x28   : > { %1934 = vmatpush.bf16.msra.mxu3 %v3554_v27  ;;  %v2837_v27 = vor.u32 %v3418_v22, %v2834_v23  ;;  %v2881_v62 = vor.u32 %v3432_v57, %v2880_v56  ;;  %v2885_v63 = vor.u32 %v3430_v58, %v2882_v59  ;;  %v2896_v4 = vld [vmem:[%s3744_s6 + $0x108] sm:$0xf]  ;;  %v3436_v5 = vld [vmem:[%s3744_s6 + $0x114] sm:$0xf0]  ;;  %v3434_v6 = vld [vmem:[%s3744_s6 + $0x10c] sm:$0xf] }
  0x29   : > { %1428 = vmatpush.bf16.msra.mxu0 %v3529_v28  ;;  %v2840_v28 = vld [vmem:[%s3744_s6 + $0xa0] sm:$0xf]  ;;  %v2898_v7 = vld [vmem:[%s3744_s6 + $0x118] sm:$0xf0]  ;;  %v3439_v23 = vld [vmem:[%s3744_s6 + $0x12c] sm:$0xf0] }
  0x2a   : > { %1597 = vmatpush.bf16.msra.mxu1 %v3537_v29  ;;  %v3423_v29 = vld [vmem:[%s3744_s6 + $0xac] sm:$0xf0]  ;;  %v3840_v18 = vld [vmem:[%s4220_s2] ss:$0 sm:$0xff]  ;;  %v3441_v57 = vld [vmem:[%s3744_s6 + $0x144] sm:$0xf] }
  0x2b   : > { %1766 = vmatpush.bf16.msra.mxu2 %v3545_v30  ;;  %v3421_v30 = vld [vmem:[%s3744_s6 + $0xa4] sm:$0xf]  ;;  %v2841_v36 = vor.u32 %v3423_v29, %v2840_v28  ;;  %v2904_v22 = vld [vmem:[%s3744_s6 + $0x120] sm:$0xf]  ;;  %v3440_v28 = vld [vmem:[%s3744_s6 + $0x134] sm:$0xf0] }
  0x2c   : > { %1935 = vmatpush.bf16.msra.mxu3 %v3553_v31  ;;  %1429 = vmatmul.bf16.vlgmr.msra.gmra.mxu0 %v2761_v40  ;;  %v2842_v31 = vld [vmem:[%s3744_s6 + $0xb0] sm:$0xf0]  ;;  %v2856_v40 = vld [vmem:[%s3744_s6 + $0xc0] sm:$0xf]  ;;  %v3438_v29 = vld [vmem:[%s3744_s6 + $0x12c] sm:$0xf]  ;;  %v2905_v34 = vor.u32 %v3439_v23, %v2904_v22 }
  0x2d   : > { %1598 = vmatmul.bf16.vlgmr.msra.gmra.mxu1 %v2765_v41  ;;  %v2845_v37 = vor.u32 %v3421_v30, %v2842_v31  ;;  %v3427_v41 = vld [vmem:[%s3744_s6 + $0xcc] sm:$0xf0]  ;;  %v2914_v30 = vld [vmem:[%s3744_s6 + $0x138] sm:$0xf0]  ;;  %v2922_v58 = vld [vmem:[%s3744_s6 + $0x150] sm:$0xf0] }
  0x2e   : > { %1767 = vmatmul.bf16.vlgmr.msra.gmra.mxu2 %v2769_v42  ;;  %v3425_v42 = vld [vmem:[%s3744_s6 + $0xc4] sm:$0xf]  ;;  %v2857_v48 = vor.u32 %v3427_v41, %v2856_v40  ;;  %v2917_v40 = vor.u32 %v3438_v29, %v2914_v30  ;;  %v2928_v59 = vld [vmem:[%s3744_s6 + $0x148] sm:$0xf]  ;;  %v2938_v29 = vld [vmem:[%s3744_s6 + $0x170] sm:$0xf0] }
  0x2f   : > { %1936 = vmatmul.bf16.vlgmr.msra.gmra.mxu3 %v2773_v43  ;;  %v2858_v43 = vld [vmem:[%s3744_s6 + $0xd0] sm:$0xf0]  ;;  %v2944_v30 = vld [vmem:[%s3744_s6 + $0x168] sm:$0xf] }
  0x30   : > { %v2861_v49 = vor.u32 %v3425_v42, %v2858_v43 }
  0x3c   : > { %1434 = vmatmul.bf16.gmra.mxu0 %v2777_v52  ;;  %v2872_v52 = vld [vmem:[%s3744_s6 + $0xe0] sm:$0xf] }
  0x3d   : > { %1603 = vmatmul.bf16.gmra.mxu1 %v2781_v53  ;;  %v3431_v53 = vld [vmem:[%s3744_s6 + $0xec] sm:$0xf0] }
  0x3e   : > { %1772 = vmatmul.bf16.gmra.mxu2 %v2785_v54  ;;  %v3429_v54 = vld [vmem:[%s3744_s6 + $0xe4] sm:$0xf]  ;;  %v2873_v60 = vor.u32 %v3431_v53, %v2872_v52 }
  0x3f   : > { %1941 = vmatmul.bf16.gmra.mxu3 %v2789_v55  ;;  %v2874_v55 = vld [vmem:[%s3744_s6 + $0xf0] sm:$0xf0] }
  0x40   : > { %v2877_v61 = vor.u32 %v3429_v54, %v2874_v55  ;;  %v2920_v54 = vld [vmem:[%s3744_s6 + $0x140] sm:$0xf]  ;;  %v3443_v55 = vld [vmem:[%s3744_s6 + $0x14c] sm:$0xf0] }
  0x4c   : > { %1439 = vmatmul.bf16.gmra.mxu0 %v2793_v0  ;;  %v2888_v0 = vld [vmem:[%s3744_s6 + $0x100] sm:$0xf] }
  0x4d   : > { %1608 = vmatmul.bf16.gmra.mxu1 %v2797_v1  ;;  %v3435_v1 = vld [vmem:[%s3744_s6 + $0x10c] sm:$0xf0] }
  0x4e   : > { %1777 = vmatmul.bf16.gmra.mxu2 %v2801_v2  ;;  %v3433_v2 = vld [vmem:[%s3744_s6 + $0x104] sm:$0xf]  ;;  %v2889_v8 = vor.u32 %v3435_v1, %v2888_v0 }
  0x4f   : > { %1946 = vmatmul.bf16.gmra.mxu3 %v2805_v3  ;;  %v2890_v3 = vld [vmem:[%s3744_s6 + $0x110] sm:$0xf0] }
  0x50   : > { %v2893_v9 = vor.u32 %v3433_v2, %v2890_v3 }
  0x5c   : > { %1444 = vmatmul.bf16.gmra.mxu0 %v2809_v12  ;;  %v2897_v12 = vor.u32 %v3436_v5, %v2896_v4  ;;  %v2921_v4 = vor.u32 %v3443_v55, %v2920_v54  ;;  %v2925_v5 = vor.u32 %v3441_v57, %v2922_v58 }
  0x5d   : > { %1613 = vmatmul.bf16.gmra.mxu1 %v2813_v13  ;;  %v2901_v13 = vor.u32 %v3434_v6, %v2898_v7 }
  0x5e   : > { %1782 = vmatmul.bf16.gmra.mxu2 %v2817_v14 }
  0x5f   : > { %1951 = vmatmul.bf16.gmra.mxu3 %v2821_v15 }
  0x6c   : > { %1449 = vmatmul.bf16.gmra.mxu0 %v2825_v24 }
  0x6d   : > { %1618 = vmatmul.bf16.gmra.mxu1 %v2829_v25  ;;  %v3437_v25 = vld [vmem:[%s3744_s6 + $0x124] sm:$0xf] }
  0x6e   : > { %1787 = vmatmul.bf16.gmra.mxu2 %v2833_v26  ;;  %v2906_v26 = vld [vmem:[%s3744_s6 + $0x130] sm:$0xf0] }
  0x6f   : > { %1956 = vmatmul.bf16.gmra.mxu3 %v2837_v27  ;;  %v2912_v27 = vld [vmem:[%s3744_s6 + $0x128] sm:$0xf]  ;;  %v2909_v35 = vor.u32 %v3437_v25, %v2906_v26  ;;  %v2936_v25 = vld [vmem:[%s3744_s6 + $0x160] sm:$0xf]  ;;  %v3447_v26 = vld [vmem:[%s3744_s6 + $0x16c] sm:$0xf0] }
  0x7c   : > { %1454 = vmatmul.bf16.gmra.mxu0 %v2841_v36 }
  0x7d   : > { %1623 = vmatmul.bf16.gmra.mxu1 %v2845_v37 }
  0x7e   : > { %1792 = vmatmul.bf16.gmra.mxu2 %v2849_v38 }
  0x7f   : > { %1961 = vmatmul.bf16.gmra.mxu3 %v2853_v39  ;;  %v2913_v39 = vor.u32 %v3440_v28, %v2912_v27  ;;  %v3445_v28 = vld [vmem:[%s3744_s6 + $0x164] sm:$0xf] }
  0x8c   : > { %1459 = vmatmul.bf16.gmra.mxu0 %v2857_v48 }
  0x8d   : > { %1628 = vmatmul.bf16.gmra.mxu1 %v2861_v49 }
  0x8e   : > { %1797 = vmatmul.bf16.gmra.mxu2 %v2865_v50 }
  0x8f   : > { %1966 = vmatmul.bf16.gmra.mxu3 %v2869_v51 }
  0x9c   : > { %1464 = vmatmul.bf16.gmra.mxu0 %v2873_v60  ;;  %v3444_v60 = vld [vmem:[%s3744_s6 + $0x154] sm:$0xf0] }
  0x9d   : > { %1633 = vmatmul.bf16.gmra.mxu1 %v2877_v61  ;;  %v3442_v61 = vld [vmem:[%s3744_s6 + $0x14c] sm:$0xf] }
  0x9e   : > { %1802 = vmatmul.bf16.gmra.mxu2 %v2881_v62  ;;  %v2930_v62 = vld [vmem:[%s3744_s6 + $0x158] sm:$0xf0] }
  0x9f   : > { %1971 = vmatmul.bf16.gmra.mxu3 %v2885_v63 }
  0xa9   : > { %v1430_v10 = vpop.f32.mrf.mxu0 }
  0xaa   : > { %v1599_v11 = vpop.f32.mrf.mxu1 }
  0xab   : > { %v1600_v14 = vadd.f32 %v1599_v11, %v1430_v10  ;;  %v2929_v10 = vor.u32 %v3444_v60, %v2928_v59  ;;  %v2933_v11 = vor.u32 %v3442_v61, %v2930_v62  ;;  %v2952_v59 = vld [vmem:[%s3744_s6 + $0x180] sm:$0xf]  ;;  %v3451_v60 = vld [vmem:[%s3744_s6 + $0x18c] sm:$0xf0]  ;;  %v3449_v62 = vld [vmem:[%s3744_s6 + $0x184] sm:$0xf] }
  0xac   : > { %1469 = vmatmul.bf16.gmra.mxu0 %v2889_v8 }
  0xad   : > { %1638 = vmatmul.bf16.gmra.mxu1 %v2893_v9 }
  0xae   : > { %1807 = vmatmul.bf16.gmra.mxu2 %v2897_v12 }
  0xaf   : > { %1976 = vmatmul.bf16.gmra.mxu3 %v2901_v13 }
  0xb1   : > { %v1768_v15 = vpop.f32.mrf.mxu2  ;;  %v1432_v19 = vpop.f32.mrf.mxu0 }
  0xb2   : > { %v1937_v16 = vpop.f32.mrf.mxu3  ;;  %v1769_v17 = vadd.f32 %v1768_v15, %v1600_v14  ;;  %v1601_v20 = vpop.f32.mrf.mxu1 }
  0xb3   : > { %v1602_v31 = vadd.f32 %v1601_v20, %v1432_v19 }
  0xb4   : > { %v1938_v21 = vadd.f32 %v1937_v16, %v1769_v17 }
  0xb6   : > { %v2296_v24 = vadd.f32 %v3840_v18, %v1938_v21 }
  0xb8   : > { %2360 = vst [vmem:[%s3845_s29] sm:$0xff] %v2296_v24  ;;  %v2495_v44 = vmul.f32 %v2296_v24, %v2296_v24 }
  0xb9   : > { %v1770_v32 = vpop.f32.mrf.mxu2  ;;  %v1435_v37 = vpop.f32.mrf.mxu0 }
  0xba   : > { %v1939_v33 = vpop.f32.mrf.mxu3  ;;  %v1771_v36 = vadd.f32 %v1770_v32, %v1602_v31  ;;  %v1604_v38 = vpop.f32.mrf.mxu1  ;;  %v3448_v31 = vld [vmem:[%s3744_s6 + $0x174] sm:$0xf0]  ;;  %v3446_v32 = vld [vmem:[%s3744_s6 + $0x16c] sm:$0xf] }
  0xbb   : > { %v1605_v43 = vadd.f32 %v1604_v38, %v1435_v37 }
  0xbc   : > { %v1940_v41 = vadd.f32 %v1939_v33, %v1771_v36  ;;  %1474 = vmatmul.bf16.gmra.mxu0 %v2905_v34  ;;  %v2946_v33 = vld [vmem:[%s3744_s6 + $0x178] sm:$0xf0] }
  0xbd   : > { %1643 = vmatmul.bf16.gmra.mxu1 %v2909_v35 }
  0xbe   : > { %v2297_v42 = vadd.f32 %v3840_v18, %v1940_v41  ;;  %1812 = vmatmul.bf16.gmra.mxu2 %v2913_v39  ;;  %v2937_v39 = vor.u32 %v3447_v26, %v2936_v25 }
  0xbf   : > { %1981 = vmatmul.bf16.gmra.mxu3 %v2917_v40  ;;  %v2941_v40 = vor.u32 %v3445_v28, %v2938_v29 }
  0xc0   : > { %2361 = vst [vmem:[%s3845_s29 + $0x8] sm:$0xff] %v2297_v42  ;;  %v2425_v45 = vadd.f32 %v2297_v42, %v2296_v24  ;;  %v2496_v46 = vmul.f32 %v2297_v42, %v2297_v42 }
  0xc1   : > { %v1773_v47 = vpop.f32.mrf.mxu2  ;;  %v1437_v51 = vpop.f32.mrf.mxu0 }
  0xc2   : > { %v1942_v48 = vpop.f32.mrf.mxu3  ;;  %v2559_v49 = vadd.f32 %v2496_v46, %v2495_v44  ;;  %v1774_v50 = vadd.f32 %v1773_v47, %v1605_v43  ;;  %v1606_v52 = vpop.f32.mrf.mxu1  ;;  %v2949_v46 = vor.u32 %v3446_v32, %v2946_v33  ;;  %v3453_v33 = vld [vmem:[%s3744_s6 + $0x1a4] sm:$0xf] }
  0xc3   : > { %v1607_v1 = vadd.f32 %v1606_v52, %v1437_v51 }
  0xc4   : > { %v1943_v53 = vadd.f32 %v1942_v48, %v1774_v50 }
  0xc6   : > { %v2298_v56 = vadd.f32 %v3840_v18, %v1943_v53 }
  0xc8   : > { %2362 = vst [vmem:[%s3845_s29 + $0x10] sm:$0xff] %v2298_v56  ;;  %v2426_v63 = vadd.f32 %v2425_v45, %v2298_v56  ;;  %v2497_v0 = vmul.f32 %v2298_v56, %v2298_v56  ;;  %v2945_v45 = vor.u32 %v3448_v31, %v2944_v30  ;;  %v2968_v30 = vld [vmem:[%s3744_s6 + $0x1a0] sm:$0xf]  ;;  %v3455_v31 = vld [vmem:[%s3744_s6 + $0x1ac] sm:$0xf0] }
  0xc9   : > { %v1775_v2 = vpop.f32.mrf.mxu2  ;;  %v1440_v8 = vpop.f32.mrf.mxu0 }
  0xca   : > { %v1944_v3 = vpop.f32.mrf.mxu3  ;;  %v2560_v6 = vadd.f32 %v2559_v49, %v2497_v0  ;;  %v1776_v7 = vadd.f32 %v1775_v2, %v1607_v1  ;;  %v1609_v9 = vpop.f32.mrf.mxu1  ;;  %v2960_v0 = vld [vmem:[%s3744_s6 + $0x188] sm:$0xf]  ;;  %v3452_v1 = vld [vmem:[%s3744_s6 + $0x194] sm:$0xf0]  ;;  %v3450_v2 = vld [vmem:[%s3744_s6 + $0x18c] sm:$0xf] }
  0xcb   : > { %v1610_v14 = vadd.f32 %v1609_v9, %v1440_v8  ;;  %v2953_v9 = vor.u32 %v3451_v60, %v2952_v59 }
  0xcc   : > { %v1945_v12 = vadd.f32 %v1944_v3, %v1776_v7  ;;  %1479 = vmatmul.bf16.gmra.mxu0 %v2921_v4  ;;  %v2962_v3 = vld [vmem:[%s3744_s6 + $0x198] sm:$0xf0] }
  0xcd   : > { %1648 = vmatmul.bf16.gmra.mxu1 %v2925_v5 }
  0xce   : > { %v2299_v13 = vadd.f32 %v3840_v18, %v1945_v12  ;;  %1817 = vmatmul.bf16.gmra.mxu2 %v2929_v10 }
  0xcf   : > { %1986 = vmatmul.bf16.gmra.mxu3 %v2933_v11 }
  0xd0   : > { %2363 = vst [vmem:[%s3845_s29 + $0x18] sm:$0xff] %v2299_v13  ;;  %v2427_v15 = vadd.f32 %v2426_v63, %v2299_v13  ;;  %v2498_v16 = vmul.f32 %v2299_v13, %v2299_v13  ;;  %v2954_v63 = vld [vmem:[%s3744_s6 + $0x190] sm:$0xf0] }
  0xd1   : > { %v1778_v17 = vpop.f32.mrf.mxu2  ;;  %v1442_v22 = vpop.f32.mrf.mxu0  ;;  %v2957_v10 = vor.u32 %v3449_v62, %v2954_v63 }
  0xd2   : > { %v1947_v19 = vpop.f32.mrf.mxu3  ;;  %v2561_v20 = vadd.f32 %v2560_v6, %v2498_v16  ;;  %v1779_v21 = vadd.f32 %v1778_v17, %v1610_v14  ;;  %v1611_v23 = vpop.f32.mrf.mxu1  ;;  %v2965_v16 = vor.u32 %v3450_v2, %v2962_v3  ;;  %v3457_v3 = vld [vmem:[%s3744_s6 + $0x1c4] sm:$0xf] }
  0xd3   : > { %v1612_v36 = vadd.f32 %v1611_v23, %v1442_v22 }
  0xd4   : > { %v1948_v24 = vadd.f32 %v1947_v19, %v1779_v21 }
  0xd6   : > { %v2300_v27 = vadd.f32 %v3840_v18, %v1948_v24 }
  0xd8   : > { %2364 = vst [vmem:[%s3845_s29 + $0x20] sm:$0xff] %v2300_v27  ;;  %v2428_v34 = vadd.f32 %v2427_v15, %v2300_v27  ;;  %v2499_v35 = vmul.f32 %v2300_v27, %v2300_v27  ;;  %v2961_v15 = vor.u32 %v3452_v1, %v2960_v0  ;;  %v2984_v0 = vld [vmem:[%s3744_s6 + $0x1c0] sm:$0xf]  ;;  %v3459_v1 = vld [vmem:[%s3744_s6 + $0x1cc] sm:$0xf0] }
  0xd9   : > { %v1780_v37 = vpop.f32.mrf.mxu2  ;;  %v1445_v43 = vpop.f32.mrf.mxu0 }
  0xda   : > { %v1949_v38 = vpop.f32.mrf.mxu3  ;;  %v2562_v41 = vadd.f32 %v2561_v20, %v2499_v35  ;;  %v1781_v42 = vadd.f32 %v1780_v37, %v1612_v36  ;;  %v1614_v44 = vpop.f32.mrf.mxu1  ;;  %v2976_v35 = vld [vmem:[%s3744_s6 + $0x1a8] sm:$0xf]  ;;  %v3456_v36 = vld [vmem:[%s3744_s6 + $0x1b4] sm:$0xf0]  ;;  %v3454_v37 = vld [vmem:[%s3744_s6 + $0x1ac] sm:$0xf] }
  0xdb   : > { %v1615_v49 = vadd.f32 %v1614_v44, %v1445_v43  ;;  %v2969_v44 = vor.u32 %v3455_v31, %v2968_v30 }
  0xdc   : > { %v1950_v47 = vadd.f32 %v1949_v38, %v1781_v42  ;;  %1484 = vmatmul.bf16.gmra.mxu0 %v2937_v39  ;;  %v2978_v38 = vld [vmem:[%s3744_s6 + $0x1b8] sm:$0xf0] }
  0xdd   : > { %1653 = vmatmul.bf16.gmra.mxu1 %v2941_v40 }
  0xde   : > { %v2301_v48 = vadd.f32 %v3840_v18, %v1950_v47  ;;  %1822 = vmatmul.bf16.gmra.mxu2 %v2945_v45 }
  0xdf   : > { %1991 = vmatmul.bf16.gmra.mxu3 %v2949_v46 }
  0xe0   : > { %2365 = vst [vmem:[%s3845_s29 + $0x28] sm:$0xff] %v2301_v48  ;;  %v2429_v50 = vadd.f32 %v2428_v34, %v2301_v48  ;;  %v2500_v51 = vmul.f32 %v2301_v48, %v2301_v48  ;;  %v2970_v34 = vld [vmem:[%s3744_s6 + $0x1b0] sm:$0xf0] }
  0xe1   : > { %v1783_v52 = vpop.f32.mrf.mxu2  ;;  %v1447_v56 = vpop.f32.mrf.mxu0  ;;  %v2973_v45 = vor.u32 %v3453_v33, %v2970_v34 }
  0xe2   : > { %v1952_v53 = vpop.f32.mrf.mxu3  ;;  %v2563_v54 = vadd.f32 %v2562_v41, %v2500_v51  ;;  %v1784_v55 = vadd.f32 %v1783_v52, %v1615_v49  ;;  %v1616_v57 = vpop.f32.mrf.mxu1  ;;  %v2981_v51 = vor.u32 %v3454_v37, %v2978_v38  ;;  %v3461_v38 = vld [vmem:[%s3744_s6 + $0x1e4] sm:$0xf] }
  0xe3   : > { %v1617_v6 = vadd.f32 %v1616_v57, %v1447_v56 }
  0xe4   : > { %v1953_v58 = vadd.f32 %v1952_v53, %v1784_v55 }
  0xe6   : > { %v2302_v61 = vadd.f32 %v3840_v18, %v1953_v58 }
  0xe8   : > { %2366 = vst [vmem:[%s3845_s29 + $0x30] sm:$0xff] %v2302_v61  ;;  %v2430_v4 = vadd.f32 %v2429_v50, %v2302_v61  ;;  %v2501_v5 = vmul.f32 %v2302_v61, %v2302_v61  ;;  %v2977_v50 = vor.u32 %v3456_v36, %v2976_v35  ;;  %v3000_v35 = vld [vmem:[%s3744_s6 + $0x1e0] sm:$0xf]  ;;  %v3463_v36 = vld [vmem:[%s3744_s6 + $0x1ec] sm:$0xf0] }
  0xe9   : > { %v1785_v7 = vpop.f32.mrf.mxu2  ;;  %v1450_v13 = vpop.f32.mrf.mxu0 }
  0xea   : > { %v1954_v8 = vpop.f32.mrf.mxu3  ;;  %v2564_v11 = vadd.f32 %v2563_v54, %v2501_v5  ;;  %v1786_v12 = vadd.f32 %v1785_v7, %v1617_v6  ;;  %v1619_v14 = vpop.f32.mrf.mxu1  ;;  %v2992_v5 = vld [vmem:[%s3744_s6 + $0x1c8] sm:$0xf]  ;;  %v3460_v6 = vld [vmem:[%s3744_s6 + $0x1d4] sm:$0xf0]  ;;  %v3458_v7 = vld [vmem:[%s3744_s6 + $0x1cc] sm:$0xf] }
  0xeb   : > { %v1620_v20 = vadd.f32 %v1619_v14, %v1450_v13  ;;  %v2985_v14 = vor.u32 %v3459_v1, %v2984_v0 }
  0xec   : > { %v1955_v17 = vadd.f32 %v1954_v8, %v1786_v12  ;;  %1489 = vmatmul.bf16.gmra.mxu0 %v2953_v9  ;;  %v2994_v8 = vld [vmem:[%s3744_s6 + $0x1d8] sm:$0xf0] }
  0xed   : > { %1658 = vmatmul.bf16.gmra.mxu1 %v2957_v10 }
  0xee   : > { %v2303_v19 = vadd.f32 %v3840_v18, %v1955_v17  ;;  %1827 = vmatmul.bf16.gmra.mxu2 %v2961_v15 }
  0xef   : > { %1996 = vmatmul.bf16.gmra.mxu3 %v2965_v16 }
  0xf0   : > { %2367 = vst [vmem:[%s3845_s29 + $0x38] sm:$0xff] %v2303_v19  ;;  %v2431_v21 = vadd.f32 %v2430_v4, %v2303_v19  ;;  %v2502_v22 = vmul.f32 %v2303_v19, %v2303_v19  ;;  %v2986_v4 = vld [vmem:[%s3744_s6 + $0x1d0] sm:$0xf0] }
  0xf1   : > { %v1788_v23 = vpop.f32.mrf.mxu2  ;;  %v1452_v27 = vpop.f32.mrf.mxu0  ;;  %v2989_v15 = vor.u32 %v3457_v3, %v2986_v4 }
  0xf2   : > { %v1957_v24 = vpop.f32.mrf.mxu3  ;;  %v2565_v25 = vadd.f32 %v2564_v11, %v2502_v22  ;;  %v1789_v26 = vadd.f32 %v1788_v23, %v1620_v20  ;;  %v1621_v28 = vpop.f32.mrf.mxu1  ;;  %v2997_v22 = vor.u32 %v3458_v7, %v2994_v8  ;;  %v3465_v8 = vld [vmem:[%s3744_s6 + $0x204] sm:$0xf] }
  0xf3   : > { %v1622_v41 = vadd.f32 %v1621_v28, %v1452_v27 }
  0xf4   : > { %v1958_v29 = vadd.f32 %v1957_v24, %v1789_v26 }
  0xf6   : > { %v2304_v32 = vadd.f32 %v3840_v18, %v1958_v29 }
  0xf8   : > { %2368 = vst [vmem:[%s3845_s29 + $0x40] sm:$0xff] %v2304_v32  ;;  %v2432_v39 = vadd.f32 %v2431_v21, %v2304_v32  ;;  %v2503_v40 = vmul.f32 %v2304_v32, %v2304_v32  ;;  %v2993_v21 = vor.u32 %v3460_v6, %v2992_v5  ;;  %v3016_v5 = vld [vmem:[%s3744_s6 + $0x200] sm:$0xf]  ;;  %v3467_v6 = vld [vmem:[%s3744_s6 + $0x20c] sm:$0xf0] }
  0xf9   : > { %v1790_v42 = vpop.f32.mrf.mxu2  ;;  %v1455_v48 = vpop.f32.mrf.mxu0 }
  0xfa   : > { %v1959_v43 = vpop.f32.mrf.mxu3  ;;  %v2566_v46 = vadd.f32 %v2565_v25, %v2503_v40  ;;  %v1791_v47 = vadd.f32 %v1790_v42, %v1622_v41  ;;  %v1624_v49 = vpop.f32.mrf.mxu1  ;;  %v3008_v40 = vld [vmem:[%s3744_s6 + $0x1e8] sm:$0xf]  ;;  %v3464_v41 = vld [vmem:[%s3744_s6 + $0x1f4] sm:$0xf0]  ;;  %v3462_v42 = vld [vmem:[%s3744_s6 + $0x1ec] sm:$0xf] }
  0xfb   : > { %v1625_v54 = vadd.f32 %v1624_v49, %v1455_v48  ;;  %v3001_v49 = vor.u32 %v3463_v36, %v3000_v35 }
  0xfc   : > { %v1960_v52 = vadd.f32 %v1959_v43, %v1791_v47  ;;  %1494 = vmatmul.bf16.gmra.mxu0 %v2969_v44  ;;  %v3010_v43 = vld [vmem:[%s3744_s6 + $0x1f8] sm:$0xf0] }
  0xfd   : > { %1663 = vmatmul.bf16.gmra.mxu1 %v2973_v45 }
  0xfe   : > { %v2305_v53 = vadd.f32 %v3840_v18, %v1960_v52  ;;  %1832 = vmatmul.bf16.gmra.mxu2 %v2977_v50 }
  0xff   : > { %2001 = vmatmul.bf16.gmra.mxu3 %v2981_v51 }
 0x100   : > { %2369 = vst [vmem:[%s3845_s29 + $0x48] sm:$0xff] %v2305_v53  ;;  %v2433_v55 = vadd.f32 %v2432_v39, %v2305_v53  ;;  %v2504_v56 = vmul.f32 %v2305_v53, %v2305_v53  ;;  %v3002_v39 = vld [vmem:[%s3744_s6 + $0x1f0] sm:$0xf0] }
 0x101   : > { %v1793_v57 = vpop.f32.mrf.mxu2  ;;  %v1457_v61 = vpop.f32.mrf.mxu0  ;;  %v3005_v50 = vor.u32 %v3461_v38, %v3002_v39 }
 0x102   : > { %v1962_v58 = vpop.f32.mrf.mxu3  ;;  %v2567_v59 = vadd.f32 %v2566_v46, %v2504_v56  ;;  %v1794_v60 = vadd.f32 %v1793_v57, %v1625_v54  ;;  %v1626_v62 = vpop.f32.mrf.mxu1  ;;  %v3013_v56 = vor.u32 %v3462_v42, %v3010_v43  ;;  %v3469_v43 = vld [vmem:[%s3744_s6 + $0x224] sm:$0xf] }
 0x103   : > { %v1627_v11 = vadd.f32 %v1626_v62, %v1457_v61 }
 0x104   : > { %v1963_v63 = vadd.f32 %v1962_v58, %v1794_v60 }
 0x106   : > { %v2306_v2 = vadd.f32 %v3840_v18, %v1963_v63 }
 0x108   : > { %2370 = vst [vmem:[%s3845_s29 + $0x50] sm:$0xff] %v2306_v2  ;;  %v2434_v9 = vadd.f32 %v2433_v55, %v2306_v2  ;;  %v2505_v10 = vmul.f32 %v2306_v2, %v2306_v2  ;;  %v3009_v55 = vor.u32 %v3464_v41, %v3008_v40  ;;  %v3032_v40 = vld [vmem:[%s3744_s6 + $0x220] sm:$0xf]  ;;  %v3471_v41 = vld [vmem:[%s3744_s6 + $0x22c] sm:$0xf0] }
 0x109   : > { %v1795_v12 = vpop.f32.mrf.mxu2  ;;  %v1460_v19 = vpop.f32.mrf.mxu0 }
 0x10a   : > { %v1964_v13 = vpop.f32.mrf.mxu3  ;;  %v2568_v16 = vadd.f32 %v2567_v59, %v2505_v10  ;;  %v1796_v17 = vadd.f32 %v1795_v12, %v1627_v11  ;;  %v1629_v20 = vpop.f32.mrf.mxu1  ;;  %v3024_v10 = vld [vmem:[%s3744_s6 + $0x208] sm:$0xf]  ;;  %v3468_v11 = vld [vmem:[%s3744_s6 + $0x214] sm:$0xf0]  ;;  %v3466_v12 = vld [vmem:[%s3744_s6 + $0x20c] sm:$0xf] }
 0x10b   : > { %v1630_v25 = vadd.f32 %v1629_v20, %v1460_v19  ;;  %v3017_v20 = vor.u32 %v3467_v6, %v3016_v5 }
 0x10c   : > { %v1965_v23 = vadd.f32 %v1964_v13, %v1796_v17  ;;  %1499 = vmatmul.bf16.gmra.mxu0 %v2985_v14  ;;  %v3026_v13 = vld [vmem:[%s3744_s6 + $0x218] sm:$0xf0] }
 0x10d   : > { %1668 = vmatmul.bf16.gmra.mxu1 %v2989_v15 }
 0x10e   : > { %v2307_v24 = vadd.f32 %v3840_v18, %v1965_v23  ;;  %1837 = vmatmul.bf16.gmra.mxu2 %v2993_v21 }
 0x10f   : > { %2006 = vmatmul.bf16.gmra.mxu3 %v2997_v22 }
 0x110   : > { %2371 = vst [vmem:[%s3845_s29 + $0x58] sm:$0xff] %v2307_v24  ;;  %v2435_v26 = vadd.f32 %v2434_v9, %v2307_v24  ;;  %v2506_v27 = vmul.f32 %v2307_v24, %v2307_v24  ;;  %v3018_v9 = vld [vmem:[%s3744_s6 + $0x210] sm:$0xf0] }
 0x111   : > { %v1798_v28 = vpop.f32.mrf.mxu2  ;;  %v1462_v32 = vpop.f32.mrf.mxu0  ;;  %v3021_v21 = vor.u32 %v3465_v8, %v3018_v9 }
 0x112   : > { %v1967_v29 = vpop.f32.mrf.mxu3  ;;  %v2569_v30 = vadd.f32 %v2568_v16, %v2506_v27  ;;  %v1799_v31 = vadd.f32 %v1798_v28, %v1630_v25  ;;  %v1631_v33 = vpop.f32.mrf.mxu1  ;;  %v3029_v27 = vor.u32 %v3466_v12, %v3026_v13  ;;  %v3473_v13 = vld [vmem:[%s3744_s6 + $0x244] sm:$0xf] }
 0x113   : > { %v1632_v46 = vadd.f32 %v1631_v33, %v1462_v32 }
 0x114   : > { %v1968_v34 = vadd.f32 %v1967_v29, %v1799_v31 }
 0x116   : > { %v2308_v37 = vadd.f32 %v3840_v18, %v1968_v34 }
 0x118   : > { %2372 = vst [vmem:[%s3845_s29 + $0x60] sm:$0xff] %v2308_v37  ;;  %v2436_v44 = vadd.f32 %v2435_v26, %v2308_v37  ;;  %v2507_v45 = vmul.f32 %v2308_v37, %v2308_v37  ;;  %v3025_v26 = vor.u32 %v3468_v11, %v3024_v10  ;;  %v3048_v10 = vld [vmem:[%s3744_s6 + $0x240] sm:$0xf]  ;;  %v3475_v11 = vld [vmem:[%s3744_s6 + $0x24c] sm:$0xf0] }
 0x119   : > { %v1800_v47 = vpop.f32.mrf.mxu2  ;;  %v1465_v53 = vpop.f32.mrf.mxu0 }
 0x11a   : > { %v1969_v48 = vpop.f32.mrf.mxu3  ;;  %v2570_v51 = vadd.f32 %v2569_v30, %v2507_v45  ;;  %v1801_v52 = vadd.f32 %v1800_v47, %v1632_v46  ;;  %v1634_v54 = vpop.f32.mrf.mxu1  ;;  %v3040_v45 = vld [vmem:[%s3744_s6 + $0x228] sm:$0xf]  ;;  %v3472_v46 = vld [vmem:[%s3744_s6 + $0x234] sm:$0xf0]  ;;  %v3470_v47 = vld [vmem:[%s3744_s6 + $0x22c] sm:$0xf] }
 0x11b   : > { %v1635_v59 = vadd.f32 %v1634_v54, %v1465_v53  ;;  %v3033_v54 = vor.u32 %v3471_v41, %v3032_v40 }
 0x11c   : > { %v1970_v57 = vadd.f32 %v1969_v48, %v1801_v52  ;;  %1504 = vmatmul.bf16.gmra.mxu0 %v3001_v49  ;;  %v3042_v48 = vld [vmem:[%s3744_s6 + $0x238] sm:$0xf0] }
 0x11d   : > { %1673 = vmatmul.bf16.gmra.mxu1 %v3005_v50 }
 0x11e   : > { %v2309_v58 = vadd.f32 %v3840_v18, %v1970_v57  ;;  %1842 = vmatmul.bf16.gmra.mxu2 %v3009_v55 }
 0x11f   : > { %2011 = vmatmul.bf16.gmra.mxu3 %v3013_v56 }
 0x120   : > { %2373 = vst [vmem:[%s3845_s29 + $0x68] sm:$0xff] %v2309_v58  ;;  %v2437_v60 = vadd.f32 %v2436_v44, %v2309_v58  ;;  %v2508_v61 = vmul.f32 %v2309_v58, %v2309_v58  ;;  %v3034_v44 = vld [vmem:[%s3744_s6 + $0x230] sm:$0xf0] }
 0x121   : > { %v1803_v62 = vpop.f32.mrf.mxu2  ;;  %v1467_v2 = vpop.f32.mrf.mxu0  ;;  %v3037_v55 = vor.u32 %v3469_v43, %v3034_v44 }
 0x122   : > { %v1972_v63 = vpop.f32.mrf.mxu3  ;;  %v2571_v0 = vadd.f32 %v2570_v51, %v2508_v61  ;;  %v1804_v1 = vadd.f32 %v1803_v62, %v1635_v59  ;;  %v1636_v3 = vpop.f32.mrf.mxu1  ;;  %v3045_v61 = vor.u32 %v3470_v47, %v3042_v48  ;;  %v3477_v48 = vld [vmem:[%s3744_s6 + $0x264] sm:$0xf] }
 0x123   : > { %v1637_v16 = vadd.f32 %v1636_v3, %v1467_v2 }
 0x124   : > { %v1973_v4 = vadd.f32 %v1972_v63, %v1804_v1 }
 0x126   : > { %v2310_v7 = vadd.f32 %v3840_v18, %v1973_v4 }
 0x128   : > { %2374 = vst [vmem:[%s3845_s29 + $0x70] sm:$0xff] %v2310_v7  ;;  %v2438_v14 = vadd.f32 %v2437_v60, %v2310_v7  ;;  %v2509_v15 = vmul.f32 %v2310_v7, %v2310_v7  ;;  %v3041_v60 = vor.u32 %v3472_v46, %v3040_v45  ;;  %v3064_v45 = vld [vmem:[%s3744_s6 + $0x260] sm:$0xf]  ;;  %v3479_v46 = vld [vmem:[%s3744_s6 + $0x26c] sm:$0xf0] }
 0x129   : > { %v1805_v17 = vpop.f32.mrf.mxu2  ;;  %v1470_v24 = vpop.f32.mrf.mxu0 }
 0x12a   : > { %v1974_v19 = vpop.f32.mrf.mxu3  ;;  %v2572_v22 = vadd.f32 %v2571_v0, %v2509_v15  ;;  %v1806_v23 = vadd.f32 %v1805_v17, %v1637_v16  ;;  %v1639_v25 = vpop.f32.mrf.mxu1  ;;  %v3056_v15 = vld [vmem:[%s3744_s6 + $0x248] sm:$0xf]  ;;  %v3476_v16 = vld [vmem:[%s3744_s6 + $0x254] sm:$0xf0]  ;;  %v3474_v17 = vld [vmem:[%s3744_s6 + $0x24c] sm:$0xf] }
 0x12b   : > { %v1640_v30 = vadd.f32 %v1639_v25, %v1470_v24  ;;  %v3049_v25 = vor.u32 %v3475_v11, %v3048_v10 }
 0x12c   : > { %v1975_v28 = vadd.f32 %v1974_v19, %v1806_v23  ;;  %1509 = vmatmul.bf16.gmra.mxu0 %v3017_v20  ;;  %v3058_v19 = vld [vmem:[%s3744_s6 + $0x258] sm:$0xf0] }
 0x12d   : > { %1678 = vmatmul.bf16.gmra.mxu1 %v3021_v21 }
 0x12e   : > { %v2311_v29 = vadd.f32 %v3840_v18, %v1975_v28  ;;  %1847 = vmatmul.bf16.gmra.mxu2 %v3025_v26 }
 0x12f   : > { %2016 = vmatmul.bf16.gmra.mxu3 %v3029_v27 }
 0x130   : > { %2375 = vst [vmem:[%s3845_s29 + $0x78] sm:$0xff] %v2311_v29  ;;  %v2439_v31 = vadd.f32 %v2438_v14, %v2311_v29  ;;  %v2510_v32 = vmul.f32 %v2311_v29, %v2311_v29  ;;  %v3050_v14 = vld [vmem:[%s3744_s6 + $0x250] sm:$0xf0] }
 0x131   : > { %v1808_v33 = vpop.f32.mrf.mxu2  ;;  %v1472_v37 = vpop.f32.mrf.mxu0  ;;  %v3053_v26 = vor.u32 %v3473_v13, %v3050_v14 }
 0x132   : > { %v1977_v34 = vpop.f32.mrf.mxu3  ;;  %v2573_v35 = vadd.f32 %v2572_v22, %v2510_v32  ;;  %v1809_v36 = vadd.f32 %v1808_v33, %v1640_v30  ;;  %v1641_v38 = vpop.f32.mrf.mxu1  ;;  %v3061_v32 = vor.u32 %v3474_v17, %v3058_v19  ;;  %v3481_v19 = vld [vmem:[%s3744_s6 + $0x284] sm:$0xf] }
 0x133   : > { %v1642_v51 = vadd.f32 %v1641_v38, %v1472_v37 }
 0x134   : > { %v1978_v39 = vadd.f32 %v1977_v34, %v1809_v36 }
 0x136   : > { %v2312_v42 = vadd.f32 %v3840_v18, %v1978_v39 }
 0x138   : > { %2376 = vst [vmem:[%s3845_s29 + $0x80] sm:$0xff] %v2312_v42  ;;  %v2440_v49 = vadd.f32 %v2439_v31, %v2312_v42  ;;  %v2511_v50 = vmul.f32 %v2312_v42, %v2312_v42  ;;  %v3057_v31 = vor.u32 %v3476_v16, %v3056_v15  ;;  %v3080_v15 = vld [vmem:[%s3744_s6 + $0x280] sm:$0xf]  ;;  %v3483_v16 = vld [vmem:[%s3744_s6 + $0x28c] sm:$0xf0] }
 0x139   : > { %v1810_v52 = vpop.f32.mrf.mxu2  ;;  %v1475_v58 = vpop.f32.mrf.mxu0 }
 0x13a   : > { %v1979_v53 = vpop.f32.mrf.mxu3  ;;  %v2574_v56 = vadd.f32 %v2573_v35, %v2511_v50  ;;  %v1811_v57 = vadd.f32 %v1810_v52, %v1642_v51  ;;  %v1644_v59 = vpop.f32.mrf.mxu1  ;;  %v3072_v50 = vld [vmem:[%s3744_s6 + $0x268] sm:$0xf]  ;;  %v3480_v51 = vld [vmem:[%s3744_s6 + $0x274] sm:$0xf0]  ;;  %v3478_v52 = vld [vmem:[%s3744_s6 + $0x26c] sm:$0xf] }
 0x13b   : > { %v1645_v0 = vadd.f32 %v1644_v59, %v1475_v58  ;;  %v3065_v59 = vor.u32 %v3479_v46, %v3064_v45 }
 0x13c   : > { %v1980_v62 = vadd.f32 %v1979_v53, %v1811_v57  ;;  %1514 = vmatmul.bf16.gmra.mxu0 %v3033_v54  ;;  %v3074_v53 = vld [vmem:[%s3744_s6 + $0x278] sm:$0xf0] }
 0x13d   : > { %1683 = vmatmul.bf16.gmra.mxu1 %v3037_v55 }
 0x13e   : > { %v2313_v63 = vadd.f32 %v3840_v18, %v1980_v62  ;;  %1852 = vmatmul.bf16.gmra.mxu2 %v3041_v60 }
 0x13f   : > { %2021 = vmatmul.bf16.gmra.mxu3 %v3045_v61 }
 0x140   : > { %2377 = vst [vmem:[%s3845_s29 + $0x88] sm:$0xff] %v2313_v63  ;;  %v2441_v1 = vadd.f32 %v2440_v49, %v2313_v63  ;;  %v2512_v2 = vmul.f32 %v2313_v63, %v2313_v63  ;;  %v3066_v49 = vld [vmem:[%s3744_s6 + $0x270] sm:$0xf0] }
 0x141   : > { %v1813_v3 = vpop.f32.mrf.mxu2  ;;  %v1477_v7 = vpop.f32.mrf.mxu0  ;;  %v3069_v60 = vor.u32 %v3477_v48, %v3066_v49 }
 0x142   : > { %v1982_v4 = vpop.f32.mrf.mxu3  ;;  %v2575_v5 = vadd.f32 %v2574_v56, %v2512_v2  ;;  %v1814_v6 = vadd.f32 %v1813_v3, %v1645_v0  ;;  %v1646_v8 = vpop.f32.mrf.mxu1  ;;  %v3077_v2 = vor.u32 %v3478_v52, %v3074_v53  ;;  %v3485_v53 = vld [vmem:[%s3744_s6 + $0x2a4] sm:$0xf] }
 0x143   : > { %v1647_v22 = vadd.f32 %v1646_v8, %v1477_v7 }
 0x144   : > { %v1983_v9 = vadd.f32 %v1982_v4, %v1814_v6 }
 0x146   : > { %v2314_v12 = vadd.f32 %v3840_v18, %v1983_v9 }
 0x148   : > { %2378 = vst [vmem:[%s3845_s29 + $0x90] sm:$0xff] %v2314_v12  ;;  %v2442_v20 = vadd.f32 %v2441_v1, %v2314_v12  ;;  %v2513_v21 = vmul.f32 %v2314_v12, %v2314_v12  ;;  %v3073_v1 = vor.u32 %v3480_v51, %v3072_v50  ;;  %v3096_v50 = vld [vmem:[%s3744_s6 + $0x2a0] sm:$0xf]  ;;  %v3487_v51 = vld [vmem:[%s3744_s6 + $0x2ac] sm:$0xf0] }
 0x149   : > { %v1815_v23 = vpop.f32.mrf.mxu2  ;;  %v1480_v29 = vpop.f32.mrf.mxu0 }
 0x14a   : > { %v1984_v24 = vpop.f32.mrf.mxu3  ;;  %v2576_v27 = vadd.f32 %v2575_v5, %v2513_v21  ;;  %v1816_v28 = vadd.f32 %v1815_v23, %v1647_v22  ;;  %v1649_v30 = vpop.f32.mrf.mxu1  ;;  %v3088_v21 = vld [vmem:[%s3744_s6 + $0x288] sm:$0xf]  ;;  %v3484_v22 = vld [vmem:[%s3744_s6 + $0x294] sm:$0xf0]  ;;  %v3482_v23 = vld [vmem:[%s3744_s6 + $0x28c] sm:$0xf] }
 0x14b   : > { %v1650_v35 = vadd.f32 %v1649_v30, %v1480_v29  ;;  %v3081_v30 = vor.u32 %v3483_v16, %v3080_v15 }
 0x14c   : > { %v1985_v33 = vadd.f32 %v1984_v24, %v1816_v28  ;;  %1519 = vmatmul.bf16.gmra.mxu0 %v3049_v25  ;;  %v3090_v24 = vld [vmem:[%s3744_s6 + $0x298] sm:$0xf0] }
 0x14d   : > { %1688 = vmatmul.bf16.gmra.mxu1 %v3053_v26 }
 0x14e   : > { %v2315_v34 = vadd.f32 %v3840_v18, %v1985_v33  ;;  %1857 = vmatmul.bf16.gmra.mxu2 %v3057_v31 }
 0x14f   : > { %2026 = vmatmul.bf16.gmra.mxu3 %v3061_v32 }
 0x150   : > { %2379 = vst [vmem:[%s3845_s29 + $0x98] sm:$0xff] %v2315_v34  ;;  %v2443_v36 = vadd.f32 %v2442_v20, %v2315_v34  ;;  %v2514_v37 = vmul.f32 %v2315_v34, %v2315_v34  ;;  %v3082_v20 = vld [vmem:[%s3744_s6 + $0x290] sm:$0xf0] }
 0x151   : > { %v1818_v38 = vpop.f32.mrf.mxu2  ;;  %v1482_v42 = vpop.f32.mrf.mxu0  ;;  %v3085_v31 = vor.u32 %v3481_v19, %v3082_v20  ;;  %v3112_v20 = vld [vmem:[%s3744_s6 + $0x2c0] sm:$0xf] }
 0x152   : > { %v1987_v39 = vpop.f32.mrf.mxu3  ;;  %v2577_v40 = vadd.f32 %v2576_v27, %v2514_v37  ;;  %v1819_v41 = vadd.f32 %v1818_v38, %v1650_v35  ;;  %v1651_v43 = vpop.f32.mrf.mxu1  ;;  %v3093_v37 = vor.u32 %v3482_v23, %v3090_v24  ;;  %v3489_v24 = vld [vmem:[%s3744_s6 + $0x2c4] sm:$0xf] }
 0x153   : > { %v1652_v56 = vadd.f32 %v1651_v43, %v1482_v42 }
 0x154   : > { %v1988_v44 = vadd.f32 %v1987_v39, %v1819_v41 }
 0x156   : > { %v2316_v47 = vadd.f32 %v3840_v18, %v1988_v44 }
 0x158   : > { %2380 = vst [vmem:[%s3845_s29 + $0xa0] sm:$0xff] %v2316_v47  ;;  %v2444_v54 = vadd.f32 %v2443_v36, %v2316_v47  ;;  %v2515_v55 = vmul.f32 %v2316_v47, %v2316_v47  ;;  %v3089_v36 = vor.u32 %v3484_v22, %v3088_v21  ;;  %v3491_v21 = vld [vmem:[%s3744_s6 + $0x2cc] sm:$0xf0]  ;;  %v4008_v22 = vld [vmem:[%s4220_s2] ss:$0 sm:$0xff] }
 0x159   : > { %v1820_v57 = vpop.f32.mrf.mxu2  ;;  %v1485_v63 = vpop.f32.mrf.mxu0 }
 0x15a   : > { %v1989_v58 = vpop.f32.mrf.mxu3  ;;  %v2578_v61 = vadd.f32 %v2577_v40, %v2515_v55  ;;  %v1821_v62 = vadd.f32 %v1820_v57, %v1652_v56  ;;  %v1654_v0 = vpop.f32.mrf.mxu1  ;;  %v3104_v55 = vld [vmem:[%s3744_s6 + $0x2a8] sm:$0xf]  ;;  %v3488_v56 = vld [vmem:[%s3744_s6 + $0x2b4] sm:$0xf0]  ;;  %v3486_v57 = vld [vmem:[%s3744_s6 + $0x2ac] sm:$0xf] }
 0x15b   : > { %v1655_v5 = vadd.f32 %v1654_v0, %v1485_v63  ;;  %v3097_v0 = vor.u32 %v3487_v51, %v3096_v50 }
 0x15c   : > { %v1990_v3 = vadd.f32 %v1989_v58, %v1821_v62  ;;  %1524 = vmatmul.bf16.gmra.mxu0 %v3065_v59  ;;  %v3106_v58 = vld [vmem:[%s3744_s6 + $0x2b8] sm:$0xf0] }
 0x15d   : > { %1693 = vmatmul.bf16.gmra.mxu1 %v3069_v60 }
 0x15e   : > { %v2317_v4 = vadd.f32 %v3840_v18, %v1990_v3  ;;  %1862 = vmatmul.bf16.gmra.mxu2 %v3073_v1 }
 0x15f   : > { %2031 = vmatmul.bf16.gmra.mxu3 %v3077_v2 }
 0x160   : > { %2381 = vst [vmem:[%s3845_s29 + $0xa8] sm:$0xff] %v2317_v4  ;;  %v2445_v6 = vadd.f32 %v2444_v54, %v2317_v4  ;;  %v2516_v7 = vmul.f32 %v2317_v4, %v2317_v4  ;;  %v3098_v54 = vld [vmem:[%s3744_s6 + $0x2b0] sm:$0xf0] }
 0x161   : > { %v1823_v8 = vpop.f32.mrf.mxu2  ;;  %v1487_v12 = vpop.f32.mrf.mxu0  ;;  %v3101_v1 = vor.u32 %v3485_v53, %v3098_v54 }
 0x162   : > { %v1992_v9 = vpop.f32.mrf.mxu3  ;;  %v2579_v10 = vadd.f32 %v2578_v61, %v2516_v7  ;;  %v1824_v11 = vadd.f32 %v1823_v8, %v1655_v5  ;;  %v1656_v13 = vpop.f32.mrf.mxu1  ;;  %v3109_v7 = vor.u32 %v3486_v57, %v3106_v58  ;;  %v3493_v58 = vld [vmem:[%s3744_s6 + $0x2e4] sm:$0xf] }
 0x163   : > { %v1657_v27 = vadd.f32 %v1656_v13, %v1487_v12 }
 0x164   : > { %v1993_v14 = vadd.f32 %v1992_v9, %v1824_v11 }
 0x166   : > { %v2318_v17 = vadd.f32 %v3840_v18, %v1993_v14 }
 0x168   : > { %2382 = vst [vmem:[%s3845_s29 + $0xb0] sm:$0xff] %v2318_v17  ;;  %v2446_v25 = vadd.f32 %v2445_v6, %v2318_v17  ;;  %v2517_v26 = vmul.f32 %v2318_v17, %v2318_v17  ;;  %v3105_v6 = vor.u32 %v3488_v56, %v3104_v55  ;;  %v3128_v55 = vld [vmem:[%s3744_s6 + $0x2e0] sm:$0xf]  ;;  %v3495_v56 = vld [vmem:[%s3744_s6 + $0x2ec] sm:$0xf0] }
 0x169   : > { %v1825_v28 = vpop.f32.mrf.mxu2  ;;  %v1490_v34 = vpop.f32.mrf.mxu0 }
 0x16a   : > { %v1994_v29 = vpop.f32.mrf.mxu3  ;;  %v2580_v32 = vadd.f32 %v2579_v10, %v2517_v26  ;;  %v1826_v33 = vadd.f32 %v1825_v28, %v1657_v27  ;;  %v1659_v35 = vpop.f32.mrf.mxu1  ;;  %v3120_v26 = vld [vmem:[%s3744_s6 + $0x2c8] sm:$0xf]  ;;  %v3492_v27 = vld [vmem:[%s3744_s6 + $0x2d4] sm:$0xf0]  ;;  %v3490_v28 = vld [vmem:[%s3744_s6 + $0x2cc] sm:$0xf] }
 0x16b   : > { %v1660_v40 = vadd.f32 %v1659_v35, %v1490_v34  ;;  %v3113_v35 = vor.u32 %v3491_v21, %v3112_v20 }
 0x16c   : > { %v1995_v38 = vadd.f32 %v1994_v29, %v1826_v33  ;;  %1529 = vmatmul.bf16.gmra.mxu0 %v3081_v30  ;;  %v3122_v29 = vld [vmem:[%s3744_s6 + $0x2d8] sm:$0xf0] }
 0x16d   : > { %1698 = vmatmul.bf16.gmra.mxu1 %v3085_v31 }
 0x16e   : > { %v2319_v39 = vadd.f32 %v3840_v18, %v1995_v38  ;;  %1867 = vmatmul.bf16.gmra.mxu2 %v3089_v36 }
 0x16f   : > { %2036 = vmatmul.bf16.gmra.mxu3 %v3093_v37 }
 0x170   : > { %2383 = vst [vmem:[%s3845_s29 + $0xb8] sm:$0xff] %v2319_v39  ;;  %v2447_v41 = vadd.f32 %v2446_v25, %v2319_v39  ;;  %v2518_v42 = vmul.f32 %v2319_v39, %v2319_v39  ;;  %v3114_v25 = vld [vmem:[%s3744_s6 + $0x2d0] sm:$0xf0] }
 0x171   : > { %v1828_v43 = vpop.f32.mrf.mxu2  ;;  %v1492_v47 = vpop.f32.mrf.mxu0  ;;  %v3117_v36 = vor.u32 %v3489_v24, %v3114_v25 }
 0x172   : > { %v1997_v44 = vpop.f32.mrf.mxu3  ;;  %v2581_v45 = vadd.f32 %v2580_v32, %v2518_v42  ;;  %v1829_v46 = vadd.f32 %v1828_v43, %v1660_v40  ;;  %v1661_v48 = vpop.f32.mrf.mxu1  ;;  %v3125_v42 = vor.u32 %v3490_v28, %v3122_v29  ;;  %v3497_v29 = vld [vmem:[%s3744_s6 + $0x304] sm:$0xf] }
 0x173   : > { %v1662_v61 = vadd.f32 %v1661_v48, %v1492_v47 }
 0x174   : > { %v1998_v49 = vadd.f32 %v1997_v44, %v1829_v46 }
 0x176   : > { %v2320_v52 = vadd.f32 %v3840_v18, %v1998_v49 }
 0x178   : > { %2384 = vst [vmem:[%s3845_s29 + $0xc0] sm:$0xff] %v2320_v52  ;;  %v2448_v59 = vadd.f32 %v2447_v41, %v2320_v52  ;;  %v2519_v60 = vmul.f32 %v2320_v52, %v2320_v52  ;;  %v3121_v41 = vor.u32 %v3492_v27, %v3120_v26  ;;  %v3144_v26 = vld [vmem:[%s3744_s6 + $0x300] sm:$0xf]  ;;  %v3499_v27 = vld [vmem:[%s3744_s6 + $0x30c] sm:$0xf0] }
 0x179   : > { %v1830_v62 = vpop.f32.mrf.mxu2  ;;  %v1495_v4 = vpop.f32.mrf.mxu0 }
 0x17a   : > { %v1999_v63 = vpop.f32.mrf.mxu3  ;;  %v2582_v2 = vadd.f32 %v2581_v45, %v2519_v60  ;;  %v1831_v3 = vadd.f32 %v1830_v62, %v1662_v61  ;;  %v1664_v5 = vpop.f32.mrf.mxu1  ;;  %v3136_v60 = vld [vmem:[%s3744_s6 + $0x2e8] sm:$0xf]  ;;  %v3496_v61 = vld [vmem:[%s3744_s6 + $0x2f4] sm:$0xf0]  ;;  %v3494_v62 = vld [vmem:[%s3744_s6 + $0x2ec] sm:$0xf] }
 0x17b   : > { %v1665_v10 = vadd.f32 %v1664_v5, %v1495_v4  ;;  %v3129_v5 = vor.u32 %v3495_v56, %v3128_v55 }
 0x17c   : > { %v2000_v8 = vadd.f32 %v1999_v63, %v1831_v3  ;;  %1534 = vmatmul.bf16.gmra.mxu0 %v3097_v0  ;;  %v3138_v63 = vld [vmem:[%s3744_s6 + $0x2f8] sm:$0xf0] }
 0x17d   : > { %1703 = vmatmul.bf16.gmra.mxu1 %v3101_v1 }
 0x17e   : > { %v2321_v9 = vadd.f32 %v3840_v18, %v2000_v8  ;;  %1872 = vmatmul.bf16.gmra.mxu2 %v3105_v6 }
 0x17f   : > { %2041 = vmatmul.bf16.gmra.mxu3 %v3109_v7 }
 0x180   : > { %2385 = vst [vmem:[%s3845_s29 + $0xc8] sm:$0xff] %v2321_v9  ;;  %v2449_v11 = vadd.f32 %v2448_v59, %v2321_v9  ;;  %v2520_v12 = vmul.f32 %v2321_v9, %v2321_v9  ;;  %v3130_v59 = vld [vmem:[%s3744_s6 + $0x2f0] sm:$0xf0] }
 0x181   : > { %v1833_v13 = vpop.f32.mrf.mxu2  ;;  %v1497_v17 = vpop.f32.mrf.mxu0  ;;  %v3133_v6 = vor.u32 %v3493_v58, %v3130_v59 }
 0x182   : > { %v2002_v14 = vpop.f32.mrf.mxu3  ;;  %v2583_v15 = vadd.f32 %v2582_v2, %v2520_v12  ;;  %v1834_v16 = vadd.f32 %v1833_v13, %v1665_v10  ;;  %v1666_v19 = vpop.f32.mrf.mxu1  ;;  %v3141_v12 = vor.u32 %v3494_v62, %v3138_v63  ;;  %v3501_v63 = vld [vmem:[%s3744_s6 + $0x324] sm:$0xf] }
 0x183   : > { %v1667_v32 = vadd.f32 %v1666_v19, %v1497_v17 }
 0x184   : > { %v2003_v18 = vadd.f32 %v2002_v14, %v1834_v16 }
 0x186   : > { %v2322_v23 = vadd.f32 %v4008_v22, %v2003_v18 }
 0x188   : > { %2386 = vst [vmem:[%s3845_s29 + $0xd0] sm:$0xff] %v2322_v23  ;;  %v2450_v30 = vadd.f32 %v2449_v11, %v2322_v23  ;;  %v2521_v31 = vmul.f32 %v2322_v23, %v2322_v23  ;;  %v3137_v11 = vor.u32 %v3496_v61, %v3136_v60  ;;  %v3160_v60 = vld [vmem:[%s3744_s6 + $0x320] sm:$0xf]  ;;  %v3503_v61 = vld [vmem:[%s3744_s6 + $0x32c] sm:$0xf0] }
 0x189   : > { %v1835_v33 = vpop.f32.mrf.mxu2  ;;  %v1500_v39 = vpop.f32.mrf.mxu0 }
 0x18a   : > { %v2004_v34 = vpop.f32.mrf.mxu3  ;;  %v2584_v37 = vadd.f32 %v2583_v15, %v2521_v31  ;;  %v1836_v38 = vadd.f32 %v1835_v33, %v1667_v32  ;;  %v1669_v40 = vpop.f32.mrf.mxu1  ;;  %v3152_v31 = vld [vmem:[%s3744_s6 + $0x308] sm:$0xf]  ;;  %v3500_v32 = vld [vmem:[%s3744_s6 + $0x314] sm:$0xf0]  ;;  %v3498_v33 = vld [vmem:[%s3744_s6 + $0x30c] sm:$0xf] }
 0x18b   : > { %v1670_v45 = vadd.f32 %v1669_v40, %v1500_v39  ;;  %v3145_v40 = vor.u32 %v3499_v27, %v3144_v26 }
 0x18c   : > { %v2005_v43 = vadd.f32 %v2004_v34, %v1836_v38  ;;  %1539 = vmatmul.bf16.gmra.mxu0 %v3113_v35  ;;  %v3154_v34 = vld [vmem:[%s3744_s6 + $0x318] sm:$0xf0] }
 0x18d   : > { %1708 = vmatmul.bf16.gmra.mxu1 %v3117_v36 }
 0x18e   : > { %v2323_v44 = vadd.f32 %v4008_v22, %v2005_v43  ;;  %1877 = vmatmul.bf16.gmra.mxu2 %v3121_v41 }
 0x18f   : > { %2046 = vmatmul.bf16.gmra.mxu3 %v3125_v42 }
 0x190   : > { %2387 = vst [vmem:[%s3845_s29 + $0xd8] sm:$0xff] %v2323_v44  ;;  %v2451_v46 = vadd.f32 %v2450_v30, %v2323_v44  ;;  %v2522_v47 = vmul.f32 %v2323_v44, %v2323_v44  ;;  %v3146_v30 = vld [vmem:[%s3744_s6 + $0x310] sm:$0xf0] }
 0x191   : > { %v1838_v48 = vpop.f32.mrf.mxu2  ;;  %v1502_v52 = vpop.f32.mrf.mxu0  ;;  %v3149_v41 = vor.u32 %v3497_v29, %v3146_v30 }
 0x192   : > { %v2007_v49 = vpop.f32.mrf.mxu3  ;;  %v2585_v50 = vadd.f32 %v2584_v37, %v2522_v47  ;;  %v1839_v51 = vadd.f32 %v1838_v48, %v1670_v45  ;;  %v1671_v53 = vpop.f32.mrf.mxu1  ;;  %v3157_v47 = vor.u32 %v3498_v33, %v3154_v34  ;;  %v3505_v34 = vld [vmem:[%s3744_s6 + $0x344] sm:$0xf] }
 0x193   : > { %v1672_v2 = vadd.f32 %v1671_v53, %v1502_v52 }
 0x194   : > { %v2008_v54 = vadd.f32 %v2007_v49, %v1839_v51 }
 0x196   : > { %v2324_v57 = vadd.f32 %v4008_v22, %v2008_v54 }
 0x198   : > { %2388 = vst [vmem:[%s3845_s29 + $0xe0] sm:$0xff] %v2324_v57  ;;  %v2452_v0 = vadd.f32 %v2451_v46, %v2324_v57  ;;  %v2523_v1 = vmul.f32 %v2324_v57, %v2324_v57  ;;  %v3153_v46 = vor.u32 %v3500_v32, %v3152_v31  ;;  %v3176_v31 = vld [vmem:[%s3744_s6 + $0x340] sm:$0xf]  ;;  %v3507_v32 = vld [vmem:[%s3744_s6 + $0x34c] sm:$0xf0] }
 0x199   : > { %v1840_v3 = vpop.f32.mrf.mxu2  ;;  %v1505_v9 = vpop.f32.mrf.mxu0 }
 0x19a   : > { %v2009_v4 = vpop.f32.mrf.mxu3  ;;  %v2586_v7 = vadd.f32 %v2585_v50, %v2523_v1  ;;  %v1841_v8 = vadd.f32 %v1840_v3, %v1672_v2  ;;  %v1674_v10 = vpop.f32.mrf.mxu1  ;;  %v3168_v1 = vld [vmem:[%s3744_s6 + $0x328] sm:$0xf]  ;;  %v3504_v2 = vld [vmem:[%s3744_s6 + $0x334] sm:$0xf0]  ;;  %v3502_v3 = vld [vmem:[%s3744_s6 + $0x32c] sm:$0xf] }
 0x19b   : > { %v1675_v15 = vadd.f32 %v1674_v10, %v1505_v9  ;;  %v3161_v10 = vor.u32 %v3503_v61, %v3160_v60 }
 0x19c   : > { %v2010_v13 = vadd.f32 %v2009_v4, %v1841_v8  ;;  %1544 = vmatmul.bf16.gmra.mxu0 %v3129_v5  ;;  %v3170_v4 = vld [vmem:[%s3744_s6 + $0x338] sm:$0xf0] }
 0x19d   : > { %1713 = vmatmul.bf16.gmra.mxu1 %v3133_v6 }
 0x19e   : > { %v2325_v14 = vadd.f32 %v4008_v22, %v2010_v13  ;;  %1882 = vmatmul.bf16.gmra.mxu2 %v3137_v11 }
 0x19f   : > { %2051 = vmatmul.bf16.gmra.mxu3 %v3141_v12 }
 0x1a0   : > { %2389 = vst [vmem:[%s3845_s29 + $0xe8] sm:$0xff] %v2325_v14  ;;  %v2453_v16 = vadd.f32 %v2452_v0, %v2325_v14  ;;  %v2524_v17 = vmul.f32 %v2325_v14, %v2325_v14  ;;  %v3162_v0 = vld [vmem:[%s3744_s6 + $0x330] sm:$0xf0] }
 0x1a1   : > { %v1843_v19 = vpop.f32.mrf.mxu2  ;;  %v1507_v23 = vpop.f32.mrf.mxu0  ;;  %v3165_v11 = vor.u32 %v3501_v63, %v3162_v0 }
 0x1a2   : > { %v2012_v18 = vpop.f32.mrf.mxu3  ;;  %v2587_v20 = vadd.f32 %v2586_v7, %v2524_v17  ;;  %v1844_v21 = vadd.f32 %v1843_v19, %v1675_v15  ;;  %v1676_v24 = vpop.f32.mrf.mxu1  ;;  %v3173_v17 = vor.u32 %v3502_v3, %v3170_v4  ;;  %v3509_v4 = vld [vmem:[%s3744_s6 + $0x364] sm:$0xf] }
 0x1a3   : > { %v1677_v37 = vadd.f32 %v1676_v24, %v1507_v23 }
 0x1a4   : > { %v2013_v25 = vadd.f32 %v2012_v18, %v1844_v21 }
 0x1a6   : > { %v2326_v28 = vadd.f32 %v4008_v22, %v2013_v25 }
 0x1a8   : > { %2390 = vst [vmem:[%s3845_s29 + $0xf0] sm:$0xff] %v2326_v28  ;;  %v2454_v35 = vadd.f32 %v2453_v16, %v2326_v28  ;;  %v2525_v36 = vmul.f32 %v2326_v28, %v2326_v28  ;;  %v3169_v16 = vor.u32 %v3504_v2, %v3168_v1  ;;  %v3192_v1 = vld [vmem:[%s3744_s6 + $0x360] sm:$0xf]  ;;  %v3511_v2 = vld [vmem:[%s3744_s6 + $0x36c] sm:$0xf0] }
 0x1a9   : > { %v1845_v38 = vpop.f32.mrf.mxu2  ;;  %v1510_v44 = vpop.f32.mrf.mxu0 }
 0x1aa   : > { %v2014_v39 = vpop.f32.mrf.mxu3  ;;  %v2588_v42 = vadd.f32 %v2587_v20, %v2525_v36  ;;  %v1846_v43 = vadd.f32 %v1845_v38, %v1677_v37  ;;  %v1679_v45 = vpop.f32.mrf.mxu1  ;;  %v3184_v36 = vld [vmem:[%s3744_s6 + $0x348] sm:$0xf]  ;;  %v3508_v37 = vld [vmem:[%s3744_s6 + $0x354] sm:$0xf0]  ;;  %v3506_v38 = vld [vmem:[%s3744_s6 + $0x34c] sm:$0xf] }
 0x1ab   : > { %v1680_v50 = vadd.f32 %v1679_v45, %v1510_v44  ;;  %v3177_v45 = vor.u32 %v3507_v32, %v3176_v31 }
 0x1ac   : > { %v2015_v48 = vadd.f32 %v2014_v39, %v1846_v43  ;;  %1549 = vmatmul.bf16.gmra.mxu0 %v3145_v40  ;;  %v3186_v39 = vld [vmem:[%s3744_s6 + $0x358] sm:$0xf0] }
 0x1ad   : > { %1718 = vmatmul.bf16.gmra.mxu1 %v3149_v41 }
 0x1ae   : > { %v2327_v49 = vadd.f32 %v4008_v22, %v2015_v48  ;;  %1887 = vmatmul.bf16.gmra.mxu2 %v3153_v46 }
 0x1af   : > { %2056 = vmatmul.bf16.gmra.mxu3 %v3157_v47 }
 0x1b0   : > { %2391 = vst [vmem:[%s3845_s29 + $0xf8] sm:$0xff] %v2327_v49  ;;  %v2455_v51 = vadd.f32 %v2454_v35, %v2327_v49  ;;  %v2526_v52 = vmul.f32 %v2327_v49, %v2327_v49  ;;  %v3178_v35 = vld [vmem:[%s3744_s6 + $0x350] sm:$0xf0] }
 0x1b1   : > { %v1848_v53 = vpop.f32.mrf.mxu2  ;;  %v1512_v57 = vpop.f32.mrf.mxu0  ;;  %v3181_v46 = vor.u32 %v3505_v34, %v3178_v35 }
 0x1b2   : > { %v2017_v54 = vpop.f32.mrf.mxu3  ;;  %v2589_v55 = vadd.f32 %v2588_v42, %v2526_v52  ;;  %v1849_v56 = vadd.f32 %v1848_v53, %v1680_v50  ;;  %v1681_v58 = vpop.f32.mrf.mxu1  ;;  %v3189_v52 = vor.u32 %v3506_v38, %v3186_v39  ;;  %v3513_v39 = vld [vmem:[%s3744_s6 + $0x384] sm:$0xf] }
 0x1b3   : > { %v1682_v7 = vadd.f32 %v1681_v58, %v1512_v57 }
 0x1b4   : > { %v2018_v59 = vadd.f32 %v2017_v54, %v1849_v56 }
 0x1b6   : > { %v2328_v62 = vadd.f32 %v4008_v22, %v2018_v59 }
 0x1b8   : > { %2392 = vst [vmem:[%s3845_s29 + $0x100] sm:$0xff] %v2328_v62  ;;  %v2456_v5 = vadd.f32 %v2455_v51, %v2328_v62  ;;  %v2527_v6 = vmul.f32 %v2328_v62, %v2328_v62  ;;  %v3185_v51 = vor.u32 %v3508_v37, %v3184_v36  ;;  %v3208_v36 = vld [vmem:[%s3744_s6 + $0x380] sm:$0xf]  ;;  %v3515_v37 = vld [vmem:[%s3744_s6 + $0x38c] sm:$0xf0] }
 0x1b9   : > { %v1850_v8 = vpop.f32.mrf.mxu2  ;;  %v1515_v14 = vpop.f32.mrf.mxu0 }
 0x1ba   : > { %v2019_v9 = vpop.f32.mrf.mxu3  ;;  %v2590_v12 = vadd.f32 %v2589_v55, %v2527_v6  ;;  %v1851_v13 = vadd.f32 %v1850_v8, %v1682_v7  ;;  %v1684_v15 = vpop.f32.mrf.mxu1  ;;  %v3200_v6 = vld [vmem:[%s3744_s6 + $0x368] sm:$0xf]  ;;  %v3512_v7 = vld [vmem:[%s3744_s6 + $0x374] sm:$0xf0]  ;;  %v3510_v8 = vld [vmem:[%s3744_s6 + $0x36c] sm:$0xf] }
 0x1bb   : > { %v1685_v20 = vadd.f32 %v1684_v15, %v1515_v14  ;;  %v3193_v15 = vor.u32 %v3511_v2, %v3192_v1 }
 0x1bc   : > { %v2020_v19 = vadd.f32 %v2019_v9, %v1851_v13  ;;  %1554 = vmatmul.bf16.gmra.mxu0 %v3161_v10  ;;  %v3202_v9 = vld [vmem:[%s3744_s6 + $0x378] sm:$0xf0] }
 0x1bd   : > { %1723 = vmatmul.bf16.gmra.mxu1 %v3165_v11 }
 0x1be   : > { %v2329_v18 = vadd.f32 %v4008_v22, %v2020_v19  ;;  %1892 = vmatmul.bf16.gmra.mxu2 %v3169_v16 }
 0x1bf   : > { %2061 = vmatmul.bf16.gmra.mxu3 %v3173_v17 }
 0x1c0   : > { %2393 = vst [vmem:[%s3845_s29 + $0x108] sm:$0xff] %v2329_v18  ;;  %v2457_v21 = vadd.f32 %v2456_v5, %v2329_v18  ;;  %v2528_v23 = vmul.f32 %v2329_v18, %v2329_v18  ;;  %v3194_v5 = vld [vmem:[%s3744_s6 + $0x370] sm:$0xf0] }
 0x1c1   : > { %v1853_v24 = vpop.f32.mrf.mxu2  ;;  %v1517_v28 = vpop.f32.mrf.mxu0  ;;  %v3197_v16 = vor.u32 %v3509_v4, %v3194_v5 }
 0x1c2   : > { %v2022_v25 = vpop.f32.mrf.mxu3  ;;  %v2591_v26 = vadd.f32 %v2590_v12, %v2528_v23  ;;  %v1854_v27 = vadd.f32 %v1853_v24, %v1685_v20  ;;  %v1686_v29 = vpop.f32.mrf.mxu1  ;;  %v3205_v23 = vor.u32 %v3510_v8, %v3202_v9  ;;  %v3517_v9 = vld [vmem:[%s3744_s6 + $0x3a4] sm:$0xf] }
 0x1c3   : > { %v1687_v42 = vadd.f32 %v1686_v29, %v1517_v28 }
 0x1c4   : > { %v2023_v30 = vadd.f32 %v2022_v25, %v1854_v27 }
 0x1c6   : > { %v2330_v33 = vadd.f32 %v4008_v22, %v2023_v30 }
 0x1c8   : > { %2394 = vst [vmem:[%s3845_s29 + $0x110] sm:$0xff] %v2330_v33  ;;  %v2458_v40 = vadd.f32 %v2457_v21, %v2330_v33  ;;  %v2529_v41 = vmul.f32 %v2330_v33, %v2330_v33  ;;  %v3201_v21 = vor.u32 %v3512_v7, %v3200_v6  ;;  %v3224_v6 = vld [vmem:[%s3744_s6 + $0x3a0] sm:$0xf]  ;;  %v3519_v7 = vld [vmem:[%s3744_s6 + $0x3ac] sm:$0xf0] }
 0x1c9   : > { %v1855_v43 = vpop.f32.mrf.mxu2  ;;  %v1520_v49 = vpop.f32.mrf.mxu0 }
 0x1ca   : > { %v2024_v44 = vpop.f32.mrf.mxu3  ;;  %v2592_v47 = vadd.f32 %v2591_v26, %v2529_v41  ;;  %v1856_v48 = vadd.f32 %v1855_v43, %v1687_v42  ;;  %v1689_v50 = vpop.f32.mrf.mxu1  ;;  %v3216_v41 = vld [vmem:[%s3744_s6 + $0x388] sm:$0xf]  ;;  %v3516_v42 = vld [vmem:[%s3744_s6 + $0x394] sm:$0xf0]  ;;  %v3514_v43 = vld [vmem:[%s3744_s6 + $0x38c] sm:$0xf] }
 0x1cb   : > { %v1690_v55 = vadd.f32 %v1689_v50, %v1520_v49  ;;  %v3209_v50 = vor.u32 %v3515_v37, %v3208_v36 }
 0x1cc   : > { %v2025_v53 = vadd.f32 %v2024_v44, %v1856_v48  ;;  %1559 = vmatmul.bf16.gmra.mxu0 %v3177_v45  ;;  %v3218_v44 = vld [vmem:[%s3744_s6 + $0x398] sm:$0xf0] }
 0x1cd   : > { %1728 = vmatmul.bf16.gmra.mxu1 %v3181_v46 }
 0x1ce   : > { %v2331_v54 = vadd.f32 %v4008_v22, %v2025_v53  ;;  %1897 = vmatmul.bf16.gmra.mxu2 %v3185_v51 }
 0x1cf   : > { %2066 = vmatmul.bf16.gmra.mxu3 %v3189_v52 }
 0x1d0   : > { %2395 = vst [vmem:[%s3845_s29 + $0x118] sm:$0xff] %v2331_v54  ;;  %v2459_v56 = vadd.f32 %v2458_v40, %v2331_v54  ;;  %v2530_v57 = vmul.f32 %v2331_v54, %v2331_v54  ;;  %v3210_v40 = vld [vmem:[%s3744_s6 + $0x390] sm:$0xf0] }
 0x1d1   : > { %v1858_v58 = vpop.f32.mrf.mxu2  ;;  %v1522_v62 = vpop.f32.mrf.mxu0  ;;  %v3213_v51 = vor.u32 %v3513_v39, %v3210_v40 }
 0x1d2   : > { %v2027_v59 = vpop.f32.mrf.mxu3  ;;  %v2593_v60 = vadd.f32 %v2592_v47, %v2530_v57  ;;  %v1859_v61 = vadd.f32 %v1858_v58, %v1690_v55  ;;  %v1691_v63 = vpop.f32.mrf.mxu1  ;;  %v3221_v57 = vor.u32 %v3514_v43, %v3218_v44  ;;  %v3521_v44 = vld [vmem:[%s3744_s6 + $0x3c4] sm:$0xf] }
 0x1d3   : > { %v1692_v12 = vadd.f32 %v1691_v63, %v1522_v62 }
 0x1d4   : > { %v2028_v0 = vadd.f32 %v2027_v59, %v1859_v61 }
 0x1d6   : > { %v2332_v3 = vadd.f32 %v4008_v22, %v2028_v0 }
 0x1d8   : > { %2396 = vst [vmem:[%s3845_s29 + $0x120] sm:$0xff] %v2332_v3  ;;  %v2460_v10 = vadd.f32 %v2459_v56, %v2332_v3  ;;  %v2531_v11 = vmul.f32 %v2332_v3, %v2332_v3  ;;  %v3217_v56 = vor.u32 %v3516_v42, %v3216_v41  ;;  %v3240_v41 = vld [vmem:[%s3744_s6 + $0x3c0] sm:$0xf]  ;;  %v3523_v42 = vld [vmem:[%s3744_s6 + $0x3cc] sm:$0xf0] }
 0x1d9   : > { %v1860_v13 = vpop.f32.mrf.mxu2  ;;  %v1525_v18 = vpop.f32.mrf.mxu0 }
 0x1da   : > { %v2029_v14 = vpop.f32.mrf.mxu3  ;;  %v2594_v17 = vadd.f32 %v2593_v60, %v2531_v11  ;;  %v1861_v19 = vadd.f32 %v1860_v13, %v1692_v12  ;;  %v1694_v20 = vpop.f32.mrf.mxu1  ;;  %v3232_v11 = vld [vmem:[%s3744_s6 + $0x3a8] sm:$0xf]  ;;  %v3520_v12 = vld [vmem:[%s3744_s6 + $0x3b4] sm:$0xf0]  ;;  %v3518_v13 = vld [vmem:[%s3744_s6 + $0x3ac] sm:$0xf] }
 0x1db   : > { %v1695_v26 = vadd.f32 %v1694_v20, %v1525_v18  ;;  %v3225_v20 = vor.u32 %v3519_v7, %v3224_v6 }
 0x1dc   : > { %v2030_v24 = vadd.f32 %v2029_v14, %v1861_v19  ;;  %1564 = vmatmul.bf16.gmra.mxu0 %v3193_v15  ;;  %v3234_v14 = vld [vmem:[%s3744_s6 + $0x3b8] sm:$0xf0] }
 0x1dd   : > { %1733 = vmatmul.bf16.gmra.mxu1 %v3197_v16 }
 0x1de   : > { %v2333_v25 = vadd.f32 %v4008_v22, %v2030_v24  ;;  %1902 = vmatmul.bf16.gmra.mxu2 %v3201_v21 }
 0x1df   : > { %2071 = vmatmul.bf16.gmra.mxu3 %v3205_v23 }
 0x1e0   : > { %2397 = vst [vmem:[%s3845_s29 + $0x128] sm:$0xff] %v2333_v25  ;;  %v2461_v27 = vadd.f32 %v2460_v10, %v2333_v25  ;;  %v2532_v28 = vmul.f32 %v2333_v25, %v2333_v25  ;;  %v3226_v10 = vld [vmem:[%s3744_s6 + $0x3b0] sm:$0xf0] }
 0x1e1   : > { %v1863_v29 = vpop.f32.mrf.mxu2  ;;  %v1527_v33 = vpop.f32.mrf.mxu0  ;;  %v3229_v21 = vor.u32 %v3517_v9, %v3226_v10 }
 0x1e2   : > { %v2032_v30 = vpop.f32.mrf.mxu3  ;;  %v2595_v31 = vadd.f32 %v2594_v17, %v2532_v28  ;;  %v1864_v32 = vadd.f32 %v1863_v29, %v1695_v26  ;;  %v1696_v34 = vpop.f32.mrf.mxu1  ;;  %v3237_v28 = vor.u32 %v3518_v13, %v3234_v14  ;;  %v3525_v14 = vld [vmem:[%s3744_s6 + $0x3e4] sm:$0xf] }
 0x1e3   : > { %v1697_v47 = vadd.f32 %v1696_v34, %v1527_v33 }
 0x1e4   : > { %v2033_v35 = vadd.f32 %v2032_v30, %v1864_v32 }
 0x1e6   : > { %v2334_v38 = vadd.f32 %v4008_v22, %v2033_v35 }
 0x1e8   : > { %2398 = vst [vmem:[%s3845_s29 + $0x130] sm:$0xff] %v2334_v38  ;;  %v2462_v45 = vadd.f32 %v2461_v27, %v2334_v38  ;;  %v2533_v46 = vmul.f32 %v2334_v38, %v2334_v38  ;;  %v3233_v27 = vor.u32 %v3520_v12, %v3232_v11  ;;  %v3256_v11 = vld [vmem:[%s3744_s6 + $0x3e0] sm:$0xf]  ;;  %v3527_v12 = vld [vmem:[%s3744_s6 + $0x3ec] sm:$0xf0] }
 0x1e9   : > { %v1865_v48 = vpop.f32.mrf.mxu2  ;;  %v1530_v54 = vpop.f32.mrf.mxu0 }
 0x1ea   : > { %v2034_v49 = vpop.f32.mrf.mxu3  ;;  %v2596_v52 = vadd.f32 %v2595_v31, %v2533_v46  ;;  %v1866_v53 = vadd.f32 %v1865_v48, %v1697_v47  ;;  %v1699_v55 = vpop.f32.mrf.mxu1  ;;  %v3248_v46 = vld [vmem:[%s3744_s6 + $0x3c8] sm:$0xf]  ;;  %v3524_v47 = vld [vmem:[%s3744_s6 + $0x3d4] sm:$0xf0]  ;;  %v3522_v48 = vld [vmem:[%s3744_s6 + $0x3cc] sm:$0xf] }
 0x1eb   : > { %v1700_v60 = vadd.f32 %v1699_v55, %v1530_v54  ;;  %v3241_v55 = vor.u32 %v3523_v42, %v3240_v41 }
 0x1ec   : > { %v2035_v58 = vadd.f32 %v2034_v49, %v1866_v53  ;;  %1569 = vmatmul.bf16.gmra.mxu0 %v3209_v50  ;;  %v3250_v49 = vld [vmem:[%s3744_s6 + $0x3d8] sm:$0xf0] }
 0x1ed   : > { %1738 = vmatmul.bf16.gmra.mxu1 %v3213_v51 }
 0x1ee   : > { %v2335_v59 = vadd.f32 %v4008_v22, %v2035_v58  ;;  %1907 = vmatmul.bf16.gmra.mxu2 %v3217_v56 }
 0x1ef   : > { %2076 = vmatmul.bf16.gmra.mxu3 %v3221_v57 }
 0x1f0   : > { %2399 = vst [vmem:[%s3845_s29 + $0x138] sm:$0xff] %v2335_v59  ;;  %v2463_v61 = vadd.f32 %v2462_v45, %v2335_v59  ;;  %v2534_v62 = vmul.f32 %v2335_v59, %v2335_v59  ;;  %v3242_v45 = vld [vmem:[%s3744_s6 + $0x3d0] sm:$0xf0] }
 0x1f1   : > { %v1868_v63 = vpop.f32.mrf.mxu2  ;;  %v1532_v3 = vpop.f32.mrf.mxu0  ;;  %v3245_v56 = vor.u32 %v3521_v44, %v3242_v45 }
 0x1f2   : > { %v2037_v0 = vpop.f32.mrf.mxu3  ;;  %v2597_v1 = vadd.f32 %v2596_v52, %v2534_v62  ;;  %v1869_v2 = vadd.f32 %v1868_v63, %v1700_v60  ;;  %v1701_v4 = vpop.f32.mrf.mxu1  ;;  %v3253_v62 = vor.u32 %v3522_v48, %v3250_v49 }
 0x1f3   : > { %v1702_v17 = vadd.f32 %v1701_v4, %v1532_v3 }
 0x1f4   : > { %v2038_v5 = vadd.f32 %v2037_v0, %v1869_v2 }
 0x1f6   : > { %v2336_v8 = vadd.f32 %v4008_v22, %v2038_v5 }
 0x1f8   : > { %2400 = vst [vmem:[%s3845_s29 + $0x140] sm:$0xff] %v2336_v8  ;;  %v2464_v15 = vadd.f32 %v2463_v61, %v2336_v8  ;;  %v2535_v16 = vmul.f32 %v2336_v8, %v2336_v8  ;;  %v3249_v61 = vor.u32 %v3524_v47, %v3248_v46 }
 0x1f9   : > { %v1870_v19 = vpop.f32.mrf.mxu2  ;;  %v1535_v25 = vpop.f32.mrf.mxu0 }
 0x1fa   : > { %v2039_v18 = vpop.f32.mrf.mxu3  ;;  %v2598_v23 = vadd.f32 %v2597_v1, %v2535_v16  ;;  %v1871_v24 = vadd.f32 %v1870_v19, %v1702_v17  ;;  %v1704_v26 = vpop.f32.mrf.mxu1  ;;  %v3264_v16 = vld [vmem:[%s3744_s6 + $0x3e8] sm:$0xf]  ;;  %v3528_v17 = vld [vmem:[%s3744_s6 + $0x3f4] sm:$0xf0]  ;;  %v3526_v19 = vld [vmem:[%s3744_s6 + $0x3ec] sm:$0xf] }
 0x1fb   : > { %v1705_v31 = vadd.f32 %v1704_v26, %v1535_v25  ;;  %v3257_v26 = vor.u32 %v3527_v12, %v3256_v11 }
 0x1fc   : > { %v2040_v29 = vadd.f32 %v2039_v18, %v1871_v24  ;;  %1574 = vmatmul.bf16.gmra.mxu0 %v3225_v20  ;;  %v3266_v18 = vld [vmem:[%s3744_s6 + $0x3f8] sm:$0xf0] }
 0x1fd   : > { %1743 = vmatmul.bf16.gmra.mxu1 %v3229_v21 }
 0x1fe   : > { %v2337_v30 = vadd.f32 %v4008_v22, %v2040_v29  ;;  %1912 = vmatmul.bf16.gmra.mxu2 %v3233_v27 }
 0x1ff   : > { %2081 = vmatmul.bf16.gmra.mxu3 %v3237_v28 }
 0x200   : > { %2401 = vst [vmem:[%s3845_s29 + $0x148] sm:$0xff] %v2337_v30  ;;  %v2465_v32 = vadd.f32 %v2464_v15, %v2337_v30  ;;  %v2536_v33 = vmul.f32 %v2337_v30, %v2337_v30  ;;  %v3258_v15 = vld [vmem:[%s3744_s6 + $0x3f0] sm:$0xf0] }
 0x201   : > { %v1873_v34 = vpop.f32.mrf.mxu2  ;;  %v1537_v38 = vpop.f32.mrf.mxu0  ;;  %v3261_v27 = vor.u32 %v3525_v14, %v3258_v15 }
 0x202   : > { %v2042_v35 = vpop.f32.mrf.mxu3  ;;  %v2599_v36 = vadd.f32 %v2598_v23, %v2536_v33  ;;  %v1874_v37 = vadd.f32 %v1873_v34, %v1705_v31  ;;  %v1706_v39 = vpop.f32.mrf.mxu1  ;;  %v3269_v33 = vor.u32 %v3526_v19, %v3266_v18 }
 0x203   : > { %v1707_v52 = vadd.f32 %v1706_v39, %v1537_v38 }
 0x204   : > { %v2043_v40 = vadd.f32 %v2042_v35, %v1874_v37 }
 0x206   : > { %v2338_v43 = vadd.f32 %v4008_v22, %v2043_v40 }
 0x208   : > { %2402 = vst [vmem:[%s3845_s29 + $0x150] sm:$0xff] %v2338_v43  ;;  %v2466_v50 = vadd.f32 %v2465_v32, %v2338_v43  ;;  %v2537_v51 = vmul.f32 %v2338_v43, %v2338_v43  ;;  %v3265_v32 = vor.u32 %v3528_v17, %v3264_v16 }
 0x209   : > { %v1875_v53 = vpop.f32.mrf.mxu2  ;;  %v1540_v59 = vpop.f32.mrf.mxu0 }
 0x20a   : > { %v2044_v54 = vpop.f32.mrf.mxu3  ;;  %v2600_v57 = vadd.f32 %v2599_v36, %v2537_v51  ;;  %v1876_v58 = vadd.f32 %v1875_v53, %v1707_v52  ;;  %v1709_v60 = vpop.f32.mrf.mxu1 }
 0x20b   : > { %v1710_v1 = vadd.f32 %v1709_v60, %v1540_v59 }
 0x20c   : > { %v2045_v63 = vadd.f32 %v2044_v54, %v1876_v58  ;;  %1579 = vmatmul.bf16.gmra.mxu0 %v3241_v55 }
 0x20d   : > { %1748 = vmatmul.bf16.gmra.mxu1 %v3245_v56 }
 0x20e   : > { %v2339_v0 = vadd.f32 %v4008_v22, %v2045_v63  ;;  %1917 = vmatmul.bf16.gmra.mxu2 %v3249_v61 }
 0x20f   : > { %2086 = vmatmul.bf16.gmra.mxu3 %v3253_v62 }
 0x210   : > { %2403 = vst [vmem:[%s3845_s29 + $0x158] sm:$0xff] %v2339_v0  ;;  %v2467_v2 = vadd.f32 %v2466_v50, %v2339_v0  ;;  %v2538_v3 = vmul.f32 %v2339_v0, %v2339_v0 }
 0x211   : > { %v1878_v4 = vpop.f32.mrf.mxu2  ;;  %v1542_v8 = vpop.f32.mrf.mxu0 }
 0x212   : > { %v2047_v5 = vpop.f32.mrf.mxu3  ;;  %v2601_v6 = vadd.f32 %v2600_v57, %v2538_v3  ;;  %v1879_v7 = vadd.f32 %v1878_v4, %v1710_v1  ;;  %v1711_v9 = vpop.f32.mrf.mxu1 }
 0x213   : > { %v1712_v23 = vadd.f32 %v1711_v9, %v1542_v8 }
 0x214   : > { %v2048_v10 = vadd.f32 %v2047_v5, %v1879_v7 }
 0x216   : > { %v2340_v13 = vadd.f32 %v4008_v22, %v2048_v10 }
 0x218   : > { %2404 = vst [vmem:[%s3845_s29 + $0x160] sm:$0xff] %v2340_v13  ;;  %v2468_v20 = vadd.f32 %v2467_v2, %v2340_v13  ;;  %v2539_v21 = vmul.f32 %v2340_v13, %v2340_v13 }
 0x219   : > { %v1880_v24 = vpop.f32.mrf.mxu2  ;;  %v1545_v30 = vpop.f32.mrf.mxu0 }
 0x21a   : > { %v2049_v25 = vpop.f32.mrf.mxu3  ;;  %v2602_v28 = vadd.f32 %v2601_v6, %v2539_v21  ;;  %v1881_v29 = vadd.f32 %v1880_v24, %v1712_v23  ;;  %v1714_v31 = vpop.f32.mrf.mxu1 }
 0x21b   : > { %v1715_v36 = vadd.f32 %v1714_v31, %v1545_v30 }
 0x21c   : > { %v2050_v34 = vadd.f32 %v2049_v25, %v1881_v29  ;;  %1584 = vmatmul.bf16.gmra.mxu0 %v3257_v26 }
 0x21d   : > { %1753 = vmatmul.bf16.gmra.mxu1 %v3261_v27 }
 0x21e   : > { %v2341_v35 = vadd.f32 %v4008_v22, %v2050_v34  ;;  %1922 = vmatmul.bf16.gmra.mxu2 %v3265_v32 }
 0x21f   : > { %2091 = vmatmul.bf16.gmra.mxu3 %v3269_v33 }
 0x220   : > { %2405 = vst [vmem:[%s3845_s29 + $0x168] sm:$0xff] %v2341_v35  ;;  %v2469_v37 = vadd.f32 %v2468_v20, %v2341_v35  ;;  %v2540_v38 = vmul.f32 %v2341_v35, %v2341_v35 }
 0x221   : > { %v1883_v39 = vpop.f32.mrf.mxu2  ;;  %v1547_v43 = vpop.f32.mrf.mxu0 }
 0x222   : > { %v2052_v40 = vpop.f32.mrf.mxu3  ;;  %v2603_v41 = vadd.f32 %v2602_v28, %v2540_v38  ;;  %v1884_v42 = vadd.f32 %v1883_v39, %v1715_v36  ;;  %v1716_v44 = vpop.f32.mrf.mxu1 }
 0x223   : > { %v1717_v49 = vadd.f32 %v1716_v44, %v1547_v43 }
 0x224   : > { %v2053_v45 = vadd.f32 %v2052_v40, %v1884_v42 }
 0x226   : > { %v2342_v46 = vadd.f32 %v4008_v22, %v2053_v45 }
 0x228   : > { %2406 = vst [vmem:[%s3845_s29 + $0x170] sm:$0xff] %v2342_v46  ;;  %v2470_v47 = vadd.f32 %v2469_v37, %v2342_v46  ;;  %v2541_v48 = vmul.f32 %v2342_v46, %v2342_v46 }
 0x229   : > { %v1885_v50 = vpop.f32.mrf.mxu2  ;;  %v1550_v54 = vpop.f32.mrf.mxu0 }
 0x22a   : > { %v2054_v51 = vpop.f32.mrf.mxu3  ;;  %v2604_v52 = vadd.f32 %v2603_v41, %v2541_v48  ;;  %v1886_v53 = vadd.f32 %v1885_v50, %v1717_v49  ;;  %v1719_v55 = vpop.f32.mrf.mxu1 }
 0x22b   : > { %v1720_v58 = vadd.f32 %v1719_v55, %v1550_v54 }
 0x22c   : > { %v2055_v56 = vadd.f32 %v2054_v51, %v1886_v53 }
 0x22e   : > { %v2343_v57 = vadd.f32 %v4008_v22, %v2055_v56 }
 0x230   : > { %2407 = vst [vmem:[%s3845_s29 + $0x178] sm:$0xff] %v2343_v57  ;;  %v2471_v59 = vadd.f32 %v2470_v47, %v2343_v57  ;;  %v2542_v60 = vmul.f32 %v2343_v57, %v2343_v57 }
 0x231   : > { %v1888_v61 = vpop.f32.mrf.mxu2  ;;  %v1552_v1 = vpop.f32.mrf.mxu0 }
 0x232   : > { %v2057_v62 = vpop.f32.mrf.mxu3  ;;  %v2605_v63 = vadd.f32 %v2604_v52, %v2542_v60  ;;  %v1889_v0 = vadd.f32 %v1888_v61, %v1720_v58  ;;  %v1721_v2 = vpop.f32.mrf.mxu1 }
 0x233   : > { %v1722_v7 = vadd.f32 %v1721_v2, %v1552_v1 }
 0x234   : > { %v2058_v3 = vadd.f32 %v2057_v62, %v1889_v0 }
 0x236   : > { %v2344_v4 = vadd.f32 %v4008_v22, %v2058_v3 }
 0x238   : > { %2408 = vst [vmem:[%s3845_s29 + $0x180] sm:$0xff] %v2344_v4  ;;  %v2472_v5 = vadd.f32 %v2471_v59, %v2344_v4  ;;  %v2543_v6 = vmul.f32 %v2344_v4, %v2344_v4 }
 0x239   : > { %v1890_v8 = vpop.f32.mrf.mxu2  ;;  %v1555_v12 = vpop.f32.mrf.mxu0 }
 0x23a   : > { %v2059_v9 = vpop.f32.mrf.mxu3  ;;  %v2606_v10 = vadd.f32 %v2605_v63, %v2543_v6  ;;  %v1891_v11 = vadd.f32 %v1890_v8, %v1722_v7  ;;  %v1724_v13 = vpop.f32.mrf.mxu1 }
 0x23b   : > { %v1725_v16 = vadd.f32 %v1724_v13, %v1555_v12 }
 0x23c   : > { %v2060_v14 = vadd.f32 %v2059_v9, %v1891_v11 }
 0x23e   : > { %v2345_v15 = vadd.f32 %v4008_v22, %v2060_v14 }
 0x240   : > { %2409 = vst [vmem:[%s3845_s29 + $0x188] sm:$0xff] %v2345_v15  ;;  %v2473_v17 = vadd.f32 %v2472_v5, %v2345_v15  ;;  %v2544_v19 = vmul.f32 %v2345_v15, %v2345_v15 }
 0x241   : > { %v1893_v18 = vpop.f32.mrf.mxu2  ;;  %v1557_v24 = vpop.f32.mrf.mxu0 }
 0x242   : > { %v2062_v20 = vpop.f32.mrf.mxu3  ;;  %v2607_v21 = vadd.f32 %v2606_v10, %v2544_v19  ;;  %v1894_v23 = vadd.f32 %v1893_v18, %v1725_v16  ;;  %v1726_v25 = vpop.f32.mrf.mxu1 }
 0x243   : > { %v1727_v30 = vadd.f32 %v1726_v25, %v1557_v24 }
 0x244   : > { %v2063_v26 = vadd.f32 %v2062_v20, %v1894_v23 }
 0x246   : > { %v2346_v27 = vadd.f32 %v4008_v22, %v2063_v26 }
 0x248   : > { %2410 = vst [vmem:[%s3845_s29 + $0x190] sm:$0xff] %v2346_v27  ;;  %v2474_v28 = vadd.f32 %v2473_v17, %v2346_v27  ;;  %v2545_v29 = vmul.f32 %v2346_v27, %v2346_v27 }
 0x249   : > { %v1895_v31 = vpop.f32.mrf.mxu2  ;;  %v1560_v35 = vpop.f32.mrf.mxu0 }
 0x24a   : > { %v2064_v32 = vpop.f32.mrf.mxu3  ;;  %v2608_v33 = vadd.f32 %v2607_v21, %v2545_v29  ;;  %v1896_v34 = vadd.f32 %v1895_v31, %v1727_v30  ;;  %v1729_v36 = vpop.f32.mrf.mxu1  ;;  %v4169_v29 = vld [vmem:[%s4220_s2] ss:$0 sm:$0xff] }
 0x24b   : > { %v1730_v39 = vadd.f32 %v1729_v36, %v1560_v35 }
 0x24c   : > { %v2065_v37 = vadd.f32 %v2064_v32, %v1896_v34 }
 0x24e   : > { %v2347_v38 = vadd.f32 %v4008_v22, %v2065_v37 }
 0x250   : > { %2411 = vst [vmem:[%s3845_s29 + $0x198] sm:$0xff] %v2347_v38  ;;  %v2475_v40 = vadd.f32 %v2474_v28, %v2347_v38  ;;  %v2546_v41 = vmul.f32 %v2347_v38, %v2347_v38 }
 0x251   : > { %v1898_v42 = vpop.f32.mrf.mxu2  ;;  %v1562_v46 = vpop.f32.mrf.mxu0 }
 0x252   : > { %v2067_v43 = vpop.f32.mrf.mxu3  ;;  %v2609_v44 = vadd.f32 %v2608_v33, %v2546_v41  ;;  %v1899_v45 = vadd.f32 %v1898_v42, %v1730_v39  ;;  %v1731_v47 = vpop.f32.mrf.mxu1 }
 0x253   : > { %v1732_v52 = vadd.f32 %v1731_v47, %v1562_v46 }
 0x254   : > { %v2068_v48 = vadd.f32 %v2067_v43, %v1899_v45 }
 0x256   : > { %v2348_v49 = vadd.f32 %v4008_v22, %v2068_v48 }
 0x258   : > { %2412 = vst [vmem:[%s3845_s29 + $0x1a0] sm:$0xff] %v2348_v49  ;;  %v4142_v50 = vadd.f32 %v2475_v40, %v2348_v49  ;;  %v2547_v51 = vmul.f32 %v2348_v49, %v2348_v49  ;;  %v3613_v49 = vmov 0.0  }
 0x259   : > { %v1900_v53 = vpop.f32.mrf.mxu2  ;;  %v1565_v57 = vpop.f32.mrf.mxu0  ;;  %2424 = vst [vmem:[%s4181_s10] sm:$0xff] %v3613_v49 }
 0x25a   : > { %v2069_v54 = vpop.f32.mrf.mxu3  ;;  %v4144_v55 = vadd.f32 %v2609_v44, %v2547_v51  ;;  %v1901_v56 = vadd.f32 %v1900_v53, %v1732_v52  ;;  %v1734_v58 = vpop.f32.mrf.mxu1 }
 0x25b   : > { %v1735_v61 = vadd.f32 %v1734_v58, %v1565_v57 }
 0x25c   : > { %v2070_v59 = vadd.f32 %v2069_v54, %v1901_v56 }
 0x25e   : > { %v4147_v60 = vadd.f32 %v4008_v22, %v2070_v59 }
 0x260   : > { %2413 = vst [vmem:[%s3845_s29 + $0x1a8] sm:$0xff] %v4147_v60  ;;  %v2548_v58 = vmul.f32 %v4147_v60, %v4147_v60 }
 0x261   : > { %v1903_v62 = vpop.f32.mrf.mxu2  ;;  %v1567_v1 = vpop.f32.mrf.mxu0 }
 0x262   : > { %v2072_v63 = vpop.f32.mrf.mxu3  ;;  %v1904_v0 = vadd.f32 %v1903_v62, %v1735_v61  ;;  %v1736_v2 = vpop.f32.mrf.mxu1 }
 0x263   : > { %v1737_v5 = vadd.f32 %v1736_v2, %v1567_v1  ;;  %v2477_v1 = vadd.f32 %v4142_v50, %v4147_v60 }
 0x264   : > { %v2073_v3 = vadd.f32 %v2072_v63, %v1904_v0 }
 0x266   : > { %v4152_v4 = vadd.f32 %v4008_v22, %v2073_v3 }
 0x268   : > { %2414 = vst [vmem:[%s3845_s29 + $0x1b0] sm:$0xff] %v4152_v4  ;;  %v2549_v2 = vmul.f32 %v4152_v4, %v4152_v4 }
 0x269   : > { %v1905_v6 = vpop.f32.mrf.mxu2  ;;  %v1570_v9 = vpop.f32.mrf.mxu0 }
 0x26a   : > { %v2074_v7 = vpop.f32.mrf.mxu3  ;;  %v1906_v8 = vadd.f32 %v1905_v6, %v1737_v5  ;;  %v1739_v10 = vpop.f32.mrf.mxu1  ;;  %v2611_v5 = vadd.f32 %v4144_v55, %v2548_v58  ;;  %v2478_v6 = vadd.f32 %v2477_v1, %v4152_v4 }
 0x26b   : > { %v1740_v13 = vadd.f32 %v1739_v10, %v1570_v9 }
 0x26c   : > { %v2075_v11 = vadd.f32 %v2074_v7, %v1906_v8  ;;  %v2612_v10 = vadd.f32 %v2611_v5, %v2549_v2 }
 0x26e   : > { %v4157_v12 = vadd.f32 %v4008_v22, %v2075_v11 }
 0x270   : > { %2415 = vst [vmem:[%s3845_s29 + $0x1b8] sm:$0xff] %v4157_v12  ;;  %v2550_v7 = vmul.f32 %v4157_v12, %v4157_v12  ;;  %v2479_v11 = vadd.f32 %v2478_v6, %v4157_v12 }
 0x271   : > { %v1908_v14 = vpop.f32.mrf.mxu2  ;;  %v1572_v17 = vpop.f32.mrf.mxu0 }
 0x272   : > { %v2077_v15 = vpop.f32.mrf.mxu3  ;;  %v1909_v16 = vadd.f32 %v1908_v14, %v1740_v13  ;;  %v1741_v19 = vpop.f32.mrf.mxu1  ;;  %v2613_v14 = vadd.f32 %v2612_v10, %v2550_v7 }
 0x273   : > { %v1742_v21 = vadd.f32 %v1741_v19, %v1572_v17 }
 0x274   : > { %v2078_v18 = vadd.f32 %v2077_v15, %v1909_v16 }
 0x276   : > { %v4162_v20 = vadd.f32 %v4008_v22, %v2078_v18 }
 0x278   : > { %2416 = vst [vmem:[%s3845_s29 + $0x1c0] sm:$0xff] %v4162_v20  ;;  %v2551_v50 = vmul.f32 %v4162_v20, %v4162_v20  ;;  %v2480_v55 = vadd.f32 %v2479_v11, %v4162_v20 }
 0x279   : > { %v1910_v23 = vpop.f32.mrf.mxu2  ;;  %v1575_v26 = vpop.f32.mrf.mxu0 }
 0x27a   : > { %v2079_v24 = vpop.f32.mrf.mxu3  ;;  %v1911_v25 = vadd.f32 %v1910_v23, %v1742_v21  ;;  %v1744_v27 = vpop.f32.mrf.mxu1  ;;  %v2614_v16 = vadd.f32 %v2613_v14, %v2551_v50 }
 0x27b   : > { %v1745_v30 = vadd.f32 %v1744_v27, %v1575_v26 }
 0x27c   : > { %v2080_v28 = vadd.f32 %v2079_v24, %v1911_v25 }
 0x27e   : > { %v2353_v22 = vadd.f32 %v4169_v29, %v2080_v28 }
 0x280   : > { %2417 = vst [vmem:[%s3845_s29 + $0x1c8] sm:$0xff] %v2353_v22  ;;  %v2552_v4 = vmul.f32 %v2353_v22, %v2353_v22  ;;  %v2481_v17 = vadd.f32 %v2480_v55, %v2353_v22 }
 0x281   : > { %v1913_v31 = vpop.f32.mrf.mxu2  ;;  %v1577_v34 = vpop.f32.mrf.mxu0 }
 0x282   : > { %v2082_v32 = vpop.f32.mrf.mxu3  ;;  %v1914_v33 = vadd.f32 %v1913_v31, %v1745_v30  ;;  %v1746_v35 = vpop.f32.mrf.mxu1  ;;  %v2615_v24 = vadd.f32 %v2614_v16, %v2552_v4 }
 0x283   : > { %v1747_v38 = vadd.f32 %v1746_v35, %v1577_v34 }
 0x284   : > { %v2083_v36 = vadd.f32 %v2082_v32, %v1914_v33 }
 0x286   : > { %v2354_v37 = vadd.f32 %v4169_v29, %v2083_v36 }
 0x288   : > { %2418 = vst [vmem:[%s3845_s29 + $0x1d0] sm:$0xff] %v2354_v37  ;;  %v2553_v19 = vmul.f32 %v2354_v37, %v2354_v37  ;;  %v2482_v12 = vadd.f32 %v2481_v17, %v2354_v37 }
 0x289   : > { %v1915_v39 = vpop.f32.mrf.mxu2  ;;  %v1580_v42 = vpop.f32.mrf.mxu0 }
 0x28a   : > { %v2084_v40 = vpop.f32.mrf.mxu3  ;;  %v1916_v41 = vadd.f32 %v1915_v39, %v1747_v38  ;;  %v1749_v43 = vpop.f32.mrf.mxu1  ;;  %v2616_v27 = vadd.f32 %v2615_v24, %v2553_v19 }
 0x28b   : > { %v1750_v46 = vadd.f32 %v1749_v43, %v1580_v42 }
 0x28c   : > { %v2085_v44 = vadd.f32 %v2084_v40, %v1916_v41 }
 0x28e   : > { %v2355_v45 = vadd.f32 %v4169_v29, %v2085_v44 }
 0x290   : > { %2419 = vst [vmem:[%s3845_s29 + $0x1d8] sm:$0xff] %v2355_v45  ;;  %v2554_v25 = vmul.f32 %v2355_v45, %v2355_v45  ;;  %v2483_v28 = vadd.f32 %v2482_v12, %v2355_v45 }
 0x291   : > { %v1918_v47 = vpop.f32.mrf.mxu2  ;;  %v1582_v52 = vpop.f32.mrf.mxu0 }
 0x292   : > { %v2087_v48 = vpop.f32.mrf.mxu3  ;;  %v1919_v51 = vadd.f32 %v1918_v47, %v1750_v46  ;;  %v1751_v53 = vpop.f32.mrf.mxu1  ;;  %v2617_v32 = vadd.f32 %v2616_v27, %v2554_v25 }
 0x293   : > { %v1752_v57 = vadd.f32 %v1751_v53, %v1582_v52 }
 0x294   : > { %v2088_v54 = vadd.f32 %v2087_v48, %v1919_v51 }
 0x296   : > { %v2356_v56 = vadd.f32 %v4169_v29, %v2088_v54 }
 0x298   : > { %2420 = vst [vmem:[%s3845_s29 + $0x1e0] sm:$0xff] %v2356_v56  ;;  %v2555_v30 = vmul.f32 %v2356_v56, %v2356_v56  ;;  %v2484_v33 = vadd.f32 %v2483_v28, %v2356_v56 }
 0x299   : > { %v1920_v59 = vpop.f32.mrf.mxu2  ;;  %v1585_v63 = vpop.f32.mrf.mxu0 }
 0x29a   : > { %v2089_v61 = vpop.f32.mrf.mxu3  ;;  %v1921_v62 = vadd.f32 %v1920_v59, %v1752_v57  ;;  %v1754_v0 = vpop.f32.mrf.mxu1  ;;  %v2618_v36 = vadd.f32 %v2617_v32, %v2555_v30 }
 0x29b   : > { %v1755_v9 = vadd.f32 %v1754_v0, %v1585_v63 }
 0x29c   : > { %v2090_v3 = vadd.f32 %v2089_v61, %v1921_v62 }
 0x29e   : > { %v2357_v8 = vadd.f32 %v4169_v29, %v2090_v3 }
 0x2a0   : > { %2421 = vst [vmem:[%s3845_s29 + $0x1e8] sm:$0xff] %v2357_v8  ;;  %v2556_v34 = vmul.f32 %v2357_v8, %v2357_v8  ;;  %v2485_v38 = vadd.f32 %v2484_v33, %v2357_v8 }
 0x2a1   : > { %v1923_v60 = vpop.f32.mrf.mxu2  ;;  %v1587_v21 = vpop.f32.mrf.mxu0 }
 0x2a2   : > { %v2092_v13 = vpop.f32.mrf.mxu3  ;;  %v1924_v15 = vadd.f32 %v1923_v60, %v1755_v9  ;;  %v1756_v23 = vpop.f32.mrf.mxu1  ;;  %v2619_v37 = vadd.f32 %v2618_v36, %v2556_v34 }
 0x2a3   : > { %v1757_v20 = vadd.f32 %v1756_v23, %v1587_v21 }
 0x2a4   : > { %v2093_v18 = vadd.f32 %v2092_v13, %v1924_v15 }
 0x2a6   : > { %v2358_v26 = vadd.f32 %v4169_v29, %v2093_v18 }
 0x2a8   : > { %2422 = vst [vmem:[%s3845_s29 + $0x1f0] sm:$0xff] %v2358_v26  ;;  %v2557_v39 = vmul.f32 %v2358_v26, %v2358_v26  ;;  %v2486_v41 = vadd.f32 %v2485_v38, %v2358_v26 }
 0x2a9   : > { %v1925_v31 = vpop.f32.mrf.mxu2 }
 0x2aa   : > { %v1926_v22 = vadd.f32 %v1925_v31, %v1757_v20  ;;  %v2094_v35 = vpop.f32.mrf.mxu3  ;;  %v2620_v43 = vadd.f32 %v2619_v37, %v2557_v39 }
 0x2ac   : > { %v2095_v40 = vadd.f32 %v2094_v35, %v1926_v22 }
 0x2ae   : > { %v2359_v42 = vadd.f32 %v4169_v29, %v2095_v40 }
 0x2b0   : > { %2423 = vst [vmem:[%s3845_s29 + $0x1f8] sm:$0xff] %v2359_v42  ;;  %v2487_v44 = vadd.f32 %v2486_v41, %v2359_v42  ;;  %v2558_v45 = vmul.f32 %v2359_v42, %v2359_v42 }
 0x2b2   : > { %v2488_v46 = vrot.slane %v2487_v44, 4  ;;  %v2621_v47 = vadd.f32 %v2620_v43, %v2558_v45 }
 0x2b4   : > { %v2489_v48 = vadd.f32 %v2488_v46, %v2487_v44  ;;  %v2622_v49 = vrot.slane %v2621_v47, 4 }
 0x2b6   : > { %v2490_v51 = vrot.slane %v2489_v48, 2  ;;  %v2623_v52 = vadd.f32 %v2622_v49, %v2621_v47 }
 0x2b8   : > { %v2491_v53 = vadd.f32 %v2490_v51, %v2489_v48  ;;  %v2624_v54 = vrot.slane %v2623_v52, 2 }
 0x2ba   : > { %v2492_v56 = vrot.slane %v2491_v53, 1  ;;  %v2625_v57 = vadd.f32 %v2624_v54, %v2623_v52 }
 0x2bc   : > { %v2493_v58 = vadd.f32 %v2492_v56, %v2491_v53  ;;  %v2626_v59 = vrot.slane %v2625_v57, 1 }
 0x2be   : > { %2494 = vst [vmem:[%s4181_s10] sm:$0x1] %v2493_v58  ;;  %v2627_v29 = vadd.f32 %v2626_v59, %v2625_v57 }
 0x2c0   : > { %2628 = vst [vmem:[%s4181_s10 + $0x1] sm:$0x1] %v2627_v29 }
 0x2c1 PF: > { %s15_s17 = sadd.s32 1, %s3611_s17   ;;  %s4223_s15 = smov %s3607_s16 }
 0x2c2   : > { %p12_p6 = scmp.ge.s32.totalorder %s15_s17, 4   ;;  %s4224_s16 = smov %s4226_s18 }
 0x2c4   :  { %14 = sbr.rel (!%p12_p6) target bundleno = 2 (0x2), region = 85 }

// kernel: up_forward.9
= control target key start
LH: loop header
LB: loop body
LE: loop exit
PB: predicated region body
PF: predicated region fallthrough
CT: control target
= control target key end

     0   :  { %s803_s15 = smov 0   ;;  %s1164_s0 = inlined_call_operand.vmem [shape: f32[1024,128], index: 0, kind: input, shape index: {}]   ;;  %s1165_s1 = inlined_call_operand.vmem [shape: f32[1,128], index: 1, kind: input, shape index: {}]   ;;  %s1166_s2 = inlined_call_operand.vmem [shape: f32[1,128], index: 2, kind: input, shape index: {}]   ;;  %s1167_s3 = inlined_call_operand.vmem [shape: f32[1024,128], index: 3, kind: input, shape index: {}]   ;;  %s1168_s4 = inlined_call_operand.vmem [shape: f32[1024,128], index: 4, kind: output, shape index: {}]  }
   0x1 LB: > { %s747_s16 = sadd.s32 4294967295, %s776_s15   ;;  %p751_p0 = scmp.ge.s32.totalorder %s776_s15, 1  ;;  %s776_s15 = sphi %s803_s15, %s14_s15  }
   0x2   : > { %p174_p1 = scmp.lt.s32.totalorder %s776_s15, 3 }
   0x4   : > { %p175_p2 = pnand %p751_p0, %p174_p1 }
   0x5   : > { %s752_s17 = sshll.u32 (!%p175_p2), %s747_s16, 6 }
   0x6   : > { %178 = sbr.rel (%p175_p2) target bundleno = 87 (0x57), region = 36  ;;  %p206_p3 = scmp.lt.s32.totalorder (!%p175_p2), %s752_s17, 127 }
   0xb   : > { %s1170_s17 = smov (!%p206_p3, %s752_s17), 127  ;;  %v814_v0 = vld [vmem:[%s1165_s1] ss:$0 sm:$0xff] }
   0xc   : > { %s816_s20 = sshll.u32 %s1170_s17, 3  ;;  %v827_v1 = vld [vmem:[%s1166_s2] ss:$0 sm:$0xff] }
   0xd   : > { %s822_s23 = scalar_lea.vmem %s1164_s0, %s816_s20  ;;  %s833_s28 = scalar_lea.vmem %s1167_s3, %s816_s20 }
   0xe   : > { %v223_v2 = vld [vmem:[%s822_s23] sm:$0xff]  ;;  %v224_v3 = vld [vmem:[%s822_s23 + $0x8] sm:$0xff]  ;;  %v225_v6 = vld [vmem:[%s822_s23 + $0x10] sm:$0xff]  ;;  %s862_s5 = scalar_lea.vmem %s1168_s4, %s816_s20 }
   0xf   : > { %v291_v4 = vmul.f32 %v814_v0, %v223_v2  ;;  %v292_v5 = vmul.f32 %v814_v0, %v224_v3  ;;  %v293_v7 = vmul.f32 %v814_v0, %v225_v6  ;;  %v226_v8 = vld [vmem:[%s822_s23 + $0x18] sm:$0xff]  ;;  %v227_v9 = vld [vmem:[%s822_s23 + $0x20] sm:$0xff]  ;;  %v228_v15 = vld [vmem:[%s822_s23 + $0x28] sm:$0xff] }
  0x10   : > { %v487_v11 = vld [vmem:[%s833_s28] sm:$0xff]  ;;  %v294_v13 = vmul.f32 %v814_v0, %v226_v8  ;;  %v295_v14 = vmul.f32 %v814_v0, %v227_v9  ;;  %v488_v16 = vld [vmem:[%s833_s28 + $0x8] sm:$0xff]  ;;  %v296_v18 = vmul.f32 %v814_v0, %v228_v15  ;;  %v229_v19 = vld [vmem:[%s822_s23 + $0x30] sm:$0xff] }
  0x11   : > { %v359_v10 = vadd.f32 %v827_v1, %v291_v4  ;;  %v360_v12 = vadd.f32 %v827_v1, %v292_v5  ;;  %v361_v17 = vadd.f32 %v827_v1, %v293_v7  ;;  %v230_v20 = vld [vmem:[%s822_s23 + $0x38] sm:$0xff]  ;;  %v489_v23 = vld [vmem:[%s833_s28 + $0x10] sm:$0xff]  ;;  %v491_v28 = vld [vmem:[%s833_s28 + $0x20] sm:$0xff]  ;;  %v297_v30 = vmul.f32 %v814_v0, %v229_v19 }
  0x12   : > { %v362_v24 = vadd.f32 %v827_v1, %v294_v13  ;;  %v490_v25 = vld [vmem:[%s833_s28 + $0x18] sm:$0xff]  ;;  %v363_v26 = vadd.f32 %v827_v1, %v295_v14  ;;  %v364_v29 = vadd.f32 %v827_v1, %v296_v18  ;;  %v298_v31 = vmul.f32 %v814_v0, %v230_v20  ;;  %v231_v32 = vld [vmem:[%s822_s23 + $0x40] sm:$0xff]  ;;  %v232_v33 = vld [vmem:[%s822_s23 + $0x48] sm:$0xff] }
  0x13   : > { %v423_v21 = vmax.f32 %v359_v10, 0.0  ;;  %v424_v22 = vmax.f32 %v360_v12, 0.0  ;;  %v425_v27 = vmax.f32 %v361_v17, 0.0  ;;  %v492_v38 = vld [vmem:[%s833_s28 + $0x28] sm:$0xff]  ;;  %v233_v39 = vld [vmem:[%s822_s23 + $0x50] sm:$0xff]  ;;  %v365_v42 = vadd.f32 %v827_v1, %v297_v30  ;;  %v234_v44 = vld [vmem:[%s822_s23 + $0x58] sm:$0xff] }
  0x14   : > { %v426_v36 = vmax.f32 %v362_v24, 0.0  ;;  %v427_v37 = vmax.f32 %v363_v26, 0.0  ;;  %v428_v41 = vmax.f32 %v364_v29, 0.0  ;;  %v366_v43 = vadd.f32 %v827_v1, %v298_v31  ;;  %v235_v45 = vld [vmem:[%s822_s23 + $0x60] sm:$0xff]  ;;  %v493_v48 = vld [vmem:[%s833_s28 + $0x30] sm:$0xff]  ;;  %v494_v49 = vld [vmem:[%s833_s28 + $0x38] sm:$0xff] }
  0x15   : > { %v551_v34 = vsub.f32 %v423_v21, %v487_v11  ;;  %v552_v35 = vsub.f32 %v424_v22, %v488_v16  ;;  %v553_v40 = vsub.f32 %v425_v27, %v489_v23  ;;  %v299_v50 = vmul.f32 %v814_v0, %v231_v32  ;;  %v236_v52 = vld [vmem:[%s822_s23 + $0x68] sm:$0xff]  ;;  %v237_v61 = vld [vmem:[%s822_s23 + $0x70] sm:$0xff]  ;;  %v238_v62 = vld [vmem:[%s822_s23 + $0x78] sm:$0xff] }
  0x16   : > { %v554_v46 = vsub.f32 %v426_v36, %v490_v25  ;;  %v555_v47 = vsub.f32 %v427_v37, %v491_v28  ;;  %v300_v51 = vmul.f32 %v814_v0, %v232_v33  ;;  %v556_v53 = vsub.f32 %v428_v41, %v492_v38  ;;  %v495_v3 = vld [vmem:[%s833_s28 + $0x40] sm:$0xff]  ;;  %v496_v4 = vld [vmem:[%s833_s28 + $0x48] sm:$0xff]  ;;  %v497_v9 = vld [vmem:[%s833_s28 + $0x50] sm:$0xff] }
  0x17   : > { %615 = vst [vmem:[%s862_s5] sm:$0xff] %v551_v34  ;;  %v429_v54 = vmax.f32 %v365_v42, 0.0  ;;  %v430_v55 = vmax.f32 %v366_v43, 0.0  ;;  %v301_v56 = vmul.f32 %v814_v0, %v233_v39  ;;  %v367_v57 = vadd.f32 %v827_v1, %v299_v50  ;;  %v498_v11 = vld [vmem:[%s833_s28 + $0x58] sm:$0xff]  ;;  %v499_v14 = vld [vmem:[%s833_s28 + $0x60] sm:$0xff]  ;;  %v240_v19 = vld [vmem:[%s822_s23 + $0x88] sm:$0xff] }
  0x18   : > { %616 = vst [vmem:[%s862_s5 + $0x8] sm:$0xff] %v552_v35  ;;  %v368_v58 = vadd.f32 %v827_v1, %v300_v51  ;;  %v302_v59 = vmul.f32 %v814_v0, %v234_v44  ;;  %v303_v60 = vmul.f32 %v814_v0, %v235_v45  ;;  %v304_v6 = vmul.f32 %v814_v0, %v236_v52  ;;  %v239_v18 = vld [vmem:[%s822_s23 + $0x80] sm:$0xff]  ;;  %v500_v24 = vld [vmem:[%s833_s28 + $0x68] sm:$0xff]  ;;  %v241_v25 = vld [vmem:[%s822_s23 + $0x90] sm:$0xff] }
  0x19   : > { %617 = vst [vmem:[%s862_s5 + $0x10] sm:$0xff] %v553_v40  ;;  %v557_v63 = vsub.f32 %v429_v54, %v493_v48  ;;  %v558_v2 = vsub.f32 %v430_v55, %v494_v49  ;;  %v369_v5 = vadd.f32 %v827_v1, %v301_v56  ;;  %v431_v7 = vmax.f32 %v367_v57, 0.0  ;;  %v242_v30 = vld [vmem:[%s822_s23 + $0x98] sm:$0xff]  ;;  %v243_v31 = vld [vmem:[%s822_s23 + $0xa0] sm:$0xff]  ;;  %v501_v34 = vld [vmem:[%s833_s28 + $0x70] sm:$0xff] }
  0x1a   : > { %618 = vst [vmem:[%s862_s5 + $0x18] sm:$0xff] %v554_v46  ;;  %v432_v8 = vmax.f32 %v368_v58, 0.0  ;;  %v370_v10 = vadd.f32 %v827_v1, %v302_v59  ;;  %v371_v12 = vadd.f32 %v827_v1, %v303_v60  ;;  %v372_v15 = vadd.f32 %v827_v1, %v304_v6  ;;  %v502_v35 = vld [vmem:[%s833_s28 + $0x78] sm:$0xff]  ;;  %v244_v38 = vld [vmem:[%s822_s23 + $0xa8] sm:$0xff]  ;;  %v503_v51 = vld [vmem:[%s833_s28 + $0x80] sm:$0xff] }
  0x1b   : > { %619 = vst [vmem:[%s862_s5 + $0x20] sm:$0xff] %v555_v47  ;;  %v433_v13 = vmax.f32 %v369_v5, 0.0  ;;  %v305_v16 = vmul.f32 %v814_v0, %v237_v61  ;;  %v306_v17 = vmul.f32 %v814_v0, %v238_v62  ;;  %v559_v20 = vsub.f32 %v431_v7, %v495_v3  ;;  %v245_v47 = vld [vmem:[%s822_s23 + $0xb0] sm:$0xff]  ;;  %v246_v48 = vld [vmem:[%s822_s23 + $0xb8] sm:$0xff]  ;;  %v504_v52 = vld [vmem:[%s833_s28 + $0x88] sm:$0xff] }
  0x1c   : > { %620 = vst [vmem:[%s862_s5 + $0x28] sm:$0xff] %v556_v53  ;;  %v560_v21 = vsub.f32 %v432_v8, %v496_v4  ;;  %v434_v22 = vmax.f32 %v370_v10, 0.0  ;;  %v435_v23 = vmax.f32 %v371_v12, 0.0  ;;  %v436_v27 = vmax.f32 %v372_v15, 0.0  ;;  %v505_v57 = vld [vmem:[%s833_s28 + $0x90] sm:$0xff]  ;;  %v506_v59 = vld [vmem:[%s833_s28 + $0x98] sm:$0xff] }
  0x1d   : > { %621 = vst [vmem:[%s862_s5 + $0x30] sm:$0xff] %v557_v63  ;;  %v561_v26 = vsub.f32 %v433_v13, %v497_v9  ;;  %v373_v28 = vadd.f32 %v827_v1, %v305_v16  ;;  %v374_v29 = vadd.f32 %v827_v1, %v306_v17  ;;  %v307_v36 = vmul.f32 %v814_v0, %v239_v18  ;;  %v507_v62 = vld [vmem:[%s833_s28 + $0xa0] sm:$0xff]  ;;  %v248_v5 = vld [vmem:[%s822_s23 + $0xc8] sm:$0xff]  ;;  %v250_v16 = vld [vmem:[%s822_s23 + $0xd8] sm:$0xff] }
  0x1e   : > { %622 = vst [vmem:[%s862_s5 + $0x38] sm:$0xff] %v558_v2  ;;  %v562_v32 = vsub.f32 %v434_v22, %v498_v11  ;;  %v563_v33 = vsub.f32 %v435_v23, %v499_v14  ;;  %v308_v37 = vmul.f32 %v814_v0, %v240_v19  ;;  %v564_v39 = vsub.f32 %v436_v27, %v500_v24  ;;  %v247_v4 = vld [vmem:[%s822_s23 + $0xc0] sm:$0xff]  ;;  %v508_v10 = vld [vmem:[%s833_s28 + $0xa8] sm:$0xff]  ;;  %v249_v11 = vld [vmem:[%s822_s23 + $0xd0] sm:$0xff] }
  0x1f   : > { %623 = vst [vmem:[%s862_s5 + $0x40] sm:$0xff] %v559_v20  ;;  %v437_v40 = vmax.f32 %v373_v28, 0.0  ;;  %v438_v41 = vmax.f32 %v374_v29, 0.0  ;;  %v309_v42 = vmul.f32 %v814_v0, %v241_v25  ;;  %v375_v43 = vadd.f32 %v827_v1, %v307_v36  ;;  %v251_v17 = vld [vmem:[%s822_s23 + $0xe0] sm:$0xff]  ;;  %v509_v20 = vld [vmem:[%s833_s28 + $0xb0] sm:$0xff]  ;;  %v252_v24 = vld [vmem:[%s822_s23 + $0xe8] sm:$0xff] }
  0x20   : > { %624 = vst [vmem:[%s862_s5 + $0x48] sm:$0xff] %v560_v21  ;;  %v376_v44 = vadd.f32 %v827_v1, %v308_v37  ;;  %v310_v45 = vmul.f32 %v814_v0, %v242_v30  ;;  %v311_v46 = vmul.f32 %v814_v0, %v243_v31  ;;  %v312_v54 = vmul.f32 %v814_v0, %v244_v38  ;;  %v510_v21 = vld [vmem:[%s833_s28 + $0xb8] sm:$0xff]  ;;  %v511_v37 = vld [vmem:[%s833_s28 + $0xc0] sm:$0xff]  ;;  %v512_v38 = vld [vmem:[%s833_s28 + $0xc8] sm:$0xff] }
  0x21   : > { %625 = vst [vmem:[%s862_s5 + $0x50] sm:$0xff] %v561_v26  ;;  %v565_v49 = vsub.f32 %v437_v40, %v501_v34  ;;  %v566_v50 = vsub.f32 %v438_v41, %v502_v35  ;;  %v377_v53 = vadd.f32 %v827_v1, %v309_v42  ;;  %v439_v55 = vmax.f32 %v375_v43, 0.0  ;;  %v254_v34 = vld [vmem:[%s822_s23 + $0xf8] sm:$0xff]  ;;  %v513_v43 = vld [vmem:[%s833_s28 + $0xd0] sm:$0xff] }
  0x22   : > { %626 = vst [vmem:[%s862_s5 + $0x58] sm:$0xff] %v562_v32  ;;  %v440_v56 = vmax.f32 %v376_v44, 0.0  ;;  %v378_v58 = vadd.f32 %v827_v1, %v310_v45  ;;  %v379_v60 = vadd.f32 %v827_v1, %v311_v46  ;;  %v380_v63 = vadd.f32 %v827_v1, %v312_v54  ;;  %v514_v45 = vld [vmem:[%s833_s28 + $0xd8] sm:$0xff] }
  0x23   : > { %627 = vst [vmem:[%s862_s5 + $0x60] sm:$0xff] %v563_v33  ;;  %v441_v61 = vmax.f32 %v377_v53, 0.0  ;;  %v313_v2 = vmul.f32 %v814_v0, %v245_v47  ;;  %v314_v3 = vmul.f32 %v814_v0, %v246_v48  ;;  %v567_v6 = vsub.f32 %v439_v55, %v503_v51  ;;  %v253_v33 = vld [vmem:[%s822_s23 + $0xf0] sm:$0xff]  ;;  %v515_v48 = vld [vmem:[%s833_s28 + $0xe0] sm:$0xff]  ;;  %v256_v53 = vld [vmem:[%s822_s23 + $0x108] sm:$0xff] }
  0x24   : > { %628 = vst [vmem:[%s862_s5 + $0x68] sm:$0xff] %v564_v39  ;;  %v568_v7 = vsub.f32 %v440_v56, %v504_v52  ;;  %v442_v8 = vmax.f32 %v378_v58, 0.0  ;;  %v443_v9 = vmax.f32 %v379_v60, 0.0  ;;  %v444_v13 = vmax.f32 %v380_v63, 0.0  ;;  %v255_v52 = vld [vmem:[%s822_s23 + $0x100] sm:$0xff]  ;;  %v516_v58 = vld [vmem:[%s833_s28 + $0xe8] sm:$0xff] }
  0x25   : > { %629 = vst [vmem:[%s862_s5 + $0x70] sm:$0xff] %v565_v49  ;;  %v569_v12 = vsub.f32 %v441_v61, %v505_v57  ;;  %v381_v14 = vadd.f32 %v827_v1, %v313_v2  ;;  %v382_v15 = vadd.f32 %v827_v1, %v314_v3  ;;  %v315_v22 = vmul.f32 %v814_v0, %v247_v4  ;;  %v258_v2 = vld [vmem:[%s822_s23 + $0x118] sm:$0xff]  ;;  %v259_v3 = vld [vmem:[%s822_s23 + $0x120] sm:$0xff] }
  0x26   : > { %630 = vst [vmem:[%s862_s5 + $0x78] sm:$0xff] %v566_v50  ;;  %v570_v18 = vsub.f32 %v442_v8, %v506_v59  ;;  %v571_v19 = vsub.f32 %v443_v9, %v507_v62  ;;  %v316_v23 = vmul.f32 %v814_v0, %v248_v5  ;;  %v572_v25 = vsub.f32 %v444_v13, %v508_v10  ;;  %v257_v59 = vld [vmem:[%s822_s23 + $0x110] sm:$0xff]  ;;  %v260_v10 = vld [vmem:[%s822_s23 + $0x128] sm:$0xff] }
  0x27   : > { %631 = vst [vmem:[%s862_s5 + $0x80] sm:$0xff] %v567_v6  ;;  %v445_v26 = vmax.f32 %v381_v14, 0.0  ;;  %v446_v27 = vmax.f32 %v382_v15, 0.0  ;;  %v317_v28 = vmul.f32 %v814_v0, %v249_v11  ;;  %v383_v29 = vadd.f32 %v827_v1, %v315_v22  ;;  %v517_v6 = vld [vmem:[%s833_s28 + $0xf0] sm:$0xff] }
  0x28   : > { %632 = vst [vmem:[%s862_s5 + $0x88] sm:$0xff] %v568_v7  ;;  %v384_v30 = vadd.f32 %v827_v1, %v316_v23  ;;  %v318_v31 = vmul.f32 %v814_v0, %v250_v16  ;;  %v319_v32 = vmul.f32 %v814_v0, %v251_v17  ;;  %v320_v40 = vmul.f32 %v814_v0, %v252_v24  ;;  %v518_v7 = vld [vmem:[%s833_s28 + $0xf8] sm:$0xff]  ;;  %v519_v23 = vld [vmem:[%s833_s28 + $0x100] sm:$0xff]  ;;  %v520_v24 = vld [vmem:[%s833_s28 + $0x108] sm:$0xff] }
  0x29   : > { %633 = vst [vmem:[%s862_s5 + $0x90] sm:$0xff] %v569_v12  ;;  %v573_v35 = vsub.f32 %v445_v26, %v509_v20  ;;  %v574_v36 = vsub.f32 %v446_v27, %v510_v21  ;;  %v385_v39 = vadd.f32 %v827_v1, %v317_v28  ;;  %v447_v41 = vmax.f32 %v383_v29, 0.0  ;;  %v262_v20 = vld [vmem:[%s822_s23 + $0x138] sm:$0xff]  ;;  %v521_v29 = vld [vmem:[%s833_s28 + $0x110] sm:$0xff] }
  0x2a   : > { %634 = vst [vmem:[%s862_s5 + $0x98] sm:$0xff] %v570_v18  ;;  %v448_v42 = vmax.f32 %v384_v30, 0.0  ;;  %v386_v44 = vadd.f32 %v827_v1, %v318_v31  ;;  %v387_v46 = vadd.f32 %v827_v1, %v319_v32  ;;  %v388_v49 = vadd.f32 %v827_v1, %v320_v40  ;;  %v522_v31 = vld [vmem:[%s833_s28 + $0x118] sm:$0xff] }
  0x2b   : > { %635 = vst [vmem:[%s862_s5 + $0xa0] sm:$0xff] %v571_v19  ;;  %v449_v47 = vmax.f32 %v385_v39, 0.0  ;;  %v321_v50 = vmul.f32 %v814_v0, %v253_v33  ;;  %v322_v51 = vmul.f32 %v814_v0, %v254_v34  ;;  %v575_v54 = vsub.f32 %v447_v41, %v511_v37  ;;  %v261_v19 = vld [vmem:[%s822_s23 + $0x130] sm:$0xff]  ;;  %v523_v34 = vld [vmem:[%s833_s28 + $0x120] sm:$0xff]  ;;  %v264_v39 = vld [vmem:[%s822_s23 + $0x148] sm:$0xff] }
  0x2c   : > { %636 = vst [vmem:[%s862_s5 + $0xa8] sm:$0xff] %v572_v25  ;;  %v576_v55 = vsub.f32 %v448_v42, %v512_v38  ;;  %v450_v56 = vmax.f32 %v386_v44, 0.0  ;;  %v451_v57 = vmax.f32 %v387_v46, 0.0  ;;  %v452_v61 = vmax.f32 %v388_v49, 0.0  ;;  %v263_v38 = vld [vmem:[%s822_s23 + $0x140] sm:$0xff]  ;;  %v524_v44 = vld [vmem:[%s833_s28 + $0x128] sm:$0xff] }
  0x2d   : > { %637 = vst [vmem:[%s862_s5 + $0xb0] sm:$0xff] %v573_v35  ;;  %v577_v60 = vsub.f32 %v449_v47, %v513_v43  ;;  %v389_v62 = vadd.f32 %v827_v1, %v321_v50  ;;  %v390_v63 = vadd.f32 %v827_v1, %v322_v51  ;;  %v323_v8 = vmul.f32 %v814_v0, %v255_v52  ;;  %v266_v50 = vld [vmem:[%s822_s23 + $0x158] sm:$0xff]  ;;  %v267_v51 = vld [vmem:[%s822_s23 + $0x160] sm:$0xff] }
  0x2e   : > { %638 = vst [vmem:[%s862_s5 + $0xb8] sm:$0xff] %v574_v36  ;;  %v578_v4 = vsub.f32 %v450_v56, %v514_v45  ;;  %v579_v5 = vsub.f32 %v451_v57, %v515_v48  ;;  %v324_v9 = vmul.f32 %v814_v0, %v256_v53  ;;  %v580_v11 = vsub.f32 %v452_v61, %v516_v58  ;;  %v265_v45 = vld [vmem:[%s822_s23 + $0x150] sm:$0xff]  ;;  %v268_v58 = vld [vmem:[%s822_s23 + $0x168] sm:$0xff] }
  0x2f   : > { %639 = vst [vmem:[%s862_s5 + $0xc0] sm:$0xff] %v575_v54  ;;  %v453_v12 = vmax.f32 %v389_v62, 0.0  ;;  %v454_v13 = vmax.f32 %v390_v63, 0.0  ;;  %v325_v14 = vmul.f32 %v814_v0, %v257_v59  ;;  %v391_v15 = vadd.f32 %v827_v1, %v323_v8  ;;  %v525_v54 = vld [vmem:[%s833_s28 + $0x130] sm:$0xff] }
  0x30   : > { %640 = vst [vmem:[%s862_s5 + $0xc8] sm:$0xff] %v576_v55  ;;  %v392_v16 = vadd.f32 %v827_v1, %v324_v9  ;;  %v326_v17 = vmul.f32 %v814_v0, %v258_v2  ;;  %v327_v18 = vmul.f32 %v814_v0, %v259_v3  ;;  %v328_v26 = vmul.f32 %v814_v0, %v260_v10  ;;  %v526_v55 = vld [vmem:[%s833_s28 + $0x138] sm:$0xff]  ;;  %v527_v9 = vld [vmem:[%s833_s28 + $0x140] sm:$0xff]  ;;  %v528_v10 = vld [vmem:[%s833_s28 + $0x148] sm:$0xff] }
  0x31   : > { %641 = vst [vmem:[%s862_s5 + $0xd0] sm:$0xff] %v577_v60  ;;  %v581_v21 = vsub.f32 %v453_v12, %v517_v6  ;;  %v582_v22 = vsub.f32 %v454_v13, %v518_v7  ;;  %v393_v25 = vadd.f32 %v827_v1, %v325_v14  ;;  %v455_v27 = vmax.f32 %v391_v15, 0.0  ;;  %v270_v6 = vld [vmem:[%s822_s23 + $0x178] sm:$0xff]  ;;  %v529_v15 = vld [vmem:[%s833_s28 + $0x150] sm:$0xff] }
  0x32   : > { %642 = vst [vmem:[%s862_s5 + $0xd8] sm:$0xff] %v578_v4  ;;  %v456_v28 = vmax.f32 %v392_v16, 0.0  ;;  %v394_v30 = vadd.f32 %v827_v1, %v326_v17  ;;  %v395_v32 = vadd.f32 %v827_v1, %v327_v18  ;;  %v396_v35 = vadd.f32 %v827_v1, %v328_v26  ;;  %v530_v17 = vld [vmem:[%s833_s28 + $0x158] sm:$0xff] }
  0x33   : > { %643 = vst [vmem:[%s862_s5 + $0xe0] sm:$0xff] %v579_v5  ;;  %v457_v33 = vmax.f32 %v393_v25, 0.0  ;;  %v329_v36 = vmul.f32 %v814_v0, %v261_v19  ;;  %v330_v37 = vmul.f32 %v814_v0, %v262_v20  ;;  %v583_v40 = vsub.f32 %v455_v27, %v519_v23  ;;  %v269_v5 = vld [vmem:[%s822_s23 + $0x170] sm:$0xff]  ;;  %v531_v20 = vld [vmem:[%s833_s28 + $0x160] sm:$0xff]  ;;  %v272_v25 = vld [vmem:[%s822_s23 + $0x188] sm:$0xff] }
  0x34   : > { %644 = vst [vmem:[%s862_s5 + $0xe8] sm:$0xff] %v580_v11  ;;  %v584_v41 = vsub.f32 %v456_v28, %v520_v24  ;;  %v458_v42 = vmax.f32 %v394_v30, 0.0  ;;  %v459_v43 = vmax.f32 %v395_v32, 0.0  ;;  %v460_v47 = vmax.f32 %v396_v35, 0.0  ;;  %v271_v24 = vld [vmem:[%s822_s23 + $0x180] sm:$0xff]  ;;  %v532_v30 = vld [vmem:[%s833_s28 + $0x168] sm:$0xff] }
  0x35   : > { %645 = vst [vmem:[%s862_s5 + $0xf0] sm:$0xff] %v581_v21  ;;  %v585_v46 = vsub.f32 %v457_v33, %v521_v29  ;;  %v397_v48 = vadd.f32 %v827_v1, %v329_v36  ;;  %v398_v49 = vadd.f32 %v827_v1, %v330_v37  ;;  %v331_v56 = vmul.f32 %v814_v0, %v263_v38  ;;  %v274_v36 = vld [vmem:[%s822_s23 + $0x198] sm:$0xff]  ;;  %v275_v37 = vld [vmem:[%s822_s23 + $0x1a0] sm:$0xff] }
  0x36   : > { %646 = vst [vmem:[%s862_s5 + $0xf8] sm:$0xff] %v582_v22  ;;  %v586_v52 = vsub.f32 %v458_v42, %v522_v31  ;;  %v587_v53 = vsub.f32 %v459_v43, %v523_v34  ;;  %v332_v57 = vmul.f32 %v814_v0, %v264_v39  ;;  %v588_v59 = vsub.f32 %v460_v47, %v524_v44  ;;  %v273_v31 = vld [vmem:[%s822_s23 + $0x190] sm:$0xff]  ;;  %v276_v44 = vld [vmem:[%s822_s23 + $0x1a8] sm:$0xff] }
  0x37   : > { %647 = vst [vmem:[%s862_s5 + $0x100] sm:$0xff] %v583_v40  ;;  %v461_v60 = vmax.f32 %v397_v48, 0.0  ;;  %v462_v61 = vmax.f32 %v398_v49, 0.0  ;;  %v333_v62 = vmul.f32 %v814_v0, %v265_v45  ;;  %v399_v63 = vadd.f32 %v827_v1, %v331_v56  ;;  %v533_v40 = vld [vmem:[%s833_s28 + $0x170] sm:$0xff] }
  0x38   : > { %648 = vst [vmem:[%s862_s5 + $0x108] sm:$0xff] %v584_v41  ;;  %v400_v2 = vadd.f32 %v827_v1, %v332_v57  ;;  %v334_v3 = vmul.f32 %v814_v0, %v266_v50  ;;  %v335_v4 = vmul.f32 %v814_v0, %v267_v51  ;;  %v336_v12 = vmul.f32 %v814_v0, %v268_v58  ;;  %v534_v41 = vld [vmem:[%s833_s28 + $0x178] sm:$0xff]  ;;  %v535_v57 = vld [vmem:[%s833_s28 + $0x180] sm:$0xff]  ;;  %v536_v58 = vld [vmem:[%s833_s28 + $0x188] sm:$0xff] }
  0x39   : > { %649 = vst [vmem:[%s862_s5 + $0x110] sm:$0xff] %v585_v46  ;;  %v589_v7 = vsub.f32 %v461_v60, %v525_v54  ;;  %v590_v8 = vsub.f32 %v462_v61, %v526_v55  ;;  %v401_v11 = vadd.f32 %v827_v1, %v333_v62  ;;  %v463_v13 = vmax.f32 %v399_v63, 0.0  ;;  %v278_v54 = vld [vmem:[%s822_s23 + $0x1b8] sm:$0xff]  ;;  %v537_v63 = vld [vmem:[%s833_s28 + $0x190] sm:$0xff] }
  0x3a   : > { %650 = vst [vmem:[%s862_s5 + $0x118] sm:$0xff] %v586_v52  ;;  %v464_v14 = vmax.f32 %v400_v2, 0.0  ;;  %v402_v16 = vadd.f32 %v827_v1, %v334_v3  ;;  %v403_v18 = vadd.f32 %v827_v1, %v335_v4  ;;  %v404_v21 = vadd.f32 %v827_v1, %v336_v12  ;;  %v538_v3 = vld [vmem:[%s833_s28 + $0x198] sm:$0xff] }
  0x3b   : > { %651 = vst [vmem:[%s862_s5 + $0x120] sm:$0xff] %v587_v53  ;;  %v465_v19 = vmax.f32 %v401_v11, 0.0  ;;  %v337_v22 = vmul.f32 %v814_v0, %v269_v5  ;;  %v338_v23 = vmul.f32 %v814_v0, %v270_v6  ;;  %v591_v26 = vsub.f32 %v463_v13, %v527_v9  ;;  %v277_v53 = vld [vmem:[%s822_s23 + $0x1b0] sm:$0xff]  ;;  %v539_v6 = vld [vmem:[%s833_s28 + $0x1a0] sm:$0xff]  ;;  %v280_v11 = vld [vmem:[%s822_s23 + $0x1c8] sm:$0xff] }
  0x3c   : > { %652 = vst [vmem:[%s862_s5 + $0x128] sm:$0xff] %v588_v59  ;;  %v592_v27 = vsub.f32 %v464_v14, %v528_v10  ;;  %v466_v28 = vmax.f32 %v402_v16, 0.0  ;;  %v467_v29 = vmax.f32 %v403_v18, 0.0  ;;  %v468_v33 = vmax.f32 %v404_v21, 0.0  ;;  %v279_v10 = vld [vmem:[%s822_s23 + $0x1c0] sm:$0xff]  ;;  %v540_v16 = vld [vmem:[%s833_s28 + $0x1a8] sm:$0xff] }
  0x3d   : > { %653 = vst [vmem:[%s862_s5 + $0x130] sm:$0xff] %v589_v7  ;;  %v593_v32 = vsub.f32 %v465_v19, %v529_v15  ;;  %v405_v34 = vadd.f32 %v827_v1, %v337_v22  ;;  %v406_v35 = vadd.f32 %v827_v1, %v338_v23  ;;  %v339_v42 = vmul.f32 %v814_v0, %v271_v24  ;;  %v282_v22 = vld [vmem:[%s822_s23 + $0x1d8] sm:$0xff]  ;;  %v283_v23 = vld [vmem:[%s822_s23 + $0x1e0] sm:$0xff] }
  0x3e   : > { %654 = vst [vmem:[%s862_s5 + $0x138] sm:$0xff] %v590_v8  ;;  %v594_v38 = vsub.f32 %v466_v28, %v530_v17  ;;  %v595_v39 = vsub.f32 %v467_v29, %v531_v20  ;;  %v340_v43 = vmul.f32 %v814_v0, %v272_v25  ;;  %v596_v45 = vsub.f32 %v468_v33, %v532_v30  ;;  %v281_v17 = vld [vmem:[%s822_s23 + $0x1d0] sm:$0xff]  ;;  %v284_v30 = vld [vmem:[%s822_s23 + $0x1e8] sm:$0xff] }
  0x3f   : > { %655 = vst [vmem:[%s862_s5 + $0x140] sm:$0xff] %v591_v26  ;;  %v469_v46 = vmax.f32 %v405_v34, 0.0  ;;  %v470_v47 = vmax.f32 %v406_v35, 0.0  ;;  %v341_v48 = vmul.f32 %v814_v0, %v273_v31  ;;  %v407_v49 = vadd.f32 %v827_v1, %v339_v42  ;;  %v541_v26 = vld [vmem:[%s833_s28 + $0x1b0] sm:$0xff] }
  0x40   : > { %656 = vst [vmem:[%s862_s5 + $0x148] sm:$0xff] %v592_v27  ;;  %v408_v50 = vadd.f32 %v827_v1, %v340_v43  ;;  %v342_v51 = vmul.f32 %v814_v0, %v274_v36  ;;  %v343_v52 = vmul.f32 %v814_v0, %v275_v37  ;;  %v344_v60 = vmul.f32 %v814_v0, %v276_v44  ;;  %v542_v27 = vld [vmem:[%s833_s28 + $0x1b8] sm:$0xff]  ;;  %v543_v43 = vld [vmem:[%s833_s28 + $0x1c0] sm:$0xff]  ;;  %v544_v44 = vld [vmem:[%s833_s28 + $0x1c8] sm:$0xff] }
  0x41   : > { %657 = vst [vmem:[%s862_s5 + $0x150] sm:$0xff] %v593_v32  ;;  %v597_v55 = vsub.f32 %v469_v46, %v533_v40  ;;  %v598_v56 = vsub.f32 %v470_v47, %v534_v41  ;;  %v409_v59 = vadd.f32 %v827_v1, %v341_v48  ;;  %v471_v61 = vmax.f32 %v407_v49, 0.0  ;;  %v286_v40 = vld [vmem:[%s822_s23 + $0x1f8] sm:$0xff]  ;;  %v545_v49 = vld [vmem:[%s833_s28 + $0x1d0] sm:$0xff] }
  0x42   : > { %658 = vst [vmem:[%s862_s5 + $0x158] sm:$0xff] %v594_v38  ;;  %v472_v62 = vmax.f32 %v408_v50, 0.0  ;;  %v410_v2 = vadd.f32 %v827_v1, %v342_v51  ;;  %v411_v4 = vadd.f32 %v827_v1, %v343_v52  ;;  %v412_v7 = vadd.f32 %v827_v1, %v344_v60 }
  0x43   : > { %659 = vst [vmem:[%s862_s5 + $0x160] sm:$0xff] %v595_v39  ;;  %v473_v5 = vmax.f32 %v409_v59, 0.0  ;;  %v345_v8 = vmul.f32 %v814_v0, %v277_v53  ;;  %v346_v9 = vmul.f32 %v814_v0, %v278_v54  ;;  %v599_v12 = vsub.f32 %v471_v61, %v535_v57  ;;  %v285_v39 = vld [vmem:[%s822_s23 + $0x1f0] sm:$0xff]  ;;  %v546_v53 = vld [vmem:[%s833_s28 + $0x1d8] sm:$0xff]  ;;  %v547_v54 = vld [vmem:[%s833_s28 + $0x1e0] sm:$0xff] }
  0x44   : > { %660 = vst [vmem:[%s862_s5 + $0x168] sm:$0xff] %v596_v45  ;;  %v600_v13 = vsub.f32 %v472_v62, %v536_v58  ;;  %v474_v14 = vmax.f32 %v410_v2, 0.0  ;;  %v475_v15 = vmax.f32 %v411_v4, 0.0  ;;  %v476_v19 = vmax.f32 %v412_v7, 0.0  ;;  %v548_v62 = vld [vmem:[%s833_s28 + $0x1e8] sm:$0xff]  ;;  %v550_v7 = vld [vmem:[%s833_s28 + $0x1f8] sm:$0xff] }
  0x45   : > { %661 = vst [vmem:[%s862_s5 + $0x170] sm:$0xff] %v597_v55  ;;  %v601_v18 = vsub.f32 %v473_v5, %v537_v63  ;;  %v413_v20 = vadd.f32 %v827_v1, %v345_v8  ;;  %v414_v21 = vadd.f32 %v827_v1, %v346_v9  ;;  %v347_v28 = vmul.f32 %v814_v0, %v279_v10 }
  0x46   : > { %662 = vst [vmem:[%s862_s5 + $0x178] sm:$0xff] %v598_v56  ;;  %v602_v24 = vsub.f32 %v474_v14, %v538_v3  ;;  %v603_v25 = vsub.f32 %v475_v15, %v539_v6  ;;  %v348_v29 = vmul.f32 %v814_v0, %v280_v11  ;;  %v604_v31 = vsub.f32 %v476_v19, %v540_v16  ;;  %v549_v6 = vld [vmem:[%s833_s28 + $0x1f0] sm:$0xff] }
  0x47   : > { %663 = vst [vmem:[%s862_s5 + $0x180] sm:$0xff] %v599_v12  ;;  %v477_v32 = vmax.f32 %v413_v20, 0.0  ;;  %v478_v33 = vmax.f32 %v414_v21, 0.0  ;;  %v349_v34 = vmul.f32 %v814_v0, %v281_v17  ;;  %v415_v35 = vadd.f32 %v827_v1, %v347_v28 }
  0x48   : > { %664 = vst [vmem:[%s862_s5 + $0x188] sm:$0xff] %v600_v13  ;;  %v416_v36 = vadd.f32 %v827_v1, %v348_v29  ;;  %v350_v37 = vmul.f32 %v814_v0, %v282_v22  ;;  %v351_v38 = vmul.f32 %v814_v0, %v283_v23  ;;  %v352_v46 = vmul.f32 %v814_v0, %v284_v30 }
  0x49   : > { %665 = vst [vmem:[%s862_s5 + $0x190] sm:$0xff] %v601_v18  ;;  %v605_v41 = vsub.f32 %v477_v32, %v541_v26  ;;  %v606_v42 = vsub.f32 %v478_v33, %v542_v27  ;;  %v417_v45 = vadd.f32 %v827_v1, %v349_v34  ;;  %v479_v47 = vmax.f32 %v415_v35, 0.0 }
  0x4a   : > { %666 = vst [vmem:[%s862_s5 + $0x198] sm:$0xff] %v602_v24  ;;  %v480_v48 = vmax.f32 %v416_v36, 0.0  ;;  %v418_v50 = vadd.f32 %v827_v1, %v350_v37  ;;  %v419_v51 = vadd.f32 %v827_v1, %v351_v38  ;;  %v420_v55 = vadd.f32 %v827_v1, %v352_v46 }
  0x4b   : > { %667 = vst [vmem:[%s862_s5 + $0x1a0] sm:$0xff] %v603_v25  ;;  %v481_v52 = vmax.f32 %v417_v45, 0.0  ;;  %v353_v56 = vmul.f32 %v814_v0, %v285_v39  ;;  %v354_v57 = vmul.f32 %v814_v0, %v286_v40  ;;  %v607_v58 = vsub.f32 %v479_v47, %v543_v43 }
  0x4c   : > { %668 = vst [vmem:[%s862_s5 + $0x1a8] sm:$0xff] %v604_v31  ;;  %v608_v59 = vsub.f32 %v480_v48, %v544_v44  ;;  %v482_v60 = vmax.f32 %v418_v50, 0.0  ;;  %v483_v61 = vmax.f32 %v419_v51, 0.0  ;;  %v484_v2 = vmax.f32 %v420_v55, 0.0 }
  0x4d   : > { %669 = vst [vmem:[%s862_s5 + $0x1b0] sm:$0xff] %v605_v41  ;;  %v609_v63 = vsub.f32 %v481_v52, %v545_v49  ;;  %v421_v3 = vadd.f32 %v827_v1, %v353_v56  ;;  %v422_v4 = vadd.f32 %v827_v1, %v354_v57 }
  0x4e   : > { %670 = vst [vmem:[%s862_s5 + $0x1b8] sm:$0xff] %v606_v42  ;;  %v610_v0 = vsub.f32 %v482_v60, %v546_v53  ;;  %v611_v5 = vsub.f32 %v483_v61, %v547_v54  ;;  %v612_v8 = vsub.f32 %v484_v2, %v548_v62 }
  0x4f   : > { %671 = vst [vmem:[%s862_s5 + $0x1c0] sm:$0xff] %v607_v58  ;;  %v485_v9 = vmax.f32 %v421_v3, 0.0  ;;  %v486_v10 = vmax.f32 %v422_v4, 0.0 }
  0x50   : > { %672 = vst [vmem:[%s862_s5 + $0x1c8] sm:$0xff] %v608_v59 }
  0x51   : > { %673 = vst [vmem:[%s862_s5 + $0x1d0] sm:$0xff] %v609_v63  ;;  %v613_v11 = vsub.f32 %v485_v9, %v549_v6  ;;  %v614_v12 = vsub.f32 %v486_v10, %v550_v7 }
  0x52   : > { %674 = vst [vmem:[%s862_s5 + $0x1d8] sm:$0xff] %v610_v0 }
  0x53   : > { %675 = vst [vmem:[%s862_s5 + $0x1e0] sm:$0xff] %v611_v5 }
  0x54   : > { %676 = vst [vmem:[%s862_s5 + $0x1e8] sm:$0xff] %v612_v8 }
  0x55   : > { %677 = vst [vmem:[%s862_s5 + $0x1f0] sm:$0xff] %v613_v11 }
  0x56   : > { %678 = vst [vmem:[%s862_s5 + $0x1f8] sm:$0xff] %v614_v12 }
  0x57 PF: > { %s14_s15 = sadd.s32 1, %s776_s15  }
  0x58   : > { %p11_p4 = scmp.ge.s32.totalorder %s14_s15, 4  }
  0x5a   :  { %13 = sbr.rel (!%p11_p4) target bundleno = 1 (0x1), region = 69 }

</bundles_post_ra>
